<compile_context>
chip_gen: v5e
topology: v5e:2x2
jax: 0.10.0
libtpu: 0.0.40
codegen_flags: <defaults>
</compile_context>

<pallas_src>
import jax
import jax.numpy as jnp
from jax.experimental import pallas as pl
from jax.experimental.pallas import tpu as pltpu

C_IN, H, W = 4, 16, 16        # small synthetic image shape
C_MID = 8                     # backbone conv channels
FEAT = 1000                   # backbone output dim (resnet18 / nn.Linear(1000, ...))
FEAT_PAD = 1024               # lane-dense padding of FEAT (multiple of 128)
H1, H2 = 512, 64              # sim head hidden dims
OUT_PAD = 128                 # lane-dense padding of the (B, 1) output
EPS = 1e-5                    # BatchNorm1d eps
HIGH = jax.lax.Precision.HIGHEST


# ----------------------------- glue (plain JAX) -----------------------------

def im2col_3x3(base_im, cmp_im):
    """Both images -> patches (2B*H*W, 9*C) for a 3x3 / stride 1 / pad 1 conv.

    One NCHW->NHWC transpose, then 9 shifted slices concatenated on the lane
    axis so XLA lowers it as (nearly) a single copy.
    """
    x = jnp.concatenate([base_im, cmp_im], axis=0)        # (2B, C, H, W)
    n = x.shape[0]
    x = jnp.transpose(x, (0, 2, 3, 1))                    # (2B, H, W, C)
    xp = jnp.pad(x, ((0, 0), (1, 1), (1, 1), (0, 0)))
    cols = [xp[:, kh:kh + H, kw:kw + W, :]
            for kh in range(3) for kw in range(3)]
    p = jnp.concatenate(cols, axis=-1)                    # (2B, H, W, 9*C)
    return p.reshape(n * H * W, 9 * C_IN)


def build_sp(batch, hw):
    """Fused (global-avg-pool + base-minus-cmp select) matrix, shape (B, 2B*HW).

    Row i: +1/HW over rows of image i, -1/HW over rows of image B+i.
    Each row sums to zero, so the backbone Linear bias cancels downstream.
    """
    n_rows = 2 * batch * hw
    rows = jnp.arange(batch)[:, None]
    img = (jnp.arange(n_rows)[None, :] // hw)
    sp = (jnp.where(img == rows, 1.0, 0.0)
          - jnp.where(img == rows + batch, 1.0, 0.0)) / float(hw)
    return sp.astype(jnp.float32)


# ----------------------------- fused Pallas kernel ---------------------------

def fused_kernel(patch_ref, sp_ref, wc_ref, wf_ref, bias_ref,
                 w1_hbm, w2_hbm, w3_ref, out_ref,
                 w1_vmem, w2_vmem, dma_sem):
    # Kick off the big sim-head weight DMAs first so they overlap the backbone.
    cp1 = pltpu.make_async_copy(w1_hbm, w1_vmem, dma_sem.at[0])
    cp2 = pltpu.make_async_copy(w2_hbm, w2_vmem, dma_sem.at[1])
    cp1.start()
    cp2.start()

    # Unpack the packed bias slab (one DMA descriptor instead of four).
    bc = bias_ref[0:1, :C_MID]        # conv bias               (1, C_MID)
    b1 = bias_ref[1:2, :H1]           # Linear1 + BN1 fused     (1, H1)
    b2 = bias_ref[2:3, :H2]           # Linear2 + BN2 fused     (1, H2)
    b3 = bias_ref[3:4, :OUT_PAD]      # Linear3 (padded lanes)  (1, OUT_PAD)

    # ---- backbone (shared weights), all 2B images in one matmul ------------
    conv = jnp.dot(patch_ref[...], wc_ref[...],
                   preferred_element_type=jnp.float32, precision=HIGH) + bc
    conv = jnp.maximum(conv, 0.0)                          # (2B*HW, C_MID)

    # Pool + base-minus-cmp selection in ONE MXU matmul (bf bias cancels).
    pooled_diff = jnp.dot(sp_ref[...], conv,
                          preferred_element_type=jnp.float32,
                          precision=HIGH)                  # (B, C_MID)
    d = jnp.abs(jnp.dot(pooled_diff, wf_ref[...],
                        preferred_element_type=jnp.float32,
                        precision=HIGH))                   # (B, FEAT_PAD), pad lanes = 0

    # ---- sim head (Dropout = identity; BN folded into w1/w2 + biases) ------
    cp1.wait()
    h = jnp.dot(d.astype(jnp.bfloat16), w1_vmem[...],
                preferred_element_type=jnp.float32) + b1
    h = jnp.maximum(h, 0.0)                                # (B, H1)

    cp2.wait()
    h = jnp.dot(h.astype(jnp.bfloat16), w2_vmem[...],
                preferred_element_type=jnp.float32) + b2
    h = jax.nn.sigmoid(h)                                  # (B, H2)

    o = jnp.dot(h, w3_ref[...],
                preferred_element_type=jnp.float32, precision=HIGH) + b3
    out_ref[...] = jax.nn.sigmoid(o)                       # (B, OUT_PAD)


# ----------------------------- wrapper ---------------------------------------

def siamese_forward(base_im, cmp_im, params):
    B = base_im.shape[0]
    patches = im2col_3x3(base_im, cmp_im)                  # (2B*HW, 9*C)
    sp = build_sp(B, H * W)                                # (B, 2B*HW)

    vmem = pl.BlockSpec(memory_space=pltpu.MemorySpace.VMEM)
    hbm = pl.BlockSpec(memory_space=pl.ANY)

    out = pl.pallas_call(
        fused_kernel,
        out_shape=jax.ShapeDtypeStruct((B, OUT_PAD), jnp.float32),
        in_specs=[vmem,    # patches
                  vmem,    # sp
                  vmem,    # wc
                  vmem,    # wf
                  vmem,    # bias slab
                  hbm,     # w1 (manual async copy)
                  hbm,     # w2 (manual async copy)
                  vmem],   # w3
        out_specs=vmem,
        scratch_shapes=[pltpu.VMEM((FEAT_PAD, H1), jnp.bfloat16),
                        pltpu.VMEM((H1, H2), jnp.bfloat16),
                        pltpu.SemaphoreType.DMA((2,))],
        compiler_params=pltpu.CompilerParams(vmem_limit_bytes=32 * 1024 * 1024),
        cost_estimate=pl.CostEstimate(flops=3_000_000,
                                      transcendentals=400,
                                      bytes_accessed=1_300_000),
    )(patches, sp, params["wc"], params["wf"], params["bias"],
      params["w1"], params["w2"], params["w3"])
    return out[:, :1]                                      # (B, 1)


# ----------------------------- parameter init --------------------------------

def init_params(key):
    ks = jax.random.split(key, 10)

    def lin(k, fan_in, shape):
        return jax.random.normal(k, shape, jnp.float32) / jnp.sqrt(jnp.float32(fan_in))

    p = {}
    # synthetic backbone: conv 3x3 (C_IN -> C_MID), Linear (C_MID -> FEAT)
    p["wc"] = lin(ks[0], C_IN * 9, (C_IN * 9, C_MID))
    bc = lin(ks[1], C_IN * 9, (1, C_MID))
    wf = lin(ks[2], C_MID, (C_MID, FEAT))
    # Backbone Linear bias bf cancels in |feat1 - feat2|  ->  not materialized.
    p["wf"] = jnp.pad(wf, ((0, 0), (0, FEAT_PAD - FEAT)))   # zero-padded lanes

    # sim head: Linear(1000,512)+BN(512)+ReLU ; Linear(512,64)+BN(64)+Sigmoid ;
    #           Linear(64,1)+Sigmoid.  Eval-mode BN folded into the Linears.
    w1 = lin(ks[4], FEAT, (FEAT, H1))
    b1 = lin(ks[5], FEAT, (1, H1))
    g1 = jnp.ones((1, H1), jnp.float32); be1 = jnp.zeros((1, H1), jnp.float32)
    m1 = jnp.zeros((1, H1), jnp.float32); v1 = jnp.ones((1, H1), jnp.float32)
    s1 = g1 / jnp.sqrt(v1 + EPS)
    w1f = w1 * s1                                  # f32 scale BEFORE bf16 cast
    b1f = (b1 - m1) * s1 + be1
    p["w1"] = jnp.pad(w1f, ((0, FEAT_PAD - FEAT), (0, 0))).astype(jnp.bfloat16)

    w2 = lin(ks[6], H1, (H1, H2))
    b2 = lin(ks[7], H1, (1, H2))
    g2 = jnp.ones((1, H2), jnp.float32); be2 = jnp.zeros((1, H2), jnp.float32)
    m2 = jnp.zeros((1, H2), jnp.float32); v2 = jnp.ones((1, H2), jnp.float32)
    s2 = g2 / jnp.sqrt(v2 + EPS)
    p["w2"] = (w2 * s2).astype(jnp.bfloat16)
    b2f = (b2 - m2) * s2 + be2

    w3 = lin(ks[8], H2, (H2, 1))
    b3 = lin(ks[9], H2, (1, 1))
    p["w3"] = jnp.pad(w3, ((0, 0), (0, OUT_PAD - 1)))        # extra cols zero
    b3p = jnp.pad(b3, ((0, 0), (0, OUT_PAD - 1)))

    # Pack all small (1, N) biases into one lane-dense (8, 1024) slab.
    bias = jnp.zeros((8, 1024), jnp.float32)
    bias = bias.at[0, :C_MID].set(bc[0])
    bias = bias.at[1, :H1].set(b1f[0])
    bias = bias.at[2, :H2].set(b2f[0])
    bias = bias.at[3, :OUT_PAD].set(b3p[0])
    p["bias"] = bias
    return p


# ----------------------------- main -------------------------------------------

if __name__ == "__main__":
    key = jax.random.PRNGKey(0)
    k_base, k_cmp, k_params = jax.random.split(key, 3)

    base_im = jax.random.normal(k_base, (2, C_IN, H, W), jnp.float32)   # NCHW
    cmp_im = jax.random.normal(k_cmp, (2, C_IN, H, W), jnp.float32)     # NCHW
    params = init_params(k_params)

    out = jax.jit(siamese_forward)(base_im, cmp_im, params)
    out = jax.block_until_ready(out)

    assert out.shape == (2, 1), out.shape
    assert bool(jnp.all(jnp.isfinite(out)))
    assert bool(jnp.all((out >= 0.0) & (out <= 1.0)))   # final Sigmoid range
    print("KERNEL_OK")
</pallas_src>

<mosaic_0001>
module attributes {stable_mosaic.version = 11 : i64} {
  func.func @fused_kernel(%arg0: memref<1024x36xf32, #tpu.memory_space<vmem>>, %arg1: memref<2x1024xf32, #tpu.memory_space<vmem>>, %arg2: memref<36x8xf32, #tpu.memory_space<vmem>>, %arg3: memref<8x1024xf32, #tpu.memory_space<vmem>>, %arg4: memref<8x1024xf32, #tpu.memory_space<vmem>>, %arg5: memref<1024x512xbf16, #tpu.memory_space<any>>, %arg6: memref<512x64xbf16, #tpu.memory_space<any>>, %arg7: memref<64x128xf32, #tpu.memory_space<vmem>>, %arg8: memref<2x128xf32, #tpu.memory_space<vmem>>, %arg9: memref<1024x512xbf16, #tpu.memory_space<vmem>>, %arg10: memref<512x64xbf16, #tpu.memory_space<vmem>>, %arg11: memref<2x!tpu.dma_semaphore, #tpu.memory_space<semaphore_mem>>) attributes {dimension_semantics = [], scalar_prefetch = 0 : i64, scratch_operands = 3 : i64, tpu.core_type = #tpu.core_type<tc>} {
    %c0_i32 = arith.constant 0 : i32
    %0 = tpu.memref_slice %arg11[%c0_i32] : memref<2x!tpu.dma_semaphore, #tpu.memory_space<semaphore_mem>> -> memref<1x!tpu.dma_semaphore, #tpu.memory_space<semaphore_mem>>
    %1 = tpu.memref_squeeze %0 : memref<1x!tpu.dma_semaphore, #tpu.memory_space<semaphore_mem>> -> memref<!tpu.dma_semaphore, #tpu.memory_space<semaphore_mem>>
    tpu.enqueue_dma source(%arg5 : memref<1024x512xbf16, #tpu.memory_space<any>>) target(%arg9 : memref<1024x512xbf16, #tpu.memory_space<vmem>>) target_semaphore(%1 : memref<!tpu.dma_semaphore, #tpu.memory_space<semaphore_mem>>)
    %c1_i32 = arith.constant 1 : i32
    %2 = tpu.memref_slice %arg11[%c1_i32] : memref<2x!tpu.dma_semaphore, #tpu.memory_space<semaphore_mem>> -> memref<1x!tpu.dma_semaphore, #tpu.memory_space<semaphore_mem>>
    %3 = tpu.memref_squeeze %2 : memref<1x!tpu.dma_semaphore, #tpu.memory_space<semaphore_mem>> -> memref<!tpu.dma_semaphore, #tpu.memory_space<semaphore_mem>>
    tpu.enqueue_dma source(%arg6 : memref<512x64xbf16, #tpu.memory_space<any>>) target(%arg10 : memref<512x64xbf16, #tpu.memory_space<vmem>>) target_semaphore(%3 : memref<!tpu.dma_semaphore, #tpu.memory_space<semaphore_mem>>)
    %c0 = arith.constant 0 : index
    %c0_0 = arith.constant 0 : index
    %4 = vector.load %arg4[%c0, %c0_0] : memref<8x1024xf32, #tpu.memory_space<vmem>>, vector<1x8xf32>
    %c1 = arith.constant 1 : index
    %c0_1 = arith.constant 0 : index
    %5 = vector.load %arg4[%c1, %c0_1] : memref<8x1024xf32, #tpu.memory_space<vmem>>, vector<1x512xf32>
    %c2 = arith.constant 2 : index
    %c0_2 = arith.constant 0 : index
    %6 = vector.load %arg4[%c2, %c0_2] : memref<8x1024xf32, #tpu.memory_space<vmem>>, vector<1x64xf32>
    %c3 = arith.constant 3 : index
    %c0_3 = arith.constant 0 : index
    %7 = vector.load %arg4[%c3, %c0_3] : memref<8x1024xf32, #tpu.memory_space<vmem>>, vector<1x128xf32>
    %c0_4 = arith.constant 0 : index
    %c0_5 = arith.constant 0 : index
    %8 = vector.load %arg0[%c0_4, %c0_5] : memref<1024x36xf32, #tpu.memory_space<vmem>>, vector<1024x36xf32>
    %c0_6 = arith.constant 0 : index
    %c0_7 = arith.constant 0 : index
    %9 = vector.load %arg2[%c0_6, %c0_7] : memref<36x8xf32, #tpu.memory_space<vmem>>, vector<36x8xf32>
    %cst = arith.constant dense<0.000000e+00> : vector<1024x8xf32>
    %10 = tpu.matmul %8, %9, %cst {dimension_numbers = #tpu.dot_dimension_numbers<[1], [0], [0], [1], [0, 0, 1, 1], [], []>, precision = #tpu.contract_precision<fp32>} : vector<1024x36xf32>, vector<36x8xf32>, vector<1024x8xf32> -> vector<1024x8xf32>
    %11 = vector.broadcast %4 : vector<1x8xf32> to vector<1024x8xf32>
    %12 = arith.addf %10, %11 : vector<1024x8xf32>
    %cst_8 = arith.constant 0.000000e+00 : f32
    %13 = vector.broadcast %cst_8 : f32 to vector<1024x8xf32>
    %14 = arith.maximumf %12, %13 : vector<1024x8xf32>
    %c0_9 = arith.constant 0 : index
    %c0_10 = arith.constant 0 : index
    %15 = vector.load %arg1[%c0_9, %c0_10] : memref<2x1024xf32, #tpu.memory_space<vmem>>, vector<2x1024xf32>
    %cst_11 = arith.constant dense<0.000000e+00> : vector<2x8xf32>
    %16 = tpu.matmul %15, %14, %cst_11 {dimension_numbers = #tpu.dot_dimension_numbers<[1], [0], [0], [1], [0, 0, 1, 1], [], []>, precision = #tpu.contract_precision<fp32>} : vector<2x1024xf32>, vector<1024x8xf32>, vector<2x8xf32> -> vector<2x8xf32>
    %c0_12 = arith.constant 0 : index
    %c0_13 = arith.constant 0 : index
    %17 = vector.load %arg3[%c0_12, %c0_13] : memref<8x1024xf32, #tpu.memory_space<vmem>>, vector<8x1024xf32>
    %cst_14 = arith.constant dense<0.000000e+00> : vector<2x1024xf32>
    %18 = tpu.matmul %16, %17, %cst_14 {dimension_numbers = #tpu.dot_dimension_numbers<[1], [0], [0], [1], [0, 0, 1, 1], [], []>, precision = #tpu.contract_precision<fp32>} : vector<2x8xf32>, vector<8x1024xf32>, vector<2x1024xf32> -> vector<2x1024xf32>
    %19 = math.absf %18 : vector<2x1024xf32>
    %c0_i32_15 = arith.constant 0 : i32
    %20 = tpu.memref_slice %arg11[%c0_i32_15] : memref<2x!tpu.dma_semaphore, #tpu.memory_space<semaphore_mem>> -> memref<1x!tpu.dma_semaphore, #tpu.memory_space<semaphore_mem>>
    %21 = tpu.memref_squeeze %20 : memref<1x!tpu.dma_semaphore, #tpu.memory_space<semaphore_mem>> -> memref<!tpu.dma_semaphore, #tpu.memory_space<semaphore_mem>>
    tpu.wait_dma2 semaphore(%21 : memref<!tpu.dma_semaphore, #tpu.memory_space<semaphore_mem>>) src(%arg5 : memref<1024x512xbf16, #tpu.memory_space<any>>) dst(%arg9 : memref<1024x512xbf16, #tpu.memory_space<vmem>>)
    %22 = arith.truncf %19 : vector<2x1024xf32> to vector<2x1024xbf16>
    %c0_16 = arith.constant 0 : index
    %c0_17 = arith.constant 0 : index
    %23 = vector.load %arg9[%c0_16, %c0_17] : memref<1024x512xbf16, #tpu.memory_space<vmem>>, vector<1024x512xbf16>
    %cst_18 = arith.constant dense<0.000000e+00> : vector<2x512xf32>
    %24 = tpu.matmul %22, %23, %cst_18 {dimension_numbers = #tpu.dot_dimension_numbers<[1], [0], [0], [1], [0, 0, 1, 1], [], []>} : vector<2x1024xbf16>, vector<1024x512xbf16>, vector<2x512xf32> -> vector<2x512xf32>
    %25 = vector.broadcast %5 : vector<1x512xf32> to vector<2x512xf32>
    %26 = arith.addf %24, %25 : vector<2x512xf32>
    %cst_19 = arith.constant 0.000000e+00 : f32
    %27 = vector.broadcast %cst_19 : f32 to vector<2x512xf32>
    %28 = arith.maximumf %26, %27 : vector<2x512xf32>
    %c1_i32_20 = arith.constant 1 : i32
    %29 = tpu.memref_slice %arg11[%c1_i32_20] : memref<2x!tpu.dma_semaphore, #tpu.memory_space<semaphore_mem>> -> memref<1x!tpu.dma_semaphore, #tpu.memory_space<semaphore_mem>>
    %30 = tpu.memref_squeeze %29 : memref<1x!tpu.dma_semaphore, #tpu.memory_space<semaphore_mem>> -> memref<!tpu.dma_semaphore, #tpu.memory_space<semaphore_mem>>
    tpu.wait_dma2 semaphore(%30 : memref<!tpu.dma_semaphore, #tpu.memory_space<semaphore_mem>>) src(%arg6 : memref<512x64xbf16, #tpu.memory_space<any>>) dst(%arg10 : memref<512x64xbf16, #tpu.memory_space<vmem>>)
    %31 = arith.truncf %28 : vector<2x512xf32> to vector<2x512xbf16>
    %c0_21 = arith.constant 0 : index
    %c0_22 = arith.constant 0 : index
    %32 = vector.load %arg10[%c0_21, %c0_22] : memref<512x64xbf16, #tpu.memory_space<vmem>>, vector<512x64xbf16>
    %cst_23 = arith.constant dense<0.000000e+00> : vector<2x64xf32>
    %33 = tpu.matmul %31, %32, %cst_23 {dimension_numbers = #tpu.dot_dimension_numbers<[1], [0], [0], [1], [0, 0, 1, 1], [], []>} : vector<2x512xbf16>, vector<512x64xbf16>, vector<2x64xf32> -> vector<2x64xf32>
    %34 = vector.broadcast %6 : vector<1x64xf32> to vector<2x64xf32>
    %35 = arith.addf %33, %34 : vector<2x64xf32>
    %36 = arith.negf %35 : vector<2x64xf32>
    %37 = math.exp %36 : vector<2x64xf32>
    %cst_24 = arith.constant 1.000000e+00 : f32
    %38 = vector.broadcast %cst_24 : f32 to vector<2x64xf32>
    %39 = arith.addf %38, %37 : vector<2x64xf32>
    %40 = arith.divf %38, %39 : vector<2x64xf32>
    %c0_25 = arith.constant 0 : index
    %c0_26 = arith.constant 0 : index
    %41 = vector.load %arg7[%c0_25, %c0_26] : memref<64x128xf32, #tpu.memory_space<vmem>>, vector<64x128xf32>
    %cst_27 = arith.constant dense<0.000000e+00> : vector<2x128xf32>
    %42 = tpu.matmul %40, %41, %cst_27 {dimension_numbers = #tpu.dot_dimension_numbers<[1], [0], [0], [1], [0, 0, 1, 1], [], []>, precision = #tpu.contract_precision<fp32>} : vector<2x64xf32>, vector<64x128xf32>, vector<2x128xf32> -> vector<2x128xf32>
    %43 = vector.broadcast %7 : vector<1x128xf32> to vector<2x128xf32>
    %44 = arith.addf %42, %43 : vector<2x128xf32>
    %45 = arith.negf %44 : vector<2x128xf32>
    %46 = math.exp %45 : vector<2x128xf32>
    %cst_28 = arith.constant 1.000000e+00 : f32
    %47 = vector.broadcast %cst_28 : f32 to vector<2x128xf32>
    %48 = arith.addf %47, %46 : vector<2x128xf32>
    %49 = arith.divf %47, %48 : vector<2x128xf32>
    %c0_29 = arith.constant 0 : index
    %c0_30 = arith.constant 0 : index
    %50 = vector.load %arg8[%c0_29, %c0_30] : memref<2x128xf32, #tpu.memory_space<vmem>>, vector<2x128xf32>
    tpu.vector_store %arg8[%c0_29, %c0_30], %49 {strides = array<i32>} : memref<2x128xf32, #tpu.memory_space<vmem>>, vector<2x128xf32>,
    return
  }
}

</mosaic_0001>

<bundles_post_ra>
// kernel: siamese_forward.1
= control target key start
LH: loop header
LB: loop body
LE: loop exit
PB: predicated region body
PF: predicated region fallthrough
CT: control target
= control target key end

     0   :  { %s19322_s0 = inlined_call_operand.vmem [shape: f32[1024,36], index: 0, kind: input, shape index: {}]   ;;  %s19323_s1 = inlined_call_operand.vmem [shape: f32[2,1024], index: 1, kind: input, shape index: {}]   ;;  %s19324_s2 = inlined_call_operand.vmem [shape: f32[36,8], index: 2, kind: input, shape index: {}]   ;;  %s19325_s3 = inlined_call_operand.vmem [shape: f32[8,1024], index: 3, kind: input, shape index: {}]   ;;  %s19326_s4 = inlined_call_operand.vmem [shape: f32[8,1024], index: 4, kind: input, shape index: {}]   ;;  %s19327_s5 = inlined_call_operand.vmem [shape: bf16[1024,512], index: 5, kind: input, shape index: {}]   ;;  %s19328_s6 = inlined_call_operand.vmem [shape: bf16[512,64], index: 6, kind: input, shape index: {}]   ;;  %s19329_s7 = inlined_call_operand.vmem [shape: f32[64,128], index: 7, kind: input, shape index: {}]   ;;  %s19330_s8 = inlined_call_operand.vmem [shape: f32[2,128], index: 8, kind: output, shape index: {}]  }
   0x1   :  { %v35_v0 = vld [vmem:[%s19327_s5] sm:$0xff]  ;;  %v37_v1 = vld [vmem:[%s19327_s5 + $0x8] sm:$0xff]  ;;  %v39_v2 = vld [vmem:[%s19327_s5 + $0x10] sm:$0xff] }
   0x2   :  { %36 = vst [vmem:[#allocation2] sm:$0xff] %v35_v0  ;;  %v41_v3 = vld [vmem:[%s19327_s5 + $0x18] sm:$0xff]  ;;  %v43_v4 = vld [vmem:[%s19327_s5 + $0x20] sm:$0xff]  ;;  %v45_v5 = vld [vmem:[%s19327_s5 + $0x28] sm:$0xff] }
   0x3   :  { %38 = vst [vmem:[#allocation2 + $0x8] sm:$0xff] %v37_v1  ;;  %v47_v6 = vld [vmem:[%s19327_s5 + $0x30] sm:$0xff]  ;;  %v49_v7 = vld [vmem:[%s19327_s5 + $0x38] sm:$0xff]  ;;  %v51_v8 = vld [vmem:[%s19327_s5 + $0x40] sm:$0xff] }
   0x4   :  { %40 = vst [vmem:[#allocation2 + $0x10] sm:$0xff] %v39_v2  ;;  %v53_v9 = vld [vmem:[%s19327_s5 + $0x48] sm:$0xff]  ;;  %v55_v10 = vld [vmem:[%s19327_s5 + $0x50] sm:$0xff]  ;;  %v57_v11 = vld [vmem:[%s19327_s5 + $0x58] sm:$0xff] }
   0x5   :  { %42 = vst [vmem:[#allocation2 + $0x18] sm:$0xff] %v41_v3  ;;  %v59_v12 = vld [vmem:[%s19327_s5 + $0x60] sm:$0xff]  ;;  %v61_v13 = vld [vmem:[%s19327_s5 + $0x68] sm:$0xff]  ;;  %v63_v14 = vld [vmem:[%s19327_s5 + $0x70] sm:$0xff] }
   0x6   :  { %44 = vst [vmem:[#allocation2 + $0x20] sm:$0xff] %v43_v4  ;;  %v65_v15 = vld [vmem:[%s19327_s5 + $0x78] sm:$0xff]  ;;  %v67_v16 = vld [vmem:[%s19327_s5 + $0x80] sm:$0xff]  ;;  %v69_v17 = vld [vmem:[%s19327_s5 + $0x88] sm:$0xff] }
   0x7   :  { %46 = vst [vmem:[#allocation2 + $0x28] sm:$0xff] %v45_v5  ;;  %v71_v18 = vld [vmem:[%s19327_s5 + $0x90] sm:$0xff]  ;;  %v73_v19 = vld [vmem:[%s19327_s5 + $0x98] sm:$0xff]  ;;  %v75_v20 = vld [vmem:[%s19327_s5 + $0xa0] sm:$0xff] }
   0x8   :  { %48 = vst [vmem:[#allocation2 + $0x30] sm:$0xff] %v47_v6  ;;  %v77_v21 = vld [vmem:[%s19327_s5 + $0xa8] sm:$0xff]  ;;  %v79_v22 = vld [vmem:[%s19327_s5 + $0xb0] sm:$0xff]  ;;  %v81_v23 = vld [vmem:[%s19327_s5 + $0xb8] sm:$0xff] }
   0x9   :  { %50 = vst [vmem:[#allocation2 + $0x38] sm:$0xff] %v49_v7  ;;  %v83_v24 = vld [vmem:[%s19327_s5 + $0xc0] sm:$0xff]  ;;  %v85_v25 = vld [vmem:[%s19327_s5 + $0xc8] sm:$0xff]  ;;  %v87_v26 = vld [vmem:[%s19327_s5 + $0xd0] sm:$0xff] }
   0xa   :  { %52 = vst [vmem:[#allocation2 + $0x40] sm:$0xff] %v51_v8  ;;  %v89_v27 = vld [vmem:[%s19327_s5 + $0xd8] sm:$0xff]  ;;  %v91_v28 = vld [vmem:[%s19327_s5 + $0xe0] sm:$0xff]  ;;  %v93_v29 = vld [vmem:[%s19327_s5 + $0xe8] sm:$0xff] }
   0xb   :  { %54 = vst [vmem:[#allocation2 + $0x48] sm:$0xff] %v53_v9  ;;  %v95_v30 = vld [vmem:[%s19327_s5 + $0xf0] sm:$0xff]  ;;  %v97_v31 = vld [vmem:[%s19327_s5 + $0xf8] sm:$0xff]  ;;  %v99_v32 = vld [vmem:[%s19327_s5 + $0x100] sm:$0xff] }
   0xc   :  { %56 = vst [vmem:[#allocation2 + $0x50] sm:$0xff] %v55_v10  ;;  %v101_v33 = vld [vmem:[%s19327_s5 + $0x108] sm:$0xff]  ;;  %v103_v34 = vld [vmem:[%s19327_s5 + $0x110] sm:$0xff]  ;;  %v105_v35 = vld [vmem:[%s19327_s5 + $0x118] sm:$0xff] }
   0xd   :  { %58 = vst [vmem:[#allocation2 + $0x58] sm:$0xff] %v57_v11  ;;  %v107_v36 = vld [vmem:[%s19327_s5 + $0x120] sm:$0xff]  ;;  %v109_v37 = vld [vmem:[%s19327_s5 + $0x128] sm:$0xff]  ;;  %v111_v38 = vld [vmem:[%s19327_s5 + $0x130] sm:$0xff] }
   0xe   :  { %60 = vst [vmem:[#allocation2 + $0x60] sm:$0xff] %v59_v12  ;;  %v113_v39 = vld [vmem:[%s19327_s5 + $0x138] sm:$0xff]  ;;  %v115_v40 = vld [vmem:[%s19327_s5 + $0x140] sm:$0xff]  ;;  %v117_v41 = vld [vmem:[%s19327_s5 + $0x148] sm:$0xff] }
   0xf   :  { %62 = vst [vmem:[#allocation2 + $0x68] sm:$0xff] %v61_v13  ;;  %v119_v42 = vld [vmem:[%s19327_s5 + $0x150] sm:$0xff]  ;;  %v121_v43 = vld [vmem:[%s19327_s5 + $0x158] sm:$0xff]  ;;  %v123_v44 = vld [vmem:[%s19327_s5 + $0x160] sm:$0xff] }
  0x10   :  { %64 = vst [vmem:[#allocation2 + $0x70] sm:$0xff] %v63_v14  ;;  %v125_v45 = vld [vmem:[%s19327_s5 + $0x168] sm:$0xff]  ;;  %v127_v46 = vld [vmem:[%s19327_s5 + $0x170] sm:$0xff]  ;;  %v129_v47 = vld [vmem:[%s19327_s5 + $0x178] sm:$0xff] }
  0x11   :  { %66 = vst [vmem:[#allocation2 + $0x78] sm:$0xff] %v65_v15  ;;  %v131_v48 = vld [vmem:[%s19327_s5 + $0x180] sm:$0xff]  ;;  %v133_v49 = vld [vmem:[%s19327_s5 + $0x188] sm:$0xff]  ;;  %v135_v50 = vld [vmem:[%s19327_s5 + $0x190] sm:$0xff] }
  0x12   :  { %68 = vst [vmem:[#allocation2 + $0x80] sm:$0xff] %v67_v16  ;;  %v137_v51 = vld [vmem:[%s19327_s5 + $0x198] sm:$0xff]  ;;  %v139_v52 = vld [vmem:[%s19327_s5 + $0x1a0] sm:$0xff]  ;;  %v141_v53 = vld [vmem:[%s19327_s5 + $0x1a8] sm:$0xff] }
  0x13   :  { %70 = vst [vmem:[#allocation2 + $0x88] sm:$0xff] %v69_v17  ;;  %v143_v54 = vld [vmem:[%s19327_s5 + $0x1b0] sm:$0xff]  ;;  %v145_v55 = vld [vmem:[%s19327_s5 + $0x1b8] sm:$0xff]  ;;  %v147_v56 = vld [vmem:[%s19327_s5 + $0x1c0] sm:$0xff] }
  0x14   :  { %72 = vst [vmem:[#allocation2 + $0x90] sm:$0xff] %v71_v18  ;;  %v149_v57 = vld [vmem:[%s19327_s5 + $0x1c8] sm:$0xff]  ;;  %v151_v58 = vld [vmem:[%s19327_s5 + $0x1d0] sm:$0xff]  ;;  %v153_v59 = vld [vmem:[%s19327_s5 + $0x1d8] sm:$0xff] }
  0x15   :  { %74 = vst [vmem:[#allocation2 + $0x98] sm:$0xff] %v73_v19  ;;  %v155_v60 = vld [vmem:[%s19327_s5 + $0x1e0] sm:$0xff]  ;;  %v157_v61 = vld [vmem:[%s19327_s5 + $0x1e8] sm:$0xff]  ;;  %v159_v62 = vld [vmem:[%s19327_s5 + $0x1f0] sm:$0xff] }
  0x16   :  { %76 = vst [vmem:[#allocation2 + $0xa0] sm:$0xff] %v75_v20  ;;  %v161_v63 = vld [vmem:[%s19327_s5 + $0x1f8] sm:$0xff]  ;;  %v163_v0 = vld [vmem:[%s19327_s5 + $0x200] sm:$0xff]  ;;  %v165_v1 = vld [vmem:[%s19327_s5 + $0x208] sm:$0xff] }
  0x17   :  { %78 = vst [vmem:[#allocation2 + $0xa8] sm:$0xff] %v77_v21  ;;  %v167_v2 = vld [vmem:[%s19327_s5 + $0x210] sm:$0xff]  ;;  %v169_v3 = vld [vmem:[%s19327_s5 + $0x218] sm:$0xff]  ;;  %v171_v4 = vld [vmem:[%s19327_s5 + $0x220] sm:$0xff] }
  0x18   :  { %80 = vst [vmem:[#allocation2 + $0xb0] sm:$0xff] %v79_v22  ;;  %v173_v5 = vld [vmem:[%s19327_s5 + $0x228] sm:$0xff]  ;;  %v175_v6 = vld [vmem:[%s19327_s5 + $0x230] sm:$0xff]  ;;  %v177_v7 = vld [vmem:[%s19327_s5 + $0x238] sm:$0xff] }
  0x19   :  { %82 = vst [vmem:[#allocation2 + $0xb8] sm:$0xff] %v81_v23  ;;  %v179_v8 = vld [vmem:[%s19327_s5 + $0x240] sm:$0xff]  ;;  %v181_v9 = vld [vmem:[%s19327_s5 + $0x248] sm:$0xff]  ;;  %v183_v10 = vld [vmem:[%s19327_s5 + $0x250] sm:$0xff] }
  0x1a   :  { %84 = vst [vmem:[#allocation2 + $0xc0] sm:$0xff] %v83_v24  ;;  %v185_v11 = vld [vmem:[%s19327_s5 + $0x258] sm:$0xff]  ;;  %v187_v12 = vld [vmem:[%s19327_s5 + $0x260] sm:$0xff]  ;;  %v189_v13 = vld [vmem:[%s19327_s5 + $0x268] sm:$0xff] }
  0x1b   :  { %86 = vst [vmem:[#allocation2 + $0xc8] sm:$0xff] %v85_v25  ;;  %v191_v14 = vld [vmem:[%s19327_s5 + $0x270] sm:$0xff]  ;;  %v193_v15 = vld [vmem:[%s19327_s5 + $0x278] sm:$0xff]  ;;  %v195_v16 = vld [vmem:[%s19327_s5 + $0x280] sm:$0xff] }
  0x1c   :  { %88 = vst [vmem:[#allocation2 + $0xd0] sm:$0xff] %v87_v26  ;;  %v197_v17 = vld [vmem:[%s19327_s5 + $0x288] sm:$0xff]  ;;  %v199_v18 = vld [vmem:[%s19327_s5 + $0x290] sm:$0xff]  ;;  %v201_v19 = vld [vmem:[%s19327_s5 + $0x298] sm:$0xff] }
  0x1d   :  { %90 = vst [vmem:[#allocation2 + $0xd8] sm:$0xff] %v89_v27  ;;  %v203_v20 = vld [vmem:[%s19327_s5 + $0x2a0] sm:$0xff]  ;;  %v205_v21 = vld [vmem:[%s19327_s5 + $0x2a8] sm:$0xff]  ;;  %v207_v22 = vld [vmem:[%s19327_s5 + $0x2b0] sm:$0xff] }
  0x1e   :  { %92 = vst [vmem:[#allocation2 + $0xe0] sm:$0xff] %v91_v28  ;;  %v209_v23 = vld [vmem:[%s19327_s5 + $0x2b8] sm:$0xff]  ;;  %v211_v24 = vld [vmem:[%s19327_s5 + $0x2c0] sm:$0xff]  ;;  %v213_v25 = vld [vmem:[%s19327_s5 + $0x2c8] sm:$0xff] }
  0x1f   :  { %94 = vst [vmem:[#allocation2 + $0xe8] sm:$0xff] %v93_v29  ;;  %v215_v26 = vld [vmem:[%s19327_s5 + $0x2d0] sm:$0xff]  ;;  %v217_v27 = vld [vmem:[%s19327_s5 + $0x2d8] sm:$0xff]  ;;  %v219_v28 = vld [vmem:[%s19327_s5 + $0x2e0] sm:$0xff] }
  0x20   :  { %96 = vst [vmem:[#allocation2 + $0xf0] sm:$0xff] %v95_v30  ;;  %v221_v29 = vld [vmem:[%s19327_s5 + $0x2e8] sm:$0xff]  ;;  %v223_v30 = vld [vmem:[%s19327_s5 + $0x2f0] sm:$0xff] }
  0x21   :  { %98 = vst [vmem:[#allocation2 + $0xf8] sm:$0xff] %v97_v31  ;;  %v225_v31 = vld [vmem:[%s19327_s5 + $0x2f8] sm:$0xff] }
  0x22   :  { %100 = vst [vmem:[#allocation2 + $0x100] sm:$0xff] %v99_v32  ;;  %v227_v32 = vld [vmem:[%s19327_s5 + $0x300] sm:$0xff] }
  0x23   :  { %102 = vst [vmem:[#allocation2 + $0x108] sm:$0xff] %v101_v33  ;;  %v229_v33 = vld [vmem:[%s19327_s5 + $0x308] sm:$0xff] }
  0x24   :  { %104 = vst [vmem:[#allocation2 + $0x110] sm:$0xff] %v103_v34  ;;  %v231_v34 = vld [vmem:[%s19327_s5 + $0x310] sm:$0xff] }
  0x25   :  { %106 = vst [vmem:[#allocation2 + $0x118] sm:$0xff] %v105_v35  ;;  %v233_v35 = vld [vmem:[%s19327_s5 + $0x318] sm:$0xff] }
  0x26   :  { %108 = vst [vmem:[#allocation2 + $0x120] sm:$0xff] %v107_v36  ;;  %v235_v36 = vld [vmem:[%s19327_s5 + $0x320] sm:$0xff] }
  0x27   :  { %110 = vst [vmem:[#allocation2 + $0x128] sm:$0xff] %v109_v37  ;;  %v237_v37 = vld [vmem:[%s19327_s5 + $0x328] sm:$0xff] }
  0x28   :  { %112 = vst [vmem:[#allocation2 + $0x130] sm:$0xff] %v111_v38  ;;  %v239_v38 = vld [vmem:[%s19327_s5 + $0x330] sm:$0xff] }
  0x29   :  { %114 = vst [vmem:[#allocation2 + $0x138] sm:$0xff] %v113_v39  ;;  %v241_v39 = vld [vmem:[%s19327_s5 + $0x338] sm:$0xff] }
  0x2a   :  { %116 = vst [vmem:[#allocation2 + $0x140] sm:$0xff] %v115_v40  ;;  %v243_v40 = vld [vmem:[%s19327_s5 + $0x340] sm:$0xff] }
  0x2b   :  { %118 = vst [vmem:[#allocation2 + $0x148] sm:$0xff] %v117_v41  ;;  %v245_v41 = vld [vmem:[%s19327_s5 + $0x348] sm:$0xff] }
  0x2c   :  { %120 = vst [vmem:[#allocation2 + $0x150] sm:$0xff] %v119_v42  ;;  %v247_v42 = vld [vmem:[%s19327_s5 + $0x350] sm:$0xff] }
  0x2d   :  { %122 = vst [vmem:[#allocation2 + $0x158] sm:$0xff] %v121_v43  ;;  %v249_v43 = vld [vmem:[%s19327_s5 + $0x358] sm:$0xff] }
  0x2e   :  { %124 = vst [vmem:[#allocation2 + $0x160] sm:$0xff] %v123_v44  ;;  %v251_v44 = vld [vmem:[%s19327_s5 + $0x360] sm:$0xff] }
  0x2f   :  { %126 = vst [vmem:[#allocation2 + $0x168] sm:$0xff] %v125_v45  ;;  %v253_v45 = vld [vmem:[%s19327_s5 + $0x368] sm:$0xff] }
  0x30   :  { %128 = vst [vmem:[#allocation2 + $0x170] sm:$0xff] %v127_v46  ;;  %v255_v46 = vld [vmem:[%s19327_s5 + $0x370] sm:$0xff] }
  0x31   :  { %130 = vst [vmem:[#allocation2 + $0x178] sm:$0xff] %v129_v47  ;;  %v257_v47 = vld [vmem:[%s19327_s5 + $0x378] sm:$0xff] }
  0x32   :  { %132 = vst [vmem:[#allocation2 + $0x180] sm:$0xff] %v131_v48  ;;  %v259_v48 = vld [vmem:[%s19327_s5 + $0x380] sm:$0xff] }
  0x33   :  { %134 = vst [vmem:[#allocation2 + $0x188] sm:$0xff] %v133_v49  ;;  %v261_v49 = vld [vmem:[%s19327_s5 + $0x388] sm:$0xff] }
  0x34   :  { %136 = vst [vmem:[#allocation2 + $0x190] sm:$0xff] %v135_v50  ;;  %v263_v50 = vld [vmem:[%s19327_s5 + $0x390] sm:$0xff] }
  0x35   :  { %138 = vst [vmem:[#allocation2 + $0x198] sm:$0xff] %v137_v51  ;;  %v265_v51 = vld [vmem:[%s19327_s5 + $0x398] sm:$0xff] }
  0x36   :  { %140 = vst [vmem:[#allocation2 + $0x1a0] sm:$0xff] %v139_v52  ;;  %v267_v52 = vld [vmem:[%s19327_s5 + $0x3a0] sm:$0xff] }
  0x37   :  { %142 = vst [vmem:[#allocation2 + $0x1a8] sm:$0xff] %v141_v53  ;;  %v269_v53 = vld [vmem:[%s19327_s5 + $0x3a8] sm:$0xff] }
  0x38   :  { %144 = vst [vmem:[#allocation2 + $0x1b0] sm:$0xff] %v143_v54  ;;  %v271_v54 = vld [vmem:[%s19327_s5 + $0x3b0] sm:$0xff] }
  0x39   :  { %146 = vst [vmem:[#allocation2 + $0x1b8] sm:$0xff] %v145_v55  ;;  %v273_v55 = vld [vmem:[%s19327_s5 + $0x3b8] sm:$0xff] }
  0x3a   :  { %148 = vst [vmem:[#allocation2 + $0x1c0] sm:$0xff] %v147_v56  ;;  %v275_v56 = vld [vmem:[%s19327_s5 + $0x3c0] sm:$0xff] }
  0x3b   :  { %150 = vst [vmem:[#allocation2 + $0x1c8] sm:$0xff] %v149_v57  ;;  %v277_v57 = vld [vmem:[%s19327_s5 + $0x3c8] sm:$0xff] }
  0x3c   :  { %152 = vst [vmem:[#allocation2 + $0x1d0] sm:$0xff] %v151_v58  ;;  %v279_v58 = vld [vmem:[%s19327_s5 + $0x3d0] sm:$0xff] }
  0x3d   :  { %154 = vst [vmem:[#allocation2 + $0x1d8] sm:$0xff] %v153_v59  ;;  %v281_v59 = vld [vmem:[%s19327_s5 + $0x3d8] sm:$0xff] }
  0x3e   :  { %156 = vst [vmem:[#allocation2 + $0x1e0] sm:$0xff] %v155_v60  ;;  %v283_v60 = vld [vmem:[%s19327_s5 + $0x3e0] sm:$0xff] }
  0x3f   :  { %158 = vst [vmem:[#allocation2 + $0x1e8] sm:$0xff] %v157_v61  ;;  %v285_v61 = vld [vmem:[%s19327_s5 + $0x3e8] sm:$0xff] }
  0x40   :  { %160 = vst [vmem:[#allocation2 + $0x1f0] sm:$0xff] %v159_v62  ;;  %v287_v62 = vld [vmem:[%s19327_s5 + $0x3f0] sm:$0xff] }
  0x41   :  { %162 = vst [vmem:[#allocation2 + $0x1f8] sm:$0xff] %v161_v63  ;;  %v289_v63 = vld [vmem:[%s19327_s5 + $0x3f8] sm:$0xff] }
  0x42   :  { %164 = vst [vmem:[#allocation2 + $0x200] sm:$0xff] %v163_v0  ;;  %v291_v0 = vld [vmem:[%s19327_s5 + $0x400] sm:$0xff] }
  0x43   :  { %166 = vst [vmem:[#allocation2 + $0x208] sm:$0xff] %v165_v1  ;;  %v293_v1 = vld [vmem:[%s19327_s5 + $0x408] sm:$0xff] }
  0x44   :  { %168 = vst [vmem:[#allocation2 + $0x210] sm:$0xff] %v167_v2  ;;  %v295_v2 = vld [vmem:[%s19327_s5 + $0x410] sm:$0xff] }
  0x45   :  { %170 = vst [vmem:[#allocation2 + $0x218] sm:$0xff] %v169_v3  ;;  %v297_v3 = vld [vmem:[%s19327_s5 + $0x418] sm:$0xff] }
  0x46   :  { %172 = vst [vmem:[#allocation2 + $0x220] sm:$0xff] %v171_v4  ;;  %v299_v4 = vld [vmem:[%s19327_s5 + $0x420] sm:$0xff] }
  0x47   :  { %174 = vst [vmem:[#allocation2 + $0x228] sm:$0xff] %v173_v5  ;;  %v301_v5 = vld [vmem:[%s19327_s5 + $0x428] sm:$0xff] }
  0x48   :  { %176 = vst [vmem:[#allocation2 + $0x230] sm:$0xff] %v175_v6  ;;  %v303_v6 = vld [vmem:[%s19327_s5 + $0x430] sm:$0xff] }
  0x49   :  { %178 = vst [vmem:[#allocation2 + $0x238] sm:$0xff] %v177_v7  ;;  %v305_v7 = vld [vmem:[%s19327_s5 + $0x438] sm:$0xff] }
  0x4a   :  { %180 = vst [vmem:[#allocation2 + $0x240] sm:$0xff] %v179_v8  ;;  %v307_v8 = vld [vmem:[%s19327_s5 + $0x440] sm:$0xff] }
  0x4b   :  { %182 = vst [vmem:[#allocation2 + $0x248] sm:$0xff] %v181_v9  ;;  %v309_v9 = vld [vmem:[%s19327_s5 + $0x448] sm:$0xff] }
  0x4c   :  { %184 = vst [vmem:[#allocation2 + $0x250] sm:$0xff] %v183_v10  ;;  %v311_v10 = vld [vmem:[%s19327_s5 + $0x450] sm:$0xff] }
  0x4d   :  { %186 = vst [vmem:[#allocation2 + $0x258] sm:$0xff] %v185_v11  ;;  %v313_v11 = vld [vmem:[%s19327_s5 + $0x458] sm:$0xff] }
  0x4e   :  { %188 = vst [vmem:[#allocation2 + $0x260] sm:$0xff] %v187_v12  ;;  %v315_v12 = vld [vmem:[%s19327_s5 + $0x460] sm:$0xff] }
  0x4f   :  { %190 = vst [vmem:[#allocation2 + $0x268] sm:$0xff] %v189_v13  ;;  %v317_v13 = vld [vmem:[%s19327_s5 + $0x468] sm:$0xff] }
  0x50   :  { %192 = vst [vmem:[#allocation2 + $0x270] sm:$0xff] %v191_v14  ;;  %v319_v14 = vld [vmem:[%s19327_s5 + $0x470] sm:$0xff] }
  0x51   :  { %194 = vst [vmem:[#allocation2 + $0x278] sm:$0xff] %v193_v15  ;;  %v321_v15 = vld [vmem:[%s19327_s5 + $0x478] sm:$0xff] }
  0x52   :  { %196 = vst [vmem:[#allocation2 + $0x280] sm:$0xff] %v195_v16  ;;  %v323_v16 = vld [vmem:[%s19327_s5 + $0x480] sm:$0xff] }
  0x53   :  { %198 = vst [vmem:[#allocation2 + $0x288] sm:$0xff] %v197_v17  ;;  %v325_v17 = vld [vmem:[%s19327_s5 + $0x488] sm:$0xff] }
  0x54   :  { %200 = vst [vmem:[#allocation2 + $0x290] sm:$0xff] %v199_v18  ;;  %v327_v18 = vld [vmem:[%s19327_s5 + $0x490] sm:$0xff] }
  0x55   :  { %202 = vst [vmem:[#allocation2 + $0x298] sm:$0xff] %v201_v19  ;;  %v329_v19 = vld [vmem:[%s19327_s5 + $0x498] sm:$0xff] }
  0x56   :  { %204 = vst [vmem:[#allocation2 + $0x2a0] sm:$0xff] %v203_v20  ;;  %v331_v20 = vld [vmem:[%s19327_s5 + $0x4a0] sm:$0xff] }
  0x57   :  { %206 = vst [vmem:[#allocation2 + $0x2a8] sm:$0xff] %v205_v21  ;;  %v333_v21 = vld [vmem:[%s19327_s5 + $0x4a8] sm:$0xff] }
  0x58   :  { %208 = vst [vmem:[#allocation2 + $0x2b0] sm:$0xff] %v207_v22  ;;  %v335_v22 = vld [vmem:[%s19327_s5 + $0x4b0] sm:$0xff] }
  0x59   :  { %210 = vst [vmem:[#allocation2 + $0x2b8] sm:$0xff] %v209_v23  ;;  %v337_v23 = vld [vmem:[%s19327_s5 + $0x4b8] sm:$0xff] }
  0x5a   :  { %212 = vst [vmem:[#allocation2 + $0x2c0] sm:$0xff] %v211_v24  ;;  %v339_v24 = vld [vmem:[%s19327_s5 + $0x4c0] sm:$0xff] }
  0x5b   :  { %214 = vst [vmem:[#allocation2 + $0x2c8] sm:$0xff] %v213_v25  ;;  %v341_v25 = vld [vmem:[%s19327_s5 + $0x4c8] sm:$0xff] }
  0x5c   :  { %216 = vst [vmem:[#allocation2 + $0x2d0] sm:$0xff] %v215_v26  ;;  %v343_v26 = vld [vmem:[%s19327_s5 + $0x4d0] sm:$0xff] }
  0x5d   :  { %218 = vst [vmem:[#allocation2 + $0x2d8] sm:$0xff] %v217_v27  ;;  %v345_v27 = vld [vmem:[%s19327_s5 + $0x4d8] sm:$0xff] }
  0x5e   :  { %220 = vst [vmem:[#allocation2 + $0x2e0] sm:$0xff] %v219_v28  ;;  %v347_v28 = vld [vmem:[%s19327_s5 + $0x4e0] sm:$0xff] }
  0x5f   :  { %222 = vst [vmem:[#allocation2 + $0x2e8] sm:$0xff] %v221_v29  ;;  %v349_v29 = vld [vmem:[%s19327_s5 + $0x4e8] sm:$0xff] }
  0x60   :  { %224 = vst [vmem:[#allocation2 + $0x2f0] sm:$0xff] %v223_v30  ;;  %v351_v30 = vld [vmem:[%s19327_s5 + $0x4f0] sm:$0xff] }
  0x61   :  { %226 = vst [vmem:[#allocation2 + $0x2f8] sm:$0xff] %v225_v31  ;;  %v353_v31 = vld [vmem:[%s19327_s5 + $0x4f8] sm:$0xff] }
  0x62   :  { %228 = vst [vmem:[#allocation2 + $0x300] sm:$0xff] %v227_v32  ;;  %v355_v32 = vld [vmem:[%s19327_s5 + $0x500] sm:$0xff] }
  0x63   :  { %230 = vst [vmem:[#allocation2 + $0x308] sm:$0xff] %v229_v33  ;;  %v357_v33 = vld [vmem:[%s19327_s5 + $0x508] sm:$0xff] }
  0x64   :  { %232 = vst [vmem:[#allocation2 + $0x310] sm:$0xff] %v231_v34  ;;  %v359_v34 = vld [vmem:[%s19327_s5 + $0x510] sm:$0xff] }
  0x65   :  { %234 = vst [vmem:[#allocation2 + $0x318] sm:$0xff] %v233_v35  ;;  %v361_v35 = vld [vmem:[%s19327_s5 + $0x518] sm:$0xff] }
  0x66   :  { %236 = vst [vmem:[#allocation2 + $0x320] sm:$0xff] %v235_v36  ;;  %v363_v36 = vld [vmem:[%s19327_s5 + $0x520] sm:$0xff] }
  0x67   :  { %238 = vst [vmem:[#allocation2 + $0x328] sm:$0xff] %v237_v37  ;;  %v365_v37 = vld [vmem:[%s19327_s5 + $0x528] sm:$0xff] }
  0x68   :  { %240 = vst [vmem:[#allocation2 + $0x330] sm:$0xff] %v239_v38  ;;  %v367_v38 = vld [vmem:[%s19327_s5 + $0x530] sm:$0xff] }
  0x69   :  { %242 = vst [vmem:[#allocation2 + $0x338] sm:$0xff] %v241_v39  ;;  %v369_v39 = vld [vmem:[%s19327_s5 + $0x538] sm:$0xff] }
  0x6a   :  { %244 = vst [vmem:[#allocation2 + $0x340] sm:$0xff] %v243_v40  ;;  %v371_v40 = vld [vmem:[%s19327_s5 + $0x540] sm:$0xff] }
  0x6b   :  { %246 = vst [vmem:[#allocation2 + $0x348] sm:$0xff] %v245_v41  ;;  %v373_v41 = vld [vmem:[%s19327_s5 + $0x548] sm:$0xff] }
  0x6c   :  { %248 = vst [vmem:[#allocation2 + $0x350] sm:$0xff] %v247_v42  ;;  %v375_v42 = vld [vmem:[%s19327_s5 + $0x550] sm:$0xff] }
  0x6d   :  { %250 = vst [vmem:[#allocation2 + $0x358] sm:$0xff] %v249_v43  ;;  %v377_v43 = vld [vmem:[%s19327_s5 + $0x558] sm:$0xff] }
  0x6e   :  { %252 = vst [vmem:[#allocation2 + $0x360] sm:$0xff] %v251_v44  ;;  %v379_v44 = vld [vmem:[%s19327_s5 + $0x560] sm:$0xff] }
  0x6f   :  { %254 = vst [vmem:[#allocation2 + $0x368] sm:$0xff] %v253_v45  ;;  %v381_v45 = vld [vmem:[%s19327_s5 + $0x568] sm:$0xff] }
  0x70   :  { %256 = vst [vmem:[#allocation2 + $0x370] sm:$0xff] %v255_v46  ;;  %v383_v46 = vld [vmem:[%s19327_s5 + $0x570] sm:$0xff] }
  0x71   :  { %258 = vst [vmem:[#allocation2 + $0x378] sm:$0xff] %v257_v47  ;;  %v385_v47 = vld [vmem:[%s19327_s5 + $0x578] sm:$0xff] }
  0x72   :  { %260 = vst [vmem:[#allocation2 + $0x380] sm:$0xff] %v259_v48  ;;  %v387_v48 = vld [vmem:[%s19327_s5 + $0x580] sm:$0xff] }
  0x73   :  { %262 = vst [vmem:[#allocation2 + $0x388] sm:$0xff] %v261_v49  ;;  %v389_v49 = vld [vmem:[%s19327_s5 + $0x588] sm:$0xff] }
  0x74   :  { %264 = vst [vmem:[#allocation2 + $0x390] sm:$0xff] %v263_v50  ;;  %v391_v50 = vld [vmem:[%s19327_s5 + $0x590] sm:$0xff] }
  0x75   :  { %266 = vst [vmem:[#allocation2 + $0x398] sm:$0xff] %v265_v51  ;;  %v393_v51 = vld [vmem:[%s19327_s5 + $0x598] sm:$0xff] }
  0x76   :  { %268 = vst [vmem:[#allocation2 + $0x3a0] sm:$0xff] %v267_v52  ;;  %v395_v52 = vld [vmem:[%s19327_s5 + $0x5a0] sm:$0xff] }
  0x77   :  { %270 = vst [vmem:[#allocation2 + $0x3a8] sm:$0xff] %v269_v53  ;;  %v397_v53 = vld [vmem:[%s19327_s5 + $0x5a8] sm:$0xff] }
  0x78   :  { %272 = vst [vmem:[#allocation2 + $0x3b0] sm:$0xff] %v271_v54  ;;  %v399_v54 = vld [vmem:[%s19327_s5 + $0x5b0] sm:$0xff] }
  0x79   :  { %274 = vst [vmem:[#allocation2 + $0x3b8] sm:$0xff] %v273_v55  ;;  %v401_v55 = vld [vmem:[%s19327_s5 + $0x5b8] sm:$0xff] }
  0x7a   :  { %276 = vst [vmem:[#allocation2 + $0x3c0] sm:$0xff] %v275_v56  ;;  %v403_v56 = vld [vmem:[%s19327_s5 + $0x5c0] sm:$0xff] }
  0x7b   :  { %278 = vst [vmem:[#allocation2 + $0x3c8] sm:$0xff] %v277_v57  ;;  %v405_v57 = vld [vmem:[%s19327_s5 + $0x5c8] sm:$0xff] }
  0x7c   :  { %280 = vst [vmem:[#allocation2 + $0x3d0] sm:$0xff] %v279_v58  ;;  %v407_v58 = vld [vmem:[%s19327_s5 + $0x5d0] sm:$0xff] }
  0x7d   :  { %282 = vst [vmem:[#allocation2 + $0x3d8] sm:$0xff] %v281_v59  ;;  %v409_v59 = vld [vmem:[%s19327_s5 + $0x5d8] sm:$0xff] }
  0x7e   :  { %284 = vst [vmem:[#allocation2 + $0x3e0] sm:$0xff] %v283_v60  ;;  %v411_v60 = vld [vmem:[%s19327_s5 + $0x5e0] sm:$0xff] }
  0x7f   :  { %286 = vst [vmem:[#allocation2 + $0x3e8] sm:$0xff] %v285_v61  ;;  %v413_v61 = vld [vmem:[%s19327_s5 + $0x5e8] sm:$0xff] }
  0x80   :  { %288 = vst [vmem:[#allocation2 + $0x3f0] sm:$0xff] %v287_v62  ;;  %v415_v62 = vld [vmem:[%s19327_s5 + $0x5f0] sm:$0xff] }
  0x81   :  { %290 = vst [vmem:[#allocation2 + $0x3f8] sm:$0xff] %v289_v63  ;;  %v417_v63 = vld [vmem:[%s19327_s5 + $0x5f8] sm:$0xff] }
  0x82   :  { %292 = vst [vmem:[#allocation2 + $0x400] sm:$0xff] %v291_v0  ;;  %v419_v0 = vld [vmem:[%s19327_s5 + $0x600] sm:$0xff] }
  0x83   :  { %294 = vst [vmem:[#allocation2 + $0x408] sm:$0xff] %v293_v1  ;;  %v421_v1 = vld [vmem:[%s19327_s5 + $0x608] sm:$0xff] }
  0x84   :  { %296 = vst [vmem:[#allocation2 + $0x410] sm:$0xff] %v295_v2  ;;  %v423_v2 = vld [vmem:[%s19327_s5 + $0x610] sm:$0xff] }
  0x85   :  { %298 = vst [vmem:[#allocation2 + $0x418] sm:$0xff] %v297_v3  ;;  %v425_v3 = vld [vmem:[%s19327_s5 + $0x618] sm:$0xff] }
  0x86   :  { %300 = vst [vmem:[#allocation2 + $0x420] sm:$0xff] %v299_v4  ;;  %v427_v4 = vld [vmem:[%s19327_s5 + $0x620] sm:$0xff] }
  0x87   :  { %302 = vst [vmem:[#allocation2 + $0x428] sm:$0xff] %v301_v5  ;;  %v429_v5 = vld [vmem:[%s19327_s5 + $0x628] sm:$0xff] }
  0x88   :  { %304 = vst [vmem:[#allocation2 + $0x430] sm:$0xff] %v303_v6  ;;  %v431_v6 = vld [vmem:[%s19327_s5 + $0x630] sm:$0xff] }
  0x89   :  { %306 = vst [vmem:[#allocation2 + $0x438] sm:$0xff] %v305_v7  ;;  %v433_v7 = vld [vmem:[%s19327_s5 + $0x638] sm:$0xff] }
  0x8a   :  { %308 = vst [vmem:[#allocation2 + $0x440] sm:$0xff] %v307_v8  ;;  %v435_v8 = vld [vmem:[%s19327_s5 + $0x640] sm:$0xff] }
  0x8b   :  { %310 = vst [vmem:[#allocation2 + $0x448] sm:$0xff] %v309_v9  ;;  %v437_v9 = vld [vmem:[%s19327_s5 + $0x648] sm:$0xff] }
  0x8c   :  { %312 = vst [vmem:[#allocation2 + $0x450] sm:$0xff] %v311_v10  ;;  %v439_v10 = vld [vmem:[%s19327_s5 + $0x650] sm:$0xff] }
  0x8d   :  { %314 = vst [vmem:[#allocation2 + $0x458] sm:$0xff] %v313_v11  ;;  %v441_v11 = vld [vmem:[%s19327_s5 + $0x658] sm:$0xff] }
  0x8e   :  { %316 = vst [vmem:[#allocation2 + $0x460] sm:$0xff] %v315_v12  ;;  %v443_v12 = vld [vmem:[%s19327_s5 + $0x660] sm:$0xff] }
  0x8f   :  { %318 = vst [vmem:[#allocation2 + $0x468] sm:$0xff] %v317_v13  ;;  %v445_v13 = vld [vmem:[%s19327_s5 + $0x668] sm:$0xff] }
  0x90   :  { %320 = vst [vmem:[#allocation2 + $0x470] sm:$0xff] %v319_v14  ;;  %v447_v14 = vld [vmem:[%s19327_s5 + $0x670] sm:$0xff] }
  0x91   :  { %322 = vst [vmem:[#allocation2 + $0x478] sm:$0xff] %v321_v15  ;;  %v449_v15 = vld [vmem:[%s19327_s5 + $0x678] sm:$0xff] }
  0x92   :  { %324 = vst [vmem:[#allocation2 + $0x480] sm:$0xff] %v323_v16  ;;  %v451_v16 = vld [vmem:[%s19327_s5 + $0x680] sm:$0xff] }
  0x93   :  { %326 = vst [vmem:[#allocation2 + $0x488] sm:$0xff] %v325_v17  ;;  %v453_v17 = vld [vmem:[%s19327_s5 + $0x688] sm:$0xff] }
  0x94   :  { %328 = vst [vmem:[#allocation2 + $0x490] sm:$0xff] %v327_v18  ;;  %v455_v18 = vld [vmem:[%s19327_s5 + $0x690] sm:$0xff] }
  0x95   :  { %330 = vst [vmem:[#allocation2 + $0x498] sm:$0xff] %v329_v19  ;;  %v457_v19 = vld [vmem:[%s19327_s5 + $0x698] sm:$0xff] }
  0x96   :  { %332 = vst [vmem:[#allocation2 + $0x4a0] sm:$0xff] %v331_v20  ;;  %v459_v20 = vld [vmem:[%s19327_s5 + $0x6a0] sm:$0xff] }
  0x97   :  { %334 = vst [vmem:[#allocation2 + $0x4a8] sm:$0xff] %v333_v21  ;;  %v461_v21 = vld [vmem:[%s19327_s5 + $0x6a8] sm:$0xff] }
  0x98   :  { %336 = vst [vmem:[#allocation2 + $0x4b0] sm:$0xff] %v335_v22  ;;  %v463_v22 = vld [vmem:[%s19327_s5 + $0x6b0] sm:$0xff] }
  0x99   :  { %338 = vst [vmem:[#allocation2 + $0x4b8] sm:$0xff] %v337_v23  ;;  %v465_v23 = vld [vmem:[%s19327_s5 + $0x6b8] sm:$0xff] }
  0x9a   :  { %340 = vst [vmem:[#allocation2 + $0x4c0] sm:$0xff] %v339_v24  ;;  %v467_v24 = vld [vmem:[%s19327_s5 + $0x6c0] sm:$0xff] }
  0x9b   :  { %342 = vst [vmem:[#allocation2 + $0x4c8] sm:$0xff] %v341_v25  ;;  %v469_v25 = vld [vmem:[%s19327_s5 + $0x6c8] sm:$0xff] }
  0x9c   :  { %344 = vst [vmem:[#allocation2 + $0x4d0] sm:$0xff] %v343_v26  ;;  %v471_v26 = vld [vmem:[%s19327_s5 + $0x6d0] sm:$0xff] }
  0x9d   :  { %346 = vst [vmem:[#allocation2 + $0x4d8] sm:$0xff] %v345_v27  ;;  %v473_v27 = vld [vmem:[%s19327_s5 + $0x6d8] sm:$0xff] }
  0x9e   :  { %348 = vst [vmem:[#allocation2 + $0x4e0] sm:$0xff] %v347_v28  ;;  %v475_v28 = vld [vmem:[%s19327_s5 + $0x6e0] sm:$0xff] }
  0x9f   :  { %350 = vst [vmem:[#allocation2 + $0x4e8] sm:$0xff] %v349_v29  ;;  %v477_v29 = vld [vmem:[%s19327_s5 + $0x6e8] sm:$0xff] }
  0xa0   :  { %352 = vst [vmem:[#allocation2 + $0x4f0] sm:$0xff] %v351_v30  ;;  %v479_v30 = vld [vmem:[%s19327_s5 + $0x6f0] sm:$0xff] }
  0xa1   :  { %354 = vst [vmem:[#allocation2 + $0x4f8] sm:$0xff] %v353_v31  ;;  %v481_v31 = vld [vmem:[%s19327_s5 + $0x6f8] sm:$0xff] }
  0xa2   :  { %356 = vst [vmem:[#allocation2 + $0x500] sm:$0xff] %v355_v32  ;;  %v483_v32 = vld [vmem:[%s19327_s5 + $0x700] sm:$0xff] }
  0xa3   :  { %358 = vst [vmem:[#allocation2 + $0x508] sm:$0xff] %v357_v33  ;;  %v485_v33 = vld [vmem:[%s19327_s5 + $0x708] sm:$0xff] }
  0xa4   :  { %360 = vst [vmem:[#allocation2 + $0x510] sm:$0xff] %v359_v34  ;;  %v487_v34 = vld [vmem:[%s19327_s5 + $0x710] sm:$0xff] }
  0xa5   :  { %362 = vst [vmem:[#allocation2 + $0x518] sm:$0xff] %v361_v35  ;;  %v489_v35 = vld [vmem:[%s19327_s5 + $0x718] sm:$0xff] }
  0xa6   :  { %364 = vst [vmem:[#allocation2 + $0x520] sm:$0xff] %v363_v36  ;;  %v491_v36 = vld [vmem:[%s19327_s5 + $0x720] sm:$0xff] }
  0xa7   :  { %366 = vst [vmem:[#allocation2 + $0x528] sm:$0xff] %v365_v37  ;;  %v493_v37 = vld [vmem:[%s19327_s5 + $0x728] sm:$0xff] }
  0xa8   :  { %368 = vst [vmem:[#allocation2 + $0x530] sm:$0xff] %v367_v38  ;;  %v495_v38 = vld [vmem:[%s19327_s5 + $0x730] sm:$0xff] }
  0xa9   :  { %370 = vst [vmem:[#allocation2 + $0x538] sm:$0xff] %v369_v39  ;;  %v497_v39 = vld [vmem:[%s19327_s5 + $0x738] sm:$0xff] }
  0xaa   :  { %372 = vst [vmem:[#allocation2 + $0x540] sm:$0xff] %v371_v40  ;;  %v499_v40 = vld [vmem:[%s19327_s5 + $0x740] sm:$0xff] }
  0xab   :  { %374 = vst [vmem:[#allocation2 + $0x548] sm:$0xff] %v373_v41  ;;  %v501_v41 = vld [vmem:[%s19327_s5 + $0x748] sm:$0xff] }
  0xac   :  { %376 = vst [vmem:[#allocation2 + $0x550] sm:$0xff] %v375_v42  ;;  %v503_v42 = vld [vmem:[%s19327_s5 + $0x750] sm:$0xff] }
  0xad   :  { %378 = vst [vmem:[#allocation2 + $0x558] sm:$0xff] %v377_v43  ;;  %v505_v43 = vld [vmem:[%s19327_s5 + $0x758] sm:$0xff] }
  0xae   :  { %380 = vst [vmem:[#allocation2 + $0x560] sm:$0xff] %v379_v44  ;;  %v507_v44 = vld [vmem:[%s19327_s5 + $0x760] sm:$0xff] }
  0xaf   :  { %382 = vst [vmem:[#allocation2 + $0x568] sm:$0xff] %v381_v45  ;;  %v509_v45 = vld [vmem:[%s19327_s5 + $0x768] sm:$0xff] }
  0xb0   :  { %384 = vst [vmem:[#allocation2 + $0x570] sm:$0xff] %v383_v46  ;;  %v511_v46 = vld [vmem:[%s19327_s5 + $0x770] sm:$0xff] }
  0xb1   :  { %386 = vst [vmem:[#allocation2 + $0x578] sm:$0xff] %v385_v47  ;;  %v513_v47 = vld [vmem:[%s19327_s5 + $0x778] sm:$0xff] }
  0xb2   :  { %388 = vst [vmem:[#allocation2 + $0x580] sm:$0xff] %v387_v48  ;;  %v515_v48 = vld [vmem:[%s19327_s5 + $0x780] sm:$0xff] }
  0xb3   :  { %390 = vst [vmem:[#allocation2 + $0x588] sm:$0xff] %v389_v49  ;;  %v517_v49 = vld [vmem:[%s19327_s5 + $0x788] sm:$0xff] }
  0xb4   :  { %392 = vst [vmem:[#allocation2 + $0x590] sm:$0xff] %v391_v50  ;;  %v519_v50 = vld [vmem:[%s19327_s5 + $0x790] sm:$0xff] }
  0xb5   :  { %394 = vst [vmem:[#allocation2 + $0x598] sm:$0xff] %v393_v51  ;;  %v521_v51 = vld [vmem:[%s19327_s5 + $0x798] sm:$0xff] }
  0xb6   :  { %396 = vst [vmem:[#allocation2 + $0x5a0] sm:$0xff] %v395_v52  ;;  %v523_v52 = vld [vmem:[%s19327_s5 + $0x7a0] sm:$0xff] }
  0xb7   :  { %398 = vst [vmem:[#allocation2 + $0x5a8] sm:$0xff] %v397_v53  ;;  %v525_v53 = vld [vmem:[%s19327_s5 + $0x7a8] sm:$0xff] }
  0xb8   :  { %400 = vst [vmem:[#allocation2 + $0x5b0] sm:$0xff] %v399_v54  ;;  %v527_v54 = vld [vmem:[%s19327_s5 + $0x7b0] sm:$0xff] }
  0xb9   :  { %402 = vst [vmem:[#allocation2 + $0x5b8] sm:$0xff] %v401_v55  ;;  %v529_v55 = vld [vmem:[%s19327_s5 + $0x7b8] sm:$0xff] }
  0xba   :  { %404 = vst [vmem:[#allocation2 + $0x5c0] sm:$0xff] %v403_v56  ;;  %v531_v56 = vld [vmem:[%s19327_s5 + $0x7c0] sm:$0xff] }
  0xbb   :  { %406 = vst [vmem:[#allocation2 + $0x5c8] sm:$0xff] %v405_v57  ;;  %v533_v57 = vld [vmem:[%s19327_s5 + $0x7c8] sm:$0xff] }
  0xbc   :  { %408 = vst [vmem:[#allocation2 + $0x5d0] sm:$0xff] %v407_v58  ;;  %v535_v58 = vld [vmem:[%s19327_s5 + $0x7d0] sm:$0xff] }
  0xbd   :  { %410 = vst [vmem:[#allocation2 + $0x5d8] sm:$0xff] %v409_v59  ;;  %v537_v59 = vld [vmem:[%s19327_s5 + $0x7d8] sm:$0xff] }
  0xbe   :  { %412 = vst [vmem:[#allocation2 + $0x5e0] sm:$0xff] %v411_v60  ;;  %v539_v60 = vld [vmem:[%s19327_s5 + $0x7e0] sm:$0xff] }
  0xbf   :  { %414 = vst [vmem:[#allocation2 + $0x5e8] sm:$0xff] %v413_v61  ;;  %v541_v61 = vld [vmem:[%s19327_s5 + $0x7e8] sm:$0xff] }
  0xc0   :  { %416 = vst [vmem:[#allocation2 + $0x5f0] sm:$0xff] %v415_v62  ;;  %v543_v62 = vld [vmem:[%s19327_s5 + $0x7f0] sm:$0xff] }
  0xc1   :  { %418 = vst [vmem:[#allocation2 + $0x5f8] sm:$0xff] %v417_v63  ;;  %v545_v63 = vld [vmem:[%s19327_s5 + $0x7f8] sm:$0xff] }
  0xc2   :  { %420 = vst [vmem:[#allocation2 + $0x600] sm:$0xff] %v419_v0 }
  0xc3   :  { %422 = vst [vmem:[#allocation2 + $0x608] sm:$0xff] %v421_v1 }
  0xc4   :  { %424 = vst [vmem:[#allocation2 + $0x610] sm:$0xff] %v423_v2 }
  0xc5   :  { %426 = vst [vmem:[#allocation2 + $0x618] sm:$0xff] %v425_v3 }
  0xc6   :  { %428 = vst [vmem:[#allocation2 + $0x620] sm:$0xff] %v427_v4 }
  0xc7   :  { %430 = vst [vmem:[#allocation2 + $0x628] sm:$0xff] %v429_v5 }
  0xc8   :  { %432 = vst [vmem:[#allocation2 + $0x630] sm:$0xff] %v431_v6 }
  0xc9   :  { %434 = vst [vmem:[#allocation2 + $0x638] sm:$0xff] %v433_v7 }
  0xca   :  { %436 = vst [vmem:[#allocation2 + $0x640] sm:$0xff] %v435_v8 }
  0xcb   :  { %438 = vst [vmem:[#allocation2 + $0x648] sm:$0xff] %v437_v9 }
  0xcc   :  { %440 = vst [vmem:[#allocation2 + $0x650] sm:$0xff] %v439_v10 }
  0xcd   :  { %442 = vst [vmem:[#allocation2 + $0x658] sm:$0xff] %v441_v11 }
  0xce   :  { %444 = vst [vmem:[#allocation2 + $0x660] sm:$0xff] %v443_v12 }
  0xcf   :  { %446 = vst [vmem:[#allocation2 + $0x668] sm:$0xff] %v445_v13 }
  0xd0   :  { %448 = vst [vmem:[#allocation2 + $0x670] sm:$0xff] %v447_v14 }
  0xd1   :  { %450 = vst [vmem:[#allocation2 + $0x678] sm:$0xff] %v449_v15 }
  0xd2   :  { %452 = vst [vmem:[#allocation2 + $0x680] sm:$0xff] %v451_v16 }
  0xd3   :  { %454 = vst [vmem:[#allocation2 + $0x688] sm:$0xff] %v453_v17 }
  0xd4   :  { %456 = vst [vmem:[#allocation2 + $0x690] sm:$0xff] %v455_v18 }
  0xd5   :  { %458 = vst [vmem:[#allocation2 + $0x698] sm:$0xff] %v457_v19 }
  0xd6   :  { %460 = vst [vmem:[#allocation2 + $0x6a0] sm:$0xff] %v459_v20 }
  0xd7   :  { %462 = vst [vmem:[#allocation2 + $0x6a8] sm:$0xff] %v461_v21 }
  0xd8   :  { %464 = vst [vmem:[#allocation2 + $0x6b0] sm:$0xff] %v463_v22 }
  0xd9   :  { %466 = vst [vmem:[#allocation2 + $0x6b8] sm:$0xff] %v465_v23 }
  0xda   :  { %468 = vst [vmem:[#allocation2 + $0x6c0] sm:$0xff] %v467_v24 }
  0xdb   :  { %470 = vst [vmem:[#allocation2 + $0x6c8] sm:$0xff] %v469_v25 }
  0xdc   :  { %472 = vst [vmem:[#allocation2 + $0x6d0] sm:$0xff] %v471_v26 }
  0xdd   :  { %474 = vst [vmem:[#allocation2 + $0x6d8] sm:$0xff] %v473_v27 }
  0xde   :  { %476 = vst [vmem:[#allocation2 + $0x6e0] sm:$0xff] %v475_v28 }
  0xdf   :  { %478 = vst [vmem:[#allocation2 + $0x6e8] sm:$0xff] %v477_v29 }
  0xe0   :  { %480 = vst [vmem:[#allocation2 + $0x6f0] sm:$0xff] %v479_v30 }
  0xe1   :  { %482 = vst [vmem:[#allocation2 + $0x6f8] sm:$0xff] %v481_v31 }
  0xe2   :  { %484 = vst [vmem:[#allocation2 + $0x700] sm:$0xff] %v483_v32 }
  0xe3   :  { %486 = vst [vmem:[#allocation2 + $0x708] sm:$0xff] %v485_v33 }
  0xe4   :  { %488 = vst [vmem:[#allocation2 + $0x710] sm:$0xff] %v487_v34 }
  0xe5   :  { %490 = vst [vmem:[#allocation2 + $0x718] sm:$0xff] %v489_v35 }
  0xe6   :  { %492 = vst [vmem:[#allocation2 + $0x720] sm:$0xff] %v491_v36 }
  0xe7   :  { %494 = vst [vmem:[#allocation2 + $0x728] sm:$0xff] %v493_v37 }
  0xe8   :  { %496 = vst [vmem:[#allocation2 + $0x730] sm:$0xff] %v495_v38 }
  0xe9   :  { %498 = vst [vmem:[#allocation2 + $0x738] sm:$0xff] %v497_v39 }
  0xea   :  { %500 = vst [vmem:[#allocation2 + $0x740] sm:$0xff] %v499_v40 }
  0xeb   :  { %502 = vst [vmem:[#allocation2 + $0x748] sm:$0xff] %v501_v41 }
  0xec   :  { %504 = vst [vmem:[#allocation2 + $0x750] sm:$0xff] %v503_v42 }
  0xed   :  { %506 = vst [vmem:[#allocation2 + $0x758] sm:$0xff] %v505_v43 }
  0xee   :  { %508 = vst [vmem:[#allocation2 + $0x760] sm:$0xff] %v507_v44 }
  0xef   :  { %510 = vst [vmem:[#allocation2 + $0x768] sm:$0xff] %v509_v45 }
  0xf0   :  { %512 = vst [vmem:[#allocation2 + $0x770] sm:$0xff] %v511_v46 }
  0xf1   :  { %514 = vst [vmem:[#allocation2 + $0x778] sm:$0xff] %v513_v47 }
  0xf2   :  { %516 = vst [vmem:[#allocation2 + $0x780] sm:$0xff] %v515_v48 }
  0xf3   :  { %518 = vst [vmem:[#allocation2 + $0x788] sm:$0xff] %v517_v49 }
  0xf4   :  { %520 = vst [vmem:[#allocation2 + $0x790] sm:$0xff] %v519_v50 }
  0xf5   :  { %522 = vst [vmem:[#allocation2 + $0x798] sm:$0xff] %v521_v51 }
  0xf6   :  { %524 = vst [vmem:[#allocation2 + $0x7a0] sm:$0xff] %v523_v52 }
  0xf7   :  { %526 = vst [vmem:[#allocation2 + $0x7a8] sm:$0xff] %v525_v53 }
  0xf8   :  { %528 = vst [vmem:[#allocation2 + $0x7b0] sm:$0xff] %v527_v54 }
  0xf9   :  { %530 = vst [vmem:[#allocation2 + $0x7b8] sm:$0xff] %v529_v55 }
  0xfa   :  { %532 = vst [vmem:[#allocation2 + $0x7c0] sm:$0xff] %v531_v56 }
  0xfb   :  { %534 = vst [vmem:[#allocation2 + $0x7c8] sm:$0xff] %v533_v57 }
  0xfc   :  { %536 = vst [vmem:[#allocation2 + $0x7d0] sm:$0xff] %v535_v58 }
  0xfd   :  { %538 = vst [vmem:[#allocation2 + $0x7d8] sm:$0xff] %v537_v59 }
  0xfe   :  { %540 = vst [vmem:[#allocation2 + $0x7e0] sm:$0xff] %v539_v60 }
  0xff   :  { %542 = vst [vmem:[#allocation2 + $0x7e8] sm:$0xff] %v541_v61 }
 0x100   :  { %544 = vst [vmem:[#allocation2 + $0x7f0] sm:$0xff] %v543_v62 }
 0x101   :  { %546 = vst [vmem:[#allocation2 + $0x7f8] sm:$0xff] %v545_v63 }
 0x102   :  { %552 = vsyncadd [#allocation4], 32768  ;;  %v564_v0 = vld [vmem:[%s19328_s6] sm:$0xff]  ;;  %v566_v1 = vld [vmem:[%s19328_s6 + $0x8] sm:$0xff] }
 0x103   :  { %565 = vst [vmem:[#allocation3 + $0xb0] sm:$0xff] %v564_v0  ;;  %v568_v2 = vld [vmem:[%s19328_s6 + $0x10] sm:$0xff]  ;;  %v570_v3 = vld [vmem:[%s19328_s6 + $0x18] sm:$0xff]  ;;  %v572_v4 = vld [vmem:[%s19328_s6 + $0x20] sm:$0xff] }
 0x104   :  { %567 = vst [vmem:[#allocation3] sm:$0xff] %v566_v1  ;;  %v574_v5 = vld [vmem:[%s19328_s6 + $0x28] sm:$0xff]  ;;  %v576_v6 = vld [vmem:[%s19328_s6 + $0x30] sm:$0xff]  ;;  %v578_v7 = vld [vmem:[%s19328_s6 + $0x38] sm:$0xff] }
 0x105   :  { %569 = vst [vmem:[#allocation3 + $0xd8] sm:$0xff] %v568_v2  ;;  %v580_v8 = vld [vmem:[%s19328_s6 + $0x40] sm:$0xff]  ;;  %v582_v9 = vld [vmem:[%s19328_s6 + $0x48] sm:$0xff]  ;;  %v584_v10 = vld [vmem:[%s19328_s6 + $0x50] sm:$0xff] }
 0x106   :  { %571 = vst [vmem:[#allocation3 + $0x18] sm:$0xff] %v570_v3  ;;  %v586_v11 = vld [vmem:[%s19328_s6 + $0x58] sm:$0xff]  ;;  %v588_v12 = vld [vmem:[%s19328_s6 + $0x60] sm:$0xff]  ;;  %v590_v13 = vld [vmem:[%s19328_s6 + $0x68] sm:$0xff] }
 0x107   :  { %573 = vst [vmem:[#allocation3 + $0x50] sm:$0xff] %v572_v4  ;;  %v592_v14 = vld [vmem:[%s19328_s6 + $0x70] sm:$0xff]  ;;  %v594_v15 = vld [vmem:[%s19328_s6 + $0x78] sm:$0xff]  ;;  %v596_v16 = vld [vmem:[%s19328_s6 + $0x80] sm:$0xff] }
 0x108   :  { %575 = vst [vmem:[#allocation3 + $0x68] sm:$0xff] %v574_v5  ;;  %v598_v17 = vld [vmem:[%s19328_s6 + $0x88] sm:$0xff]  ;;  %v600_v18 = vld [vmem:[%s19328_s6 + $0x90] sm:$0xff]  ;;  %v602_v19 = vld [vmem:[%s19328_s6 + $0x98] sm:$0xff] }
 0x109   :  { %577 = vst [vmem:[#allocation3 + $0x30] sm:$0xff] %v576_v6  ;;  %v604_v20 = vld [vmem:[%s19328_s6 + $0xa0] sm:$0xff]  ;;  %v606_v21 = vld [vmem:[%s19328_s6 + $0xa8] sm:$0xff]  ;;  %v608_v22 = vld [vmem:[%s19328_s6 + $0xb0] sm:$0xff] }
 0x10a   :  { %579 = vst [vmem:[#allocation3 + $0x48] sm:$0xff] %v578_v7  ;;  %v610_v23 = vld [vmem:[%s19328_s6 + $0xb8] sm:$0xff]  ;;  %v612_v24 = vld [vmem:[%s19328_s6 + $0xc0] sm:$0xff]  ;;  %v614_v25 = vld [vmem:[%s19328_s6 + $0xc8] sm:$0xff] }
 0x10b   :  { %581 = vst [vmem:[#allocation3 + $0x80] sm:$0xff] %v580_v8  ;;  %v616_v26 = vld [vmem:[%s19328_s6 + $0xd0] sm:$0xff]  ;;  %v618_v27 = vld [vmem:[%s19328_s6 + $0xd8] sm:$0xff]  ;;  %v620_v28 = vld [vmem:[%s19328_s6 + $0xe0] sm:$0xff] }
 0x10c   :  { %583 = vst [vmem:[#allocation3 + $0x88] sm:$0xff] %v582_v9  ;;  %v622_v29 = vld [vmem:[%s19328_s6 + $0xe8] sm:$0xff]  ;;  %v624_v30 = vld [vmem:[%s19328_s6 + $0xf0] sm:$0xff]  ;;  %v626_v31 = vld [vmem:[%s19328_s6 + $0xf8] sm:$0xff] }
 0x10d   :  { %585 = vst [vmem:[#allocation3 + $0xe8] sm:$0xff] %v584_v10 }
 0x10e   :  { %587 = vst [vmem:[#allocation3 + $0xb8] sm:$0xff] %v586_v11 }
 0x10f   :  { %589 = vst [vmem:[#allocation3 + $0x60] sm:$0xff] %v588_v12 }
 0x110   :  { %591 = vst [vmem:[#allocation3 + $0xf0] sm:$0xff] %v590_v13 }
 0x111   :  { %593 = vst [vmem:[#allocation3 + $0x8] sm:$0xff] %v592_v14 }
 0x112   :  { %595 = vst [vmem:[#allocation3 + $0x78] sm:$0xff] %v594_v15 }
 0x113   :  { %597 = vst [vmem:[#allocation3 + $0x38] sm:$0xff] %v596_v16 }
 0x114   :  { %599 = vst [vmem:[#allocation3 + $0x58] sm:$0xff] %v598_v17 }
 0x115   :  { %601 = vst [vmem:[#allocation3 + $0x40] sm:$0xff] %v600_v18 }
 0x116   :  { %603 = vst [vmem:[#allocation3 + $0xc8] sm:$0xff] %v602_v19 }
 0x117   :  { %605 = vst [vmem:[#allocation3 + $0xe0] sm:$0xff] %v604_v20 }
 0x118   :  { %607 = vst [vmem:[#allocation3 + $0x90] sm:$0xff] %v606_v21 }
 0x119   :  { %609 = vst [vmem:[#allocation3 + $0x70] sm:$0xff] %v608_v22 }
 0x11a   :  { %611 = vst [vmem:[#allocation3 + $0xc0] sm:$0xff] %v610_v23 }
 0x11b   :  { %613 = vst [vmem:[#allocation3 + $0xa8] sm:$0xff] %v612_v24 }
 0x11c   :  { %615 = vst [vmem:[#allocation3 + $0xd0] sm:$0xff] %v614_v25 }
 0x11d   :  { %617 = vst [vmem:[#allocation3 + $0x10] sm:$0xff] %v616_v26 }
 0x11e   :  { %619 = vst [vmem:[#allocation3 + $0x28] sm:$0xff] %v618_v27 }
 0x11f   :  { %621 = vst [vmem:[#allocation3 + $0xa0] sm:$0xff] %v620_v28 }
 0x120   :  { %623 = vst [vmem:[#allocation3 + $0xf8] sm:$0xff] %v622_v29 }
 0x121   :  { %625 = vst [vmem:[#allocation3 + $0x20] sm:$0xff] %v624_v30 }
 0x122   :  { %627 = vst [vmem:[#allocation3 + $0x98] sm:$0xff] %v626_v31 }
 0x123   :  { %633 = vsyncadd [#allocation4 + $0x1], 4096  ;;  %v14342_v32 = vld [vmem:[%s19326_s4 + $0x1] ss:$8 sm:$0xf]  ;;  %vm1157_vm0 = vcmask 1043456  }
 0x124   :  { %19628 = vst [vmem:[#allocation9_spill] sm:$0xff] %v14342_v32  ;;  %v14347_v33 = vld [vmem:[%s19326_s4 + $0x2] ss:$0 sm:$0xff]  ;;  %v14352_v34 = vld [vmem:[%s19326_s4 + $0x3] ss:$0 sm:$0xff]  ;;  %v770_v37 = vld [vmem:[%s19324_s2 + $0x18] sm:$0xff] }
 0x125   :  { %19629 = vst [vmem:[#allocation10_spill] sm:$0xff] %v14347_v33  ;;  %v771_v35 = vld [vmem:[%s19324_s2 + $0x20] sm:$0xf]  ;;  %v769_v38 = vld [vmem:[%s19324_s2 + $0x10] sm:$0xff]  ;;  %v768_v39 = vld [vmem:[%s19324_s2 + $0x8] sm:$0xff]  ;;  %vm772_vm1 = vcmask 293888  }
 0x126   :  { %19630 = vst [vmem:[#allocation11_spill] sm:$0xff] %v14352_v34  ;;  %v1159_v36 = vsel %vm1157_vm0, %v771_v35, 0  ;;  %v14368_v41 = vand.u32 4294901760, %v770_v37  ;;  %v14370_v42 = vand.u32 4294901760, %v769_v38  ;;  %v14372_v43 = vand.u32 4294901760, %v768_v39  ;;  %v767_v44 = vld [vmem:[%s19324_s2] sm:$0xff] }
 0x127   :  { %v14366_v40 = vand.u32 4294901760, %v1159_v36  ;;  %v639_v45 = vld [vmem:[%s19322_s0] sm:$0xff]  ;;  %v14380_v46 = vand.u32 4294901760, %v767_v44  ;;  %v640_v48 = vld [vmem:[%s19322_s0 + $0x8] sm:$0xff]  ;;  %v641_v49 = vld [vmem:[%s19322_s0 + $0x10] sm:$0xff]  ;;  %vm8183_vm2 = vcmask 64512  }
 0x128   :  { %v774_v47 = vsel %vm772_vm1, %v639_v45, 0  ;;  %v2225_v51 = vsub.f32 %v770_v37, %v14368_v41  ;;  %v2231_v52 = vsub.f32 %v769_v38, %v14370_v42  ;;  %v14397_v54 = vsub.f32 %v768_v39, %v14372_v43  ;;  %v642_v15 = vld [vmem:[%s19322_s0 + $0x18] sm:$0xff]  ;;  %v643_v24 = vld [vmem:[%s19322_s0 + $0x20] sm:$0xff]  ;;  %v644_v31 = vld [vmem:[%s19322_s0 + $0x28] sm:$0xff] }
 0x129   :  { %1173 = vmatpush.msra.mxu0 %v14366_v40  ;;  %v2219_v50 = vsub.f32 %v1159_v36, %v14366_v40  ;;  %3440 = vmatpush.msra.mxu3 %v14366_v40  ;;  %v14394_v53 = vand.u32 4294901760, %v774_v47  ;;  %v14400_v55 = vsub.f32 %v767_v44, %v14380_v46  ;;  %v777_v56 = vsel %vm772_vm1, %v640_v48, 0  ;;  %v646_v48 = vld [vmem:[%s19322_s0 + $0x38] sm:$0xff] }
 0x12a   :  { %v780_v57 = vsel %vm772_vm1, %v641_v49, 0  ;;  %v2226_v60 = vand.u32 4294901760, %v2225_v51  ;;  %v2232_v61 = vand.u32 4294901760, %v2231_v52  ;;  %v2238_v62 = vand.u32 4294901760, %v14397_v54 }
 0x12b   :  { %1175 = vmatpush.msra.mxu0 %v14368_v41  ;;  %2774 = vmatpush.msra.mxu2 %v2219_v50  ;;  %v2220_v58 = vand.u32 4294901760, %v2219_v50  ;;  %v1183_v59 = vsub.f32 %v774_v47, %v14394_v53  ;;  %v2244_v63 = vand.u32 4294901760, %v14400_v55  ;;  %v14409_v0 = vand.u32 4294901760, %v777_v56 }
 0x12c   :  { %3442 = vmatpush.msra.mxu3 %v14368_v41  ;;  %v2227_v3 = vsub.f32 %v2225_v51, %v2226_v60  ;;  %v2233_v4 = vsub.f32 %v2231_v52, %v2232_v61  ;;  %v14414_v6 = vand.u32 4294901760, %v780_v57  ;;  %v2239_v10 = vsub.f32 %v14397_v54, %v2238_v62 }
 0x12d   :  { %1177 = vmatpush.msra.mxu0 %v14370_v42  ;;  %2777 = vmatpush.msra.mxu2 %v2225_v51  ;;  %v2221_v1 = vsub.f32 %v2219_v50, %v2220_v58  ;;  %v1184_v2 = vand.u32 4294901760, %v1183_v59  ;;  %v1191_v5 = vsub.f32 %v777_v56, %v14409_v0  ;;  %v2245_v14 = vsub.f32 %v14400_v55, %v2244_v63  ;;  %v647_v56 = vld [vmem:[%s19322_s0 + $0x40] sm:$0xff] }
 0x12e   :  { %3444 = vmatpush.msra.mxu3 %v14370_v42  ;;  %v2228_v9 = vand.u32 4294901760, %v2227_v3  ;;  %v2234_v13 = vand.u32 4294901760, %v2233_v4  ;;  %v2240_v16 = vand.u32 4294901760, %v2239_v10  ;;  %v1199_v18 = vsub.f32 %v780_v57, %v14414_v6 }
 0x12f   :  { %1179 = vmatpush.msra.mxu0 %v14372_v43  ;;  %v2222_v7 = vand.u32 4294901760, %v2221_v1  ;;  %2780 = vmatpush.msra.mxu2 %v2231_v52  ;;  %v1185_v8 = vsub.f32 %v1183_v59, %v1184_v2  ;;  %v1192_v11 = vand.u32 4294901760, %v1191_v5  ;;  %v783_v19 = vsel %vm772_vm1, %v642_v15, 0  ;;  %v650_v15 = vld [vmem:[%s19322_s0 + $0x58] sm:$0xff] }
 0x130   :  { %3446 = vmatpush.msra.mxu3 %v14372_v43  ;;  %v2246_v20 = vand.u32 4294901760, %v2245_v14  ;;  %v1200_v22 = vand.u32 4294901760, %v1199_v18  ;;  %v14429_v23 = vand.u32 4294901760, %v783_v19  ;;  %v786_v27 = vsel %vm772_vm1, %v643_v24, 0 }
 0x131   :  { %1181 = vmatpush.msra.mxu0 %v14380_v46  ;;  %2223 = vmatpush.msra.mxu1 %v2222_v7  ;;  %v1186_v12 = vand.u32 4294901760, %v1185_v8  ;;  %v1193_v17 = vsub.f32 %v1191_v5, %v1192_v11  ;;  %v14439_v30 = vand.u32 4294901760, %v786_v27  ;;  %v789_v37 = vsel %vm772_vm1, %v644_v31, 0  ;;  %v649_v8 = vld [vmem:[%s19322_s0 + $0x50] sm:$0xff]  ;;  %v652_v31 = vld [vmem:[%s19322_s0 + $0x68] sm:$0xff] }
 0x132   :  { %2783 = vmatpush.msra.mxu2 %v14397_v54  ;;  %3448 = vmatpush.msra.mxu3 %v14380_v46  ;;  %v1201_v25 = vsub.f32 %v1199_v18, %v1200_v22  ;;  %v1207_v26 = vsub.f32 %v783_v19, %v14429_v23  ;;  %v795_v51 = vsel %vm772_vm1, %v646_v48, 0 }
 0x133   :  { %1187 = vmatmul.f32.vlgmr.msra.gmra.mxu0 %v1186_v12  ;;  %2229 = vmatpush.msra.mxu1 %v2228_v9  ;;  %v1194_v21 = vand.u32 4294901760, %v1193_v17  ;;  %v1215_v36 = vsub.f32 %v786_v27, %v14439_v30 }
 0x134   :  { %2786 = vmatpush.msra.mxu2 %v14400_v55  ;;  %3452 = vmatmul.f32.vlgmr.msra.gmra.mxu3 %v1184_v2  ;;  %v1202_v28 = vand.u32 4294901760, %v1201_v25  ;;  %v1208_v29 = vand.u32 4294901760, %v1207_v26  ;;  %v14466_v55 = vand.u32 4294901760, %v795_v51 }
 0x135   :  { %2235 = vmatpush.msra.mxu1 %v2234_v13  ;;  %2789 = vmatmul.f32.vlgmr.msra.gmra.mxu2 %v1183_v59  ;;  %v1216_v39 = vand.u32 4294901760, %v1215_v36  ;;  %v798_v59 = vsel %vm772_vm1, %v647_v56, 0 }
 0x136   :  { %4232 = vmatpush.msrb.mxu0 %v2220_v58  ;;  %v1209_v35 = vsub.f32 %v1207_v26, %v1208_v29  ;;  %v1239_v58 = vsub.f32 %v795_v51, %v14466_v55 }
 0x137   :  { %2241 = vmatpush.msra.mxu1 %v2240_v16 }
 0x138   :  { %4236 = vmatpush.msrb.mxu0 %v2226_v60  ;;  %v1210_v38 = vand.u32 4294901760, %v1209_v35 }
 0x139   :  { %2247 = vmatpush.msra.mxu1 %v2246_v20 }
 0x13a   :  { %2249 = vmatmul.f32.vlgmr.msra.gmra.mxu1 %v14394_v53  ;;  %4240 = vmatpush.msrb.mxu0 %v2232_v61  ;;  %v1240_v61 = vand.u32 4294901760, %v1239_v58 }
 0x13b   :  { %1195 = vmatmul.f32.gmra.mxu0 %v1194_v21  ;;  %4774 = vmatpush.msrb.mxu1 %v14366_v40  ;;  %v14450_v40 = vand.u32 4294901760, %v789_v37 }
 0x13c   :  { %3458 = vmatmul.f32.gmra.mxu3 %v1192_v11  ;;  %4244 = vmatpush.msrb.mxu0 %v2238_v62  ;;  %v14474_v62 = vand.u32 4294901760, %v798_v59  ;;  %v1241_v1 = vsub.f32 %v1239_v58, %v1240_v61  ;;  %v804_v11 = vsel %vm772_vm1, %v649_v8, 0 }
 0x13d   :  { %2794 = vmatmul.f32.gmra.mxu2 %v1191_v5  ;;  %4776 = vmatpush.msrb.mxu1 %v14368_v41  ;;  %v645_v41 = vld [vmem:[%s19322_s0 + $0x30] sm:$0xff]  ;;  %v14490_v14 = vand.u32 4294901760, %v804_v11 }
 0x13e   :  { %4248 = vmatpush.msrb.mxu0 %v2244_v63  ;;  %v792_v44 = vsel %vm772_vm1, %v645_v41, 0  ;;  %v648_v63 = vld [vmem:[%s19322_s0 + $0x48] sm:$0xff]  ;;  %v1247_v2 = vsub.f32 %v798_v59, %v14474_v62  ;;  %v1242_v4 = vand.u32 4294901760, %v1241_v1  ;;  %v655_v59 = vld [vmem:[%s19322_s0 + $0x80] sm:$0xff] }
 0x13f   :  { %4778 = vmatpush.msrb.mxu1 %v14370_v42  ;;  %v1217_v42 = vsub.f32 %v1215_v36, %v1216_v39  ;;  %v14458_v47 = vand.u32 4294901760, %v792_v44  ;;  %v801_v3 = vsel %vm772_vm1, %v648_v63, 0  ;;  %v1263_v17 = vsub.f32 %v804_v11, %v14490_v14 }
 0x140   :  { %v1248_v5 = vand.u32 4294901760, %v1247_v2  ;;  %v14482_v7 = vand.u32 4294901760, %v801_v3  ;;  %v822_v63 = vsel %vm772_vm1, %v655_v59, 0 }
 0x141   :  { %4780 = vmatpush.msrb.mxu1 %v14372_v43  ;;  %v1223_v43 = vsub.f32 %v789_v37, %v14450_v40  ;;  %v1218_v45 = vand.u32 4294901760, %v1217_v42  ;;  %v1231_v50 = vsub.f32 %v792_v44, %v14458_v47  ;;  %v1264_v20 = vand.u32 4294901760, %v1263_v17  ;;  %v653_v42 = vld [vmem:[%s19322_s0 + $0x70] sm:$0xff] }
 0x142   :  { %2253 = vmatmul.f32.gmra.mxu1 %v14409_v0  ;;  %v1249_v9 = vsub.f32 %v1247_v2, %v1248_v5  ;;  %v1255_v10 = vsub.f32 %v801_v3, %v14482_v7  ;;  %v813_v37 = vsel %vm772_vm1, %v652_v31, 0  ;;  %v14538_v3 = vand.u32 4294901760, %v822_v63 }
 0x143   :  { %1203 = vmatmul.f32.gmra.mxu0 %v1202_v28  ;;  %4782 = vmatpush.msrb.mxu1 %v14380_v46  ;;  %v1224_v46 = vand.u32 4294901760, %v1223_v43  ;;  %v1232_v54 = vand.u32 4294901760, %v1231_v50  ;;  %v1265_v24 = vsub.f32 %v1263_v17, %v1264_v20  ;;  %v14514_v41 = vand.u32 4294901760, %v813_v37 }
 0x144   :  { %3464 = vmatmul.f32.gmra.mxu3 %v1200_v22  ;;  %v1250_v12 = vand.u32 4294901760, %v1249_v9  ;;  %v1256_v13 = vand.u32 4294901760, %v1255_v10  ;;  %v651_v22 = vld [vmem:[%s19322_s0 + $0x60] sm:$0xff]  ;;  %v1311_v8 = vsub.f32 %v822_v63, %v14538_v3 }
 0x145   :  { %2799 = vmatmul.f32.gmra.mxu2 %v1199_v18  ;;  %v1225_v49 = vsub.f32 %v1223_v43, %v1224_v46  ;;  %v1233_v57 = vsub.f32 %v1231_v50, %v1232_v54  ;;  %v807_v18 = vsel %vm772_vm1, %v650_v15, 0  ;;  %v1266_v27 = vand.u32 4294901760, %v1265_v24  ;;  %v14559_v24 = vld [vmem:[%s19326_s4] ss:$0 sm:$0xff] }
 0x146   :  { %v1257_v16 = vsub.f32 %v1255_v10, %v1256_v13  ;;  %v14498_v21 = vand.u32 4294901760, %v807_v18  ;;  %v1287_v44 = vsub.f32 %v813_v37, %v14514_v41  ;;  %v1312_v11 = vand.u32 4294901760, %v1311_v8 }
 0x147   :  { %v1226_v52 = vand.u32 4294901760, %v1225_v49  ;;  %v1234_v60 = vand.u32 4294901760, %v1233_v57 }
 0x148   :  { %v1258_v19 = vand.u32 4294901760, %v1257_v16  ;;  %v1271_v25 = vsub.f32 %v807_v18, %v14498_v21  ;;  %v1288_v48 = vand.u32 4294901760, %v1287_v44  ;;  %v1313_v15 = vsub.f32 %v1311_v8, %v1312_v11 }
 0x14a   :  { %2257 = vmatmul.f32.gmra.mxu1 %v14414_v6  ;;  %v1272_v28 = vand.u32 4294901760, %v1271_v25  ;;  %v1289_v51 = vsub.f32 %v1287_v44, %v1288_v48  ;;  %v1314_v18 = vand.u32 4294901760, %v1313_v15 }
 0x14b   :  { %1211 = vmatmul.f32.gmra.mxu0 %v1210_v38 }
 0x14c   :  { %3470 = vmatmul.f32.gmra.mxu3 %v1208_v29  ;;  %v1273_v35 = vsub.f32 %v1271_v25, %v1272_v28  ;;  %v1290_v56 = vand.u32 4294901760, %v1289_v51 }
 0x14d   :  { %2804 = vmatmul.f32.gmra.mxu2 %v1207_v26  ;;  %v810_v26 = vsel %vm772_vm1, %v651_v22, 0 }
 0x14e   :  { %v14506_v29 = vand.u32 4294901760, %v810_v26  ;;  %v1274_v38 = vand.u32 4294901760, %v1273_v35 }
 0x152   :  { %2261 = vmatmul.f32.gmra.mxu1 %v14429_v23 }
 0x153   :  { %1219 = vmatmul.f32.gmra.mxu0 %v1218_v45  ;;  %v816_v45 = vsel %vm772_vm1, %v653_v42, 0 }
 0x154   :  { %3476 = vmatmul.f32.gmra.mxu3 %v1216_v39  ;;  %v14522_v49 = vand.u32 4294901760, %v816_v45 }
 0x155   :  { %2809 = vmatmul.f32.gmra.mxu2 %v1215_v36  ;;  %v1279_v36 = vsub.f32 %v810_v26, %v14506_v29 }
 0x157   :  { %v1280_v39 = vand.u32 4294901760, %v1279_v36 }
 0x15a   :  { %2265 = vmatmul.f32.gmra.mxu1 %v14439_v30 }
 0x15b   :  { %1227 = vmatmul.f32.gmra.mxu0 %v1226_v52  ;;  %v1295_v52 = vsub.f32 %v816_v45, %v14522_v49  ;;  %v659_v45 = vld [vmem:[%s19322_s0 + $0xa0] sm:$0xff] }
 0x15c   :  { %3482 = vmatmul.f32.gmra.mxu3 %v1224_v46 }
 0x15d   :  { %2814 = vmatmul.f32.gmra.mxu2 %v1223_v43  ;;  %v1281_v43 = vsub.f32 %v1279_v36, %v1280_v39  ;;  %v1296_v57 = vand.u32 4294901760, %v1295_v52 }
 0x15f   :  { %v1282_v46 = vand.u32 4294901760, %v1281_v43 }
 0x162   :  { %2269 = vmatmul.f32.gmra.mxu1 %v14450_v40 }
 0x163   :  { %1235 = vmatmul.f32.gmra.mxu0 %v1234_v60  ;;  %v1297_v60 = vsub.f32 %v1295_v52, %v1296_v57 }
 0x164   :  { %3488 = vmatmul.f32.gmra.mxu3 %v1232_v54 }
 0x165   :  { %2819 = vmatmul.f32.gmra.mxu2 %v1231_v50  ;;  %v654_v50 = vld [vmem:[%s19322_s0 + $0x78] sm:$0xff]  ;;  %v1298_v1 = vand.u32 4294901760, %v1297_v60 }
 0x166   :  { %v819_v54 = vsel %vm772_vm1, %v654_v50, 0 }
 0x16a   :  { %2273 = vmatmul.f32.gmra.mxu1 %v14458_v47 }
 0x16b   :  { %1243 = vmatmul.f32.gmra.mxu0 %v1242_v4  ;;  %v656_v4 = vld [vmem:[%s19322_s0 + $0x88] sm:$0xff] }
 0x16c   :  { %3494 = vmatmul.f32.gmra.mxu3 %v1240_v61  ;;  %v825_v9 = vsel %vm772_vm1, %v656_v4, 0  ;;  %v660_v4 = vld [vmem:[%s19322_s0 + $0xa8] sm:$0xff] }
 0x16d   :  { %2824 = vmatmul.f32.gmra.mxu2 %v1239_v58  ;;  %v14530_v58 = vand.u32 4294901760, %v819_v54 }
 0x16f   :  { %v1303_v61 = vsub.f32 %v819_v54, %v14530_v58  ;;  %v834_v54 = vsel %vm772_vm1, %v659_v45, 0 }
 0x172   :  { %2277 = vmatmul.f32.gmra.mxu1 %v14466_v55 }
 0x173   :  { %1251 = vmatmul.f32.gmra.mxu0 %v1250_v12  ;;  %v14546_v12 = vand.u32 4294901760, %v825_v9 }
 0x174   :  { %3500 = vmatmul.f32.gmra.mxu3 %v1248_v5 }
 0x175   :  { %2829 = vmatmul.f32.gmra.mxu2 %v1247_v2  ;;  %v1304_v2 = vand.u32 4294901760, %v1303_v61  ;;  %v1319_v16 = vsub.f32 %v825_v9, %v14546_v12 }
 0x177   :  { %v1305_v5 = vsub.f32 %v1303_v61, %v1304_v2 }
 0x17a   :  { %2281 = vmatmul.f32.gmra.mxu1 %v14474_v62 }
 0x17b   :  { %1259 = vmatmul.f32.gmra.mxu0 %v1258_v19  ;;  %v1320_v19 = vand.u32 4294901760, %v1319_v16 }
 0x17c   :  { %3506 = vmatmul.f32.gmra.mxu3 %v1256_v13  ;;  %v657_v13 = vld [vmem:[%s19322_s0 + $0x90] sm:$0xff] }
 0x17d   :  { %2834 = vmatmul.f32.gmra.mxu2 %v1255_v10  ;;  %v1306_v10 = vand.u32 4294901760, %v1305_v5  ;;  %v1321_v26 = vsub.f32 %v1319_v16, %v1320_v19 }
 0x182   :  { %2285 = vmatmul.f32.gmra.mxu1 %v14482_v7 }
 0x183   :  { %1267 = vmatmul.f32.gmra.mxu0 %v1266_v27 }
 0x184   :  { %3512 = vmatmul.f32.gmra.mxu3 %v1264_v20 }
 0x185   :  { %2839 = vmatmul.f32.gmra.mxu2 %v1263_v17  ;;  %v828_v17 = vsel %vm772_vm1, %v657_v13, 0  ;;  %v837_v13 = vsel %vm772_vm1, %v660_v4, 0 }
 0x186   :  { %v14554_v20 = vand.u32 4294901760, %v828_v17 }
 0x188   :  { %v1327_v27 = vsub.f32 %v828_v17, %v14554_v20 }
 0x18a   :  { %2289 = vmatmul.f32.gmra.mxu1 %v14490_v14 }
 0x18b   :  { %1275 = vmatmul.f32.gmra.mxu0 %v1274_v38  ;;  %v1328_v38 = vand.u32 4294901760, %v1327_v27 }
 0x18c   :  { %3518 = vmatmul.f32.gmra.mxu3 %v1272_v28 }
 0x18d   :  { %2844 = vmatmul.f32.gmra.mxu2 %v1271_v25  ;;  %v658_v25 = vld [vmem:[%s19322_s0 + $0x98] sm:$0xff] }
 0x18e   :  { %v831_v31 = vsel %vm772_vm1, %v658_v25, 0 }
 0x192   :  { %2293 = vmatmul.f32.gmra.mxu1 %v14498_v21 }
 0x193   :  { %1283 = vmatmul.f32.gmra.mxu0 %v1282_v46 }
 0x194   :  { %3524 = vmatmul.f32.gmra.mxu3 %v1280_v39  ;;  %v14568_v39 = vand.u32 4294901760, %v831_v31 }
 0x195   :  { %2849 = vmatmul.f32.gmra.mxu2 %v1279_v36  ;;  %v1322_v36 = vand.u32 4294901760, %v1321_v26 }
 0x196   :  { %v1335_v50 = vsub.f32 %v831_v31, %v14568_v39 }
 0x198   :  { %v1336_v60 = vand.u32 4294901760, %v1335_v50 }
 0x19a   :  { %2297 = vmatmul.f32.gmra.mxu1 %v14506_v29 }
 0x19b   :  { %1291 = vmatmul.f32.gmra.mxu0 %v1290_v56 }
 0x19c   :  { %3530 = vmatmul.f32.gmra.mxu3 %v1288_v48  ;;  %v1329_v48 = vsub.f32 %v1327_v27, %v1328_v38 }
 0x19d   :  { %2854 = vmatmul.f32.gmra.mxu2 %v1287_v44 }
 0x1a2   :  { %2301 = vmatmul.f32.gmra.mxu1 %v14514_v41 }
 0x1a3   :  { %1299 = vmatmul.f32.gmra.mxu0 %v1298_v1 }
 0x1a4   :  { %3536 = vmatmul.f32.gmra.mxu3 %v1296_v57  ;;  %v1330_v57 = vand.u32 4294901760, %v1329_v48 }
 0x1a5   :  { %2859 = vmatmul.f32.gmra.mxu2 %v1295_v52 }
 0x1aa   :  { %2305 = vmatmul.f32.gmra.mxu1 %v14522_v49 }
 0x1ab   :  { %1307 = vmatmul.f32.gmra.mxu0 %v1306_v10 }
 0x1ac   :  { %3542 = vmatmul.f32.gmra.mxu3 %v1304_v2 }
 0x1ad   :  { %2864 = vmatmul.f32.gmra.mxu2 %v1303_v61  ;;  %v14579_v61 = vand.u32 4294901760, %v834_v54 }
 0x1af   :  { %v1343_v9 = vsub.f32 %v834_v54, %v14579_v61 }
 0x1b0   :  { %v1188_v22 = vpop.f32.mrf.mxu0 }
 0x1b1   :  { %v1189_v28 = vadd.f32 %v1188_v22, %v14559_v24 }
 0x1b2   :  { %2309 = vmatmul.f32.gmra.mxu1 %v14530_v58 }
 0x1b3   :  { %1315 = vmatmul.f32.gmra.mxu0 %v1314_v18  ;;  %v1344_v18 = vand.u32 4294901760, %v1343_v9 }
 0x1b4   :  { %3548 = vmatmul.f32.gmra.mxu3 %v1312_v11 }
 0x1b5   :  { %2869 = vmatmul.f32.gmra.mxu2 %v1311_v8  ;;  %v1337_v8 = vsub.f32 %v1335_v50, %v1336_v60 }
 0x1b7   :  { %v2250_v35 = vpop.f32.mrf.mxu1  ;;  %v3453_v37 = vpop.f32.mrf.mxu3 }
 0x1b8   :  { %v1196_v42 = vpop.f32.mrf.mxu0  ;;  %v2251_v43 = vadd.f32 %v2250_v35, %v1189_v28  ;;  %v2790_v44 = vpop.f32.mrf.mxu2  ;;  %v661_v28 = vld [vmem:[%s19322_s0 + $0xb0] sm:$0xff]  ;;  %v1345_v35 = vsub.f32 %v1343_v9, %v1344_v18 }
 0x1b9   :  { %v1197_v51 = vadd.f32 %v1196_v42, %v14559_v24 }
 0x1ba   :  { %v2791_v46 = vadd.f32 %v2790_v44, %v2251_v43  ;;  %2313 = vmatmul.f32.gmra.mxu1 %v14538_v3  ;;  %v1346_v43 = vand.u32 4294901760, %v1345_v35 }
 0x1bb   :  { %1323 = vmatmul.f32.gmra.mxu0 %v1322_v36 }
 0x1bc   :  { %v14576_v52 = vadd.f32 %v3453_v37, %v2791_v46  ;;  %3554 = vmatmul.f32.gmra.mxu3 %v1320_v19  ;;  %v14590_v19 = vand.u32 4294901760, %v837_v13 }
 0x1bd   :  { %2874 = vmatmul.f32.gmra.mxu2 %v1319_v16  ;;  %v1338_v16 = vand.u32 4294901760, %v1337_v8 }
 0x1be   :  { %19631 = vst [vmem:[#allocation12_spill] sm:$0xff] %v14576_v52 }
 0x1bf   :  { %v2254_v56 = vpop.f32.mrf.mxu1  ;;  %v3459_v59 = vpop.f32.mrf.mxu3 }
 0x1c0   :  { %v1204_v63 = vpop.f32.mrf.mxu0  ;;  %v2255_v1 = vadd.f32 %v2254_v56, %v1197_v51  ;;  %v2795_v2 = vpop.f32.mrf.mxu2  ;;  %v662_v56 = vld [vmem:[%s19322_s0 + $0xb8] sm:$0xff] }
 0x1c1   :  { %v1205_v10 = vadd.f32 %v1204_v63, %v14559_v24 }
 0x1c2   :  { %v2796_v5 = vadd.f32 %v2795_v2, %v2255_v1  ;;  %2317 = vmatmul.f32.gmra.mxu1 %v14546_v12  ;;  %v843_v1 = vsel %vm772_vm1, %v662_v56, 0 }
 0x1c3   :  { %1331 = vmatmul.f32.gmra.mxu0 %v1330_v57 }
 0x1c4   :  { %v14587_v11 = vadd.f32 %v3459_v59, %v2796_v5  ;;  %3560 = vmatmul.f32.gmra.mxu3 %v1328_v38  ;;  %v840_v38 = vsel %vm772_vm1, %v661_v28, 0 }
 0x1c5   :  { %2879 = vmatmul.f32.gmra.mxu2 %v1327_v27  ;;  %v1351_v27 = vsub.f32 %v837_v13, %v14590_v19  ;;  %v14601_v46 = vand.u32 4294901760, %v840_v38 }
 0x1c6   :  { %19632 = vst [vmem:[#allocation13_spill] sm:$0xff] %v14587_v11 }
 0x1c7   :  { %v2258_v15 = vpop.f32.mrf.mxu1  ;;  %v3465_v17 = vpop.f32.mrf.mxu3  ;;  %v1352_v45 = vand.u32 4294901760, %v1351_v27 }
 0x1c8   :  { %v1212_v22 = vpop.f32.mrf.mxu0  ;;  %v2259_v25 = vadd.f32 %v2258_v15, %v1205_v10  ;;  %v2800_v26 = vpop.f32.mrf.mxu2  ;;  %v14612_v10 = vand.u32 4294901760, %v843_v1 }
 0x1c9   :  { %v1213_v36 = vadd.f32 %v1212_v22, %v14559_v24  ;;  %v1353_v59 = vsub.f32 %v1351_v27, %v1352_v45 }
 0x1ca   :  { %v2801_v31 = vadd.f32 %v2800_v26, %v2259_v25  ;;  %2321 = vmatmul.f32.gmra.mxu1 %v14554_v20 }
 0x1cb   :  { %1339 = vmatmul.f32.gmra.mxu0 %v1338_v16  ;;  %v1354_v4 = vand.u32 4294901760, %v1353_v59 }
 0x1cc   :  { %v14598_v37 = vadd.f32 %v3465_v17, %v2801_v31  ;;  %3566 = vmatmul.f32.gmra.mxu3 %v1336_v60  ;;  %v663_v17 = vld [vmem:[%s19322_s0 + $0xc0] sm:$0xff] }
 0x1cd   :  { %2884 = vmatmul.f32.gmra.mxu2 %v1335_v50  ;;  %v1359_v50 = vsub.f32 %v840_v38, %v14601_v46  ;;  %v846_v28 = vsel %vm772_vm1, %v663_v17, 0  ;;  %v665_v17 = vld [vmem:[%s19322_s0 + $0xd0] sm:$0xff] }
 0x1ce   :  { %19633 = vst [vmem:[#allocation14_spill] sm:$0xff] %v14598_v37 }
 0x1cf   :  { %v2262_v42 = vpop.f32.mrf.mxu1  ;;  %v3471_v44 = vpop.f32.mrf.mxu3  ;;  %v1360_v8 = vand.u32 4294901760, %v1359_v50 }
 0x1d0   :  { %v1220_v48 = vpop.f32.mrf.mxu0  ;;  %v2263_v51 = vadd.f32 %v2262_v42, %v1213_v36  ;;  %v2805_v54 = vpop.f32.mrf.mxu2  ;;  %v14623_v42 = vand.u32 4294901760, %v846_v28 }
 0x1d1   :  { %v1221_v60 = vadd.f32 %v1220_v48, %v14559_v24 }
 0x1d2   :  { %v2806_v57 = vadd.f32 %v2805_v54, %v2263_v51  ;;  %2325 = vmatmul.f32.gmra.mxu1 %v14568_v39  ;;  %v664_v51 = vld [vmem:[%s19322_s0 + $0xc8] sm:$0xff] }
 0x1d3   :  { %1347 = vmatmul.f32.gmra.mxu0 %v1346_v43  ;;  %v849_v59 = vsel %vm772_vm1, %v664_v51, 0 }
 0x1d4   :  { %v14609_v63 = vadd.f32 %v3471_v44, %v2806_v57  ;;  %3572 = vmatmul.f32.gmra.mxu3 %v1344_v18  ;;  %v1361_v18 = vsub.f32 %v1359_v50, %v1360_v8 }
 0x1d5   :  { %2889 = vmatmul.f32.gmra.mxu2 %v1343_v9  ;;  %v1367_v9 = vsub.f32 %v843_v1, %v14612_v10 }
 0x1d6   :  { %19634 = vst [vmem:[#allocation15_spill] sm:$0xff] %v14609_v63  ;;  %v1362_v35 = vand.u32 4294901760, %v1361_v18 }
 0x1d7   :  { %v2266_v2 = vpop.f32.mrf.mxu1  ;;  %v3477_v5 = vpop.f32.mrf.mxu3  ;;  %v1368_v38 = vand.u32 4294901760, %v1367_v9 }
 0x1d8   :  { %v1228_v13 = vpop.f32.mrf.mxu0  ;;  %v2267_v15 = vadd.f32 %v2266_v2, %v1221_v60  ;;  %v2810_v16 = vpop.f32.mrf.mxu2 }
 0x1d9   :  { %v1229_v25 = vadd.f32 %v1228_v13, %v14559_v24 }
 0x1da   :  { %v2811_v22 = vadd.f32 %v2810_v16, %v2267_v15  ;;  %2329 = vmatmul.f32.gmra.mxu1 %v14579_v61 }
 0x1db   :  { %1355 = vmatmul.f32.gmra.mxu0 %v1354_v4 }
 0x1dc   :  { %v14620_v26 = vadd.f32 %v3477_v5, %v2811_v22  ;;  %3578 = vmatmul.f32.gmra.mxu3 %v1352_v45  ;;  %v1369_v45 = vsub.f32 %v1367_v9, %v1368_v38  ;;  %v14634_v5 = vand.u32 4294901760, %v849_v59 }
 0x1dd   :  { %2894 = vmatmul.f32.gmra.mxu2 %v1351_v27  ;;  %v1375_v27 = vsub.f32 %v846_v28, %v14623_v42  ;;  %v852_v28 = vsel %vm772_vm1, %v665_v17, 0 }
 0x1de   :  { %19635 = vst [vmem:[#allocation16_spill] sm:$0xff] %v14620_v26  ;;  %v1370_v1 = vand.u32 4294901760, %v1369_v45  ;;  %v666_v45 = vld [vmem:[%s19322_s0 + $0xd8] sm:$0xff] }
 0x1df   :  { %v2270_v31 = vpop.f32.mrf.mxu1  ;;  %v3483_v36 = vpop.f32.mrf.mxu3  ;;  %v1376_v4 = vand.u32 4294901760, %v1375_v27 }
 0x1e0   :  { %v1236_v43 = vpop.f32.mrf.mxu0  ;;  %v2271_v44 = vadd.f32 %v2270_v31, %v1229_v25  ;;  %v2815_v48 = vpop.f32.mrf.mxu2 }
 0x1e1   :  { %v1237_v56 = vadd.f32 %v1236_v43, %v14559_v24 }
 0x1e2   :  { %v2816_v54 = vadd.f32 %v2815_v48, %v2271_v44  ;;  %2333 = vmatmul.f32.gmra.mxu1 %v14590_v19  ;;  %v14645_v44 = vand.u32 4294901760, %v852_v28 }
 0x1e3   :  { %1363 = vmatmul.f32.gmra.mxu0 %v1362_v35 }
 0x1e4   :  { %v14631_v57 = vadd.f32 %v3483_v36, %v2816_v54  ;;  %3584 = vmatmul.f32.gmra.mxu3 %v1360_v8  ;;  %v1377_v8 = vsub.f32 %v1375_v27, %v1376_v4 }
 0x1e5   :  { %2899 = vmatmul.f32.gmra.mxu2 %v1359_v50  ;;  %v1383_v50 = vsub.f32 %v849_v59, %v14634_v5 }
 0x1e6   :  { %19636 = vst [vmem:[#allocation17_spill] sm:$0xff] %v14631_v57  ;;  %v1378_v35 = vand.u32 4294901760, %v1377_v8 }
 0x1e7   :  { %v2274_v60 = vpop.f32.mrf.mxu1  ;;  %v3489_v2 = vpop.f32.mrf.mxu3  ;;  %v1384_v43 = vand.u32 4294901760, %v1383_v50 }
 0x1e8   :  { %v1244_v13 = vpop.f32.mrf.mxu0  ;;  %v2275_v15 = vadd.f32 %v2274_v60, %v1237_v56  ;;  %v2820_v16 = vpop.f32.mrf.mxu2 }
 0x1e9   :  { %v1245_v18 = vadd.f32 %v1244_v13, %v14559_v24 }
 0x1ea   :  { %v2821_v22 = vadd.f32 %v2820_v16, %v2275_v15  ;;  %2337 = vmatmul.f32.gmra.mxu1 %v14601_v46 }
 0x1eb   :  { %1371 = vmatmul.f32.gmra.mxu0 %v1370_v1  ;;  %v855_v1 = vsel %vm772_vm1, %v666_v45, 0 }
 0x1ec   :  { %v14642_v25 = vadd.f32 %v3489_v2, %v2821_v22  ;;  %3590 = vmatmul.f32.gmra.mxu3 %v1368_v38  ;;  %v1385_v38 = vsub.f32 %v1383_v50, %v1384_v43  ;;  %v14656_v17 = vand.u32 4294901760, %v855_v1 }
 0x1ed   :  { %2904 = vmatmul.f32.gmra.mxu2 %v1367_v9  ;;  %v1391_v9 = vsub.f32 %v852_v28, %v14645_v44  ;;  %v667_v28 = vld [vmem:[%s19322_s0 + $0xe0] sm:$0xff] }
 0x1ee   :  { %19637 = vst [vmem:[#allocation18_spill] sm:$0xff] %v14642_v25  ;;  %v1386_v13 = vand.u32 4294901760, %v1385_v38 }
 0x1ef   :  { %v2278_v31 = vpop.f32.mrf.mxu1  ;;  %v3495_v36 = vpop.f32.mrf.mxu3  ;;  %v1392_v16 = vand.u32 4294901760, %v1391_v9 }
 0x1f0   :  { %v1252_v48 = vpop.f32.mrf.mxu0  ;;  %v2279_v51 = vadd.f32 %v2278_v31, %v1245_v18  ;;  %v2825_v54 = vpop.f32.mrf.mxu2 }
 0x1f1   :  { %v1253_v59 = vadd.f32 %v1252_v48, %v14559_v24  ;;  %v858_v48 = vsel %vm772_vm1, %v667_v28, 0 }
 0x1f2   :  { %v2826_v56 = vadd.f32 %v2825_v54, %v2279_v51  ;;  %2341 = vmatmul.f32.gmra.mxu1 %v14612_v10  ;;  %v14667_v38 = vand.u32 4294901760, %v858_v48 }
 0x1f3   :  { %1379 = vmatmul.f32.gmra.mxu0 %v1378_v35 }
 0x1f4   :  { %v14653_v60 = vadd.f32 %v3495_v36, %v2826_v56  ;;  %3596 = vmatmul.f32.gmra.mxu3 %v1376_v4  ;;  %v1393_v4 = vsub.f32 %v1391_v9, %v1392_v16 }
 0x1f5   :  { %2909 = vmatmul.f32.gmra.mxu2 %v1375_v27  ;;  %v1399_v27 = vsub.f32 %v855_v1, %v14656_v17  ;;  %v668_v1 = vld [vmem:[%s19322_s0 + $0xe8] sm:$0xff] }
 0x1f6   :  { %19638 = vst [vmem:[#allocation19_spill] sm:$0xff] %v14653_v60  ;;  %v1394_v54 = vand.u32 4294901760, %v1393_v4 }
 0x1f7   :  { %v2282_v2 = vpop.f32.mrf.mxu1  ;;  %v3501_v15 = vpop.f32.mrf.mxu3  ;;  %v1400_v56 = vand.u32 4294901760, %v1399_v27 }
 0x1f8   :  { %v1260_v22 = vpop.f32.mrf.mxu0  ;;  %v2283_v8 = vadd.f32 %v2282_v2, %v1253_v59  ;;  %v2830_v18 = vpop.f32.mrf.mxu2 }
 0x1f9   :  { %v1261_v35 = vadd.f32 %v1260_v22, %v14559_v24 }
 0x1fa   :  { %v2831_v31 = vadd.f32 %v2830_v18, %v2283_v8  ;;  %2345 = vmatmul.f32.gmra.mxu1 %v14623_v42  ;;  %v861_v18 = vsel %vm772_vm1, %v668_v1, 0 }
 0x1fb   :  { %1387 = vmatmul.f32.gmra.mxu0 %v1386_v13 }
 0x1fc   :  { %v14664_v36 = vadd.f32 %v3501_v15, %v2831_v31  ;;  %3602 = vmatmul.f32.gmra.mxu3 %v1384_v43  ;;  %v1401_v43 = vsub.f32 %v1399_v27, %v1400_v56 }
 0x1fd   :  { %2914 = vmatmul.f32.gmra.mxu2 %v1383_v50  ;;  %v1407_v50 = vsub.f32 %v858_v48, %v14667_v38  ;;  %v669_v48 = vld [vmem:[%s19322_s0 + $0xf0] sm:$0xff] }
 0x1fe   :  { %v1402_v31 = vand.u32 4294901760, %v1401_v43 }
 0x1ff   :  { %v2286_v51 = vpop.f32.mrf.mxu1  ;;  %v3507_v45 = vpop.f32.mrf.mxu3 }
 0x200   :  { %v1268_v59 = vpop.f32.mrf.mxu0  ;;  %v2287_v2 = vadd.f32 %v2286_v51, %v1261_v35  ;;  %v2835_v13 = vpop.f32.mrf.mxu2  ;;  %v1408_v35 = vand.u32 4294901760, %v1407_v50  ;;  %v14678_v51 = vand.u32 4294901760, %v861_v18 }
 0x201   :  { %v1269_v15 = vadd.f32 %v1268_v59, %v14559_v24 }
 0x202   :  { %v2836_v22 = vadd.f32 %v2835_v13, %v2287_v2  ;;  %2349 = vmatmul.f32.gmra.mxu1 %v14634_v5 }
 0x203   :  { %1395 = vmatmul.f32.gmra.mxu0 %v1394_v54 }
 0x204   :  { %v14675_v8 = vadd.f32 %v3507_v45, %v2836_v22  ;;  %3608 = vmatmul.f32.gmra.mxu3 %v1392_v16  ;;  %v1409_v16 = vsub.f32 %v1407_v50, %v1408_v35  ;;  %v864_v22 = vsel %vm772_vm1, %v669_v48, 0 }
 0x205   :  { %2919 = vmatmul.f32.gmra.mxu2 %v1391_v9  ;;  %v1415_v9 = vsub.f32 %v861_v18, %v14678_v51  ;;  %v14689_v33 = vand.u32 4294901760, %v864_v22  ;;  %v670_v18 = vld [vmem:[%s19322_s0 + $0xf8] sm:$0xff] }
 0x206   :  { %19639 = vst [vmem:[#allocation20_spill] sm:$0xff] %v14675_v8 }
 0x207   :  { %v2290_v28 = vpop.f32.mrf.mxu1  ;;  %v3513_v4 = vpop.f32.mrf.mxu3  ;;  %v1416_v34 = vand.u32 4294901760, %v1415_v9 }
 0x208   :  { %v1276_v2 = vpop.f32.mrf.mxu0  ;;  %v2291_v13 = vadd.f32 %v2290_v28, %v1269_v15  ;;  %v2840_v54 = vpop.f32.mrf.mxu2  ;;  %v1410_v15 = vand.u32 4294901760, %v1409_v16 }
 0x209   :  { %v1277_v45 = vadd.f32 %v1276_v2, %v14559_v24 }
 0x20a   :  { %v2841_v59 = vadd.f32 %v2840_v54, %v2291_v13  ;;  %2353 = vmatmul.f32.gmra.mxu1 %v14645_v44 }
 0x20b   :  { %1403 = vmatmul.f32.gmra.mxu0 %v1402_v31 }
 0x20c   :  { %v14686_v1 = vadd.f32 %v3513_v4, %v2841_v59  ;;  %3614 = vmatmul.f32.gmra.mxu3 %v1400_v56  ;;  %v1417_v56 = vsub.f32 %v1415_v9, %v1416_v34  ;;  %v867_v59 = vsel %vm772_vm1, %v670_v18, 0 }
 0x20d   :  { %2924 = vmatmul.f32.gmra.mxu2 %v1399_v27  ;;  %v1423_v27 = vsub.f32 %v864_v22, %v14689_v33  ;;  %v14700_v52 = vand.u32 4294901760, %v867_v59  ;;  %v671_v22 = vld [vmem:[%s19322_s0 + $0x100] sm:$0xff] }
 0x20e   :  { %19640 = vst [vmem:[#allocation21_spill] sm:$0xff] %v14686_v1 }
 0x20f   :  { %v2294_v43 = vpop.f32.mrf.mxu1  ;;  %v3519_v28 = vpop.f32.mrf.mxu3  ;;  %v1424_v32 = vand.u32 4294901760, %v1423_v27 }
 0x210   :  { %v1284_v13 = vpop.f32.mrf.mxu0  ;;  %v2295_v54 = vadd.f32 %v2294_v43, %v1277_v45  ;;  %v2845_v31 = vpop.f32.mrf.mxu2  ;;  %v1418_v45 = vand.u32 4294901760, %v1417_v56 }
 0x211   :  { %v1285_v4 = vadd.f32 %v1284_v13, %v14559_v24 }
 0x212   :  { %v2846_v2 = vadd.f32 %v2845_v31, %v2295_v54  ;;  %2357 = vmatmul.f32.gmra.mxu1 %v14656_v17 }
 0x213   :  { %1411 = vmatmul.f32.gmra.mxu0 %v1410_v15 }
 0x214   :  { %v14697_v48 = vadd.f32 %v3519_v28, %v2846_v2  ;;  %3620 = vmatmul.f32.gmra.mxu3 %v1408_v35  ;;  %v1425_v35 = vsub.f32 %v1423_v27, %v1424_v32  ;;  %v870_v2 = vsel %vm772_vm1, %v671_v22, 0 }
 0x215   :  { %2929 = vmatmul.f32.gmra.mxu2 %v1407_v50  ;;  %v1431_v50 = vsub.f32 %v867_v59, %v14700_v52  ;;  %v14711_v37 = vand.u32 4294901760, %v870_v2  ;;  %v672_v59 = vld [vmem:[%s19322_s0 + $0x108] sm:$0xff] }
 0x217   :  { %v2298_v16 = vpop.f32.mrf.mxu1  ;;  %v3525_v43 = vpop.f32.mrf.mxu3  ;;  %v1432_v11 = vand.u32 4294901760, %v1431_v50  ;;  %19641 = vst [vmem:[#allocation22_spill] sm:$0xff] %v14711_v37 }
 0x218   :  { %v1292_v54 = vpop.f32.mrf.mxu0  ;;  %v2299_v31 = vadd.f32 %v2298_v16, %v1285_v4  ;;  %v2850_v15 = vpop.f32.mrf.mxu2  ;;  %v1426_v4 = vand.u32 4294901760, %v1425_v35 }
 0x219   :  { %v1293_v28 = vadd.f32 %v1292_v54, %v14559_v24 }
 0x21a   :  { %v2851_v13 = vadd.f32 %v2850_v15, %v2299_v31  ;;  %2361 = vmatmul.f32.gmra.mxu1 %v14667_v38 }
 0x21b   :  { %1419 = vmatmul.f32.gmra.mxu0 %v1418_v45 }
 0x21c   :  { %v14708_v18 = vadd.f32 %v3525_v43, %v2851_v13  ;;  %3626 = vmatmul.f32.gmra.mxu3 %v1416_v34  ;;  %v1433_v34 = vsub.f32 %v1431_v50, %v1432_v11  ;;  %v873_v13 = vsel %vm772_vm1, %v672_v59, 0 }
 0x21d   :  { %2934 = vmatmul.f32.gmra.mxu2 %v1415_v9  ;;  %v1439_v9 = vsub.f32 %v870_v2, %v14711_v37  ;;  %v14722_v63 = vand.u32 4294901760, %v873_v13  ;;  %v673_v2 = vld [vmem:[%s19322_s0 + $0x110] sm:$0xff] }
 0x21f   :  { %v2302_v56 = vpop.f32.mrf.mxu1  ;;  %v3531_v16 = vpop.f32.mrf.mxu3  ;;  %v1440_v26 = vand.u32 4294901760, %v1439_v9  ;;  %19642 = vst [vmem:[#allocation23_spill] sm:$0xff] %v14722_v63 }
 0x220   :  { %v1300_v31 = vpop.f32.mrf.mxu0  ;;  %v2303_v15 = vadd.f32 %v2302_v56, %v1293_v28  ;;  %v2855_v45 = vpop.f32.mrf.mxu2  ;;  %v1434_v28 = vand.u32 4294901760, %v1433_v34 }
 0x221   :  { %v1301_v43 = vadd.f32 %v1300_v31, %v14559_v24 }
 0x222   :  { %v2856_v54 = vadd.f32 %v2855_v45, %v2303_v15  ;;  %2365 = vmatmul.f32.gmra.mxu1 %v14678_v51 }
 0x223   :  { %1427 = vmatmul.f32.gmra.mxu0 %v1426_v4 }
 0x224   :  { %v14719_v22 = vadd.f32 %v3531_v16, %v2856_v54  ;;  %3632 = vmatmul.f32.gmra.mxu3 %v1424_v32  ;;  %v1441_v32 = vsub.f32 %v1439_v9, %v1440_v26  ;;  %v876_v54 = vsel %vm772_vm1, %v673_v2, 0 }
 0x225   :  { %2939 = vmatmul.f32.gmra.mxu2 %v1423_v27  ;;  %v1447_v27 = vsub.f32 %v873_v13, %v14722_v63  ;;  %v14733_v25 = vand.u32 4294901760, %v876_v54  ;;  %v674_v13 = vld [vmem:[%s19322_s0 + $0x118] sm:$0xff] }
 0x227   :  { %v2306_v35 = vpop.f32.mrf.mxu1  ;;  %v3537_v56 = vpop.f32.mrf.mxu3  ;;  %v1448_v57 = vand.u32 4294901760, %v1447_v27  ;;  %19643 = vst [vmem:[#allocation24_spill] sm:$0xff] %v14733_v25 }
 0x228   :  { %v1308_v15 = vpop.f32.mrf.mxu0  ;;  %v2307_v45 = vadd.f32 %v2306_v35, %v1301_v43  ;;  %v2860_v4 = vpop.f32.mrf.mxu2  ;;  %v1442_v43 = vand.u32 4294901760, %v1441_v32 }
 0x229   :  { %v1309_v16 = vadd.f32 %v1308_v15, %v14559_v24 }
 0x22a   :  { %v2861_v31 = vadd.f32 %v2860_v4, %v2307_v45  ;;  %2369 = vmatmul.f32.gmra.mxu1 %v14689_v33 }
 0x22b   :  { %1435 = vmatmul.f32.gmra.mxu0 %v1434_v28 }
 0x22c   :  { %v14730_v59 = vadd.f32 %v3537_v56, %v2861_v31  ;;  %3638 = vmatmul.f32.gmra.mxu3 %v1432_v11  ;;  %v1449_v11 = vsub.f32 %v1447_v27, %v1448_v57  ;;  %v879_v31 = vsel %vm772_vm1, %v674_v13, 0 }
 0x22d   :  { %2944 = vmatmul.f32.gmra.mxu2 %v1431_v50  ;;  %v1455_v50 = vsub.f32 %v876_v54, %v14733_v25  ;;  %v14744_v8 = vand.u32 4294901760, %v879_v31  ;;  %v675_v54 = vld [vmem:[%s19322_s0 + $0x120] sm:$0xff] }
 0x22f   :  { %v2310_v34 = vpop.f32.mrf.mxu1  ;;  %v3543_v35 = vpop.f32.mrf.mxu3  ;;  %v1456_v60 = vand.u32 4294901760, %v1455_v50  ;;  %19645 = vst [vmem:[#allocation26_spill] sm:$0xff] %v14744_v8 }
 0x230   :  { %v1316_v45 = vpop.f32.mrf.mxu0  ;;  %v2311_v4 = vadd.f32 %v2310_v34, %v1309_v16  ;;  %v2865_v28 = vpop.f32.mrf.mxu2  ;;  %v1450_v16 = vand.u32 4294901760, %v1449_v11 }
 0x231   :  { %v1317_v56 = vadd.f32 %v1316_v45, %v14559_v24 }
 0x232   :  { %v2866_v15 = vadd.f32 %v2865_v28, %v2311_v4  ;;  %2373 = vmatmul.f32.gmra.mxu1 %v14700_v52 }
 0x233   :  { %1443 = vmatmul.f32.gmra.mxu0 %v1442_v43 }
 0x234   :  { %v14741_v2 = vadd.f32 %v3543_v35, %v2866_v15  ;;  %3644 = vmatmul.f32.gmra.mxu3 %v1440_v26  ;;  %v1457_v26 = vsub.f32 %v1455_v50, %v1456_v60  ;;  %v882_v15 = vsel %vm772_vm1, %v675_v54, 0 }
 0x235   :  { %2949 = vmatmul.f32.gmra.mxu2 %v1439_v9  ;;  %v1463_v9 = vsub.f32 %v879_v31, %v14744_v8  ;;  %v14755_v1 = vand.u32 4294901760, %v882_v15  ;;  %v676_v31 = vld [vmem:[%s19322_s0 + $0x128] sm:$0xff] }
 0x236   :  { %19644 = vst [vmem:[#allocation25_spill] sm:$0xff] %v14741_v2 }
 0x237   :  { %v2314_v32 = vpop.f32.mrf.mxu1  ;;  %v3549_v34 = vpop.f32.mrf.mxu3  ;;  %v1464_v2 = vand.u32 4294901760, %v1463_v9  ;;  %19647 = vst [vmem:[#allocation28_spill] sm:$0xff] %v14755_v1 }
 0x238   :  { %v1324_v4 = vpop.f32.mrf.mxu0  ;;  %v2315_v28 = vadd.f32 %v2314_v32, %v1317_v56  ;;  %v2870_v43 = vpop.f32.mrf.mxu2  ;;  %v1458_v56 = vand.u32 4294901760, %v1457_v26 }
 0x239   :  { %v1325_v35 = vadd.f32 %v1324_v4, %v14559_v24 }
 0x23a   :  { %v2871_v45 = vadd.f32 %v2870_v43, %v2315_v28  ;;  %2377 = vmatmul.f32.gmra.mxu1 %v14711_v37 }
 0x23b   :  { %1451 = vmatmul.f32.gmra.mxu0 %v1450_v16 }
 0x23c   :  { %v14752_v13 = vadd.f32 %v3549_v34, %v2871_v45  ;;  %3650 = vmatmul.f32.gmra.mxu3 %v1448_v57  ;;  %v1465_v57 = vsub.f32 %v1463_v9, %v1464_v2  ;;  %v885_v45 = vsel %vm772_vm1, %v676_v31, 0 }
 0x23d   :  { %2954 = vmatmul.f32.gmra.mxu2 %v1447_v27  ;;  %v1471_v27 = vsub.f32 %v882_v15, %v14755_v1  ;;  %v14766_v37 = vand.u32 4294901760, %v885_v45  ;;  %v677_v15 = vld [vmem:[%s19322_s0 + $0x130] sm:$0xff] }
 0x23e   :  { %19646 = vst [vmem:[#allocation27_spill] sm:$0xff] %v14752_v13 }
 0x23f   :  { %v2318_v11 = vpop.f32.mrf.mxu1  ;;  %v3555_v32 = vpop.f32.mrf.mxu3  ;;  %v1472_v13 = vand.u32 4294901760, %v1471_v27  ;;  %19649 = vst [vmem:[#allocation30_spill] sm:$0xff] %v14766_v37 }
 0x240   :  { %v1332_v28 = vpop.f32.mrf.mxu0  ;;  %v2319_v43 = vadd.f32 %v2318_v11, %v1325_v35  ;;  %v2875_v16 = vpop.f32.mrf.mxu2  ;;  %v1466_v35 = vand.u32 4294901760, %v1465_v57 }
 0x241   :  { %v1333_v34 = vadd.f32 %v1332_v28, %v14559_v24 }
 0x242   :  { %v2876_v4 = vadd.f32 %v2875_v16, %v2319_v43  ;;  %2381 = vmatmul.f32.gmra.mxu1 %v14722_v63 }
 0x243   :  { %1459 = vmatmul.f32.gmra.mxu0 %v1458_v56 }
 0x244   :  { %v14763_v54 = vadd.f32 %v3555_v32, %v2876_v4  ;;  %3656 = vmatmul.f32.gmra.mxu3 %v1456_v60  ;;  %v1473_v60 = vsub.f32 %v1471_v27, %v1472_v13  ;;  %v888_v4 = vsel %vm772_vm1, %v677_v15, 0 }
 0x245   :  { %2959 = vmatmul.f32.gmra.mxu2 %v1455_v50  ;;  %v1479_v50 = vsub.f32 %v885_v45, %v14766_v37  ;;  %v14777_v63 = vand.u32 4294901760, %v888_v4  ;;  %v678_v45 = vld [vmem:[%s19322_s0 + $0x138] sm:$0xff] }
 0x246   :  { %19648 = vst [vmem:[#allocation29_spill] sm:$0xff] %v14763_v54 }
 0x247   :  { %v2322_v26 = vpop.f32.mrf.mxu1  ;;  %v3561_v11 = vpop.f32.mrf.mxu3  ;;  %v1480_v54 = vand.u32 4294901760, %v1479_v50  ;;  %19651 = vst [vmem:[#allocation32_spill] sm:$0xff] %v14777_v63 }
 0x248   :  { %v1340_v43 = vpop.f32.mrf.mxu0  ;;  %v2323_v16 = vadd.f32 %v2322_v26, %v1333_v34  ;;  %v2880_v56 = vpop.f32.mrf.mxu2  ;;  %v1474_v34 = vand.u32 4294901760, %v1473_v60 }
 0x249   :  { %v1341_v32 = vadd.f32 %v1340_v43, %v14559_v24 }
 0x24a   :  { %v2881_v28 = vadd.f32 %v2880_v56, %v2323_v16  ;;  %2385 = vmatmul.f32.gmra.mxu1 %v14733_v25 }
 0x24b   :  { %1467 = vmatmul.f32.gmra.mxu0 %v1466_v35 }
 0x24c   :  { %v14774_v31 = vadd.f32 %v3561_v11, %v2881_v28  ;;  %3662 = vmatmul.f32.gmra.mxu3 %v1464_v2  ;;  %v1481_v2 = vsub.f32 %v1479_v50, %v1480_v54  ;;  %v891_v28 = vsel %vm772_vm1, %v678_v45, 0 }
 0x24d   :  { %2964 = vmatmul.f32.gmra.mxu2 %v1463_v9  ;;  %v1487_v9 = vsub.f32 %v888_v4, %v14777_v63  ;;  %v14788_v25 = vand.u32 4294901760, %v891_v28  ;;  %v679_v4 = vld [vmem:[%s19322_s0 + $0x140] sm:$0xff] }
 0x24e   :  { %19650 = vst [vmem:[#allocation31_spill] sm:$0xff] %v14774_v31 }
 0x24f   :  { %v2326_v57 = vpop.f32.mrf.mxu1  ;;  %v3567_v26 = vpop.f32.mrf.mxu3  ;;  %v1488_v31 = vand.u32 4294901760, %v1487_v9  ;;  %19653 = vst [vmem:[#allocation34_spill] sm:$0xff] %v14788_v25 }
 0x250   :  { %v1348_v16 = vpop.f32.mrf.mxu0  ;;  %v2327_v56 = vadd.f32 %v2326_v57, %v1341_v32  ;;  %v2885_v35 = vpop.f32.mrf.mxu2  ;;  %v1482_v32 = vand.u32 4294901760, %v1481_v2 }
 0x251   :  { %v1349_v11 = vadd.f32 %v1348_v16, %v14559_v24 }
 0x252   :  { %v2886_v43 = vadd.f32 %v2885_v35, %v2327_v56  ;;  %2389 = vmatmul.f32.gmra.mxu1 %v14744_v8 }
 0x253   :  { %1475 = vmatmul.f32.gmra.mxu0 %v1474_v34 }
 0x254   :  { %v14785_v15 = vadd.f32 %v3567_v26, %v2886_v43  ;;  %3668 = vmatmul.f32.gmra.mxu3 %v1472_v13  ;;  %v1489_v13 = vsub.f32 %v1487_v9, %v1488_v31  ;;  %v894_v43 = vsel %vm772_vm1, %v679_v4, 0 }
 0x255   :  { %2969 = vmatmul.f32.gmra.mxu2 %v1471_v27  ;;  %v1495_v27 = vsub.f32 %v891_v28, %v14788_v25  ;;  %v14799_v8 = vand.u32 4294901760, %v894_v43  ;;  %v680_v28 = vld [vmem:[%s19322_s0 + $0x148] sm:$0xff] }
 0x256   :  { %19652 = vst [vmem:[#allocation33_spill] sm:$0xff] %v14785_v15 }
 0x257   :  { %v2330_v60 = vpop.f32.mrf.mxu1  ;;  %v3573_v57 = vpop.f32.mrf.mxu3  ;;  %v1496_v15 = vand.u32 4294901760, %v1495_v27  ;;  %19655 = vst [vmem:[#allocation36_spill] sm:$0xff] %v14799_v8 }
 0x258   :  { %v1356_v56 = vpop.f32.mrf.mxu0  ;;  %v2331_v35 = vadd.f32 %v2330_v60, %v1349_v11  ;;  %v2890_v34 = vpop.f32.mrf.mxu2  ;;  %v1490_v11 = vand.u32 4294901760, %v1489_v13 }
 0x259   :  { %v1357_v26 = vadd.f32 %v1356_v56, %v14559_v24 }
 0x25a   :  { %v2891_v16 = vadd.f32 %v2890_v34, %v2331_v35  ;;  %2393 = vmatmul.f32.gmra.mxu1 %v14755_v1 }
 0x25b   :  { %1483 = vmatmul.f32.gmra.mxu0 %v1482_v32 }
 0x25c   :  { %v14796_v45 = vadd.f32 %v3573_v57, %v2891_v16  ;;  %3674 = vmatmul.f32.gmra.mxu3 %v1480_v54  ;;  %v1497_v54 = vsub.f32 %v1495_v27, %v1496_v15  ;;  %v897_v16 = vsel %vm772_vm1, %v680_v28, 0 }
 0x25d   :  { %2974 = vmatmul.f32.gmra.mxu2 %v1479_v50  ;;  %v1503_v50 = vsub.f32 %v894_v43, %v14799_v8  ;;  %v14810_v1 = vand.u32 4294901760, %v897_v16  ;;  %v681_v43 = vld [vmem:[%s19322_s0 + $0x150] sm:$0xff] }
 0x25e   :  { %19654 = vst [vmem:[#allocation35_spill] sm:$0xff] %v14796_v45 }
 0x25f   :  { %v2334_v2 = vpop.f32.mrf.mxu1  ;;  %v3579_v60 = vpop.f32.mrf.mxu3  ;;  %v1504_v45 = vand.u32 4294901760, %v1503_v50  ;;  %19657 = vst [vmem:[#allocation38_spill] sm:$0xff] %v14810_v1 }
 0x260   :  { %v1364_v35 = vpop.f32.mrf.mxu0  ;;  %v2335_v34 = vadd.f32 %v2334_v2, %v1357_v26  ;;  %v2895_v32 = vpop.f32.mrf.mxu2  ;;  %v1498_v26 = vand.u32 4294901760, %v1497_v54 }
 0x261   :  { %v1365_v57 = vadd.f32 %v1364_v35, %v14559_v24 }
 0x262   :  { %v2896_v56 = vadd.f32 %v2895_v32, %v2335_v34  ;;  %2397 = vmatmul.f32.gmra.mxu1 %v14766_v37 }
 0x263   :  { %1491 = vmatmul.f32.gmra.mxu0 %v1490_v11 }
 0x264   :  { %v14807_v4 = vadd.f32 %v3579_v60, %v2896_v56  ;;  %3680 = vmatmul.f32.gmra.mxu3 %v1488_v31  ;;  %v1505_v31 = vsub.f32 %v1503_v50, %v1504_v45  ;;  %v900_v56 = vsel %vm772_vm1, %v681_v43, 0 }
 0x265   :  { %2979 = vmatmul.f32.gmra.mxu2 %v1487_v9  ;;  %v1511_v9 = vsub.f32 %v897_v16, %v14810_v1  ;;  %v14821_v37 = vand.u32 4294901760, %v900_v56  ;;  %v682_v16 = vld [vmem:[%s19322_s0 + $0x158] sm:$0xff] }
 0x266   :  { %19656 = vst [vmem:[#allocation37_spill] sm:$0xff] %v14807_v4 }
 0x267   :  { %v2338_v13 = vpop.f32.mrf.mxu1  ;;  %v3585_v2 = vpop.f32.mrf.mxu3  ;;  %v1512_v4 = vand.u32 4294901760, %v1511_v9  ;;  %19659 = vst [vmem:[#allocation40_spill] sm:$0xff] %v14821_v37 }
 0x268   :  { %v1372_v34 = vpop.f32.mrf.mxu0  ;;  %v2339_v32 = vadd.f32 %v2338_v13, %v1365_v57  ;;  %v2900_v11 = vpop.f32.mrf.mxu2  ;;  %v1506_v57 = vand.u32 4294901760, %v1505_v31 }
 0x269   :  { %v1373_v60 = vadd.f32 %v1372_v34, %v14559_v24 }
 0x26a   :  { %v2901_v35 = vadd.f32 %v2900_v11, %v2339_v32  ;;  %2401 = vmatmul.f32.gmra.mxu1 %v14777_v63 }
 0x26b   :  { %1499 = vmatmul.f32.gmra.mxu0 %v1498_v26 }
 0x26c   :  { %v14818_v28 = vadd.f32 %v3585_v2, %v2901_v35  ;;  %3686 = vmatmul.f32.gmra.mxu3 %v1496_v15  ;;  %v1513_v15 = vsub.f32 %v1511_v9, %v1512_v4  ;;  %v903_v35 = vsel %vm772_vm1, %v682_v16, 0 }
 0x26d   :  { %2984 = vmatmul.f32.gmra.mxu2 %v1495_v27  ;;  %v1519_v27 = vsub.f32 %v900_v56, %v14821_v37  ;;  %v14832_v63 = vand.u32 4294901760, %v903_v35  ;;  %v683_v56 = vld [vmem:[%s19322_s0 + $0x160] sm:$0xff] }
 0x26e   :  { %19658 = vst [vmem:[#allocation39_spill] sm:$0xff] %v14818_v28 }
 0x26f   :  { %v2342_v54 = vpop.f32.mrf.mxu1  ;;  %v3591_v13 = vpop.f32.mrf.mxu3  ;;  %v1520_v28 = vand.u32 4294901760, %v1519_v27  ;;  %19661 = vst [vmem:[#allocation42_spill] sm:$0xff] %v14832_v63 }
 0x270   :  { %v1380_v32 = vpop.f32.mrf.mxu0  ;;  %v2343_v11 = vadd.f32 %v2342_v54, %v1373_v60  ;;  %v2905_v26 = vpop.f32.mrf.mxu2  ;;  %v1514_v60 = vand.u32 4294901760, %v1513_v15 }
 0x271   :  { %v1381_v2 = vadd.f32 %v1380_v32, %v14559_v24 }
 0x272   :  { %v2906_v34 = vadd.f32 %v2905_v26, %v2343_v11  ;;  %2405 = vmatmul.f32.gmra.mxu1 %v14788_v25 }
 0x273   :  { %1507 = vmatmul.f32.gmra.mxu0 %v1506_v57 }
 0x274   :  { %v14829_v43 = vadd.f32 %v3591_v13, %v2906_v34  ;;  %3692 = vmatmul.f32.gmra.mxu3 %v1504_v45  ;;  %v1521_v45 = vsub.f32 %v1519_v27, %v1520_v28  ;;  %v906_v34 = vsel %vm772_vm1, %v683_v56, 0 }
 0x275   :  { %2989 = vmatmul.f32.gmra.mxu2 %v1503_v50  ;;  %v1527_v50 = vsub.f32 %v903_v35, %v14832_v63  ;;  %v14843_v25 = vand.u32 4294901760, %v906_v34  ;;  %v684_v35 = vld [vmem:[%s19322_s0 + $0x168] sm:$0xff] }
 0x276   :  { %19660 = vst [vmem:[#allocation41_spill] sm:$0xff] %v14829_v43 }
 0x277   :  { %v2346_v31 = vpop.f32.mrf.mxu1  ;;  %v3597_v54 = vpop.f32.mrf.mxu3  ;;  %v1528_v43 = vand.u32 4294901760, %v1527_v50  ;;  %19663 = vst [vmem:[#allocation44_spill] sm:$0xff] %v14843_v25 }
 0x278   :  { %v1388_v11 = vpop.f32.mrf.mxu0  ;;  %v2347_v26 = vadd.f32 %v2346_v31, %v1381_v2  ;;  %v2910_v57 = vpop.f32.mrf.mxu2  ;;  %v1522_v2 = vand.u32 4294901760, %v1521_v45 }
 0x279   :  { %v1389_v13 = vadd.f32 %v1388_v11, %v14559_v24 }
 0x27a   :  { %v2911_v32 = vadd.f32 %v2910_v57, %v2347_v26  ;;  %2409 = vmatmul.f32.gmra.mxu1 %v14799_v8 }
 0x27b   :  { %1515 = vmatmul.f32.gmra.mxu0 %v1514_v60 }
 0x27c   :  { %v14840_v16 = vadd.f32 %v3597_v54, %v2911_v32  ;;  %3698 = vmatmul.f32.gmra.mxu3 %v1512_v4  ;;  %v1529_v4 = vsub.f32 %v1527_v50, %v1528_v43  ;;  %v909_v32 = vsel %vm772_vm1, %v684_v35, 0 }
 0x27d   :  { %2994 = vmatmul.f32.gmra.mxu2 %v1511_v9  ;;  %v1535_v9 = vsub.f32 %v906_v34, %v14843_v25  ;;  %v685_v34 = vld [vmem:[%s19322_s0 + $0x170] sm:$0xff] }
 0x27e   :  { %19662 = vst [vmem:[#allocation43_spill] sm:$0xff] %v14840_v16  ;;  %v14854_v16 = vand.u32 4294901760, %v909_v32 }
 0x27f   :  { %v2350_v15 = vpop.f32.mrf.mxu1  ;;  %v3603_v31 = vpop.f32.mrf.mxu3  ;;  %v1536_v8 = vand.u32 4294901760, %v1535_v9 }
 0x280   :  { %v1396_v26 = vpop.f32.mrf.mxu0  ;;  %v2351_v57 = vadd.f32 %v2350_v15, %v1389_v13  ;;  %v2915_v60 = vpop.f32.mrf.mxu2  ;;  %v1530_v13 = vand.u32 4294901760, %v1529_v4  ;;  %19665 = vst [vmem:[#allocation46_spill] sm:$0xff] %v14854_v16 }
 0x281   :  { %v1397_v54 = vadd.f32 %v1396_v26, %v14559_v24 }
 0x282   :  { %v2916_v11 = vadd.f32 %v2915_v60, %v2351_v57  ;;  %2413 = vmatmul.f32.gmra.mxu1 %v14810_v1 }
 0x283   :  { %1523 = vmatmul.f32.gmra.mxu0 %v1522_v2 }
 0x284   :  { %v14851_v56 = vadd.f32 %v3603_v31, %v2916_v11  ;;  %3704 = vmatmul.f32.gmra.mxu3 %v1520_v28  ;;  %v1537_v28 = vsub.f32 %v1535_v9, %v1536_v8  ;;  %v14864_v31 = vld [vmem:[%s19326_s4] ss:$0 sm:$0xff]  ;;  %v912_v11 = vsel %vm772_vm1, %v685_v34, 0 }
 0x285   :  { %2999 = vmatmul.f32.gmra.mxu2 %v1519_v27  ;;  %v1543_v27 = vsub.f32 %v909_v32, %v14854_v16 }
 0x286   :  { %19664 = vst [vmem:[#allocation45_spill] sm:$0xff] %v14851_v56 }
 0x287   :  { %v2354_v45 = vpop.f32.mrf.mxu1  ;;  %v3609_v15 = vpop.f32.mrf.mxu3 }
 0x288   :  { %v1404_v57 = vpop.f32.mrf.mxu0  ;;  %v2355_v60 = vadd.f32 %v2354_v45, %v1397_v54  ;;  %v2920_v2 = vpop.f32.mrf.mxu2  ;;  %v1538_v54 = vand.u32 4294901760, %v1537_v28 }
 0x289   :  { %v1405_v26 = vadd.f32 %v14864_v31, %v1404_v57 }
 0x28a   :  { %v2921_v24 = vadd.f32 %v2920_v2, %v2355_v60  ;;  %2417 = vmatmul.f32.gmra.mxu1 %v14821_v37  ;;  %v14870_v60 = vand.u32 4294901760, %v912_v11  ;;  %v686_v37 = vld [vmem:[%s19322_s0 + $0x178] sm:$0xff] }
 0x28b   :  { %1531 = vmatmul.f32.gmra.mxu0 %v1530_v13  ;;  %v1544_v13 = vand.u32 4294901760, %v1543_v27 }
 0x28c   :  { %v14867_v35 = vadd.f32 %v3609_v15, %v2921_v24  ;;  %3710 = vmatmul.f32.gmra.mxu3 %v1528_v43  ;;  %19667 = vst [vmem:[#allocation48_spill] sm:$0xff] %v14870_v60  ;;  %v915_v24 = vsel %vm772_vm1, %v686_v37, 0 }
 0x28d   :  { %3004 = vmatmul.f32.gmra.mxu2 %v1527_v50  ;;  %v1545_v43 = vsub.f32 %v1543_v27, %v1544_v13  ;;  %v1551_v50 = vsub.f32 %v912_v11, %v14870_v60  ;;  %v14881_v1 = vand.u32 4294901760, %v915_v24  ;;  %v687_v11 = vld [vmem:[%s19322_s0 + $0x180] sm:$0xff] }
 0x28e   :  { %19666 = vst [vmem:[#allocation47_spill] sm:$0xff] %v14867_v35 }
 0x28f   :  { %v2358_v4 = vpop.f32.mrf.mxu1  ;;  %v3615_v45 = vpop.f32.mrf.mxu3  ;;  %v1552_v35 = vand.u32 4294901760, %v1551_v50  ;;  %19669 = vst [vmem:[#allocation50_spill] sm:$0xff] %v14881_v1  ;;  %v1559_v37 = vsub.f32 %v915_v24, %v14881_v1  ;;  %v688_v24 = vld [vmem:[%s19322_s0 + $0x188] sm:$0xff] }
 0x290   :  { %v1412_v32 = vpop.f32.mrf.mxu0  ;;  %v2359_v2 = vadd.f32 %v2358_v4, %v1405_v26  ;;  %v2925_v56 = vpop.f32.mrf.mxu2  ;;  %v1546_v26 = vand.u32 4294901760, %v1545_v43 }
 0x291   :  { %v1413_v15 = vadd.f32 %v14864_v31, %v1412_v32 }
 0x292   :  { %v2926_v57 = vadd.f32 %v2925_v56, %v2359_v2  ;;  %2421 = vmatmul.f32.gmra.mxu1 %v14832_v63 }
 0x293   :  { %1539 = vmatmul.f32.gmra.mxu0 %v1538_v54 }
 0x294   :  { %v14878_v34 = vadd.f32 %v3615_v45, %v2926_v57  ;;  %3716 = vmatmul.f32.gmra.mxu3 %v1536_v8  ;;  %v1553_v8 = vsub.f32 %v1551_v50, %v1552_v35  ;;  %v918_v57 = vsel %vm772_vm1, %v687_v11, 0 }
 0x295   :  { %3009 = vmatmul.f32.gmra.mxu2 %v1535_v9  ;;  %v14892_v63 = vand.u32 4294901760, %v918_v57 }
 0x296   :  { %19668 = vst [vmem:[#allocation49_spill] sm:$0xff] %v14878_v34  ;;  %v1560_v34 = vand.u32 4294901760, %v1559_v37 }
 0x297   :  { %v2362_v28 = vpop.f32.mrf.mxu1  ;;  %v3621_v4 = vpop.f32.mrf.mxu3  ;;  %19671 = vst [vmem:[#allocation52_spill] sm:$0xff] %v14892_v63 }
 0x298   :  { %v1420_v56 = vpop.f32.mrf.mxu0  ;;  %v2363_v2 = vadd.f32 %v2362_v28, %v1413_v15  ;;  %v2930_v54 = vpop.f32.mrf.mxu2  ;;  %v1554_v15 = vand.u32 4294901760, %v1553_v8 }
 0x299   :  { %v1421_v9 = vadd.f32 %v14864_v31, %v1420_v56 }
 0x29a   :  { %v2931_v32 = vadd.f32 %v2930_v54, %v2363_v2  ;;  %2425 = vmatmul.f32.gmra.mxu1 %v14843_v25 }
 0x29b   :  { %1547 = vmatmul.f32.gmra.mxu0 %v1546_v26 }
 0x29c   :  { %v14889_v45 = vadd.f32 %v3621_v4, %v2931_v32  ;;  %3722 = vmatmul.f32.gmra.mxu3 %v1544_v13  ;;  %v1561_v13 = vsub.f32 %v1559_v37, %v1560_v34  ;;  %v921_v32 = vsel %vm772_vm1, %v688_v24, 0 }
 0x29d   :  { %3014 = vmatmul.f32.gmra.mxu2 %v1543_v27  ;;  %v1567_v27 = vsub.f32 %v918_v57, %v14892_v63  ;;  %v14903_v25 = vand.u32 4294901760, %v921_v32  ;;  %v689_v57 = vld [vmem:[%s19322_s0 + $0x190] sm:$0xff] }
 0x29e   :  { %19670 = vst [vmem:[#allocation51_spill] sm:$0xff] %v14889_v45 }
 0x29f   :  { %v2366_v43 = vpop.f32.mrf.mxu1  ;;  %v3627_v28 = vpop.f32.mrf.mxu3  ;;  %v1568_v45 = vand.u32 4294901760, %v1567_v27  ;;  %19673 = vst [vmem:[#allocation54_spill] sm:$0xff] %v14903_v25 }
 0x2a0   :  { %v1428_v2 = vpop.f32.mrf.mxu0  ;;  %v2367_v54 = vadd.f32 %v2366_v43, %v1421_v9  ;;  %v2935_v26 = vpop.f32.mrf.mxu2  ;;  %v1562_v9 = vand.u32 4294901760, %v1561_v13 }
 0x2a1   :  { %v1429_v4 = vadd.f32 %v14864_v31, %v1428_v2 }
 0x2a2   :  { %v2936_v56 = vadd.f32 %v2935_v26, %v2367_v54  ;;  %2429 = vmatmul.f32.gmra.mxu1 %v14854_v16 }
 0x2a3   :  { %1555 = vmatmul.f32.gmra.mxu0 %v1554_v15 }
 0x2a4   :  { %v14900_v11 = vadd.f32 %v3627_v28, %v2936_v56  ;;  %3728 = vmatmul.f32.gmra.mxu3 %v1552_v35  ;;  %v1569_v35 = vsub.f32 %v1567_v27, %v1568_v45  ;;  %v924_v56 = vsel %vm772_vm1, %v689_v57, 0 }
 0x2a5   :  { %3019 = vmatmul.f32.gmra.mxu2 %v1551_v50  ;;  %v1575_v50 = vsub.f32 %v921_v32, %v14903_v25  ;;  %v14914_v16 = vand.u32 4294901760, %v924_v56  ;;  %v690_v32 = vld [vmem:[%s19322_s0 + $0x198] sm:$0xff] }
 0x2a6   :  { %19672 = vst [vmem:[#allocation53_spill] sm:$0xff] %v14900_v11 }
 0x2a7   :  { %v2370_v8 = vpop.f32.mrf.mxu1  ;;  %v3633_v43 = vpop.f32.mrf.mxu3  ;;  %v1576_v11 = vand.u32 4294901760, %v1575_v50  ;;  %19675 = vst [vmem:[#allocation56_spill] sm:$0xff] %v14914_v16 }
 0x2a8   :  { %v1436_v54 = vpop.f32.mrf.mxu0  ;;  %v2371_v26 = vadd.f32 %v2370_v8, %v1429_v4  ;;  %v2940_v15 = vpop.f32.mrf.mxu2  ;;  %v1570_v4 = vand.u32 4294901760, %v1569_v35 }
 0x2a9   :  { %v1437_v28 = vadd.f32 %v14864_v31, %v1436_v54 }
 0x2aa   :  { %v2941_v2 = vadd.f32 %v2940_v15, %v2371_v26  ;;  %2433 = vmatmul.f32.gmra.mxu1 %v14870_v60 }
 0x2ab   :  { %1563 = vmatmul.f32.gmra.mxu0 %v1562_v9 }
 0x2ac   :  { %v14911_v24 = vadd.f32 %v3633_v43, %v2941_v2  ;;  %3734 = vmatmul.f32.gmra.mxu3 %v1560_v34  ;;  %v1577_v34 = vsub.f32 %v1575_v50, %v1576_v11  ;;  %v927_v2 = vsel %vm772_vm1, %v690_v32, 0 }
 0x2ad   :  { %3024 = vmatmul.f32.gmra.mxu2 %v1559_v37  ;;  %v1583_v37 = vsub.f32 %v924_v56, %v14914_v16  ;;  %v14925_v60 = vand.u32 4294901760, %v927_v2  ;;  %v691_v56 = vld [vmem:[%s19322_s0 + $0x1a0] sm:$0xff] }
 0x2ae   :  { %19674 = vst [vmem:[#allocation55_spill] sm:$0xff] %v14911_v24 }
 0x2af   :  { %v2374_v13 = vpop.f32.mrf.mxu1  ;;  %v3639_v8 = vpop.f32.mrf.mxu3  ;;  %v1584_v24 = vand.u32 4294901760, %v1583_v37  ;;  %19677 = vst [vmem:[#allocation58_spill] sm:$0xff] %v14925_v60 }
 0x2b0   :  { %v1444_v26 = vpop.f32.mrf.mxu0  ;;  %v2375_v15 = vadd.f32 %v2374_v13, %v1437_v28  ;;  %v2945_v9 = vpop.f32.mrf.mxu2  ;;  %v1578_v28 = vand.u32 4294901760, %v1577_v34 }
 0x2b1   :  { %v1445_v43 = vadd.f32 %v14864_v31, %v1444_v26 }
 0x2b2   :  { %v2946_v54 = vadd.f32 %v2945_v9, %v2375_v15  ;;  %2437 = vmatmul.f32.gmra.mxu1 %v14881_v1 }
 0x2b3   :  { %1571 = vmatmul.f32.gmra.mxu0 %v1570_v4 }
 0x2b4   :  { %v14922_v57 = vadd.f32 %v3639_v8, %v2946_v54  ;;  %3740 = vmatmul.f32.gmra.mxu3 %v1568_v45  ;;  %v1585_v45 = vsub.f32 %v1583_v37, %v1584_v24  ;;  %v930_v54 = vsel %vm772_vm1, %v691_v56, 0 }
 0x2b5   :  { %3029 = vmatmul.f32.gmra.mxu2 %v1567_v27  ;;  %v1591_v27 = vsub.f32 %v927_v2, %v14925_v60  ;;  %v14936_v1 = vand.u32 4294901760, %v930_v54  ;;  %v692_v2 = vld [vmem:[%s19322_s0 + $0x1a8] sm:$0xff] }
 0x2b6   :  { %19676 = vst [vmem:[#allocation57_spill] sm:$0xff] %v14922_v57 }
 0x2b7   :  { %v2378_v35 = vpop.f32.mrf.mxu1  ;;  %v3645_v13 = vpop.f32.mrf.mxu3  ;;  %v1592_v57 = vand.u32 4294901760, %v1591_v27  ;;  %19679 = vst [vmem:[#allocation60_spill] sm:$0xff] %v14936_v1 }
 0x2b8   :  { %v1452_v15 = vpop.f32.mrf.mxu0  ;;  %v2379_v9 = vadd.f32 %v2378_v35, %v1445_v43  ;;  %v2950_v4 = vpop.f32.mrf.mxu2  ;;  %v1586_v43 = vand.u32 4294901760, %v1585_v45 }
 0x2b9   :  { %v1453_v8 = vadd.f32 %v14864_v31, %v1452_v15 }
 0x2ba   :  { %v2951_v26 = vadd.f32 %v2950_v4, %v2379_v9  ;;  %2441 = vmatmul.f32.gmra.mxu1 %v14892_v63 }
 0x2bb   :  { %1579 = vmatmul.f32.gmra.mxu0 %v1578_v28 }
 0x2bc   :  { %v14933_v32 = vadd.f32 %v3645_v13, %v2951_v26  ;;  %3746 = vmatmul.f32.gmra.mxu3 %v1576_v11  ;;  %v1593_v11 = vsub.f32 %v1591_v27, %v1592_v57  ;;  %v933_v26 = vsel %vm772_vm1, %v692_v2, 0 }
 0x2bd   :  { %3034 = vmatmul.f32.gmra.mxu2 %v1575_v50  ;;  %v1599_v50 = vsub.f32 %v930_v54, %v14936_v1  ;;  %v14947_v63 = vand.u32 4294901760, %v933_v26  ;;  %v693_v54 = vld [vmem:[%s19322_s0 + $0x1b0] sm:$0xff] }
 0x2be   :  { %19678 = vst [vmem:[#allocation59_spill] sm:$0xff] %v14933_v32 }
 0x2bf   :  { %v2382_v34 = vpop.f32.mrf.mxu1  ;;  %v3651_v35 = vpop.f32.mrf.mxu3  ;;  %v1600_v32 = vand.u32 4294901760, %v1599_v50  ;;  %19681 = vst [vmem:[#allocation62_spill] sm:$0xff] %v14947_v63 }
 0x2c0   :  { %v1460_v9 = vpop.f32.mrf.mxu0  ;;  %v2383_v4 = vadd.f32 %v2382_v34, %v1453_v8  ;;  %v2955_v28 = vpop.f32.mrf.mxu2  ;;  %v1594_v8 = vand.u32 4294901760, %v1593_v11 }
 0x2c1   :  { %v1461_v13 = vadd.f32 %v14864_v31, %v1460_v9 }
 0x2c2   :  { %v2956_v15 = vadd.f32 %v2955_v28, %v2383_v4  ;;  %2445 = vmatmul.f32.gmra.mxu1 %v14903_v25 }
 0x2c3   :  { %1587 = vmatmul.f32.gmra.mxu0 %v1586_v43 }
 0x2c4   :  { %v14944_v56 = vadd.f32 %v3651_v35, %v2956_v15  ;;  %3752 = vmatmul.f32.gmra.mxu3 %v1584_v24  ;;  %v1601_v24 = vsub.f32 %v1599_v50, %v1600_v32  ;;  %v936_v15 = vsel %vm772_vm1, %v693_v54, 0 }
 0x2c5   :  { %3039 = vmatmul.f32.gmra.mxu2 %v1583_v37  ;;  %v1607_v37 = vsub.f32 %v933_v26, %v14947_v63  ;;  %v14958_v25 = vand.u32 4294901760, %v936_v15  ;;  %v694_v26 = vld [vmem:[%s19322_s0 + $0x1b8] sm:$0xff] }
 0x2c6   :  { %19680 = vst [vmem:[#allocation61_spill] sm:$0xff] %v14944_v56 }
 0x2c7   :  { %v2386_v45 = vpop.f32.mrf.mxu1  ;;  %v3657_v34 = vpop.f32.mrf.mxu3  ;;  %v1608_v56 = vand.u32 4294901760, %v1607_v37  ;;  %19683 = vst [vmem:[#allocation64_spill] sm:$0xff] %v14958_v25 }
 0x2c8   :  { %v1468_v4 = vpop.f32.mrf.mxu0  ;;  %v2387_v28 = vadd.f32 %v2386_v45, %v1461_v13  ;;  %v2960_v43 = vpop.f32.mrf.mxu2  ;;  %v1602_v13 = vand.u32 4294901760, %v1601_v24 }
 0x2c9   :  { %v1469_v35 = vadd.f32 %v14864_v31, %v1468_v4 }
 0x2ca   :  { %v2961_v9 = vadd.f32 %v2960_v43, %v2387_v28  ;;  %2449 = vmatmul.f32.gmra.mxu1 %v14914_v16 }
 0x2cb   :  { %1595 = vmatmul.f32.gmra.mxu0 %v1594_v8 }
 0x2cc   :  { %v14955_v2 = vadd.f32 %v3657_v34, %v2961_v9  ;;  %3758 = vmatmul.f32.gmra.mxu3 %v1592_v57  ;;  %v1609_v57 = vsub.f32 %v1607_v37, %v1608_v56  ;;  %v939_v9 = vsel %vm772_vm1, %v694_v26, 0 }
 0x2cd   :  { %3044 = vmatmul.f32.gmra.mxu2 %v1591_v27  ;;  %v1615_v27 = vsub.f32 %v936_v15, %v14958_v25  ;;  %v14969_v16 = vand.u32 4294901760, %v939_v9  ;;  %v695_v15 = vld [vmem:[%s19322_s0 + $0x1c0] sm:$0xff] }
 0x2ce   :  { %19682 = vst [vmem:[#allocation63_spill] sm:$0xff] %v14955_v2 }
 0x2cf   :  { %v2390_v11 = vpop.f32.mrf.mxu1  ;;  %v3663_v45 = vpop.f32.mrf.mxu3  ;;  %v1616_v2 = vand.u32 4294901760, %v1615_v27  ;;  %19685 = vst [vmem:[#allocation66_spill] sm:$0xff] %v14969_v16 }
 0x2d0   :  { %v1476_v28 = vpop.f32.mrf.mxu0  ;;  %v2391_v43 = vadd.f32 %v2390_v11, %v1469_v35  ;;  %v2965_v8 = vpop.f32.mrf.mxu2  ;;  %v1610_v35 = vand.u32 4294901760, %v1609_v57 }
 0x2d1   :  { %v1477_v34 = vadd.f32 %v14864_v31, %v1476_v28 }
 0x2d2   :  { %v2966_v4 = vadd.f32 %v2965_v8, %v2391_v43  ;;  %2453 = vmatmul.f32.gmra.mxu1 %v14925_v60 }
 0x2d3   :  { %1603 = vmatmul.f32.gmra.mxu0 %v1602_v13 }
 0x2d4   :  { %v14966_v54 = vadd.f32 %v3663_v45, %v2966_v4  ;;  %3764 = vmatmul.f32.gmra.mxu3 %v1600_v32  ;;  %v1617_v32 = vsub.f32 %v1615_v27, %v1616_v2  ;;  %v942_v4 = vsel %vm772_vm1, %v695_v15, 0 }
 0x2d5   :  { %3049 = vmatmul.f32.gmra.mxu2 %v1599_v50  ;;  %v1623_v50 = vsub.f32 %v939_v9, %v14969_v16  ;;  %v14980_v60 = vand.u32 4294901760, %v942_v4  ;;  %v696_v9 = vld [vmem:[%s19322_s0 + $0x1c8] sm:$0xff] }
 0x2d6   :  { %19684 = vst [vmem:[#allocation65_spill] sm:$0xff] %v14966_v54 }
 0x2d7   :  { %v2394_v24 = vpop.f32.mrf.mxu1  ;;  %v3669_v11 = vpop.f32.mrf.mxu3  ;;  %v1624_v54 = vand.u32 4294901760, %v1623_v50  ;;  %19687 = vst [vmem:[#allocation68_spill] sm:$0xff] %v14980_v60 }
 0x2d8   :  { %v1484_v43 = vpop.f32.mrf.mxu0  ;;  %v2395_v8 = vadd.f32 %v2394_v24, %v1477_v34  ;;  %v2970_v13 = vpop.f32.mrf.mxu2  ;;  %v1618_v34 = vand.u32 4294901760, %v1617_v32 }
 0x2d9   :  { %v1485_v45 = vadd.f32 %v14864_v31, %v1484_v43 }
 0x2da   :  { %v2971_v28 = vadd.f32 %v2970_v13, %v2395_v8  ;;  %2457 = vmatmul.f32.gmra.mxu1 %v14936_v1 }
 0x2db   :  { %1611 = vmatmul.f32.gmra.mxu0 %v1610_v35 }
 0x2dc   :  { %v14977_v26 = vadd.f32 %v3669_v11, %v2971_v28  ;;  %3770 = vmatmul.f32.gmra.mxu3 %v1608_v56  ;;  %v1625_v56 = vsub.f32 %v1623_v50, %v1624_v54  ;;  %v945_v28 = vsel %vm772_vm1, %v696_v9, 0 }
 0x2dd   :  { %3054 = vmatmul.f32.gmra.mxu2 %v1607_v37  ;;  %v1631_v37 = vsub.f32 %v942_v4, %v14980_v60  ;;  %v14991_v1 = vand.u32 4294901760, %v945_v28  ;;  %v697_v4 = vld [vmem:[%s19322_s0 + $0x1d0] sm:$0xff] }
 0x2de   :  { %19686 = vst [vmem:[#allocation67_spill] sm:$0xff] %v14977_v26 }
 0x2df   :  { %v2398_v57 = vpop.f32.mrf.mxu1  ;;  %v3675_v24 = vpop.f32.mrf.mxu3  ;;  %v1632_v26 = vand.u32 4294901760, %v1631_v37  ;;  %19689 = vst [vmem:[#allocation70_spill] sm:$0xff] %v14991_v1 }
 0x2e0   :  { %v1492_v8 = vpop.f32.mrf.mxu0  ;;  %v2399_v13 = vadd.f32 %v2398_v57, %v1485_v45  ;;  %v2975_v35 = vpop.f32.mrf.mxu2  ;;  %v1626_v45 = vand.u32 4294901760, %v1625_v56 }
 0x2e1   :  { %v1493_v11 = vadd.f32 %v14864_v31, %v1492_v8 }
 0x2e2   :  { %v2976_v43 = vadd.f32 %v2975_v35, %v2399_v13  ;;  %2461 = vmatmul.f32.gmra.mxu1 %v14947_v63 }
 0x2e3   :  { %1619 = vmatmul.f32.gmra.mxu0 %v1618_v34 }
 0x2e4   :  { %v14988_v15 = vadd.f32 %v3675_v24, %v2976_v43  ;;  %3776 = vmatmul.f32.gmra.mxu3 %v1616_v2  ;;  %v1633_v2 = vsub.f32 %v1631_v37, %v1632_v26  ;;  %v948_v43 = vsel %vm772_vm1, %v697_v4, 0 }
 0x2e5   :  { %3059 = vmatmul.f32.gmra.mxu2 %v1615_v27  ;;  %v1639_v27 = vsub.f32 %v945_v28, %v14991_v1  ;;  %v15002_v63 = vand.u32 4294901760, %v948_v43  ;;  %v698_v28 = vld [vmem:[%s19322_s0 + $0x1d8] sm:$0xff] }
 0x2e6   :  { %19688 = vst [vmem:[#allocation69_spill] sm:$0xff] %v14988_v15 }
 0x2e7   :  { %v2402_v32 = vpop.f32.mrf.mxu1  ;;  %v3681_v57 = vpop.f32.mrf.mxu3  ;;  %v1640_v15 = vand.u32 4294901760, %v1639_v27  ;;  %19691 = vst [vmem:[#allocation72_spill] sm:$0xff] %v15002_v63 }
 0x2e8   :  { %v1500_v13 = vpop.f32.mrf.mxu0  ;;  %v2403_v35 = vadd.f32 %v2402_v32, %v1493_v11  ;;  %v2980_v34 = vpop.f32.mrf.mxu2  ;;  %v1634_v11 = vand.u32 4294901760, %v1633_v2 }
 0x2e9   :  { %v1501_v24 = vadd.f32 %v14864_v31, %v1500_v13 }
 0x2ea   :  { %v2981_v8 = vadd.f32 %v2980_v34, %v2403_v35  ;;  %2465 = vmatmul.f32.gmra.mxu1 %v14958_v25 }
 0x2eb   :  { %1627 = vmatmul.f32.gmra.mxu0 %v1626_v45 }
 0x2ec   :  { %v14999_v9 = vadd.f32 %v3681_v57, %v2981_v8  ;;  %3782 = vmatmul.f32.gmra.mxu3 %v1624_v54  ;;  %v1641_v54 = vsub.f32 %v1639_v27, %v1640_v15  ;;  %v951_v8 = vsel %vm772_vm1, %v698_v28, 0 }
 0x2ed   :  { %3064 = vmatmul.f32.gmra.mxu2 %v1623_v50  ;;  %v1647_v50 = vsub.f32 %v948_v43, %v15002_v63  ;;  %v15013_v25 = vand.u32 4294901760, %v951_v8  ;;  %v699_v43 = vld [vmem:[%s19322_s0 + $0x1e0] sm:$0xff] }
 0x2ee   :  { %19690 = vst [vmem:[#allocation71_spill] sm:$0xff] %v14999_v9 }
 0x2ef   :  { %v2406_v56 = vpop.f32.mrf.mxu1  ;;  %v3687_v32 = vpop.f32.mrf.mxu3  ;;  %v1648_v9 = vand.u32 4294901760, %v1647_v50  ;;  %19693 = vst [vmem:[#allocation74_spill] sm:$0xff] %v15013_v25 }
 0x2f0   :  { %v1508_v35 = vpop.f32.mrf.mxu0  ;;  %v2407_v34 = vadd.f32 %v2406_v56, %v1501_v24  ;;  %v2985_v45 = vpop.f32.mrf.mxu2  ;;  %v1642_v24 = vand.u32 4294901760, %v1641_v54 }
 0x2f1   :  { %v1509_v57 = vadd.f32 %v14864_v31, %v1508_v35 }
 0x2f2   :  { %v2986_v13 = vadd.f32 %v2985_v45, %v2407_v34  ;;  %2469 = vmatmul.f32.gmra.mxu1 %v14969_v16 }
 0x2f3   :  { %1635 = vmatmul.f32.gmra.mxu0 %v1634_v11 }
 0x2f4   :  { %v15010_v4 = vadd.f32 %v3687_v32, %v2986_v13  ;;  %3788 = vmatmul.f32.gmra.mxu3 %v1632_v26  ;;  %v1649_v26 = vsub.f32 %v1647_v50, %v1648_v9  ;;  %v954_v13 = vsel %vm772_vm1, %v699_v43, 0 }
 0x2f5   :  { %3069 = vmatmul.f32.gmra.mxu2 %v1631_v37  ;;  %v1655_v37 = vsub.f32 %v951_v8, %v15013_v25  ;;  %v15024_v16 = vand.u32 4294901760, %v954_v13  ;;  %v700_v8 = vld [vmem:[%s19322_s0 + $0x1e8] sm:$0xff] }
 0x2f6   :  { %19692 = vst [vmem:[#allocation73_spill] sm:$0xff] %v15010_v4 }
 0x2f7   :  { %v2410_v2 = vpop.f32.mrf.mxu1  ;;  %v3693_v56 = vpop.f32.mrf.mxu3  ;;  %v1656_v4 = vand.u32 4294901760, %v1655_v37  ;;  %19695 = vst [vmem:[#allocation76_spill] sm:$0xff] %v15024_v16 }
 0x2f8   :  { %v1516_v34 = vpop.f32.mrf.mxu0  ;;  %v2411_v45 = vadd.f32 %v2410_v2, %v1509_v57  ;;  %v2990_v11 = vpop.f32.mrf.mxu2  ;;  %v1650_v57 = vand.u32 4294901760, %v1649_v26 }
 0x2f9   :  { %v1517_v32 = vadd.f32 %v14864_v31, %v1516_v34 }
 0x2fa   :  { %v2991_v35 = vadd.f32 %v2990_v11, %v2411_v45  ;;  %2473 = vmatmul.f32.gmra.mxu1 %v14980_v60 }
 0x2fb   :  { %1643 = vmatmul.f32.gmra.mxu0 %v1642_v24 }
 0x2fc   :  { %v15021_v28 = vadd.f32 %v3693_v56, %v2991_v35  ;;  %3794 = vmatmul.f32.gmra.mxu3 %v1640_v15  ;;  %v1657_v15 = vsub.f32 %v1655_v37, %v1656_v4  ;;  %v957_v35 = vsel %vm772_vm1, %v700_v8, 0 }
 0x2fd   :  { %3074 = vmatmul.f32.gmra.mxu2 %v1639_v27  ;;  %v1663_v27 = vsub.f32 %v954_v13, %v15024_v16  ;;  %v701_v13 = vld [vmem:[%s19322_s0 + $0x1f0] sm:$0xff] }
 0x2fe   :  { %19694 = vst [vmem:[#allocation75_spill] sm:$0xff] %v15021_v28  ;;  %v15035_v28 = vand.u32 4294901760, %v957_v35 }
 0x2ff   :  { %v2414_v54 = vpop.f32.mrf.mxu1  ;;  %v3699_v2 = vpop.f32.mrf.mxu3  ;;  %v1664_v60 = vand.u32 4294901760, %v1663_v27 }
 0x300   :  { %v1524_v45 = vpop.f32.mrf.mxu0  ;;  %v2415_v11 = vadd.f32 %v2414_v54, %v1517_v32  ;;  %v2995_v24 = vpop.f32.mrf.mxu2  ;;  %v1658_v32 = vand.u32 4294901760, %v1657_v15  ;;  %19697 = vst [vmem:[#allocation78_spill] sm:$0xff] %v15035_v28 }
 0x301   :  { %v1525_v56 = vadd.f32 %v14864_v31, %v1524_v45 }
 0x302   :  { %v2996_v34 = vadd.f32 %v2995_v24, %v2415_v11  ;;  %2477 = vmatmul.f32.gmra.mxu1 %v14991_v1 }
 0x303   :  { %1651 = vmatmul.f32.gmra.mxu0 %v1650_v57 }
 0x304   :  { %v15032_v43 = vadd.f32 %v3699_v2, %v2996_v34  ;;  %3800 = vmatmul.f32.gmra.mxu3 %v1648_v9  ;;  %v1665_v9 = vsub.f32 %v1663_v27, %v1664_v60  ;;  %v960_v34 = vsel %vm772_vm1, %v701_v13, 0 }
 0x305   :  { %3079 = vmatmul.f32.gmra.mxu2 %v1647_v50  ;;  %v1671_v50 = vsub.f32 %v957_v35, %v15035_v28  ;;  %v15046_v1 = vand.u32 4294901760, %v960_v34  ;;  %v702_v35 = vld [vmem:[%s19322_s0 + $0x1f8] sm:$0xff] }
 0x306   :  { %19696 = vst [vmem:[#allocation77_spill] sm:$0xff] %v15032_v43 }
 0x307   :  { %v2418_v26 = vpop.f32.mrf.mxu1  ;;  %v3705_v54 = vpop.f32.mrf.mxu3  ;;  %v1672_v43 = vand.u32 4294901760, %v1671_v50  ;;  %19699 = vst [vmem:[#allocation80_spill] sm:$0xff] %v15046_v1 }
 0x308   :  { %v1532_v11 = vpop.f32.mrf.mxu0  ;;  %v2419_v24 = vadd.f32 %v2418_v26, %v1525_v56  ;;  %v3000_v57 = vpop.f32.mrf.mxu2  ;;  %v1666_v56 = vand.u32 4294901760, %v1665_v9 }
 0x309   :  { %v1533_v2 = vadd.f32 %v14864_v31, %v1532_v11 }
 0x30a   :  { %v3001_v45 = vadd.f32 %v3000_v57, %v2419_v24  ;;  %2481 = vmatmul.f32.gmra.mxu1 %v15002_v63 }
 0x30b   :  { %1659 = vmatmul.f32.gmra.mxu0 %v1658_v32 }
 0x30c   :  { %v15043_v8 = vadd.f32 %v3705_v54, %v3001_v45  ;;  %3806 = vmatmul.f32.gmra.mxu3 %v1656_v4  ;;  %v1673_v4 = vsub.f32 %v1671_v50, %v1672_v43  ;;  %v963_v45 = vsel %vm772_vm1, %v702_v35, 0 }
 0x30d   :  { %3084 = vmatmul.f32.gmra.mxu2 %v1655_v37  ;;  %v1679_v37 = vsub.f32 %v960_v34, %v15046_v1  ;;  %v15057_v63 = vand.u32 4294901760, %v963_v45  ;;  %v703_v34 = vld [vmem:[%s19322_s0 + $0x200] sm:$0xff] }
 0x30e   :  { %19698 = vst [vmem:[#allocation79_spill] sm:$0xff] %v15043_v8 }
 0x30f   :  { %v2422_v15 = vpop.f32.mrf.mxu1  ;;  %v3711_v26 = vpop.f32.mrf.mxu3  ;;  %v1680_v8 = vand.u32 4294901760, %v1679_v37  ;;  %19701 = vst [vmem:[#allocation82_spill] sm:$0xff] %v15057_v63 }
 0x310   :  { %v1540_v24 = vpop.f32.mrf.mxu0  ;;  %v2423_v57 = vadd.f32 %v2422_v15, %v1533_v2  ;;  %v3005_v32 = vpop.f32.mrf.mxu2  ;;  %v1674_v2 = vand.u32 4294901760, %v1673_v4 }
 0x311   :  { %v1541_v54 = vadd.f32 %v14864_v31, %v1540_v24 }
 0x312   :  { %v3006_v11 = vadd.f32 %v3005_v32, %v2423_v57  ;;  %2485 = vmatmul.f32.gmra.mxu1 %v15013_v25 }
 0x313   :  { %1667 = vmatmul.f32.gmra.mxu0 %v1666_v56 }
 0x314   :  { %v15054_v13 = vadd.f32 %v3711_v26, %v3006_v11  ;;  %3812 = vmatmul.f32.gmra.mxu3 %v1664_v60  ;;  %v1681_v60 = vsub.f32 %v1679_v37, %v1680_v8  ;;  %v966_v11 = vsel %vm772_vm1, %v703_v34, 0 }
 0x315   :  { %3089 = vmatmul.f32.gmra.mxu2 %v1663_v27  ;;  %v1687_v27 = vsub.f32 %v963_v45, %v15057_v63  ;;  %v15068_v25 = vand.u32 4294901760, %v966_v11  ;;  %v704_v45 = vld [vmem:[%s19322_s0 + $0x208] sm:$0xff] }
 0x316   :  { %19700 = vst [vmem:[#allocation81_spill] sm:$0xff] %v15054_v13 }
 0x317   :  { %v2426_v9 = vpop.f32.mrf.mxu1  ;;  %v3717_v15 = vpop.f32.mrf.mxu3  ;;  %v1688_v13 = vand.u32 4294901760, %v1687_v27  ;;  %19703 = vst [vmem:[#allocation84_spill] sm:$0xff] %v15068_v25 }
 0x318   :  { %v1548_v57 = vpop.f32.mrf.mxu0  ;;  %v2427_v32 = vadd.f32 %v2426_v9, %v1541_v54  ;;  %v3010_v56 = vpop.f32.mrf.mxu2  ;;  %v1682_v54 = vand.u32 4294901760, %v1681_v60 }
 0x319   :  { %v1549_v26 = vadd.f32 %v14864_v31, %v1548_v57 }
 0x31a   :  { %v3011_v24 = vadd.f32 %v3010_v56, %v2427_v32  ;;  %2489 = vmatmul.f32.gmra.mxu1 %v15024_v16 }
 0x31b   :  { %1675 = vmatmul.f32.gmra.mxu0 %v1674_v2 }
 0x31c   :  { %v15065_v35 = vadd.f32 %v3717_v15, %v3011_v24  ;;  %3818 = vmatmul.f32.gmra.mxu3 %v1672_v43  ;;  %v1689_v43 = vsub.f32 %v1687_v27, %v1688_v13  ;;  %v969_v24 = vsel %vm772_vm1, %v704_v45, 0 }
 0x31d   :  { %3094 = vmatmul.f32.gmra.mxu2 %v1671_v50  ;;  %v1695_v50 = vsub.f32 %v966_v11, %v15068_v25  ;;  %v15079_v16 = vand.u32 4294901760, %v969_v24  ;;  %v705_v11 = vld [vmem:[%s19322_s0 + $0x210] sm:$0xff] }
 0x31e   :  { %19702 = vst [vmem:[#allocation83_spill] sm:$0xff] %v15065_v35 }
 0x31f   :  { %v2430_v4 = vpop.f32.mrf.mxu1  ;;  %v3723_v9 = vpop.f32.mrf.mxu3  ;;  %v1696_v35 = vand.u32 4294901760, %v1695_v50  ;;  %19705 = vst [vmem:[#allocation86_spill] sm:$0xff] %v15079_v16 }
 0x320   :  { %v1556_v32 = vpop.f32.mrf.mxu0  ;;  %v2431_v56 = vadd.f32 %v2430_v4, %v1549_v26  ;;  %v3015_v2 = vpop.f32.mrf.mxu2  ;;  %v1690_v26 = vand.u32 4294901760, %v1689_v43 }
 0x321   :  { %v1557_v15 = vadd.f32 %v14864_v31, %v1556_v32 }
 0x322   :  { %v3016_v57 = vadd.f32 %v3015_v2, %v2431_v56  ;;  %2493 = vmatmul.f32.gmra.mxu1 %v15035_v28 }
 0x323   :  { %1683 = vmatmul.f32.gmra.mxu0 %v1682_v54 }
 0x324   :  { %v15076_v34 = vadd.f32 %v3723_v9, %v3016_v57  ;;  %3824 = vmatmul.f32.gmra.mxu3 %v1680_v8  ;;  %v1697_v8 = vsub.f32 %v1695_v50, %v1696_v35  ;;  %v972_v57 = vsel %vm772_vm1, %v705_v11, 0 }
 0x325   :  { %3099 = vmatmul.f32.gmra.mxu2 %v1679_v37  ;;  %v1703_v37 = vsub.f32 %v969_v24, %v15079_v16  ;;  %v15090_v28 = vand.u32 4294901760, %v972_v57  ;;  %v706_v24 = vld [vmem:[%s19322_s0 + $0x218] sm:$0xff] }
 0x326   :  { %19704 = vst [vmem:[#allocation85_spill] sm:$0xff] %v15076_v34 }
 0x327   :  { %v2434_v60 = vpop.f32.mrf.mxu1  ;;  %v3729_v4 = vpop.f32.mrf.mxu3  ;;  %v1704_v34 = vand.u32 4294901760, %v1703_v37  ;;  %19707 = vst [vmem:[#allocation88_spill] sm:$0xff] %v15090_v28 }
 0x328   :  { %v1564_v56 = vpop.f32.mrf.mxu0  ;;  %v2435_v2 = vadd.f32 %v2434_v60, %v1557_v15  ;;  %v3020_v54 = vpop.f32.mrf.mxu2  ;;  %v1698_v15 = vand.u32 4294901760, %v1697_v8 }
 0x329   :  { %v1565_v9 = vadd.f32 %v14864_v31, %v1564_v56 }
 0x32a   :  { %v3021_v32 = vadd.f32 %v3020_v54, %v2435_v2  ;;  %2497 = vmatmul.f32.gmra.mxu1 %v15046_v1 }
 0x32b   :  { %1691 = vmatmul.f32.gmra.mxu0 %v1690_v26 }
 0x32c   :  { %v15087_v45 = vadd.f32 %v3729_v4, %v3021_v32  ;;  %3830 = vmatmul.f32.gmra.mxu3 %v1688_v13  ;;  %v1705_v13 = vsub.f32 %v1703_v37, %v1704_v34  ;;  %v975_v32 = vsel %vm772_vm1, %v706_v24, 0 }
 0x32d   :  { %3104 = vmatmul.f32.gmra.mxu2 %v1687_v27  ;;  %v1711_v27 = vsub.f32 %v972_v57, %v15090_v28  ;;  %v15101_v1 = vand.u32 4294901760, %v975_v32  ;;  %v707_v57 = vld [vmem:[%s19322_s0 + $0x220] sm:$0xff] }
 0x32e   :  { %19706 = vst [vmem:[#allocation87_spill] sm:$0xff] %v15087_v45 }
 0x32f   :  { %v2438_v43 = vpop.f32.mrf.mxu1  ;;  %v3735_v60 = vpop.f32.mrf.mxu3  ;;  %v1712_v45 = vand.u32 4294901760, %v1711_v27  ;;  %19709 = vst [vmem:[#allocation90_spill] sm:$0xff] %v15101_v1 }
 0x330   :  { %v1572_v2 = vpop.f32.mrf.mxu0  ;;  %v2439_v54 = vadd.f32 %v2438_v43, %v1565_v9  ;;  %v3025_v26 = vpop.f32.mrf.mxu2  ;;  %v1706_v9 = vand.u32 4294901760, %v1705_v13 }
 0x331   :  { %v1573_v4 = vadd.f32 %v14864_v31, %v1572_v2 }
 0x332   :  { %v3026_v56 = vadd.f32 %v3025_v26, %v2439_v54  ;;  %2501 = vmatmul.f32.gmra.mxu1 %v15057_v63 }
 0x333   :  { %1699 = vmatmul.f32.gmra.mxu0 %v1698_v15 }
 0x334   :  { %v15098_v11 = vadd.f32 %v3735_v60, %v3026_v56  ;;  %3836 = vmatmul.f32.gmra.mxu3 %v1696_v35  ;;  %v1713_v35 = vsub.f32 %v1711_v27, %v1712_v45  ;;  %v978_v56 = vsel %vm772_vm1, %v707_v57, 0 }
 0x335   :  { %3109 = vmatmul.f32.gmra.mxu2 %v1695_v50  ;;  %v1719_v50 = vsub.f32 %v975_v32, %v15101_v1  ;;  %v15112_v63 = vand.u32 4294901760, %v978_v56  ;;  %v708_v32 = vld [vmem:[%s19322_s0 + $0x228] sm:$0xff] }
 0x336   :  { %19708 = vst [vmem:[#allocation89_spill] sm:$0xff] %v15098_v11 }
 0x337   :  { %v2442_v8 = vpop.f32.mrf.mxu1  ;;  %v3741_v43 = vpop.f32.mrf.mxu3  ;;  %v1720_v11 = vand.u32 4294901760, %v1719_v50  ;;  %19711 = vst [vmem:[#allocation92_spill] sm:$0xff] %v15112_v63 }
 0x338   :  { %v1580_v54 = vpop.f32.mrf.mxu0  ;;  %v2443_v26 = vadd.f32 %v2442_v8, %v1573_v4  ;;  %v3030_v15 = vpop.f32.mrf.mxu2  ;;  %v1714_v4 = vand.u32 4294901760, %v1713_v35 }
 0x339   :  { %v1581_v60 = vadd.f32 %v14864_v31, %v1580_v54 }
 0x33a   :  { %v3031_v2 = vadd.f32 %v3030_v15, %v2443_v26  ;;  %2505 = vmatmul.f32.gmra.mxu1 %v15068_v25 }
 0x33b   :  { %1707 = vmatmul.f32.gmra.mxu0 %v1706_v9 }
 0x33c   :  { %v15109_v24 = vadd.f32 %v3741_v43, %v3031_v2  ;;  %3842 = vmatmul.f32.gmra.mxu3 %v1704_v34  ;;  %v1721_v34 = vsub.f32 %v1719_v50, %v1720_v11  ;;  %v981_v2 = vsel %vm772_vm1, %v708_v32, 0 }
 0x33d   :  { %3114 = vmatmul.f32.gmra.mxu2 %v1703_v37  ;;  %v1727_v37 = vsub.f32 %v978_v56, %v15112_v63  ;;  %v15123_v25 = vand.u32 4294901760, %v981_v2  ;;  %v709_v56 = vld [vmem:[%s19322_s0 + $0x230] sm:$0xff] }
 0x33e   :  { %19710 = vst [vmem:[#allocation91_spill] sm:$0xff] %v15109_v24 }
 0x33f   :  { %v2446_v13 = vpop.f32.mrf.mxu1  ;;  %v3747_v8 = vpop.f32.mrf.mxu3  ;;  %v1728_v24 = vand.u32 4294901760, %v1727_v37  ;;  %19713 = vst [vmem:[#allocation94_spill] sm:$0xff] %v15123_v25 }
 0x340   :  { %v1588_v26 = vpop.f32.mrf.mxu0  ;;  %v2447_v15 = vadd.f32 %v2446_v13, %v1581_v60  ;;  %v3035_v9 = vpop.f32.mrf.mxu2  ;;  %v1722_v60 = vand.u32 4294901760, %v1721_v34 }
 0x341   :  { %v1589_v43 = vadd.f32 %v14864_v31, %v1588_v26 }
 0x342   :  { %v3036_v54 = vadd.f32 %v3035_v9, %v2447_v15  ;;  %2509 = vmatmul.f32.gmra.mxu1 %v15079_v16 }
 0x343   :  { %1715 = vmatmul.f32.gmra.mxu0 %v1714_v4 }
 0x344   :  { %v15120_v57 = vadd.f32 %v3747_v8, %v3036_v54  ;;  %3848 = vmatmul.f32.gmra.mxu3 %v1712_v45  ;;  %v1729_v45 = vsub.f32 %v1727_v37, %v1728_v24  ;;  %v984_v54 = vsel %vm772_vm1, %v709_v56, 0 }
 0x345   :  { %3119 = vmatmul.f32.gmra.mxu2 %v1711_v27  ;;  %v1735_v27 = vsub.f32 %v981_v2, %v15123_v25  ;;  %v15134_v16 = vand.u32 4294901760, %v984_v54  ;;  %v710_v2 = vld [vmem:[%s19322_s0 + $0x238] sm:$0xff] }
 0x346   :  { %19712 = vst [vmem:[#allocation93_spill] sm:$0xff] %v15120_v57 }
 0x347   :  { %v2450_v35 = vpop.f32.mrf.mxu1  ;;  %v3753_v13 = vpop.f32.mrf.mxu3  ;;  %v1736_v57 = vand.u32 4294901760, %v1735_v27  ;;  %19715 = vst [vmem:[#allocation96_spill] sm:$0xff] %v15134_v16 }
 0x348   :  { %v1596_v15 = vpop.f32.mrf.mxu0  ;;  %v2451_v9 = vadd.f32 %v2450_v35, %v1589_v43  ;;  %v3040_v4 = vpop.f32.mrf.mxu2  ;;  %v1730_v43 = vand.u32 4294901760, %v1729_v45 }
 0x349   :  { %v1597_v8 = vadd.f32 %v14864_v31, %v1596_v15 }
 0x34a   :  { %v3041_v26 = vadd.f32 %v3040_v4, %v2451_v9  ;;  %2513 = vmatmul.f32.gmra.mxu1 %v15090_v28 }
 0x34b   :  { %1723 = vmatmul.f32.gmra.mxu0 %v1722_v60 }
 0x34c   :  { %v15131_v32 = vadd.f32 %v3753_v13, %v3041_v26  ;;  %3854 = vmatmul.f32.gmra.mxu3 %v1720_v11  ;;  %v1737_v11 = vsub.f32 %v1735_v27, %v1736_v57  ;;  %v987_v26 = vsel %vm772_vm1, %v710_v2, 0 }
 0x34d   :  { %3124 = vmatmul.f32.gmra.mxu2 %v1719_v50  ;;  %v1743_v50 = vsub.f32 %v984_v54, %v15134_v16  ;;  %v15145_v28 = vand.u32 4294901760, %v987_v26  ;;  %v711_v54 = vld [vmem:[%s19322_s0 + $0x240] sm:$0xff] }
 0x34e   :  { %19714 = vst [vmem:[#allocation95_spill] sm:$0xff] %v15131_v32 }
 0x34f   :  { %v2454_v34 = vpop.f32.mrf.mxu1  ;;  %v3759_v35 = vpop.f32.mrf.mxu3  ;;  %v1744_v32 = vand.u32 4294901760, %v1743_v50  ;;  %19717 = vst [vmem:[#allocation98_spill] sm:$0xff] %v15145_v28 }
 0x350   :  { %v1604_v9 = vpop.f32.mrf.mxu0  ;;  %v2455_v4 = vadd.f32 %v2454_v34, %v1597_v8  ;;  %v3045_v60 = vpop.f32.mrf.mxu2  ;;  %v1738_v8 = vand.u32 4294901760, %v1737_v11 }
 0x351   :  { %v1605_v13 = vadd.f32 %v14864_v31, %v1604_v9 }
 0x352   :  { %v3046_v15 = vadd.f32 %v3045_v60, %v2455_v4  ;;  %2517 = vmatmul.f32.gmra.mxu1 %v15101_v1 }
 0x353   :  { %1731 = vmatmul.f32.gmra.mxu0 %v1730_v43 }
 0x354   :  { %v15142_v56 = vadd.f32 %v3759_v35, %v3046_v15  ;;  %3860 = vmatmul.f32.gmra.mxu3 %v1728_v24  ;;  %v1745_v24 = vsub.f32 %v1743_v50, %v1744_v32  ;;  %v990_v15 = vsel %vm772_vm1, %v711_v54, 0 }
 0x355   :  { %3129 = vmatmul.f32.gmra.mxu2 %v1727_v37  ;;  %v1751_v37 = vsub.f32 %v987_v26, %v15145_v28  ;;  %v15156_v1 = vand.u32 4294901760, %v990_v15  ;;  %v712_v26 = vld [vmem:[%s19322_s0 + $0x248] sm:$0xff] }
 0x356   :  { %19716 = vst [vmem:[#allocation97_spill] sm:$0xff] %v15142_v56 }
 0x357   :  { %v2458_v45 = vpop.f32.mrf.mxu1  ;;  %v3765_v34 = vpop.f32.mrf.mxu3  ;;  %v1752_v56 = vand.u32 4294901760, %v1751_v37  ;;  %19719 = vst [vmem:[#allocation100_spill] sm:$0xff] %v15156_v1 }
 0x358   :  { %v1612_v4 = vpop.f32.mrf.mxu0  ;;  %v2459_v60 = vadd.f32 %v2458_v45, %v1605_v13  ;;  %v3050_v43 = vpop.f32.mrf.mxu2  ;;  %v1746_v13 = vand.u32 4294901760, %v1745_v24 }
 0x359   :  { %v1613_v35 = vadd.f32 %v14864_v31, %v1612_v4 }
 0x35a   :  { %v3051_v9 = vadd.f32 %v3050_v43, %v2459_v60  ;;  %2521 = vmatmul.f32.gmra.mxu1 %v15112_v63 }
 0x35b   :  { %1739 = vmatmul.f32.gmra.mxu0 %v1738_v8 }
 0x35c   :  { %v15153_v2 = vadd.f32 %v3765_v34, %v3051_v9  ;;  %3866 = vmatmul.f32.gmra.mxu3 %v1736_v57  ;;  %v1753_v57 = vsub.f32 %v1751_v37, %v1752_v56  ;;  %v15166_v34 = vld [vmem:[%s19326_s4] ss:$0 sm:$0xff]  ;;  %v993_v9 = vsel %vm772_vm1, %v712_v26, 0 }
 0x35d   :  { %3134 = vmatmul.f32.gmra.mxu2 %v1735_v27  ;;  %v1759_v27 = vsub.f32 %v990_v15, %v15156_v1 }
 0x35e   :  { %19718 = vst [vmem:[#allocation99_spill] sm:$0xff] %v15153_v2 }
 0x35f   :  { %v2462_v11 = vpop.f32.mrf.mxu1  ;;  %v3771_v45 = vpop.f32.mrf.mxu3 }
 0x360   :  { %v1620_v60 = vpop.f32.mrf.mxu0  ;;  %v2463_v43 = vadd.f32 %v2462_v11, %v1613_v35  ;;  %v3055_v8 = vpop.f32.mrf.mxu2  ;;  %v1754_v35 = vand.u32 4294901760, %v1753_v57 }
 0x361   :  { %v1621_v4 = vadd.f32 %v15166_v34, %v1620_v60 }
 0x362   :  { %v3056_v31 = vadd.f32 %v3055_v8, %v2463_v43  ;;  %2525 = vmatmul.f32.gmra.mxu1 %v15123_v25  ;;  %v15172_v43 = vand.u32 4294901760, %v993_v9  ;;  %v713_v25 = vld [vmem:[%s19322_s0 + $0x250] sm:$0xff] }
 0x363   :  { %1747 = vmatmul.f32.gmra.mxu0 %v1746_v13  ;;  %v1760_v13 = vand.u32 4294901760, %v1759_v27 }
 0x364   :  { %v15169_v54 = vadd.f32 %v3771_v45, %v3056_v31  ;;  %3872 = vmatmul.f32.gmra.mxu3 %v1744_v32  ;;  %19721 = vst [vmem:[#allocation102_spill] sm:$0xff] %v15172_v43  ;;  %v996_v31 = vsel %vm772_vm1, %v713_v25, 0 }
 0x365   :  { %3139 = vmatmul.f32.gmra.mxu2 %v1743_v50  ;;  %v1761_v32 = vsub.f32 %v1759_v27, %v1760_v13  ;;  %v1767_v50 = vsub.f32 %v993_v9, %v15172_v43  ;;  %v15183_v63 = vand.u32 4294901760, %v996_v31  ;;  %v714_v9 = vld [vmem:[%s19322_s0 + $0x258] sm:$0xff] }
 0x366   :  { %19720 = vst [vmem:[#allocation101_spill] sm:$0xff] %v15169_v54 }
 0x367   :  { %v2466_v24 = vpop.f32.mrf.mxu1  ;;  %v3777_v11 = vpop.f32.mrf.mxu3  ;;  %v1768_v54 = vand.u32 4294901760, %v1767_v50  ;;  %19723 = vst [vmem:[#allocation104_spill] sm:$0xff] %v15183_v63  ;;  %v1775_v25 = vsub.f32 %v996_v31, %v15183_v63  ;;  %v715_v31 = vld [vmem:[%s19322_s0 + $0x260] sm:$0xff] }
 0x368   :  { %v1628_v15 = vpop.f32.mrf.mxu0  ;;  %v2467_v8 = vadd.f32 %v2466_v24, %v1621_v4  ;;  %v3060_v2 = vpop.f32.mrf.mxu2  ;;  %v1762_v4 = vand.u32 4294901760, %v1761_v32 }
 0x369   :  { %v1629_v45 = vadd.f32 %v15166_v34, %v1628_v15 }
 0x36a   :  { %v3061_v60 = vadd.f32 %v3060_v2, %v2467_v8  ;;  %2529 = vmatmul.f32.gmra.mxu1 %v15134_v16 }
 0x36b   :  { %1755 = vmatmul.f32.gmra.mxu0 %v1754_v35 }
 0x36c   :  { %v15180_v26 = vadd.f32 %v3777_v11, %v3061_v60  ;;  %3878 = vmatmul.f32.gmra.mxu3 %v1752_v56  ;;  %v1769_v56 = vsub.f32 %v1767_v50, %v1768_v54  ;;  %v999_v60 = vsel %vm772_vm1, %v714_v9, 0 }
 0x36d   :  { %3144 = vmatmul.f32.gmra.mxu2 %v1751_v37  ;;  %v15194_v16 = vand.u32 4294901760, %v999_v60 }
 0x36e   :  { %19722 = vst [vmem:[#allocation103_spill] sm:$0xff] %v15180_v26  ;;  %v1776_v26 = vand.u32 4294901760, %v1775_v25 }
 0x36f   :  { %v2470_v57 = vpop.f32.mrf.mxu1  ;;  %v3783_v24 = vpop.f32.mrf.mxu3  ;;  %19725 = vst [vmem:[#allocation106_spill] sm:$0xff] %v15194_v16 }
 0x370   :  { %v1636_v2 = vpop.f32.mrf.mxu0  ;;  %v2471_v8 = vadd.f32 %v2470_v57, %v1629_v45  ;;  %v3065_v35 = vpop.f32.mrf.mxu2  ;;  %v1770_v45 = vand.u32 4294901760, %v1769_v56 }
 0x371   :  { %v1637_v37 = vadd.f32 %v15166_v34, %v1636_v2 }
 0x372   :  { %v3066_v15 = vadd.f32 %v3065_v35, %v2471_v8  ;;  %2533 = vmatmul.f32.gmra.mxu1 %v15145_v28 }
 0x373   :  { %1763 = vmatmul.f32.gmra.mxu0 %v1762_v4 }
 0x374   :  { %v15191_v11 = vadd.f32 %v3783_v24, %v3066_v15  ;;  %3884 = vmatmul.f32.gmra.mxu3 %v1760_v13  ;;  %v1777_v13 = vsub.f32 %v1775_v25, %v1776_v26  ;;  %v1002_v15 = vsel %vm772_vm1, %v715_v31, 0 }
 0x375   :  { %3149 = vmatmul.f32.gmra.mxu2 %v1759_v27  ;;  %v1783_v27 = vsub.f32 %v999_v60, %v15194_v16  ;;  %v15205_v28 = vand.u32 4294901760, %v1002_v15  ;;  %v716_v60 = vld [vmem:[%s19322_s0 + $0x268] sm:$0xff] }
 0x376   :  { %19724 = vst [vmem:[#allocation105_spill] sm:$0xff] %v15191_v11 }
 0x377   :  { %v2474_v32 = vpop.f32.mrf.mxu1  ;;  %v3789_v57 = vpop.f32.mrf.mxu3  ;;  %v1784_v11 = vand.u32 4294901760, %v1783_v27  ;;  %19727 = vst [vmem:[#allocation108_spill] sm:$0xff] %v15205_v28 }
 0x378   :  { %v1644_v8 = vpop.f32.mrf.mxu0  ;;  %v2475_v35 = vadd.f32 %v2474_v32, %v1637_v37  ;;  %v3070_v4 = vpop.f32.mrf.mxu2  ;;  %v1778_v37 = vand.u32 4294901760, %v1777_v13 }
 0x379   :  { %v1645_v24 = vadd.f32 %v15166_v34, %v1644_v8 }
 0x37a   :  { %v3071_v2 = vadd.f32 %v3070_v4, %v2475_v35  ;;  %2537 = vmatmul.f32.gmra.mxu1 %v15156_v1 }
 0x37b   :  { %1771 = vmatmul.f32.gmra.mxu0 %v1770_v45 }
 0x37c   :  { %v15202_v9 = vadd.f32 %v3789_v57, %v3071_v2  ;;  %3890 = vmatmul.f32.gmra.mxu3 %v1768_v54  ;;  %v1785_v54 = vsub.f32 %v1783_v27, %v1784_v11  ;;  %v1005_v2 = vsel %vm772_vm1, %v716_v60, 0 }
 0x37d   :  { %3154 = vmatmul.f32.gmra.mxu2 %v1767_v50  ;;  %v1791_v50 = vsub.f32 %v1002_v15, %v15205_v28  ;;  %v717_v15 = vld [vmem:[%s19322_s0 + $0x270] sm:$0xff] }
 0x37e   :  { %19726 = vst [vmem:[#allocation107_spill] sm:$0xff] %v15202_v9  ;;  %v15216_v9 = vand.u32 4294901760, %v1005_v2 }
 0x37f   :  { %v2478_v56 = vpop.f32.mrf.mxu1  ;;  %v3795_v32 = vpop.f32.mrf.mxu3  ;;  %v1792_v1 = vand.u32 4294901760, %v1791_v50 }
 0x380   :  { %v1652_v35 = vpop.f32.mrf.mxu0  ;;  %v2479_v4 = vadd.f32 %v2478_v56, %v1645_v24  ;;  %v3075_v45 = vpop.f32.mrf.mxu2  ;;  %v1786_v24 = vand.u32 4294901760, %v1785_v54  ;;  %19729 = vst [vmem:[#allocation110_spill] sm:$0xff] %v15216_v9 }
 0x381   :  { %v1653_v57 = vadd.f32 %v15166_v34, %v1652_v35 }
 0x382   :  { %v3076_v8 = vadd.f32 %v3075_v45, %v2479_v4  ;;  %2541 = vmatmul.f32.gmra.mxu1 %v15172_v43 }
 0x383   :  { %1779 = vmatmul.f32.gmra.mxu0 %v1778_v37 }
 0x384   :  { %v15213_v31 = vadd.f32 %v3795_v32, %v3076_v8  ;;  %3896 = vmatmul.f32.gmra.mxu3 %v1776_v26  ;;  %v1793_v26 = vsub.f32 %v1791_v50, %v1792_v1  ;;  %v1008_v8 = vsel %vm772_vm1, %v717_v15, 0 }
 0x385   :  { %3159 = vmatmul.f32.gmra.mxu2 %v1775_v25  ;;  %v1799_v25 = vsub.f32 %v1005_v2, %v15216_v9  ;;  %v15227_v43 = vand.u32 4294901760, %v1008_v8  ;;  %v718_v2 = vld [vmem:[%s19322_s0 + $0x278] sm:$0xff] }
 0x386   :  { %19728 = vst [vmem:[#allocation109_spill] sm:$0xff] %v15213_v31 }
 0x387   :  { %v2482_v13 = vpop.f32.mrf.mxu1  ;;  %v3801_v56 = vpop.f32.mrf.mxu3  ;;  %v1800_v31 = vand.u32 4294901760, %v1799_v25  ;;  %19731 = vst [vmem:[#allocation112_spill] sm:$0xff] %v15227_v43 }
 0x388   :  { %v1660_v4 = vpop.f32.mrf.mxu0  ;;  %v2483_v45 = vadd.f32 %v2482_v13, %v1653_v57  ;;  %v3080_v37 = vpop.f32.mrf.mxu2  ;;  %v1794_v57 = vand.u32 4294901760, %v1793_v26 }
 0x389   :  { %v1661_v32 = vadd.f32 %v15166_v34, %v1660_v4 }
 0x38a   :  { %v3081_v35 = vadd.f32 %v3080_v37, %v2483_v45  ;;  %2545 = vmatmul.f32.gmra.mxu1 %v15183_v63 }
 0x38b   :  { %1787 = vmatmul.f32.gmra.mxu0 %v1786_v24 }
 0x38c   :  { %v15224_v60 = vadd.f32 %v3801_v56, %v3081_v35  ;;  %3902 = vmatmul.f32.gmra.mxu3 %v1784_v11  ;;  %v1801_v11 = vsub.f32 %v1799_v25, %v1800_v31  ;;  %v1011_v35 = vsel %vm772_vm1, %v718_v2, 0 }
 0x38d   :  { %3164 = vmatmul.f32.gmra.mxu2 %v1783_v27  ;;  %v1807_v27 = vsub.f32 %v1008_v8, %v15227_v43  ;;  %v15238_v63 = vand.u32 4294901760, %v1011_v35  ;;  %v719_v8 = vld [vmem:[%s19322_s0 + $0x280] sm:$0xff] }
 0x38e   :  { %19730 = vst [vmem:[#allocation111_spill] sm:$0xff] %v15224_v60 }
 0x38f   :  { %v2486_v54 = vpop.f32.mrf.mxu1  ;;  %v3807_v13 = vpop.f32.mrf.mxu3  ;;  %v1808_v60 = vand.u32 4294901760, %v1807_v27  ;;  %19733 = vst [vmem:[#allocation114_spill] sm:$0xff] %v15238_v63 }
 0x390   :  { %v1668_v45 = vpop.f32.mrf.mxu0  ;;  %v2487_v37 = vadd.f32 %v2486_v54, %v1661_v32  ;;  %v3085_v24 = vpop.f32.mrf.mxu2  ;;  %v1802_v32 = vand.u32 4294901760, %v1801_v11 }
 0x391   :  { %v1669_v56 = vadd.f32 %v15166_v34, %v1668_v45 }
 0x392   :  { %v3086_v4 = vadd.f32 %v3085_v24, %v2487_v37  ;;  %2549 = vmatmul.f32.gmra.mxu1 %v15194_v16 }
 0x393   :  { %1795 = vmatmul.f32.gmra.mxu0 %v1794_v57 }
 0x394   :  { %v15235_v15 = vadd.f32 %v3807_v13, %v3086_v4  ;;  %3908 = vmatmul.f32.gmra.mxu3 %v1792_v1  ;;  %v1809_v1 = vsub.f32 %v1807_v27, %v1808_v60  ;;  %v1014_v4 = vsel %vm772_vm1, %v719_v8, 0 }
 0x395   :  { %3169 = vmatmul.f32.gmra.mxu2 %v1791_v50  ;;  %v1815_v50 = vsub.f32 %v1011_v35, %v15238_v63  ;;  %v15249_v16 = vand.u32 4294901760, %v1014_v4  ;;  %v720_v35 = vld [vmem:[%s19322_s0 + $0x288] sm:$0xff] }
 0x396   :  { %19732 = vst [vmem:[#allocation113_spill] sm:$0xff] %v15235_v15 }
 0x397   :  { %v2490_v26 = vpop.f32.mrf.mxu1  ;;  %v3813_v54 = vpop.f32.mrf.mxu3  ;;  %v1816_v15 = vand.u32 4294901760, %v1815_v50  ;;  %19735 = vst [vmem:[#allocation116_spill] sm:$0xff] %v15249_v16 }
 0x398   :  { %v1676_v37 = vpop.f32.mrf.mxu0  ;;  %v2491_v24 = vadd.f32 %v2490_v26, %v1669_v56  ;;  %v3090_v57 = vpop.f32.mrf.mxu2  ;;  %v1810_v56 = vand.u32 4294901760, %v1809_v1 }
 0x399   :  { %v1677_v13 = vadd.f32 %v15166_v34, %v1676_v37 }
 0x39a   :  { %v3091_v45 = vadd.f32 %v3090_v57, %v2491_v24  ;;  %2553 = vmatmul.f32.gmra.mxu1 %v15205_v28 }
 0x39b   :  { %1803 = vmatmul.f32.gmra.mxu0 %v1802_v32 }
 0x39c   :  { %v15246_v2 = vadd.f32 %v3813_v54, %v3091_v45  ;;  %3914 = vmatmul.f32.gmra.mxu3 %v1800_v31  ;;  %v1817_v31 = vsub.f32 %v1815_v50, %v1816_v15  ;;  %v1017_v45 = vsel %vm772_vm1, %v720_v35, 0 }
 0x39d   :  { %3174 = vmatmul.f32.gmra.mxu2 %v1799_v25  ;;  %v1823_v25 = vsub.f32 %v1014_v4, %v15249_v16  ;;  %v15260_v28 = vand.u32 4294901760, %v1017_v45  ;;  %v721_v4 = vld [vmem:[%s19322_s0 + $0x290] sm:$0xff] }
 0x39e   :  { %19734 = vst [vmem:[#allocation115_spill] sm:$0xff] %v15246_v2 }
 0x39f   :  { %v2494_v11 = vpop.f32.mrf.mxu1  ;;  %v3819_v26 = vpop.f32.mrf.mxu3  ;;  %v1824_v2 = vand.u32 4294901760, %v1823_v25  ;;  %19737 = vst [vmem:[#allocation118_spill] sm:$0xff] %v15260_v28 }
 0x3a0   :  { %v1684_v24 = vpop.f32.mrf.mxu0  ;;  %v2495_v57 = vadd.f32 %v2494_v11, %v1677_v13  ;;  %v3095_v32 = vpop.f32.mrf.mxu2  ;;  %v1818_v13 = vand.u32 4294901760, %v1817_v31 }
 0x3a1   :  { %v1685_v54 = vadd.f32 %v15166_v34, %v1684_v24 }
 0x3a2   :  { %v3096_v37 = vadd.f32 %v3095_v32, %v2495_v57  ;;  %2557 = vmatmul.f32.gmra.mxu1 %v15216_v9 }
 0x3a3   :  { %1811 = vmatmul.f32.gmra.mxu0 %v1810_v56 }
 0x3a4   :  { %v15257_v8 = vadd.f32 %v3819_v26, %v3096_v37  ;;  %3920 = vmatmul.f32.gmra.mxu3 %v1808_v60  ;;  %v1825_v60 = vsub.f32 %v1823_v25, %v1824_v2  ;;  %v1020_v37 = vsel %vm772_vm1, %v721_v4, 0 }
 0x3a5   :  { %3179 = vmatmul.f32.gmra.mxu2 %v1807_v27  ;;  %v1831_v27 = vsub.f32 %v1017_v45, %v15260_v28  ;;  %v15271_v9 = vand.u32 4294901760, %v1020_v37  ;;  %v722_v45 = vld [vmem:[%s19322_s0 + $0x298] sm:$0xff] }
 0x3a6   :  { %19736 = vst [vmem:[#allocation117_spill] sm:$0xff] %v15257_v8 }
 0x3a7   :  { %v2498_v1 = vpop.f32.mrf.mxu1  ;;  %v3825_v11 = vpop.f32.mrf.mxu3  ;;  %v1832_v8 = vand.u32 4294901760, %v1831_v27  ;;  %19739 = vst [vmem:[#allocation120_spill] sm:$0xff] %v15271_v9 }
 0x3a8   :  { %v1692_v57 = vpop.f32.mrf.mxu0  ;;  %v2499_v32 = vadd.f32 %v2498_v1, %v1685_v54  ;;  %v3100_v56 = vpop.f32.mrf.mxu2  ;;  %v1826_v54 = vand.u32 4294901760, %v1825_v60 }
 0x3a9   :  { %v1693_v26 = vadd.f32 %v15166_v34, %v1692_v57 }
 0x3aa   :  { %v3101_v24 = vadd.f32 %v3100_v56, %v2499_v32  ;;  %2561 = vmatmul.f32.gmra.mxu1 %v15227_v43 }
 0x3ab   :  { %1819 = vmatmul.f32.gmra.mxu0 %v1818_v13 }
 0x3ac   :  { %v15268_v35 = vadd.f32 %v3825_v11, %v3101_v24  ;;  %3926 = vmatmul.f32.gmra.mxu3 %v1816_v15  ;;  %v1833_v15 = vsub.f32 %v1831_v27, %v1832_v8  ;;  %v1023_v24 = vsel %vm772_vm1, %v722_v45, 0 }
 0x3ad   :  { %3184 = vmatmul.f32.gmra.mxu2 %v1815_v50  ;;  %v1839_v50 = vsub.f32 %v1020_v37, %v15271_v9  ;;  %v15282_v43 = vand.u32 4294901760, %v1023_v24  ;;  %v723_v37 = vld [vmem:[%s19322_s0 + $0x2a0] sm:$0xff] }
 0x3ae   :  { %19738 = vst [vmem:[#allocation119_spill] sm:$0xff] %v15268_v35 }
 0x3af   :  { %v2502_v31 = vpop.f32.mrf.mxu1  ;;  %v3831_v1 = vpop.f32.mrf.mxu3  ;;  %v1840_v35 = vand.u32 4294901760, %v1839_v50  ;;  %19741 = vst [vmem:[#allocation122_spill] sm:$0xff] %v15282_v43 }
 0x3b0   :  { %v1700_v32 = vpop.f32.mrf.mxu0  ;;  %v2503_v56 = vadd.f32 %v2502_v31, %v1693_v26  ;;  %v3105_v13 = vpop.f32.mrf.mxu2  ;;  %v1834_v26 = vand.u32 4294901760, %v1833_v15 }
 0x3b1   :  { %v1701_v11 = vadd.f32 %v15166_v34, %v1700_v32 }
 0x3b2   :  { %v3106_v57 = vadd.f32 %v3105_v13, %v2503_v56  ;;  %2565 = vmatmul.f32.gmra.mxu1 %v15238_v63 }
 0x3b3   :  { %1827 = vmatmul.f32.gmra.mxu0 %v1826_v54 }
 0x3b4   :  { %v15279_v4 = vadd.f32 %v3831_v1, %v3106_v57  ;;  %3932 = vmatmul.f32.gmra.mxu3 %v1824_v2  ;;  %v1841_v2 = vsub.f32 %v1839_v50, %v1840_v35  ;;  %v1026_v57 = vsel %vm772_vm1, %v723_v37, 0 }
 0x3b5   :  { %3189 = vmatmul.f32.gmra.mxu2 %v1823_v25  ;;  %v1847_v25 = vsub.f32 %v1023_v24, %v15282_v43  ;;  %v15293_v63 = vand.u32 4294901760, %v1026_v57  ;;  %v724_v24 = vld [vmem:[%s19322_s0 + $0x2a8] sm:$0xff] }
 0x3b6   :  { %19740 = vst [vmem:[#allocation121_spill] sm:$0xff] %v15279_v4 }
 0x3b7   :  { %v2506_v60 = vpop.f32.mrf.mxu1  ;;  %v3837_v31 = vpop.f32.mrf.mxu3  ;;  %v1848_v4 = vand.u32 4294901760, %v1847_v25  ;;  %19743 = vst [vmem:[#allocation124_spill] sm:$0xff] %v15293_v63 }
 0x3b8   :  { %v1708_v56 = vpop.f32.mrf.mxu0  ;;  %v2507_v13 = vadd.f32 %v2506_v60, %v1701_v11  ;;  %v3110_v54 = vpop.f32.mrf.mxu2  ;;  %v1842_v11 = vand.u32 4294901760, %v1841_v2 }
 0x3b9   :  { %v1709_v1 = vadd.f32 %v15166_v34, %v1708_v56 }
 0x3ba   :  { %v3111_v32 = vadd.f32 %v3110_v54, %v2507_v13  ;;  %2569 = vmatmul.f32.gmra.mxu1 %v15249_v16 }
 0x3bb   :  { %1835 = vmatmul.f32.gmra.mxu0 %v1834_v26 }
 0x3bc   :  { %v15290_v45 = vadd.f32 %v3837_v31, %v3111_v32  ;;  %3938 = vmatmul.f32.gmra.mxu3 %v1832_v8  ;;  %v1849_v8 = vsub.f32 %v1847_v25, %v1848_v4  ;;  %v1029_v32 = vsel %vm772_vm1, %v724_v24, 0 }
 0x3bd   :  { %3194 = vmatmul.f32.gmra.mxu2 %v1831_v27  ;;  %v1855_v27 = vsub.f32 %v1026_v57, %v15293_v63  ;;  %v15304_v16 = vand.u32 4294901760, %v1029_v32  ;;  %v725_v57 = vld [vmem:[%s19322_s0 + $0x2b0] sm:$0xff] }
 0x3be   :  { %19742 = vst [vmem:[#allocation123_spill] sm:$0xff] %v15290_v45 }
 0x3bf   :  { %v2510_v15 = vpop.f32.mrf.mxu1  ;;  %v3843_v60 = vpop.f32.mrf.mxu3  ;;  %v1856_v45 = vand.u32 4294901760, %v1855_v27  ;;  %19745 = vst [vmem:[#allocation126_spill] sm:$0xff] %v15304_v16 }
 0x3c0   :  { %v1716_v13 = vpop.f32.mrf.mxu0  ;;  %v2511_v54 = vadd.f32 %v2510_v15, %v1709_v1  ;;  %v3115_v26 = vpop.f32.mrf.mxu2  ;;  %v1850_v1 = vand.u32 4294901760, %v1849_v8 }
 0x3c1   :  { %v1717_v31 = vadd.f32 %v15166_v34, %v1716_v13 }
 0x3c2   :  { %v3116_v56 = vadd.f32 %v3115_v26, %v2511_v54  ;;  %2573 = vmatmul.f32.gmra.mxu1 %v15260_v28 }
 0x3c3   :  { %1843 = vmatmul.f32.gmra.mxu0 %v1842_v11 }
 0x3c4   :  { %v15301_v37 = vadd.f32 %v3843_v60, %v3116_v56  ;;  %3944 = vmatmul.f32.gmra.mxu3 %v1840_v35  ;;  %v1857_v35 = vsub.f32 %v1855_v27, %v1856_v45  ;;  %v1032_v56 = vsel %vm772_vm1, %v725_v57, 0 }
 0x3c5   :  { %3199 = vmatmul.f32.gmra.mxu2 %v1839_v50  ;;  %v1863_v50 = vsub.f32 %v1029_v32, %v15304_v16  ;;  %v15315_v28 = vand.u32 4294901760, %v1032_v56  ;;  %v726_v32 = vld [vmem:[%s19322_s0 + $0x2b8] sm:$0xff] }
 0x3c6   :  { %19744 = vst [vmem:[#allocation125_spill] sm:$0xff] %v15301_v37 }
 0x3c7   :  { %v2514_v2 = vpop.f32.mrf.mxu1  ;;  %v3849_v15 = vpop.f32.mrf.mxu3  ;;  %v1864_v37 = vand.u32 4294901760, %v1863_v50  ;;  %19747 = vst [vmem:[#allocation128_spill] sm:$0xff] %v15315_v28 }
 0x3c8   :  { %v1724_v54 = vpop.f32.mrf.mxu0  ;;  %v2515_v26 = vadd.f32 %v2514_v2, %v1717_v31  ;;  %v3120_v11 = vpop.f32.mrf.mxu2  ;;  %v1858_v31 = vand.u32 4294901760, %v1857_v35 }
 0x3c9   :  { %v1725_v60 = vadd.f32 %v15166_v34, %v1724_v54 }
 0x3ca   :  { %v3121_v13 = vadd.f32 %v3120_v11, %v2515_v26  ;;  %2577 = vmatmul.f32.gmra.mxu1 %v15271_v9 }
 0x3cb   :  { %1851 = vmatmul.f32.gmra.mxu0 %v1850_v1 }
 0x3cc   :  { %v15312_v24 = vadd.f32 %v3849_v15, %v3121_v13  ;;  %3950 = vmatmul.f32.gmra.mxu3 %v1848_v4  ;;  %v1865_v4 = vsub.f32 %v1863_v50, %v1864_v37  ;;  %v1035_v13 = vsel %vm772_vm1, %v726_v32, 0 }
 0x3cd   :  { %3204 = vmatmul.f32.gmra.mxu2 %v1847_v25  ;;  %v1871_v25 = vsub.f32 %v1032_v56, %v15315_v28  ;;  %v15326_v9 = vand.u32 4294901760, %v1035_v13  ;;  %v727_v56 = vld [vmem:[%s19322_s0 + $0x2c0] sm:$0xff] }
 0x3ce   :  { %19746 = vst [vmem:[#allocation127_spill] sm:$0xff] %v15312_v24 }
 0x3cf   :  { %v2518_v8 = vpop.f32.mrf.mxu1  ;;  %v3855_v2 = vpop.f32.mrf.mxu3  ;;  %v1872_v24 = vand.u32 4294901760, %v1871_v25  ;;  %19749 = vst [vmem:[#allocation130_spill] sm:$0xff] %v15326_v9 }
 0x3d0   :  { %v1732_v26 = vpop.f32.mrf.mxu0  ;;  %v2519_v11 = vadd.f32 %v2518_v8, %v1725_v60  ;;  %v3125_v1 = vpop.f32.mrf.mxu2  ;;  %v1866_v60 = vand.u32 4294901760, %v1865_v4 }
 0x3d1   :  { %v1733_v15 = vadd.f32 %v15166_v34, %v1732_v26 }
 0x3d2   :  { %v3126_v54 = vadd.f32 %v3125_v1, %v2519_v11  ;;  %2581 = vmatmul.f32.gmra.mxu1 %v15282_v43 }
 0x3d3   :  { %1859 = vmatmul.f32.gmra.mxu0 %v1858_v31 }
 0x3d4   :  { %v15323_v57 = vadd.f32 %v3855_v2, %v3126_v54  ;;  %3956 = vmatmul.f32.gmra.mxu3 %v1856_v45  ;;  %v1873_v45 = vsub.f32 %v1871_v25, %v1872_v24  ;;  %v1038_v54 = vsel %vm772_vm1, %v727_v56, 0 }
 0x3d5   :  { %3209 = vmatmul.f32.gmra.mxu2 %v1855_v27  ;;  %v1879_v27 = vsub.f32 %v1035_v13, %v15326_v9  ;;  %v15337_v43 = vand.u32 4294901760, %v1038_v54  ;;  %v728_v13 = vld [vmem:[%s19322_s0 + $0x2c8] sm:$0xff] }
 0x3d6   :  { %19748 = vst [vmem:[#allocation129_spill] sm:$0xff] %v15323_v57 }
 0x3d7   :  { %v2522_v35 = vpop.f32.mrf.mxu1  ;;  %v3861_v8 = vpop.f32.mrf.mxu3  ;;  %v1880_v57 = vand.u32 4294901760, %v1879_v27  ;;  %19751 = vst [vmem:[#allocation132_spill] sm:$0xff] %v15337_v43 }
 0x3d8   :  { %v1740_v11 = vpop.f32.mrf.mxu0  ;;  %v2523_v1 = vadd.f32 %v2522_v35, %v1733_v15  ;;  %v3130_v31 = vpop.f32.mrf.mxu2  ;;  %v1874_v15 = vand.u32 4294901760, %v1873_v45 }
 0x3d9   :  { %v1741_v2 = vadd.f32 %v15166_v34, %v1740_v11 }
 0x3da   :  { %v3131_v26 = vadd.f32 %v3130_v31, %v2523_v1  ;;  %2585 = vmatmul.f32.gmra.mxu1 %v15293_v63 }
 0x3db   :  { %1867 = vmatmul.f32.gmra.mxu0 %v1866_v60 }
 0x3dc   :  { %v15334_v32 = vadd.f32 %v3861_v8, %v3131_v26  ;;  %3962 = vmatmul.f32.gmra.mxu3 %v1864_v37  ;;  %v1881_v37 = vsub.f32 %v1879_v27, %v1880_v57  ;;  %v1041_v26 = vsel %vm772_vm1, %v728_v13, 0 }
 0x3dd   :  { %3214 = vmatmul.f32.gmra.mxu2 %v1863_v50  ;;  %v1887_v50 = vsub.f32 %v1038_v54, %v15337_v43  ;;  %v15348_v63 = vand.u32 4294901760, %v1041_v26  ;;  %v729_v54 = vld [vmem:[%s19322_s0 + $0x2d0] sm:$0xff] }
 0x3de   :  { %19750 = vst [vmem:[#allocation131_spill] sm:$0xff] %v15334_v32 }
 0x3df   :  { %v2526_v4 = vpop.f32.mrf.mxu1  ;;  %v3867_v35 = vpop.f32.mrf.mxu3  ;;  %v1888_v32 = vand.u32 4294901760, %v1887_v50  ;;  %19753 = vst [vmem:[#allocation134_spill] sm:$0xff] %v15348_v63 }
 0x3e0   :  { %v1748_v1 = vpop.f32.mrf.mxu0  ;;  %v2527_v31 = vadd.f32 %v2526_v4, %v1741_v2  ;;  %v3135_v60 = vpop.f32.mrf.mxu2  ;;  %v1882_v2 = vand.u32 4294901760, %v1881_v37 }
 0x3e1   :  { %v1749_v8 = vadd.f32 %v15166_v34, %v1748_v1 }
 0x3e2   :  { %v3136_v11 = vadd.f32 %v3135_v60, %v2527_v31  ;;  %2589 = vmatmul.f32.gmra.mxu1 %v15304_v16 }
 0x3e3   :  { %1875 = vmatmul.f32.gmra.mxu0 %v1874_v15 }
 0x3e4   :  { %v15345_v56 = vadd.f32 %v3867_v35, %v3136_v11  ;;  %3968 = vmatmul.f32.gmra.mxu3 %v1872_v24  ;;  %v1889_v24 = vsub.f32 %v1887_v50, %v1888_v32  ;;  %v1044_v11 = vsel %vm772_vm1, %v729_v54, 0 }
 0x3e5   :  { %3219 = vmatmul.f32.gmra.mxu2 %v1871_v25  ;;  %v1895_v25 = vsub.f32 %v1041_v26, %v15348_v63  ;;  %v15359_v16 = vand.u32 4294901760, %v1044_v11  ;;  %v730_v26 = vld [vmem:[%s19322_s0 + $0x2d8] sm:$0xff] }
 0x3e6   :  { %19752 = vst [vmem:[#allocation133_spill] sm:$0xff] %v15345_v56 }
 0x3e7   :  { %v2530_v45 = vpop.f32.mrf.mxu1  ;;  %v3873_v4 = vpop.f32.mrf.mxu3  ;;  %v1896_v56 = vand.u32 4294901760, %v1895_v25  ;;  %19755 = vst [vmem:[#allocation136_spill] sm:$0xff] %v15359_v16 }
 0x3e8   :  { %v1756_v31 = vpop.f32.mrf.mxu0  ;;  %v2531_v60 = vadd.f32 %v2530_v45, %v1749_v8  ;;  %v3140_v15 = vpop.f32.mrf.mxu2  ;;  %v1890_v8 = vand.u32 4294901760, %v1889_v24 }
 0x3e9   :  { %v1757_v35 = vadd.f32 %v15166_v34, %v1756_v31 }
 0x3ea   :  { %v3141_v1 = vadd.f32 %v3140_v15, %v2531_v60  ;;  %2593 = vmatmul.f32.gmra.mxu1 %v15315_v28 }
 0x3eb   :  { %1883 = vmatmul.f32.gmra.mxu0 %v1882_v2 }
 0x3ec   :  { %v15356_v13 = vadd.f32 %v3873_v4, %v3141_v1  ;;  %3974 = vmatmul.f32.gmra.mxu3 %v1880_v57  ;;  %v1897_v57 = vsub.f32 %v1895_v25, %v1896_v56  ;;  %v1047_v1 = vsel %vm772_vm1, %v730_v26, 0 }
 0x3ed   :  { %3224 = vmatmul.f32.gmra.mxu2 %v1879_v27  ;;  %v1903_v27 = vsub.f32 %v1044_v11, %v15359_v16  ;;  %v15370_v28 = vand.u32 4294901760, %v1047_v1  ;;  %v731_v11 = vld [vmem:[%s19322_s0 + $0x2e0] sm:$0xff] }
 0x3ee   :  { %19754 = vst [vmem:[#allocation135_spill] sm:$0xff] %v15356_v13 }
 0x3ef   :  { %v2534_v37 = vpop.f32.mrf.mxu1  ;;  %v3879_v45 = vpop.f32.mrf.mxu3  ;;  %v1904_v13 = vand.u32 4294901760, %v1903_v27  ;;  %19757 = vst [vmem:[#allocation138_spill] sm:$0xff] %v15370_v28 }
 0x3f0   :  { %v1764_v60 = vpop.f32.mrf.mxu0  ;;  %v2535_v15 = vadd.f32 %v2534_v37, %v1757_v35  ;;  %v3145_v2 = vpop.f32.mrf.mxu2  ;;  %v1898_v35 = vand.u32 4294901760, %v1897_v57 }
 0x3f1   :  { %v1765_v4 = vadd.f32 %v15166_v34, %v1764_v60 }
 0x3f2   :  { %v3146_v31 = vadd.f32 %v3145_v2, %v2535_v15  ;;  %2597 = vmatmul.f32.gmra.mxu1 %v15326_v9 }
 0x3f3   :  { %1891 = vmatmul.f32.gmra.mxu0 %v1890_v8 }
 0x3f4   :  { %v15367_v54 = vadd.f32 %v3879_v45, %v3146_v31  ;;  %3980 = vmatmul.f32.gmra.mxu3 %v1888_v32  ;;  %v1905_v32 = vsub.f32 %v1903_v27, %v1904_v13  ;;  %v1050_v31 = vsel %vm772_vm1, %v731_v11, 0 }
 0x3f5   :  { %3229 = vmatmul.f32.gmra.mxu2 %v1887_v50  ;;  %v1911_v50 = vsub.f32 %v1047_v1, %v15370_v28  ;;  %v15381_v9 = vand.u32 4294901760, %v1050_v31  ;;  %v732_v1 = vld [vmem:[%s19322_s0 + $0x2e8] sm:$0xff] }
 0x3f6   :  { %19756 = vst [vmem:[#allocation137_spill] sm:$0xff] %v15367_v54 }
 0x3f7   :  { %v2538_v24 = vpop.f32.mrf.mxu1  ;;  %v3885_v37 = vpop.f32.mrf.mxu3  ;;  %v1912_v54 = vand.u32 4294901760, %v1911_v50  ;;  %19759 = vst [vmem:[#allocation140_spill] sm:$0xff] %v15381_v9 }
 0x3f8   :  { %v1772_v15 = vpop.f32.mrf.mxu0  ;;  %v2539_v2 = vadd.f32 %v2538_v24, %v1765_v4  ;;  %v3150_v8 = vpop.f32.mrf.mxu2  ;;  %v1906_v4 = vand.u32 4294901760, %v1905_v32 }
 0x3f9   :  { %v1773_v45 = vadd.f32 %v15166_v34, %v1772_v15 }
 0x3fa   :  { %v3151_v60 = vadd.f32 %v3150_v8, %v2539_v2  ;;  %2601 = vmatmul.f32.gmra.mxu1 %v15337_v43 }
 0x3fb   :  { %1899 = vmatmul.f32.gmra.mxu0 %v1898_v35 }
 0x3fc   :  { %v15378_v26 = vadd.f32 %v3885_v37, %v3151_v60  ;;  %3986 = vmatmul.f32.gmra.mxu3 %v1896_v56  ;;  %v1913_v56 = vsub.f32 %v1911_v50, %v1912_v54  ;;  %v1053_v60 = vsel %vm772_vm1, %v732_v1, 0 }
 0x3fd   :  { %3234 = vmatmul.f32.gmra.mxu2 %v1895_v25  ;;  %v1919_v25 = vsub.f32 %v1050_v31, %v15381_v9  ;;  %v733_v31 = vld [vmem:[%s19322_s0 + $0x2f0] sm:$0xff] }
 0x3fe   :  { %19758 = vst [vmem:[#allocation139_spill] sm:$0xff] %v15378_v26  ;;  %v15392_v26 = vand.u32 4294901760, %v1053_v60 }
 0x3ff   :  { %v2542_v57 = vpop.f32.mrf.mxu1  ;;  %v3891_v24 = vpop.f32.mrf.mxu3  ;;  %v1920_v43 = vand.u32 4294901760, %v1919_v25 }
 0x400   :  { %v1780_v2 = vpop.f32.mrf.mxu0  ;;  %v2543_v8 = vadd.f32 %v2542_v57, %v1773_v45  ;;  %v3155_v35 = vpop.f32.mrf.mxu2  ;;  %v1914_v45 = vand.u32 4294901760, %v1913_v56  ;;  %19761 = vst [vmem:[#allocation142_spill] sm:$0xff] %v15392_v26 }
 0x401   :  { %v1781_v37 = vadd.f32 %v15166_v34, %v1780_v2 }
 0x402   :  { %v3156_v15 = vadd.f32 %v3155_v35, %v2543_v8  ;;  %2605 = vmatmul.f32.gmra.mxu1 %v15348_v63 }
 0x403   :  { %1907 = vmatmul.f32.gmra.mxu0 %v1906_v4 }
 0x404   :  { %v15389_v11 = vadd.f32 %v3891_v24, %v3156_v15  ;;  %3992 = vmatmul.f32.gmra.mxu3 %v1904_v13  ;;  %v1921_v13 = vsub.f32 %v1919_v25, %v1920_v43  ;;  %v1056_v15 = vsel %vm772_vm1, %v733_v31, 0 }
 0x405   :  { %3239 = vmatmul.f32.gmra.mxu2 %v1903_v27  ;;  %v1927_v27 = vsub.f32 %v1053_v60, %v15392_v26  ;;  %v15403_v63 = vand.u32 4294901760, %v1056_v15  ;;  %v734_v60 = vld [vmem:[%s19322_s0 + $0x2f8] sm:$0xff] }
 0x406   :  { %19760 = vst [vmem:[#allocation141_spill] sm:$0xff] %v15389_v11 }
 0x407   :  { %v2546_v32 = vpop.f32.mrf.mxu1  ;;  %v3897_v57 = vpop.f32.mrf.mxu3  ;;  %v1928_v11 = vand.u32 4294901760, %v1927_v27  ;;  %19763 = vst [vmem:[#allocation144_spill] sm:$0xff] %v15403_v63 }
 0x408   :  { %v1788_v8 = vpop.f32.mrf.mxu0  ;;  %v2547_v35 = vadd.f32 %v2546_v32, %v1781_v37  ;;  %v3160_v4 = vpop.f32.mrf.mxu2  ;;  %v1922_v37 = vand.u32 4294901760, %v1921_v13 }
 0x409   :  { %v1789_v24 = vadd.f32 %v15166_v34, %v1788_v8 }
 0x40a   :  { %v3161_v2 = vadd.f32 %v3160_v4, %v2547_v35  ;;  %2609 = vmatmul.f32.gmra.mxu1 %v15359_v16 }
 0x40b   :  { %1915 = vmatmul.f32.gmra.mxu0 %v1914_v45 }
 0x40c   :  { %v15400_v1 = vadd.f32 %v3897_v57, %v3161_v2  ;;  %3998 = vmatmul.f32.gmra.mxu3 %v1912_v54  ;;  %v1929_v54 = vsub.f32 %v1927_v27, %v1928_v11  ;;  %v1059_v2 = vsel %vm772_vm1, %v734_v60, 0 }
 0x40d   :  { %3244 = vmatmul.f32.gmra.mxu2 %v1911_v50  ;;  %v1935_v50 = vsub.f32 %v1056_v15, %v15403_v63  ;;  %v15414_v16 = vand.u32 4294901760, %v1059_v2  ;;  %v735_v15 = vld [vmem:[%s19322_s0 + $0x300] sm:$0xff] }
 0x40e   :  { %19762 = vst [vmem:[#allocation143_spill] sm:$0xff] %v15400_v1 }
 0x40f   :  { %v2550_v56 = vpop.f32.mrf.mxu1  ;;  %v3903_v32 = vpop.f32.mrf.mxu3  ;;  %v1936_v1 = vand.u32 4294901760, %v1935_v50  ;;  %19765 = vst [vmem:[#allocation146_spill] sm:$0xff] %v15414_v16 }
 0x410   :  { %v1796_v35 = vpop.f32.mrf.mxu0  ;;  %v2551_v4 = vadd.f32 %v2550_v56, %v1789_v24  ;;  %v3165_v45 = vpop.f32.mrf.mxu2  ;;  %v1930_v24 = vand.u32 4294901760, %v1929_v54 }
 0x411   :  { %v1797_v57 = vadd.f32 %v15166_v34, %v1796_v35 }
 0x412   :  { %v3166_v8 = vadd.f32 %v3165_v45, %v2551_v4  ;;  %2613 = vmatmul.f32.gmra.mxu1 %v15370_v28 }
 0x413   :  { %1923 = vmatmul.f32.gmra.mxu0 %v1922_v37 }
 0x414   :  { %v15411_v31 = vadd.f32 %v3903_v32, %v3166_v8  ;;  %4004 = vmatmul.f32.gmra.mxu3 %v1920_v43  ;;  %v1937_v43 = vsub.f32 %v1935_v50, %v1936_v1  ;;  %v1062_v8 = vsel %vm772_vm1, %v735_v15, 0 }
 0x415   :  { %3249 = vmatmul.f32.gmra.mxu2 %v1919_v25  ;;  %v1943_v25 = vsub.f32 %v1059_v2, %v15414_v16  ;;  %v15425_v28 = vand.u32 4294901760, %v1062_v8  ;;  %v736_v2 = vld [vmem:[%s19322_s0 + $0x308] sm:$0xff] }
 0x416   :  { %19764 = vst [vmem:[#allocation145_spill] sm:$0xff] %v15411_v31 }
 0x417   :  { %v2554_v13 = vpop.f32.mrf.mxu1  ;;  %v3909_v56 = vpop.f32.mrf.mxu3  ;;  %v1944_v31 = vand.u32 4294901760, %v1943_v25  ;;  %19767 = vst [vmem:[#allocation148_spill] sm:$0xff] %v15425_v28 }
 0x418   :  { %v1804_v4 = vpop.f32.mrf.mxu0  ;;  %v2555_v45 = vadd.f32 %v2554_v13, %v1797_v57  ;;  %v3170_v37 = vpop.f32.mrf.mxu2  ;;  %v1938_v57 = vand.u32 4294901760, %v1937_v43 }
 0x419   :  { %v1805_v32 = vadd.f32 %v15166_v34, %v1804_v4 }
 0x41a   :  { %v3171_v35 = vadd.f32 %v3170_v37, %v2555_v45  ;;  %2617 = vmatmul.f32.gmra.mxu1 %v15381_v9 }
 0x41b   :  { %1931 = vmatmul.f32.gmra.mxu0 %v1930_v24 }
 0x41c   :  { %v15422_v60 = vadd.f32 %v3909_v56, %v3171_v35  ;;  %4010 = vmatmul.f32.gmra.mxu3 %v1928_v11  ;;  %v1945_v11 = vsub.f32 %v1943_v25, %v1944_v31  ;;  %v1065_v35 = vsel %vm772_vm1, %v736_v2, 0 }
 0x41d   :  { %3254 = vmatmul.f32.gmra.mxu2 %v1927_v27  ;;  %v1951_v27 = vsub.f32 %v1062_v8, %v15425_v28  ;;  %v15436_v9 = vand.u32 4294901760, %v1065_v35  ;;  %v737_v8 = vld [vmem:[%s19322_s0 + $0x310] sm:$0xff] }
 0x41e   :  { %19766 = vst [vmem:[#allocation147_spill] sm:$0xff] %v15422_v60 }
 0x41f   :  { %v2558_v54 = vpop.f32.mrf.mxu1  ;;  %v3915_v13 = vpop.f32.mrf.mxu3  ;;  %v1952_v60 = vand.u32 4294901760, %v1951_v27  ;;  %19769 = vst [vmem:[#allocation150_spill] sm:$0xff] %v15436_v9 }
 0x420   :  { %v1812_v45 = vpop.f32.mrf.mxu0  ;;  %v2559_v37 = vadd.f32 %v2558_v54, %v1805_v32  ;;  %v3175_v24 = vpop.f32.mrf.mxu2  ;;  %v1946_v32 = vand.u32 4294901760, %v1945_v11 }
 0x421   :  { %v1813_v56 = vadd.f32 %v15166_v34, %v1812_v45 }
 0x422   :  { %v3176_v4 = vadd.f32 %v3175_v24, %v2559_v37  ;;  %2621 = vmatmul.f32.gmra.mxu1 %v15392_v26 }
 0x423   :  { %1939 = vmatmul.f32.gmra.mxu0 %v1938_v57 }
 0x424   :  { %v15433_v15 = vadd.f32 %v3915_v13, %v3176_v4  ;;  %4016 = vmatmul.f32.gmra.mxu3 %v1936_v1  ;;  %v1953_v1 = vsub.f32 %v1951_v27, %v1952_v60  ;;  %v1068_v4 = vsel %vm772_vm1, %v737_v8, 0 }
 0x425   :  { %3259 = vmatmul.f32.gmra.mxu2 %v1935_v50  ;;  %v1959_v50 = vsub.f32 %v1065_v35, %v15436_v9  ;;  %v15447_v26 = vand.u32 4294901760, %v1068_v4  ;;  %v738_v35 = vld [vmem:[%s19322_s0 + $0x318] sm:$0xff] }
 0x426   :  { %19768 = vst [vmem:[#allocation149_spill] sm:$0xff] %v15433_v15 }
 0x427   :  { %v2562_v43 = vpop.f32.mrf.mxu1  ;;  %v3921_v54 = vpop.f32.mrf.mxu3  ;;  %v1960_v15 = vand.u32 4294901760, %v1959_v50  ;;  %19771 = vst [vmem:[#allocation152_spill] sm:$0xff] %v15447_v26 }
 0x428   :  { %v1820_v37 = vpop.f32.mrf.mxu0  ;;  %v2563_v24 = vadd.f32 %v2562_v43, %v1813_v56  ;;  %v3180_v57 = vpop.f32.mrf.mxu2  ;;  %v1954_v56 = vand.u32 4294901760, %v1953_v1 }
 0x429   :  { %v1821_v13 = vadd.f32 %v15166_v34, %v1820_v37 }
 0x42a   :  { %v3181_v45 = vadd.f32 %v3180_v57, %v2563_v24  ;;  %2625 = vmatmul.f32.gmra.mxu1 %v15403_v63 }
 0x42b   :  { %1947 = vmatmul.f32.gmra.mxu0 %v1946_v32 }
 0x42c   :  { %v15444_v2 = vadd.f32 %v3921_v54, %v3181_v45  ;;  %4022 = vmatmul.f32.gmra.mxu3 %v1944_v31  ;;  %v1961_v31 = vsub.f32 %v1959_v50, %v1960_v15  ;;  %v1071_v45 = vsel %vm772_vm1, %v738_v35, 0 }
 0x42d   :  { %3264 = vmatmul.f32.gmra.mxu2 %v1943_v25  ;;  %v1967_v25 = vsub.f32 %v1068_v4, %v15447_v26  ;;  %v15458_v63 = vand.u32 4294901760, %v1071_v45  ;;  %v739_v4 = vld [vmem:[%s19322_s0 + $0x320] sm:$0xff] }
 0x42e   :  { %19770 = vst [vmem:[#allocation151_spill] sm:$0xff] %v15444_v2 }
 0x42f   :  { %v2566_v11 = vpop.f32.mrf.mxu1  ;;  %v3927_v43 = vpop.f32.mrf.mxu3  ;;  %v1968_v2 = vand.u32 4294901760, %v1967_v25  ;;  %19773 = vst [vmem:[#allocation154_spill] sm:$0xff] %v15458_v63 }
 0x430   :  { %v1828_v24 = vpop.f32.mrf.mxu0  ;;  %v2567_v57 = vadd.f32 %v2566_v11, %v1821_v13  ;;  %v3185_v32 = vpop.f32.mrf.mxu2  ;;  %v1962_v13 = vand.u32 4294901760, %v1961_v31 }
 0x431   :  { %v1829_v54 = vadd.f32 %v15166_v34, %v1828_v24 }
 0x432   :  { %v3186_v37 = vadd.f32 %v3185_v32, %v2567_v57  ;;  %2629 = vmatmul.f32.gmra.mxu1 %v15414_v16 }
 0x433   :  { %1955 = vmatmul.f32.gmra.mxu0 %v1954_v56 }
 0x434   :  { %v15455_v8 = vadd.f32 %v3927_v43, %v3186_v37  ;;  %4028 = vmatmul.f32.gmra.mxu3 %v1952_v60  ;;  %v1969_v60 = vsub.f32 %v1967_v25, %v1968_v2  ;;  %v15468_v43 = vld [vmem:[%s19326_s4] ss:$0 sm:$0xff]  ;;  %v1074_v37 = vsel %vm772_vm1, %v739_v4, 0 }
 0x435   :  { %3269 = vmatmul.f32.gmra.mxu2 %v1951_v27  ;;  %v1975_v27 = vsub.f32 %v1071_v45, %v15458_v63 }
 0x436   :  { %19772 = vst [vmem:[#allocation153_spill] sm:$0xff] %v15455_v8  ;;  %v740_v8 = vld [vmem:[%s19322_s0 + $0x328] sm:$0xff] }
 0x437   :  { %v2570_v1 = vpop.f32.mrf.mxu1  ;;  %v3933_v11 = vpop.f32.mrf.mxu3 }
 0x438   :  { %v1836_v57 = vpop.f32.mrf.mxu0  ;;  %v2571_v32 = vadd.f32 %v2570_v1, %v1829_v54  ;;  %v3190_v56 = vpop.f32.mrf.mxu2  ;;  %v1970_v54 = vand.u32 4294901760, %v1969_v60 }
 0x439   :  { %v1837_v24 = vadd.f32 %v15468_v43, %v1836_v57 }
 0x43a   :  { %v3191_v34 = vadd.f32 %v3190_v56, %v2571_v32  ;;  %2633 = vmatmul.f32.gmra.mxu1 %v15425_v28  ;;  %v15474_v32 = vand.u32 4294901760, %v1074_v37 }
 0x43b   :  { %1963 = vmatmul.f32.gmra.mxu0 %v1962_v13  ;;  %v1976_v13 = vand.u32 4294901760, %v1975_v27 }
 0x43c   :  { %v15471_v35 = vadd.f32 %v3933_v11, %v3191_v34  ;;  %4034 = vmatmul.f32.gmra.mxu3 %v1960_v15  ;;  %19775 = vst [vmem:[#allocation156_spill] sm:$0xff] %v15474_v32  ;;  %v1077_v34 = vsel %vm772_vm1, %v740_v8, 0 }
 0x43d   :  { %3274 = vmatmul.f32.gmra.mxu2 %v1959_v50  ;;  %v1977_v15 = vsub.f32 %v1975_v27, %v1976_v13  ;;  %v1983_v50 = vsub.f32 %v1074_v37, %v15474_v32  ;;  %v15485_v16 = vand.u32 4294901760, %v1077_v34  ;;  %v741_v37 = vld [vmem:[%s19322_s0 + $0x330] sm:$0xff] }
 0x43e   :  { %19774 = vst [vmem:[#allocation155_spill] sm:$0xff] %v15471_v35 }
 0x43f   :  { %v2574_v31 = vpop.f32.mrf.mxu1  ;;  %v3939_v1 = vpop.f32.mrf.mxu3  ;;  %v1984_v35 = vand.u32 4294901760, %v1983_v50  ;;  %19777 = vst [vmem:[#allocation158_spill] sm:$0xff] %v15485_v16 }
 0x440   :  { %v1844_v45 = vpop.f32.mrf.mxu0  ;;  %v2575_v56 = vadd.f32 %v2574_v31, %v1837_v24  ;;  %v3195_v28 = vpop.f32.mrf.mxu2  ;;  %v1978_v24 = vand.u32 4294901760, %v1977_v15 }
 0x441   :  { %v1845_v11 = vadd.f32 %v15468_v43, %v1844_v45 }
 0x442   :  { %v3196_v57 = vadd.f32 %v3195_v28, %v2575_v56  ;;  %2637 = vmatmul.f32.gmra.mxu1 %v15436_v9 }
 0x443   :  { %1971 = vmatmul.f32.gmra.mxu0 %v1970_v54 }
 0x444   :  { %v15482_v4 = vadd.f32 %v3939_v1, %v3196_v57  ;;  %4040 = vmatmul.f32.gmra.mxu3 %v1968_v2  ;;  %v1985_v2 = vsub.f32 %v1983_v50, %v1984_v35  ;;  %v1080_v57 = vsel %vm772_vm1, %v741_v37, 0 }
 0x445   :  { %3279 = vmatmul.f32.gmra.mxu2 %v1967_v25  ;;  %v1991_v25 = vsub.f32 %v1077_v34, %v15485_v16  ;;  %v15496_v9 = vand.u32 4294901760, %v1080_v57  ;;  %v742_v34 = vld [vmem:[%s19322_s0 + $0x338] sm:$0xff] }
 0x446   :  { %19776 = vst [vmem:[#allocation157_spill] sm:$0xff] %v15482_v4 }
 0x447   :  { %v2578_v60 = vpop.f32.mrf.mxu1  ;;  %v3945_v31 = vpop.f32.mrf.mxu3  ;;  %v1992_v4 = vand.u32 4294901760, %v1991_v25  ;;  %19779 = vst [vmem:[#allocation160_spill] sm:$0xff] %v15496_v9 }
 0x448   :  { %v1852_v28 = vpop.f32.mrf.mxu0  ;;  %v2579_v56 = vadd.f32 %v2578_v60, %v1845_v11  ;;  %v3200_v54 = vpop.f32.mrf.mxu2  ;;  %v1986_v11 = vand.u32 4294901760, %v1985_v2 }
 0x449   :  { %v1853_v8 = vadd.f32 %v15468_v43, %v1852_v28 }
 0x44a   :  { %v3201_v45 = vadd.f32 %v3200_v54, %v2579_v56  ;;  %2641 = vmatmul.f32.gmra.mxu1 %v15447_v26 }
 0x44b   :  { %1979 = vmatmul.f32.gmra.mxu0 %v1978_v24 }
 0x44c   :  { %v15493_v1 = vadd.f32 %v3945_v31, %v3201_v45  ;;  %4046 = vmatmul.f32.gmra.mxu3 %v1976_v13  ;;  %v1993_v13 = vsub.f32 %v1991_v25, %v1992_v4  ;;  %v1083_v45 = vsel %vm772_vm1, %v742_v34, 0 }
 0x44d   :  { %3284 = vmatmul.f32.gmra.mxu2 %v1975_v27  ;;  %v1999_v27 = vsub.f32 %v1080_v57, %v15496_v9  ;;  %v15507_v26 = vand.u32 4294901760, %v1083_v45  ;;  %v743_v57 = vld [vmem:[%s19322_s0 + $0x340] sm:$0xff] }
 0x44e   :  { %19778 = vst [vmem:[#allocation159_spill] sm:$0xff] %v15493_v1 }
 0x44f   :  { %v2582_v15 = vpop.f32.mrf.mxu1  ;;  %v3951_v60 = vpop.f32.mrf.mxu3  ;;  %v2000_v1 = vand.u32 4294901760, %v1999_v27  ;;  %19781 = vst [vmem:[#allocation162_spill] sm:$0xff] %v15507_v26 }
 0x450   :  { %v1860_v56 = vpop.f32.mrf.mxu0  ;;  %v2583_v54 = vadd.f32 %v2582_v15, %v1853_v8  ;;  %v3205_v24 = vpop.f32.mrf.mxu2  ;;  %v1994_v8 = vand.u32 4294901760, %v1993_v13 }
 0x451   :  { %v1861_v31 = vadd.f32 %v15468_v43, %v1860_v56 }
 0x452   :  { %v3206_v28 = vadd.f32 %v3205_v24, %v2583_v54  ;;  %2645 = vmatmul.f32.gmra.mxu1 %v15458_v63 }
 0x453   :  { %1987 = vmatmul.f32.gmra.mxu0 %v1986_v11 }
 0x454   :  { %v15504_v37 = vadd.f32 %v3951_v60, %v3206_v28  ;;  %4052 = vmatmul.f32.gmra.mxu3 %v1984_v35  ;;  %v2001_v35 = vsub.f32 %v1999_v27, %v2000_v1  ;;  %v1086_v28 = vsel %vm772_vm1, %v743_v57, 0 }
 0x455   :  { %3289 = vmatmul.f32.gmra.mxu2 %v1983_v50  ;;  %v2007_v50 = vsub.f32 %v1083_v45, %v15507_v26  ;;  %v15518_v63 = vand.u32 4294901760, %v1086_v28  ;;  %v744_v45 = vld [vmem:[%s19322_s0 + $0x348] sm:$0xff] }
 0x456   :  { %19780 = vst [vmem:[#allocation161_spill] sm:$0xff] %v15504_v37 }
 0x457   :  { %v2586_v2 = vpop.f32.mrf.mxu1  ;;  %v3957_v15 = vpop.f32.mrf.mxu3  ;;  %v2008_v37 = vand.u32 4294901760, %v2007_v50  ;;  %19783 = vst [vmem:[#allocation164_spill] sm:$0xff] %v15518_v63 }
 0x458   :  { %v1868_v54 = vpop.f32.mrf.mxu0  ;;  %v2587_v24 = vadd.f32 %v2586_v2, %v1861_v31  ;;  %v3210_v11 = vpop.f32.mrf.mxu2  ;;  %v2002_v31 = vand.u32 4294901760, %v2001_v35 }
 0x459   :  { %v1869_v60 = vadd.f32 %v15468_v43, %v1868_v54 }
 0x45a   :  { %v3211_v56 = vadd.f32 %v3210_v11, %v2587_v24  ;;  %2649 = vmatmul.f32.gmra.mxu1 %v15474_v32 }
 0x45b   :  { %1995 = vmatmul.f32.gmra.mxu0 %v1994_v8 }
 0x45c   :  { %v15515_v34 = vadd.f32 %v3957_v15, %v3211_v56  ;;  %4058 = vmatmul.f32.gmra.mxu3 %v1992_v4  ;;  %v2009_v4 = vsub.f32 %v2007_v50, %v2008_v37  ;;  %v1089_v56 = vsel %vm772_vm1, %v744_v45, 0 }
 0x45d   :  { %3294 = vmatmul.f32.gmra.mxu2 %v1991_v25  ;;  %v2015_v25 = vsub.f32 %v1086_v28, %v15518_v63  ;;  %v15529_v32 = vand.u32 4294901760, %v1089_v56  ;;  %v745_v28 = vld [vmem:[%s19322_s0 + $0x350] sm:$0xff] }
 0x45e   :  { %19782 = vst [vmem:[#allocation163_spill] sm:$0xff] %v15515_v34 }
 0x45f   :  { %v2590_v13 = vpop.f32.mrf.mxu1  ;;  %v3963_v2 = vpop.f32.mrf.mxu3  ;;  %v2016_v34 = vand.u32 4294901760, %v2015_v25  ;;  %19785 = vst [vmem:[#allocation166_spill] sm:$0xff] %v15529_v32 }
 0x460   :  { %v1876_v24 = vpop.f32.mrf.mxu0  ;;  %v2591_v11 = vadd.f32 %v2590_v13, %v1869_v60  ;;  %v3215_v8 = vpop.f32.mrf.mxu2  ;;  %v2010_v60 = vand.u32 4294901760, %v2009_v4 }
 0x461   :  { %v1877_v15 = vadd.f32 %v15468_v43, %v1876_v24 }
 0x462   :  { %v3216_v54 = vadd.f32 %v3215_v8, %v2591_v11  ;;  %2653 = vmatmul.f32.gmra.mxu1 %v15485_v16 }
 0x463   :  { %2003 = vmatmul.f32.gmra.mxu0 %v2002_v31 }
 0x464   :  { %v15526_v57 = vadd.f32 %v3963_v2, %v3216_v54  ;;  %4064 = vmatmul.f32.gmra.mxu3 %v2000_v1  ;;  %v2017_v1 = vsub.f32 %v2015_v25, %v2016_v34  ;;  %v1092_v54 = vsel %vm772_vm1, %v745_v28, 0 }
 0x465   :  { %3299 = vmatmul.f32.gmra.mxu2 %v1999_v27  ;;  %v2023_v27 = vsub.f32 %v1089_v56, %v15529_v32  ;;  %v15540_v16 = vand.u32 4294901760, %v1092_v54  ;;  %v746_v56 = vld [vmem:[%s19322_s0 + $0x358] sm:$0xff] }
 0x466   :  { %19784 = vst [vmem:[#allocation165_spill] sm:$0xff] %v15526_v57 }
 0x467   :  { %v2594_v35 = vpop.f32.mrf.mxu1  ;;  %v3969_v13 = vpop.f32.mrf.mxu3  ;;  %v2024_v57 = vand.u32 4294901760, %v2023_v27  ;;  %19787 = vst [vmem:[#allocation168_spill] sm:$0xff] %v15540_v16 }
 0x468   :  { %v1884_v11 = vpop.f32.mrf.mxu0  ;;  %v2595_v8 = vadd.f32 %v2594_v35, %v1877_v15  ;;  %v3220_v31 = vpop.f32.mrf.mxu2  ;;  %v2018_v15 = vand.u32 4294901760, %v2017_v1 }
 0x469   :  { %v1885_v2 = vadd.f32 %v15468_v43, %v1884_v11 }
 0x46a   :  { %v3221_v24 = vadd.f32 %v3220_v31, %v2595_v8  ;;  %2657 = vmatmul.f32.gmra.mxu1 %v15496_v9 }
 0x46b   :  { %2011 = vmatmul.f32.gmra.mxu0 %v2010_v60 }
 0x46c   :  { %v15537_v45 = vadd.f32 %v3969_v13, %v3221_v24  ;;  %4070 = vmatmul.f32.gmra.mxu3 %v2008_v37  ;;  %v2025_v37 = vsub.f32 %v2023_v27, %v2024_v57  ;;  %v1095_v24 = vsel %vm772_vm1, %v746_v56, 0 }
 0x46d   :  { %3304 = vmatmul.f32.gmra.mxu2 %v2007_v50  ;;  %v2031_v50 = vsub.f32 %v1092_v54, %v15540_v16  ;;  %v15551_v9 = vand.u32 4294901760, %v1095_v24  ;;  %v747_v54 = vld [vmem:[%s19322_s0 + $0x360] sm:$0xff] }
 0x46e   :  { %19786 = vst [vmem:[#allocation167_spill] sm:$0xff] %v15537_v45 }
 0x46f   :  { %v2598_v4 = vpop.f32.mrf.mxu1  ;;  %v3975_v35 = vpop.f32.mrf.mxu3  ;;  %v2032_v45 = vand.u32 4294901760, %v2031_v50  ;;  %19789 = vst [vmem:[#allocation170_spill] sm:$0xff] %v15551_v9 }
 0x470   :  { %v1892_v8 = vpop.f32.mrf.mxu0  ;;  %v2599_v31 = vadd.f32 %v2598_v4, %v1885_v2  ;;  %v3225_v60 = vpop.f32.mrf.mxu2  ;;  %v2026_v2 = vand.u32 4294901760, %v2025_v37 }
 0x471   :  { %v1893_v13 = vadd.f32 %v15468_v43, %v1892_v8 }
 0x472   :  { %v3226_v11 = vadd.f32 %v3225_v60, %v2599_v31  ;;  %2661 = vmatmul.f32.gmra.mxu1 %v15507_v26 }
 0x473   :  { %2019 = vmatmul.f32.gmra.mxu0 %v2018_v15 }
 0x474   :  { %v15548_v28 = vadd.f32 %v3975_v35, %v3226_v11  ;;  %4076 = vmatmul.f32.gmra.mxu3 %v2016_v34  ;;  %v2033_v34 = vsub.f32 %v2031_v50, %v2032_v45  ;;  %v1098_v11 = vsel %vm772_vm1, %v747_v54, 0 }
 0x475   :  { %3309 = vmatmul.f32.gmra.mxu2 %v2015_v25  ;;  %v2039_v25 = vsub.f32 %v1095_v24, %v15551_v9  ;;  %v15562_v26 = vand.u32 4294901760, %v1098_v11  ;;  %v748_v24 = vld [vmem:[%s19322_s0 + $0x368] sm:$0xff] }
 0x476   :  { %19788 = vst [vmem:[#allocation169_spill] sm:$0xff] %v15548_v28 }
 0x477   :  { %v2602_v1 = vpop.f32.mrf.mxu1  ;;  %v3981_v4 = vpop.f32.mrf.mxu3  ;;  %v2040_v28 = vand.u32 4294901760, %v2039_v25  ;;  %19791 = vst [vmem:[#allocation172_spill] sm:$0xff] %v15562_v26 }
 0x478   :  { %v1900_v31 = vpop.f32.mrf.mxu0  ;;  %v2603_v60 = vadd.f32 %v2602_v1, %v1893_v13  ;;  %v3230_v15 = vpop.f32.mrf.mxu2  ;;  %v2034_v13 = vand.u32 4294901760, %v2033_v34 }
 0x479   :  { %v1901_v35 = vadd.f32 %v15468_v43, %v1900_v31 }
 0x47a   :  { %v3231_v8 = vadd.f32 %v3230_v15, %v2603_v60  ;;  %2665 = vmatmul.f32.gmra.mxu1 %v15518_v63 }
 0x47b   :  { %2027 = vmatmul.f32.gmra.mxu0 %v2026_v2 }
 0x47c   :  { %v15559_v56 = vadd.f32 %v3981_v4, %v3231_v8  ;;  %4082 = vmatmul.f32.gmra.mxu3 %v2024_v57  ;;  %v2041_v57 = vsub.f32 %v2039_v25, %v2040_v28  ;;  %v1101_v8 = vsel %vm772_vm1, %v748_v24, 0 }
 0x47d   :  { %3314 = vmatmul.f32.gmra.mxu2 %v2023_v27  ;;  %v2047_v27 = vsub.f32 %v1098_v11, %v15562_v26  ;;  %v749_v11 = vld [vmem:[%s19322_s0 + $0x370] sm:$0xff] }
 0x47e   :  { %19790 = vst [vmem:[#allocation171_spill] sm:$0xff] %v15559_v56  ;;  %v15573_v56 = vand.u32 4294901760, %v1101_v8 }
 0x47f   :  { %v2606_v37 = vpop.f32.mrf.mxu1  ;;  %v3987_v1 = vpop.f32.mrf.mxu3  ;;  %v2048_v63 = vand.u32 4294901760, %v2047_v27 }
 0x480   :  { %v1908_v60 = vpop.f32.mrf.mxu0  ;;  %v2607_v15 = vadd.f32 %v2606_v37, %v1901_v35  ;;  %v3235_v2 = vpop.f32.mrf.mxu2  ;;  %v2042_v35 = vand.u32 4294901760, %v2041_v57  ;;  %19793 = vst [vmem:[#allocation174_spill] sm:$0xff] %v15573_v56 }
 0x481   :  { %v1909_v4 = vadd.f32 %v15468_v43, %v1908_v60 }
 0x482   :  { %v3236_v31 = vadd.f32 %v3235_v2, %v2607_v15  ;;  %2669 = vmatmul.f32.gmra.mxu1 %v15529_v32 }
 0x483   :  { %2035 = vmatmul.f32.gmra.mxu0 %v2034_v13 }
 0x484   :  { %v15570_v54 = vadd.f32 %v3987_v1, %v3236_v31  ;;  %4088 = vmatmul.f32.gmra.mxu3 %v2032_v45  ;;  %v2049_v45 = vsub.f32 %v2047_v27, %v2048_v63  ;;  %v1104_v31 = vsel %vm772_vm1, %v749_v11, 0 }
 0x485   :  { %3319 = vmatmul.f32.gmra.mxu2 %v2031_v50  ;;  %v2055_v50 = vsub.f32 %v1101_v8, %v15573_v56  ;;  %v15584_v32 = vand.u32 4294901760, %v1104_v31  ;;  %v750_v8 = vld [vmem:[%s19322_s0 + $0x378] sm:$0xff] }
 0x486   :  { %19792 = vst [vmem:[#allocation173_spill] sm:$0xff] %v15570_v54 }
 0x487   :  { %v2610_v34 = vpop.f32.mrf.mxu1  ;;  %v3993_v37 = vpop.f32.mrf.mxu3  ;;  %v2056_v54 = vand.u32 4294901760, %v2055_v50  ;;  %19795 = vst [vmem:[#allocation176_spill] sm:$0xff] %v15584_v32 }
 0x488   :  { %v1916_v15 = vpop.f32.mrf.mxu0  ;;  %v2611_v2 = vadd.f32 %v2610_v34, %v1909_v4  ;;  %v3240_v13 = vpop.f32.mrf.mxu2  ;;  %v2050_v4 = vand.u32 4294901760, %v2049_v45 }
 0x489   :  { %v1917_v1 = vadd.f32 %v15468_v43, %v1916_v15 }
 0x48a   :  { %v3241_v60 = vadd.f32 %v3240_v13, %v2611_v2  ;;  %2673 = vmatmul.f32.gmra.mxu1 %v15540_v16 }
 0x48b   :  { %2043 = vmatmul.f32.gmra.mxu0 %v2042_v35 }
 0x48c   :  { %v15581_v24 = vadd.f32 %v3993_v37, %v3241_v60  ;;  %4094 = vmatmul.f32.gmra.mxu3 %v2040_v28  ;;  %v2057_v28 = vsub.f32 %v2055_v50, %v2056_v54  ;;  %v1107_v60 = vsel %vm772_vm1, %v750_v8, 0 }
 0x48d   :  { %3324 = vmatmul.f32.gmra.mxu2 %v2039_v25  ;;  %v2063_v25 = vsub.f32 %v1104_v31, %v15584_v32  ;;  %v15595_v16 = vand.u32 4294901760, %v1107_v60  ;;  %v751_v31 = vld [vmem:[%s19322_s0 + $0x380] sm:$0xff] }
 0x48e   :  { %19794 = vst [vmem:[#allocation175_spill] sm:$0xff] %v15581_v24 }
 0x48f   :  { %v2614_v57 = vpop.f32.mrf.mxu1  ;;  %v3999_v34 = vpop.f32.mrf.mxu3  ;;  %v2064_v24 = vand.u32 4294901760, %v2063_v25  ;;  %19797 = vst [vmem:[#allocation178_spill] sm:$0xff] %v15595_v16 }
 0x490   :  { %v1924_v2 = vpop.f32.mrf.mxu0  ;;  %v2615_v13 = vadd.f32 %v2614_v57, %v1917_v1  ;;  %v3245_v35 = vpop.f32.mrf.mxu2  ;;  %v2058_v1 = vand.u32 4294901760, %v2057_v28 }
 0x491   :  { %v1925_v37 = vadd.f32 %v15468_v43, %v1924_v2 }
 0x492   :  { %v3246_v15 = vadd.f32 %v3245_v35, %v2615_v13  ;;  %2677 = vmatmul.f32.gmra.mxu1 %v15551_v9 }
 0x493   :  { %2051 = vmatmul.f32.gmra.mxu0 %v2050_v4 }
 0x494   :  { %v15592_v11 = vadd.f32 %v3999_v34, %v3246_v15  ;;  %4100 = vmatmul.f32.gmra.mxu3 %v2048_v63  ;;  %v2065_v63 = vsub.f32 %v2063_v25, %v2064_v24  ;;  %v1110_v15 = vsel %vm772_vm1, %v751_v31, 0 }
 0x495   :  { %3329 = vmatmul.f32.gmra.mxu2 %v2047_v27  ;;  %v2071_v27 = vsub.f32 %v1107_v60, %v15595_v16  ;;  %v15606_v9 = vand.u32 4294901760, %v1110_v15  ;;  %v752_v60 = vld [vmem:[%s19322_s0 + $0x388] sm:$0xff] }
 0x496   :  { %19796 = vst [vmem:[#allocation177_spill] sm:$0xff] %v15592_v11 }
 0x497   :  { %v2618_v45 = vpop.f32.mrf.mxu1  ;;  %v4005_v57 = vpop.f32.mrf.mxu3  ;;  %v2072_v11 = vand.u32 4294901760, %v2071_v27  ;;  %19799 = vst [vmem:[#allocation180_spill] sm:$0xff] %v15606_v9 }
 0x498   :  { %v1932_v13 = vpop.f32.mrf.mxu0  ;;  %v2619_v35 = vadd.f32 %v2618_v45, %v1925_v37  ;;  %v3250_v4 = vpop.f32.mrf.mxu2  ;;  %v2066_v37 = vand.u32 4294901760, %v2065_v63 }
 0x499   :  { %v1933_v34 = vadd.f32 %v15468_v43, %v1932_v13 }
 0x49a   :  { %v3251_v2 = vadd.f32 %v3250_v4, %v2619_v35  ;;  %2681 = vmatmul.f32.gmra.mxu1 %v15562_v26 }
 0x49b   :  { %2059 = vmatmul.f32.gmra.mxu0 %v2058_v1 }
 0x49c   :  { %v15603_v8 = vadd.f32 %v4005_v57, %v3251_v2  ;;  %4106 = vmatmul.f32.gmra.mxu3 %v2056_v54  ;;  %v2073_v54 = vsub.f32 %v2071_v27, %v2072_v11  ;;  %v1113_v2 = vsel %vm772_vm1, %v752_v60, 0 }
 0x49d   :  { %3334 = vmatmul.f32.gmra.mxu2 %v2055_v50  ;;  %v2079_v50 = vsub.f32 %v1110_v15, %v15606_v9  ;;  %v15617_v26 = vand.u32 4294901760, %v1113_v2  ;;  %v753_v15 = vld [vmem:[%s19322_s0 + $0x390] sm:$0xff] }
 0x49e   :  { %19798 = vst [vmem:[#allocation179_spill] sm:$0xff] %v15603_v8 }
 0x49f   :  { %v2622_v28 = vpop.f32.mrf.mxu1  ;;  %v4011_v45 = vpop.f32.mrf.mxu3  ;;  %v2080_v8 = vand.u32 4294901760, %v2079_v50  ;;  %19801 = vst [vmem:[#allocation182_spill] sm:$0xff] %v15617_v26 }
 0x4a0   :  { %v1940_v35 = vpop.f32.mrf.mxu0  ;;  %v2623_v4 = vadd.f32 %v2622_v28, %v1933_v34  ;;  %v3255_v1 = vpop.f32.mrf.mxu2  ;;  %v2074_v34 = vand.u32 4294901760, %v2073_v54 }
 0x4a1   :  { %v1941_v57 = vadd.f32 %v15468_v43, %v1940_v35 }
 0x4a2   :  { %v3256_v13 = vadd.f32 %v3255_v1, %v2623_v4  ;;  %2685 = vmatmul.f32.gmra.mxu1 %v15573_v56 }
 0x4a3   :  { %2067 = vmatmul.f32.gmra.mxu0 %v2066_v37 }
 0x4a4   :  { %v15614_v31 = vadd.f32 %v4011_v45, %v3256_v13  ;;  %4112 = vmatmul.f32.gmra.mxu3 %v2064_v24  ;;  %v2081_v24 = vsub.f32 %v2079_v50, %v2080_v8  ;;  %v1116_v13 = vsel %vm772_vm1, %v753_v15, 0 }
 0x4a5   :  { %3339 = vmatmul.f32.gmra.mxu2 %v2063_v25  ;;  %v2087_v25 = vsub.f32 %v1113_v2, %v15617_v26  ;;  %v15628_v56 = vand.u32 4294901760, %v1116_v13  ;;  %v754_v2 = vld [vmem:[%s19322_s0 + $0x398] sm:$0xff] }
 0x4a6   :  { %19800 = vst [vmem:[#allocation181_spill] sm:$0xff] %v15614_v31 }
 0x4a7   :  { %v2626_v63 = vpop.f32.mrf.mxu1  ;;  %v4017_v28 = vpop.f32.mrf.mxu3  ;;  %v2088_v31 = vand.u32 4294901760, %v2087_v25  ;;  %19803 = vst [vmem:[#allocation184_spill] sm:$0xff] %v15628_v56 }
 0x4a8   :  { %v1948_v4 = vpop.f32.mrf.mxu0  ;;  %v2627_v1 = vadd.f32 %v2626_v63, %v1941_v57  ;;  %v3260_v37 = vpop.f32.mrf.mxu2  ;;  %v2082_v57 = vand.u32 4294901760, %v2081_v24 }
 0x4a9   :  { %v1949_v45 = vadd.f32 %v15468_v43, %v1948_v4 }
 0x4aa   :  { %v3261_v35 = vadd.f32 %v3260_v37, %v2627_v1  ;;  %2689 = vmatmul.f32.gmra.mxu1 %v15584_v32 }
 0x4ab   :  { %2075 = vmatmul.f32.gmra.mxu0 %v2074_v34 }
 0x4ac   :  { %v15625_v60 = vadd.f32 %v4017_v28, %v3261_v35  ;;  %4118 = vmatmul.f32.gmra.mxu3 %v2072_v11  ;;  %v2089_v11 = vsub.f32 %v2087_v25, %v2088_v31  ;;  %v1119_v35 = vsel %vm772_vm1, %v754_v2, 0 }
 0x4ad   :  { %3344 = vmatmul.f32.gmra.mxu2 %v2071_v27  ;;  %v2095_v27 = vsub.f32 %v1116_v13, %v15628_v56  ;;  %v15639_v32 = vand.u32 4294901760, %v1119_v35  ;;  %v755_v13 = vld [vmem:[%s19322_s0 + $0x3a0] sm:$0xff] }
 0x4ae   :  { %19802 = vst [vmem:[#allocation183_spill] sm:$0xff] %v15625_v60 }
 0x4af   :  { %v2630_v54 = vpop.f32.mrf.mxu1  ;;  %v4023_v63 = vpop.f32.mrf.mxu3  ;;  %v2096_v60 = vand.u32 4294901760, %v2095_v27  ;;  %19805 = vst [vmem:[#allocation186_spill] sm:$0xff] %v15639_v32 }
 0x4b0   :  { %v1956_v1 = vpop.f32.mrf.mxu0  ;;  %v2631_v37 = vadd.f32 %v2630_v54, %v1949_v45  ;;  %v3265_v34 = vpop.f32.mrf.mxu2  ;;  %v2090_v45 = vand.u32 4294901760, %v2089_v11 }
 0x4b1   :  { %v1957_v28 = vadd.f32 %v15468_v43, %v1956_v1 }
 0x4b2   :  { %v3266_v4 = vadd.f32 %v3265_v34, %v2631_v37  ;;  %2693 = vmatmul.f32.gmra.mxu1 %v15595_v16 }
 0x4b3   :  { %2083 = vmatmul.f32.gmra.mxu0 %v2082_v57 }
 0x4b4   :  { %v15636_v15 = vadd.f32 %v4023_v63, %v3266_v4  ;;  %4124 = vmatmul.f32.gmra.mxu3 %v2080_v8  ;;  %v2097_v8 = vsub.f32 %v2095_v27, %v2096_v60  ;;  %v1122_v4 = vsel %vm772_vm1, %v755_v13, 0 }
 0x4b5   :  { %3349 = vmatmul.f32.gmra.mxu2 %v2079_v50  ;;  %v2103_v50 = vsub.f32 %v1119_v35, %v15639_v32  ;;  %v15650_v16 = vand.u32 4294901760, %v1122_v4  ;;  %v756_v35 = vld [vmem:[%s19322_s0 + $0x3a8] sm:$0xff] }
 0x4b6   :  { %19804 = vst [vmem:[#allocation185_spill] sm:$0xff] %v15636_v15 }
 0x4b7   :  { %v2634_v24 = vpop.f32.mrf.mxu1  ;;  %v4029_v54 = vpop.f32.mrf.mxu3  ;;  %v2104_v15 = vand.u32 4294901760, %v2103_v50  ;;  %19807 = vst [vmem:[#allocation188_spill] sm:$0xff] %v15650_v16 }
 0x4b8   :  { %v1964_v37 = vpop.f32.mrf.mxu0  ;;  %v2635_v34 = vadd.f32 %v2634_v24, %v1957_v28  ;;  %v3270_v57 = vpop.f32.mrf.mxu2  ;;  %v2098_v28 = vand.u32 4294901760, %v2097_v8 }
 0x4b9   :  { %v1965_v63 = vadd.f32 %v15468_v43, %v1964_v37 }
 0x4ba   :  { %v3271_v1 = vadd.f32 %v3270_v57, %v2635_v34  ;;  %2697 = vmatmul.f32.gmra.mxu1 %v15606_v9 }
 0x4bb   :  { %2091 = vmatmul.f32.gmra.mxu0 %v2090_v45 }
 0x4bc   :  { %v15647_v2 = vadd.f32 %v4029_v54, %v3271_v1  ;;  %4130 = vmatmul.f32.gmra.mxu3 %v2088_v31  ;;  %v2105_v31 = vsub.f32 %v2103_v50, %v2104_v15  ;;  %v1125_v1 = vsel %vm772_vm1, %v756_v35, 0 }
 0x4bd   :  { %3354 = vmatmul.f32.gmra.mxu2 %v2087_v25  ;;  %v2111_v25 = vsub.f32 %v1122_v4, %v15650_v16  ;;  %v15661_v9 = vand.u32 4294901760, %v1125_v1  ;;  %v757_v4 = vld [vmem:[%s19322_s0 + $0x3b0] sm:$0xff] }
 0x4be   :  { %19806 = vst [vmem:[#allocation187_spill] sm:$0xff] %v15647_v2 }
 0x4bf   :  { %v2638_v11 = vpop.f32.mrf.mxu1  ;;  %v4035_v24 = vpop.f32.mrf.mxu3  ;;  %v2112_v2 = vand.u32 4294901760, %v2111_v25 }
 0x4c0   :  { %v1972_v34 = vpop.f32.mrf.mxu0  ;;  %v2639_v57 = vadd.f32 %v2638_v11, %v1965_v63  ;;  %v3275_v45 = vpop.f32.mrf.mxu2  ;;  %v2106_v63 = vand.u32 4294901760, %v2105_v31 }
 0x4c1   :  { %v1973_v54 = vadd.f32 %v15468_v43, %v1972_v34 }
 0x4c2   :  { %v3276_v37 = vadd.f32 %v3275_v45, %v2639_v57  ;;  %2701 = vmatmul.f32.gmra.mxu1 %v15617_v26 }
 0x4c3   :  { %2099 = vmatmul.f32.gmra.mxu0 %v2098_v28 }
 0x4c4   :  { %v15658_v13 = vadd.f32 %v4035_v24, %v3276_v37  ;;  %4136 = vmatmul.f32.gmra.mxu3 %v2096_v60  ;;  %v2113_v60 = vsub.f32 %v2111_v25, %v2112_v2  ;;  %v1128_v37 = vsel %vm772_vm1, %v757_v4, 0 }
 0x4c5   :  { %3359 = vmatmul.f32.gmra.mxu2 %v2095_v27  ;;  %v2119_v27 = vsub.f32 %v1125_v1, %v15661_v9  ;;  %v15672_v26 = vand.u32 4294901760, %v1128_v37  ;;  %v758_v1 = vld [vmem:[%s19322_s0 + $0x3b8] sm:$0xff] }
 0x4c6   :  { %19808 = vst [vmem:[#allocation189_spill] sm:$0xff] %v15658_v13 }
 0x4c7   :  { %v2642_v8 = vpop.f32.mrf.mxu1  ;;  %v4041_v11 = vpop.f32.mrf.mxu3  ;;  %v2120_v13 = vand.u32 4294901760, %v2119_v27  ;;  %19810 = vst [vmem:[#allocation191_spill] sm:$0xff] %v15672_v26 }
 0x4c8   :  { %v1980_v57 = vpop.f32.mrf.mxu0  ;;  %v2643_v45 = vadd.f32 %v2642_v8, %v1973_v54  ;;  %v3280_v28 = vpop.f32.mrf.mxu2  ;;  %v2114_v54 = vand.u32 4294901760, %v2113_v60 }
 0x4c9   :  { %v1981_v24 = vadd.f32 %v15468_v43, %v1980_v57 }
 0x4ca   :  { %v3281_v34 = vadd.f32 %v3280_v28, %v2643_v45  ;;  %2705 = vmatmul.f32.gmra.mxu1 %v15628_v56 }
 0x4cb   :  { %2107 = vmatmul.f32.gmra.mxu0 %v2106_v63 }
 0x4cc   :  { %v15669_v35 = vadd.f32 %v4041_v11, %v3281_v34  ;;  %4142 = vmatmul.f32.gmra.mxu3 %v2104_v15  ;;  %v2121_v15 = vsub.f32 %v2119_v27, %v2120_v13  ;;  %v1131_v34 = vsel %vm772_vm1, %v758_v1, 0 }
 0x4cd   :  { %3364 = vmatmul.f32.gmra.mxu2 %v2103_v50  ;;  %v2127_v50 = vsub.f32 %v1128_v37, %v15672_v26  ;;  %v15683_v56 = vand.u32 4294901760, %v1131_v34  ;;  %v759_v37 = vld [vmem:[%s19322_s0 + $0x3c0] sm:$0xff] }
 0x4ce   :  { %19809 = vst [vmem:[#allocation190_spill] sm:$0xff] %v15669_v35 }
 0x4cf   :  { %v2646_v31 = vpop.f32.mrf.mxu1  ;;  %v4047_v8 = vpop.f32.mrf.mxu3  ;;  %v2128_v35 = vand.u32 4294901760, %v2127_v50 }
 0x4d0   :  { %v1988_v45 = vpop.f32.mrf.mxu0  ;;  %v2647_v28 = vadd.f32 %v2646_v31, %v1981_v24  ;;  %v3285_v63 = vpop.f32.mrf.mxu2  ;;  %v2122_v24 = vand.u32 4294901760, %v2121_v15 }
 0x4d1   :  { %v1989_v11 = vadd.f32 %v15468_v43, %v1988_v45 }
 0x4d2   :  { %v3286_v57 = vadd.f32 %v3285_v63, %v2647_v28  ;;  %2709 = vmatmul.f32.gmra.mxu1 %v15639_v32 }
 0x4d3   :  { %2115 = vmatmul.f32.gmra.mxu0 %v2114_v54 }
 0x4d4   :  { %v15680_v4 = vadd.f32 %v4047_v8, %v3286_v57  ;;  %4148 = vmatmul.f32.gmra.mxu3 %v2112_v2  ;;  %v2129_v2 = vsub.f32 %v2127_v50, %v2128_v35  ;;  %v1134_v57 = vsel %vm772_vm1, %v759_v37, 0 }
 0x4d5   :  { %3369 = vmatmul.f32.gmra.mxu2 %v2111_v25  ;;  %v2135_v25 = vsub.f32 %v1131_v34, %v15683_v56  ;;  %v15694_v32 = vand.u32 4294901760, %v1134_v57  ;;  %v760_v34 = vld [vmem:[%s19322_s0 + $0x3c8] sm:$0xff] }
 0x4d6   :  { %19811 = vst [vmem:[#allocation192_spill] sm:$0xff] %v15680_v4 }
 0x4d7   :  { %v2650_v60 = vpop.f32.mrf.mxu1  ;;  %v4053_v31 = vpop.f32.mrf.mxu3  ;;  %v2136_v4 = vand.u32 4294901760, %v2135_v25  ;;  %19813 = vst [vmem:[#allocation194_spill] sm:$0xff] %v15694_v32 }
 0x4d8   :  { %v1996_v28 = vpop.f32.mrf.mxu0  ;;  %v2651_v63 = vadd.f32 %v2650_v60, %v1989_v11  ;;  %v3290_v54 = vpop.f32.mrf.mxu2  ;;  %v2130_v11 = vand.u32 4294901760, %v2129_v2 }
 0x4d9   :  { %v1997_v8 = vadd.f32 %v15468_v43, %v1996_v28 }
 0x4da   :  { %v3291_v45 = vadd.f32 %v3290_v54, %v2651_v63  ;;  %2713 = vmatmul.f32.gmra.mxu1 %v15650_v16 }
 0x4db   :  { %2123 = vmatmul.f32.gmra.mxu0 %v2122_v24 }
 0x4dc   :  { %v15691_v1 = vadd.f32 %v4053_v31, %v3291_v45  ;;  %4154 = vmatmul.f32.gmra.mxu3 %v2120_v13  ;;  %v2137_v13 = vsub.f32 %v2135_v25, %v2136_v4  ;;  %v1137_v45 = vsel %vm772_vm1, %v760_v34, 0 }
 0x4dd   :  { %3374 = vmatmul.f32.gmra.mxu2 %v2119_v27  ;;  %v2143_v27 = vsub.f32 %v1134_v57, %v15694_v32  ;;  %v15705_v16 = vand.u32 4294901760, %v1137_v45  ;;  %v761_v57 = vld [vmem:[%s19322_s0 + $0x3d0] sm:$0xff] }
 0x4de   :  { %19812 = vst [vmem:[#allocation193_spill] sm:$0xff] %v15691_v1 }
 0x4df   :  { %v2654_v15 = vpop.f32.mrf.mxu1  ;;  %v4059_v60 = vpop.f32.mrf.mxu3  ;;  %v2144_v1 = vand.u32 4294901760, %v2143_v27  ;;  %19815 = vst [vmem:[#allocation196_spill] sm:$0xff] %v15705_v16 }
 0x4e0   :  { %v2004_v63 = vpop.f32.mrf.mxu0  ;;  %v2655_v54 = vadd.f32 %v2654_v15, %v1997_v8  ;;  %v3295_v24 = vpop.f32.mrf.mxu2  ;;  %v2138_v8 = vand.u32 4294901760, %v2137_v13 }
 0x4e1   :  { %v2005_v31 = vadd.f32 %v15468_v43, %v2004_v63 }
 0x4e2   :  { %v3296_v28 = vadd.f32 %v3295_v24, %v2655_v54  ;;  %2717 = vmatmul.f32.gmra.mxu1 %v15661_v9 }
 0x4e3   :  { %2131 = vmatmul.f32.gmra.mxu0 %v2130_v11 }
 0x4e4   :  { %v15702_v37 = vadd.f32 %v4059_v60, %v3296_v28  ;;  %4160 = vmatmul.f32.gmra.mxu3 %v2128_v35  ;;  %v2145_v35 = vsub.f32 %v2143_v27, %v2144_v1  ;;  %v1140_v28 = vsel %vm772_vm1, %v761_v57, 0 }
 0x4e5   :  { %3379 = vmatmul.f32.gmra.mxu2 %v2127_v50  ;;  %v2151_v50 = vsub.f32 %v1137_v45, %v15705_v16 }
 0x4e6   :  { %19814 = vst [vmem:[#allocation195_spill] sm:$0xff] %v15702_v37  ;;  %v15716_v37 = vand.u32 4294901760, %v1140_v28 }
 0x4e7   :  { %v2658_v2 = vpop.f32.mrf.mxu1  ;;  %v4065_v15 = vpop.f32.mrf.mxu3 }
 0x4e8   :  { %v2012_v54 = vpop.f32.mrf.mxu0  ;;  %v2659_v24 = vadd.f32 %v2658_v2, %v2005_v31  ;;  %v3300_v11 = vpop.f32.mrf.mxu2  ;;  %v2146_v31 = vand.u32 4294901760, %v2145_v35  ;;  %v2152_v2 = vand.u32 4294901760, %v2151_v50  ;;  %19817 = vst [vmem:[#allocation198_spill] sm:$0xff] %v15716_v37 }
 0x4e9   :  { %v2013_v60 = vadd.f32 %v15468_v43, %v2012_v54  ;;  %v762_v43 = vld [vmem:[%s19322_s0 + $0x3d8] sm:$0xff] }
 0x4ea   :  { %v3301_v63 = vadd.f32 %v3300_v11, %v2659_v24  ;;  %2721 = vmatmul.f32.gmra.mxu1 %v15672_v26  ;;  %v1143_v54 = vsel %vm772_vm1, %v762_v43, 0 }
 0x4eb   :  { %2139 = vmatmul.f32.gmra.mxu0 %v2138_v8 }
 0x4ec   :  { %v15713_v34 = vadd.f32 %v4065_v15, %v3301_v63  ;;  %4166 = vmatmul.f32.gmra.mxu3 %v2136_v4  ;;  %v2153_v4 = vsub.f32 %v2151_v50, %v2152_v2 }
 0x4ed   :  { %3384 = vmatmul.f32.gmra.mxu2 %v2135_v25  ;;  %v2159_v25 = vsub.f32 %v1140_v28, %v15716_v37 }
 0x4ee   :  { %19816 = vst [vmem:[#allocation197_spill] sm:$0xff] %v15713_v34  ;;  %v2154_v63 = vand.u32 4294901760, %v2153_v4  ;;  %v764_v4 = vld [vmem:[%s19322_s0 + $0x3e8] sm:$0xff] }
 0x4ef   :  { %v2662_v13 = vpop.f32.mrf.mxu1  ;;  %v4071_v26 = vpop.f32.mrf.mxu3  ;;  %v2160_v35 = vand.u32 4294901760, %v2159_v25 }
 0x4f0   :  { %v15718_v24 = vpop.f32.mrf.mxu0  ;;  %v2663_v11 = vadd.f32 %v2662_v13, %v2013_v60  ;;  %v3305_v8 = vpop.f32.mrf.mxu2  ;;  %v15730_v60 = vand.u32 4294901760, %v1143_v54 }
 0x4f2   :  { %v3306_v45 = vadd.f32 %v3305_v8, %v2663_v11  ;;  %2725 = vmatmul.f32.gmra.mxu1 %v15683_v56  ;;  %19819 = vst [vmem:[#allocation200_spill] sm:$0xff] %v15730_v60 }
 0x4f3   :  { %2147 = vmatmul.f32.gmra.mxu0 %v2146_v31  ;;  %v763_v31 = vld [vmem:[%s19322_s0 + $0x3e0] sm:$0xff] }
 0x4f4   :  { %v15725_v15 = vadd.f32 %v4071_v26, %v3306_v45  ;;  %4172 = vmatmul.f32.gmra.mxu3 %v2144_v1  ;;  %v2161_v26 = vsub.f32 %v2159_v25, %v2160_v35  ;;  %v2167_v1 = vsub.f32 %v1143_v54, %v15730_v60 }
 0x4f5   :  { %3389 = vmatmul.f32.gmra.mxu2 %v2143_v27  ;;  %v1146_v27 = vsel %vm772_vm1, %v763_v31, 0 }
 0x4f6   :  { %19818 = vst [vmem:[#allocation199_spill] sm:$0xff] %v15725_v15  ;;  %v2162_v11 = vand.u32 4294901760, %v2161_v26  ;;  %v2168_v8 = vand.u32 4294901760, %v2167_v1  ;;  %v15742_v43 = vand.u32 4294901760, %v1146_v27 }
 0x4f7   :  { %v15728_v57 = vpop.f32.mrf.mxu1 }
 0x4f8   :  { %v15732_v13 = vpop.f32.mrf.mxu0  ;;  %19822 = vst [vmem:[#allocation203_spill] sm:$0xff] %v15742_v43  ;;  %v2169_v54 = vsub.f32 %v2167_v1, %v2168_v8 }
 0x4f9   :  { %19820 = vst [vmem:[#allocation201_spill] sm:$0xff] %v15732_v13 }
 0x4fa   :  { %2729 = vmatmul.f32.gmra.mxu1 %v15694_v32  ;;  %v2170_v31 = vand.u32 4294901760, %v2169_v54 }
 0x4fb   :  { %2155 = vmatmul.f32.gmra.mxu0 %v2154_v63 }
 0x4fc   :  { %4178 = vmatmul.f32.gmra.mxu3 %v2152_v2  ;;  %v2175_v2 = vsub.f32 %v1146_v27, %v15742_v43 }
 0x4fd   :  { %3394 = vmatmul.f32.gmra.mxu2 %v2151_v50  ;;  %v1149_v50 = vsel %vm772_vm1, %v764_v4, 0 }
 0x4fe   :  { %v2176_v26 = vand.u32 4294901760, %v2175_v2  ;;  %v15754_v34 = vand.u32 4294901760, %v1149_v50 }
 0x4ff   :  { %v15740_v28 = vpop.f32.mrf.mxu1 }
 0x500   :  { %19821 = vst [vmem:[#allocation202_spill] sm:$0xff] %v15740_v28  ;;  %v15744_v45 = vpop.f32.mrf.mxu0  ;;  %v765_v28 = vld [vmem:[%s19322_s0 + $0x3f0] sm:$0xff]  ;;  %v2177_v27 = vsub.f32 %v2175_v2, %v2176_v26 }
 0x501   :  { %19823 = vst [vmem:[#allocation204_spill] sm:$0xff] %v15744_v45  ;;  %v766_v45 = vld [vmem:[%s19322_s0 + $0x3f8] sm:$0xff] }
 0x502   :  { %2733 = vmatmul.f32.gmra.mxu1 %v15705_v16  ;;  %19825 = vst [vmem:[#allocation206_spill] sm:$0xff] %v15754_v34  ;;  %v2178_v4 = vand.u32 4294901760, %v2177_v27 }
 0x503   :  { %2163 = vmatmul.f32.gmra.mxu0 %v2162_v11 }
 0x504   :  { %4184 = vmatmul.f32.gmra.mxu3 %v2160_v35  ;;  %v2183_v35 = vsub.f32 %v1149_v50, %v15754_v34 }
 0x505   :  { %3399 = vmatmul.f32.gmra.mxu2 %v2159_v25  ;;  %v1152_v25 = vsel %vm772_vm1, %v765_v28, 0 }
 0x506   :  { %v2184_v54 = vand.u32 4294901760, %v2183_v35 }
 0x507   :  { %v15752_v63 = vpop.f32.mrf.mxu1 }
 0x508   :  { %19824 = vst [vmem:[#allocation205_spill] sm:$0xff] %v15752_v63  ;;  %v15756_v15 = vpop.f32.mrf.mxu0  ;;  %v15766_v63 = vand.u32 4294901760, %v1152_v25  ;;  %v2185_v50 = vsub.f32 %v2183_v35, %v2184_v54 }
 0x509   :  { %19826 = vst [vmem:[#allocation207_spill] sm:$0xff] %v15756_v15 }
 0x50a   :  { %2737 = vmatmul.f32.gmra.mxu1 %v15716_v37  ;;  %19828 = vst [vmem:[#allocation209_spill] sm:$0xff] %v15766_v63 }
 0x50b   :  { %2171 = vmatmul.f32.gmra.mxu0 %v2170_v31  ;;  %v2186_v31 = vand.u32 4294901760, %v2185_v50 }
 0x50c   :  { %4190 = vmatmul.f32.gmra.mxu3 %v2168_v8  ;;  %v2191_v8 = vsub.f32 %v1152_v25, %v15766_v63 }
 0x50d   :  { %3404 = vmatmul.f32.gmra.mxu2 %v2167_v1  ;;  %v1155_v1 = vsel %vm772_vm1, %v766_v45, 0 }
 0x50e   :  { %v2192_v27 = vand.u32 4294901760, %v2191_v8 }
 0x50f   :  { %v15764_v11 = vpop.f32.mrf.mxu1 }
 0x510   :  { %19827 = vst [vmem:[#allocation208_spill] sm:$0xff] %v15764_v11  ;;  %v15768_v13 = vpop.f32.mrf.mxu0  ;;  %v15778_v11 = vand.u32 4294901760, %v1155_v1 }
 0x511   :  { %19829 = vst [vmem:[#allocation210_spill] sm:$0xff] %v15768_v13  ;;  %v2193_v13 = vsub.f32 %v2191_v8, %v2192_v27 }
 0x512   :  { %2741 = vmatmul.f32.gmra.mxu1 %v15730_v60  ;;  %19831 = vst [vmem:[#allocation212_spill] sm:$0xff] %v15778_v11  ;;  %v16198_v60 = vpop.f32.mrf.mxu2 }
 0x513   :  { %2179 = vmatmul.f32.gmra.mxu0 %v2178_v4  ;;  %v2199_v4 = vsub.f32 %v1155_v1, %v15778_v11  ;;  %v2194_v45 = vand.u32 4294901760, %v2193_v13 }
 0x514   :  { %4196 = vmatmul.f32.gmra.mxu3 %v2176_v26 }
 0x515   :  { %3409 = vmatmul.f32.gmra.mxu2 %v2175_v2  ;;  %v2200_v2 = vand.u32 4294901760, %v2199_v4 }
 0x517   :  { %v15776_v28 = vpop.f32.mrf.mxu1  ;;  %v2201_v50 = vsub.f32 %v2199_v4, %v2200_v2 }
 0x518   :  { %19830 = vst [vmem:[#allocation211_spill] sm:$0xff] %v15776_v28  ;;  %v15780_v15 = vpop.f32.mrf.mxu0 }
 0x519   :  { %19832 = vst [vmem:[#allocation213_spill] sm:$0xff] %v15780_v15 }
 0x51a   :  { %2745 = vmatmul.f32.gmra.mxu1 %v15742_v43  ;;  %v16258_v16 = vpop.f32.mrf.mxu2 }
 0x51b   :  { %2187 = vmatmul.f32.gmra.mxu0 %v2186_v31  ;;  %v2202_v31 = vand.u32 4294901760, %v2201_v50 }
 0x51c   :  { %4202 = vmatmul.f32.gmra.mxu3 %v2184_v54 }
 0x51d   :  { %3414 = vmatmul.f32.gmra.mxu2 %v2183_v35 }
 0x51f   :  { %v15784_v26 = vpop.f32.mrf.mxu1 }
 0x520   :  { %19833 = vst [vmem:[#allocation214_spill] sm:$0xff] %v15784_v26  ;;  %v15786_v25 = vpop.f32.mrf.mxu0 }
 0x521   :  { %19834 = vst [vmem:[#allocation215_spill] sm:$0xff] %v15786_v25 }
 0x522   :  { %2749 = vmatmul.f32.gmra.mxu1 %v15754_v34 }
 0x523   :  { %2195 = vmatmul.f32.gmra.mxu0 %v2194_v45 }
 0x524   :  { %4208 = vmatmul.f32.gmra.mxu3 %v2192_v27 }
 0x525   :  { %3419 = vmatmul.f32.gmra.mxu2 %v2191_v8 }
 0x527   :  { %v15789_v28 = vpop.f32.mrf.mxu1 }
 0x528   :  { %19835 = vst [vmem:[#allocation216_spill] sm:$0xff] %v15789_v28  ;;  %v15791_v15 = vpop.f32.mrf.mxu0 }
 0x529   :  { %19836 = vst [vmem:[#allocation217_spill] sm:$0xff] %v15791_v15 }
 0x52a   :  { %2753 = vmatmul.f32.gmra.mxu1 %v15766_v63 }
 0x52b   :  { %2203 = vmatmul.f32.gmra.mxu0 %v2202_v31 }
 0x52c   :  { %4214 = vmatmul.f32.gmra.mxu3 %v2200_v2 }
 0x52d   :  { %3424 = vmatmul.f32.gmra.mxu2 %v2199_v4 }
 0x52f   :  { %v15794_v13 = vpop.f32.mrf.mxu1 }
 0x530   :  { %19837 = vst [vmem:[#allocation218_spill] sm:$0xff] %v15794_v13  ;;  %v15796_v35 = vpop.f32.mrf.mxu0 }
 0x531   :  { %19838 = vst [vmem:[#allocation219_spill] sm:$0xff] %v15796_v35 }
 0x532   :  { %2757 = vmatmul.f32.gmra.mxu1 %v15778_v11 }
 0x533   :  { %4250 = vmatmul.f32.vlgmr.msrb.gmra.mxu0 %v14394_v53 }
 0x537   :  { %v15800_v54 = vpop.f32.mrf.mxu1 }
 0x538   :  { %19839 = vst [vmem:[#allocation220_spill] sm:$0xff] %v15800_v54  ;;  %v15802_v8 = vpop.f32.mrf.mxu0 }
 0x539   :  { %19840 = vst [vmem:[#allocation221_spill] sm:$0xff] %v15802_v8 }
 0x53a   :  { %4784 = vmatmul.f32.vlgmr.msrb.gmra.mxu1 %v14394_v53 }
 0x53b   :  { %4254 = vmatmul.f32.gmra.mxu0 %v14409_v0 }
 0x53f   :  { %v15806_v1 = vpop.f32.mrf.mxu1 }
 0x540   :  { %19841 = vst [vmem:[#allocation222_spill] sm:$0xff] %v15806_v1  ;;  %v15808_v27 = vpop.f32.mrf.mxu0 }
 0x541   :  { %19842 = vst [vmem:[#allocation223_spill] sm:$0xff] %v15808_v27 }
 0x542   :  { %4788 = vmatmul.f32.gmra.mxu1 %v14409_v0 }
 0x543   :  { %4258 = vmatmul.f32.gmra.mxu0 %v14414_v6 }
 0x547   :  { %v15812_v4 = vpop.f32.mrf.mxu1 }
 0x548   :  { %19843 = vst [vmem:[#allocation224_spill] sm:$0xff] %v15812_v4  ;;  %v15814_v45 = vpop.f32.mrf.mxu0 }
 0x549   :  { %19844 = vst [vmem:[#allocation225_spill] sm:$0xff] %v15814_v45 }
 0x54a   :  { %4792 = vmatmul.f32.gmra.mxu1 %v14414_v6 }
 0x54b   :  { %4262 = vmatmul.f32.gmra.mxu0 %v14429_v23 }
 0x54f   :  { %v15818_v2 = vpop.f32.mrf.mxu1 }
 0x550   :  { %19845 = vst [vmem:[#allocation226_spill] sm:$0xff] %v15818_v2  ;;  %v15820_v53 = vpop.f32.mrf.mxu0 }
 0x551   :  { %19846 = vst [vmem:[#allocation227_spill] sm:$0xff] %v15820_v53 }
 0x552   :  { %4796 = vmatmul.f32.gmra.mxu1 %v14429_v23 }
 0x553   :  { %4266 = vmatmul.f32.gmra.mxu0 %v14439_v30 }
 0x557   :  { %v15824_v50 = vpop.f32.mrf.mxu1 }
 0x558   :  { %19847 = vst [vmem:[#allocation228_spill] sm:$0xff] %v15824_v50  ;;  %v15826_v0 = vpop.f32.mrf.mxu0 }
 0x559   :  { %19848 = vst [vmem:[#allocation229_spill] sm:$0xff] %v15826_v0 }
 0x55a   :  { %4800 = vmatmul.f32.gmra.mxu1 %v14439_v30 }
 0x55b   :  { %4270 = vmatmul.f32.gmra.mxu0 %v14450_v40 }
 0x55f   :  { %v15830_v31 = vpop.f32.mrf.mxu1 }
 0x560   :  { %19849 = vst [vmem:[#allocation230_spill] sm:$0xff] %v15830_v31  ;;  %v15832_v6 = vpop.f32.mrf.mxu0 }
 0x561   :  { %19850 = vst [vmem:[#allocation231_spill] sm:$0xff] %v15832_v6 }
 0x562   :  { %4804 = vmatmul.f32.gmra.mxu1 %v14450_v40 }
 0x563   :  { %4274 = vmatmul.f32.gmra.mxu0 %v14458_v47 }
 0x567   :  { %v15836_v53 = vpop.f32.mrf.mxu1 }
 0x568   :  { %19851 = vst [vmem:[#allocation232_spill] sm:$0xff] %v15836_v53  ;;  %v15838_v23 = vpop.f32.mrf.mxu0 }
 0x569   :  { %19852 = vst [vmem:[#allocation233_spill] sm:$0xff] %v15838_v23 }
 0x56a   :  { %4808 = vmatmul.f32.gmra.mxu1 %v14458_v47 }
 0x56b   :  { %4278 = vmatmul.f32.gmra.mxu0 %v14466_v55 }
 0x56f   :  { %v15842_v0 = vpop.f32.mrf.mxu1 }
 0x570   :  { %19853 = vst [vmem:[#allocation234_spill] sm:$0xff] %v15842_v0  ;;  %v15844_v30 = vpop.f32.mrf.mxu0 }
 0x571   :  { %19854 = vst [vmem:[#allocation235_spill] sm:$0xff] %v15844_v30 }
 0x572   :  { %4812 = vmatmul.f32.gmra.mxu1 %v14466_v55 }
 0x573   :  { %4282 = vmatmul.f32.gmra.mxu0 %v14474_v62 }
 0x577   :  { %v15848_v6 = vpop.f32.mrf.mxu1 }
 0x578   :  { %19855 = vst [vmem:[#allocation236_spill] sm:$0xff] %v15848_v6  ;;  %v15850_v40 = vpop.f32.mrf.mxu0 }
 0x579   :  { %19856 = vst [vmem:[#allocation237_spill] sm:$0xff] %v15850_v40 }
 0x57a   :  { %4816 = vmatmul.f32.gmra.mxu1 %v14474_v62 }
 0x57b   :  { %4286 = vmatmul.f32.gmra.mxu0 %v14482_v7 }
 0x57f   :  { %v15854_v23 = vpop.f32.mrf.mxu1 }
 0x580   :  { %19857 = vst [vmem:[#allocation238_spill] sm:$0xff] %v15854_v23  ;;  %v15856_v47 = vpop.f32.mrf.mxu0 }
 0x581   :  { %19858 = vst [vmem:[#allocation239_spill] sm:$0xff] %v15856_v47 }
 0x582   :  { %4820 = vmatmul.f32.gmra.mxu1 %v14482_v7 }
 0x583   :  { %4290 = vmatmul.f32.gmra.mxu0 %v14490_v14 }
 0x587   :  { %v15860_v30 = vpop.f32.mrf.mxu1 }
 0x588   :  { %19859 = vst [vmem:[#allocation240_spill] sm:$0xff] %v15860_v30  ;;  %v15862_v55 = vpop.f32.mrf.mxu0 }
 0x589   :  { %19860 = vst [vmem:[#allocation241_spill] sm:$0xff] %v15862_v55 }
 0x58a   :  { %4824 = vmatmul.f32.gmra.mxu1 %v14490_v14 }
 0x58b   :  { %4294 = vmatmul.f32.gmra.mxu0 %v14498_v21 }
 0x58f   :  { %v15866_v40 = vpop.f32.mrf.mxu1 }
 0x590   :  { %19861 = vst [vmem:[#allocation242_spill] sm:$0xff] %v15866_v40  ;;  %v15868_v62 = vpop.f32.mrf.mxu0 }
 0x591   :  { %19862 = vst [vmem:[#allocation243_spill] sm:$0xff] %v15868_v62 }
 0x592   :  { %4828 = vmatmul.f32.gmra.mxu1 %v14498_v21 }
 0x593   :  { %4298 = vmatmul.f32.gmra.mxu0 %v14506_v29 }
 0x597   :  { %v15872_v23 = vpop.f32.mrf.mxu1 }
 0x598   :  { %19863 = vst [vmem:[#allocation244_spill] sm:$0xff] %v15872_v23  ;;  %v15874_v7 = vpop.f32.mrf.mxu0 }
 0x599   :  { %19864 = vst [vmem:[#allocation245_spill] sm:$0xff] %v15874_v7 }
 0x59a   :  { %4832 = vmatmul.f32.gmra.mxu1 %v14506_v29 }
 0x59b   :  { %4302 = vmatmul.f32.gmra.mxu0 %v14514_v41 }
 0x59f   :  { %v15878_v30 = vpop.f32.mrf.mxu1 }
 0x5a0   :  { %19865 = vst [vmem:[#allocation246_spill] sm:$0xff] %v15878_v30  ;;  %v15880_v14 = vpop.f32.mrf.mxu0 }
 0x5a1   :  { %19866 = vst [vmem:[#allocation247_spill] sm:$0xff] %v15880_v14 }
 0x5a2   :  { %4836 = vmatmul.f32.gmra.mxu1 %v14514_v41 }
 0x5a3   :  { %4306 = vmatmul.f32.gmra.mxu0 %v14522_v49 }
 0x5a7   :  { %v15884_v40 = vpop.f32.mrf.mxu1 }
 0x5a8   :  { %19867 = vst [vmem:[#allocation248_spill] sm:$0xff] %v15884_v40  ;;  %v15886_v21 = vpop.f32.mrf.mxu0 }
 0x5a9   :  { %19868 = vst [vmem:[#allocation249_spill] sm:$0xff] %v15886_v21 }
 0x5aa   :  { %4840 = vmatmul.f32.gmra.mxu1 %v14522_v49 }
 0x5ab   :  { %4310 = vmatmul.f32.gmra.mxu0 %v14530_v58 }
 0x5af   :  { %v15890_v23 = vpop.f32.mrf.mxu1 }
 0x5b0   :  { %19869 = vst [vmem:[#allocation250_spill] sm:$0xff] %v15890_v23  ;;  %v15892_v29 = vpop.f32.mrf.mxu0 }
 0x5b2   :  { %4844 = vmatmul.f32.gmra.mxu1 %v14530_v58 }
 0x5b3   :  { %4314 = vmatmul.f32.gmra.mxu0 %v14538_v3 }
 0x5b7   :  { %v15896_v47 = vpop.f32.mrf.mxu1 }
 0x5b8   :  { %v15898_v41 = vpop.f32.mrf.mxu0 }
 0x5ba   :  { %4848 = vmatmul.f32.gmra.mxu1 %v14538_v3 }
 0x5bb   :  { %4318 = vmatmul.f32.gmra.mxu0 %v14546_v12 }
 0x5bf   :  { %v15902_v21 = vpop.f32.mrf.mxu1 }
 0x5c0   :  { %v15904_v49 = vpop.f32.mrf.mxu0 }
 0x5c2   :  { %4852 = vmatmul.f32.gmra.mxu1 %v14546_v12 }
 0x5c3   :  { %4322 = vmatmul.f32.gmra.mxu0 %v14554_v20 }
 0x5c7   :  { %v15908_v23 = vpop.f32.mrf.mxu1 }
 0x5c8   :  { %v15910_v58 = vpop.f32.mrf.mxu0 }
 0x5ca   :  { %4856 = vmatmul.f32.gmra.mxu1 %v14554_v20 }
 0x5cb   :  { %4326 = vmatmul.f32.gmra.mxu0 %v14568_v39 }
 0x5cf   :  { %v15914_v40 = vpop.f32.mrf.mxu1 }
 0x5d0   :  { %v15916_v3 = vpop.f32.mrf.mxu0 }
 0x5d2   :  { %4860 = vmatmul.f32.gmra.mxu1 %v14568_v39 }
 0x5d3   :  { %4330 = vmatmul.f32.gmra.mxu0 %v14579_v61 }
 0x5d7   :  { %v15920_v30 = vpop.f32.mrf.mxu1 }
 0x5d8   :  { %v15922_v12 = vpop.f32.mrf.mxu0 }
 0x5da   :  { %4864 = vmatmul.f32.gmra.mxu1 %v14579_v61 }
 0x5db   :  { %4334 = vmatmul.f32.gmra.mxu0 %v14590_v19 }
 0x5df   :  { %v15926_v55 = vpop.f32.mrf.mxu1 }
 0x5e0   :  { %v15928_v20 = vpop.f32.mrf.mxu0 }
 0x5e2   :  { %4868 = vmatmul.f32.gmra.mxu1 %v14590_v19 }
 0x5e3   :  { %4338 = vmatmul.f32.gmra.mxu0 %v14601_v46 }
 0x5e7   :  { %v15932_v62 = vpop.f32.mrf.mxu1 }
 0x5e8   :  { %v4279_v39 = vpop.f32.mrf.mxu0 }
 0x5ea   :  { %4872 = vmatmul.f32.gmra.mxu1 %v14601_v46 }
 0x5eb   :  { %4342 = vmatmul.f32.gmra.mxu0 %v14612_v10 }
 0x5ef   :  { %v15936_v14 = vpop.f32.mrf.mxu1 }
 0x5f0   :  { %v4283_v61 = vpop.f32.mrf.mxu0 }
 0x5f1   :  { %v4284_v7 = vadd.f32 %v4283_v61, %v14664_v36 }
 0x5f2   :  { %4876 = vmatmul.f32.gmra.mxu1 %v14612_v10 }
 0x5f3   :  { %4346 = vmatmul.f32.gmra.mxu0 %v14623_v42 }
 0x5f7   :  { %v4817_v6 = vpop.f32.mrf.mxu1 }
 0x5f8   :  { %v4287_v19 = vpop.f32.mrf.mxu0  ;;  %v15941_v0 = vadd.f32 %v4817_v6, %v4284_v7 }
 0x5fa   :  { %4880 = vmatmul.f32.gmra.mxu1 %v14623_v42 }
 0x5fb   :  { %4350 = vmatmul.f32.gmra.mxu0 %v14634_v5 }
 0x5ff   :  { %v4821_v46 = vpop.f32.mrf.mxu1 }
 0x600   :  { %v4291_v53 = vpop.f32.mrf.mxu0 }
 0x602   :  { %4884 = vmatmul.f32.gmra.mxu1 %v14634_v5 }
 0x603   :  { %4354 = vmatmul.f32.gmra.mxu0 %v14645_v44 }
 0x607   :  { %v4825_v31 = vpop.f32.mrf.mxu1 }
 0x608   :  { %v4295_v36 = vpop.f32.mrf.mxu0 }
 0x60a   :  { %4888 = vmatmul.f32.gmra.mxu1 %v14645_v44 }
 0x60b   :  { %4358 = vmatmul.f32.gmra.mxu0 %v14656_v17 }
 0x60f   :  { %v4829_v10 = vpop.f32.mrf.mxu1 }
 0x610   :  { %v4299_v61 = vpop.f32.mrf.mxu0 }
 0x611   :  { %v4300_v4 = vadd.f32 %v4299_v61, %v14708_v18 }
 0x612   :  { %4892 = vmatmul.f32.gmra.mxu1 %v14656_v17 }
 0x613   :  { %4362 = vmatmul.f32.gmra.mxu0 %v14667_v38 }
 0x617   :  { %v4833_v42 = vpop.f32.mrf.mxu1 }
 0x618   :  { %v4303_v6 = vpop.f32.mrf.mxu0  ;;  %v4834_v1 = vadd.f32 %v4833_v42, %v4300_v4 }
 0x619   :  { %v4304_v50 = vadd.f32 %v4303_v6, %v14719_v22 }
 0x61a   :  { %4896 = vmatmul.f32.gmra.mxu1 %v14667_v38  ;;  %v4296_v38 = vadd.f32 %v4295_v36, %v14697_v48 }
 0x61b   :  { %4366 = vmatmul.f32.gmra.mxu0 %v14678_v51 }
 0x61c   :  { %v4830_v8 = vadd.f32 %v4829_v10, %v4296_v38  ;;  %v19873_v10 = vld [vmem:[#allocation19_spill] sm:$0xff] }
 0x61d   :  { %v4280_v42 = vadd.f32 %v4279_v39, %v19873_v10 }
 0x61e   :  { %v5307_v4 = vmax.f32 %v4830_v8, 0.0 }
 0x61f   :  { %v4837_v5 = vpop.f32.mrf.mxu1  ;;  %v4814_v8 = vadd.f32 %v15936_v14, %v4280_v42  ;;  %v5304_v14 = vmax.f32 %v15941_v0, 0.0 }
 0x620   :  { %v4307_v7 = vpop.f32.mrf.mxu0  ;;  %v4838_v11 = vadd.f32 %v4837_v5, %v4304_v50  ;;  %v5308_v50 = vmax.f32 %v4834_v1, 0.0  ;;  %v19875_v1 = vld [vmem:[#allocation18_spill] sm:$0xff] }
 0x621   :  { %v4308_v44 = vadd.f32 %v4307_v7, %v14730_v59  ;;  %v19871_v7 = vld [vmem:[#allocation25_spill] sm:$0xff]  ;;  %v16035_v42 = vand.u32 4294901760, %v5304_v14 }
 0x622   :  { %4900 = vmatmul.f32.gmra.mxu1 %v14678_v51  ;;  %v19870_v51 = vld [vmem:[#allocation21_spill] sm:$0xff]  ;;  %v5309_v59 = vmax.f32 %v4838_v11, 0.0  ;;  %19899 = vst [vmem:[#allocation25_spill] sm:$0xff] %v16258_v16 }
 0x623   :  { %4370 = vmatmul.f32.gmra.mxu0 %v14689_v33  ;;  %v4292_v54 = vadd.f32 %v4291_v53, %v19870_v51 }
 0x624   :  { %v15968_v36 = vand.u32 4294901760, %v5309_v59 }
 0x625   :  { %v4826_v18 = vadd.f32 %v4825_v31, %v4292_v54  ;;  %v19874_v54 = vld [vmem:[#allocation22_spill] sm:$0xff]  ;;  %v4276_v31 = vadd.f32 %v15928_v20, %v19875_v1 }
 0x626   :  { %v15986_v38 = vsub.f32 %v5309_v59, %v15968_v36 }
 0x627   :  { %v4841_v2 = vpop.f32.mrf.mxu1  ;;  %v5306_v5 = vmax.f32 %v4826_v18, 0.0  ;;  %v19878_v18 = vld [vmem:[#allocation16_spill] sm:$0xff] }
 0x628   :  { %v4311_v17 = vpop.f32.mrf.mxu0  ;;  %v4842_v45 = vadd.f32 %v4841_v2, %v4308_v44  ;;  %v19872_v2 = vld [vmem:[#allocation20_spill] sm:$0xff]  ;;  %v19901_v32 = vand.u32 4294901760, %v15986_v38 }
 0x629   :  { %v4312_v22 = vadd.f32 %v4311_v17, %v19871_v7  ;;  %v4288_v44 = vadd.f32 %v4287_v19, %v19872_v2  ;;  %v15975_v19 = vand.u32 4294901760, %v5308_v50  ;;  %v15996_v7 = vadd.f32 %v15932_v62, %v4276_v31  ;;  %v19880_v31 = vld [vmem:[#allocation14_spill] sm:$0xff] }
 0x62a   :  { %v5310_v27 = vmax.f32 %v4842_v45, 0.0  ;;  %4904 = vmatmul.f32.gmra.mxu1 %v14689_v33 }
 0x62b   :  { %4374 = vmatmul.f32.gmra.mxu0 %v14700_v52  ;;  %v4822_v48 = vadd.f32 %v4821_v46, %v4288_v44  ;;  %v16002_v59 = vsub.f32 %v5308_v50, %v15975_v19 }
 0x62c   :  { %v15963_v6 = vand.u32 4294901760, %v5310_v27 }
 0x62d   :  { %v5305_v17 = vmax.f32 %v4822_v48, 0.0  ;;  %v5303_v48 = vmax.f32 %v4814_v8, 0.0  ;;  %v4260_v8 = vadd.f32 %v15904_v49, %v19880_v31  ;;  %v19881_v49 = vld [vmem:[#allocation13_spill] sm:$0xff] }
 0x62e   :  { %v15971_v53 = vsub.f32 %v5310_v27, %v15963_v6  ;;  %v15983_v27 = vand.u32 4294901760, %v5307_v4 }
 0x62f   :  { %v4845_v45 = vpop.f32.mrf.mxu1  ;;  %v16017_v50 = vand.u32 4294901760, %v5305_v17 }
 0x630   :  { %v15966_v61 = vpop.f32.mrf.mxu0  ;;  %v4846_v33 = vadd.f32 %v4845_v45, %v4312_v22  ;;  %v19506_v20 = vand.u32 4294901760, %v15971_v53  ;;  %v15999_v22 = vand.u32 4294901760, %v5306_v5  ;;  %v4268_v45 = vadd.f32 %v15916_v3, %v19878_v18 }
 0x632   :  { %v5311_v11 = vmax.f32 %v4846_v33, 0.0  ;;  %4908 = vmatmul.f32.gmra.mxu1 %v14700_v52  ;;  %v19876_v52 = vld [vmem:[#allocation17_spill] sm:$0xff]  ;;  %v16024_v10 = vadd.f32 %v15920_v30, %v4268_v45  ;;  %v5497_v3 = vsub.f32 %v15971_v53, %v19506_v20  ;;  %v16038_v1 = vsub.f32 %v5306_v5, %v15999_v22  ;;  %v19879_v30 = vld [vmem:[#allocation23_spill] sm:$0xff] }
 0x633   :  { %4378 = vmatmul.f32.gmra.mxu0 %v19874_v54  ;;  %v4272_v39 = vadd.f32 %v15922_v12, %v19876_v52  ;;  %v19877_v12 = vld [vmem:[#allocation15_spill] sm:$0xff]  ;;  %v16052_v5 = vsub.f32 %v5305_v17, %v16017_v50  ;;  %v16066_v17 = vsub.f32 %v5304_v14, %v16035_v42 }
 0x634   :  { %v15980_v46 = vand.u32 4294901760, %v5311_v11  ;;  %v4264_v44 = vadd.f32 %v15910_v58, %v19877_v12  ;;  %v19507_v58 = vand.u32 4294901760, %v15986_v38  ;;  %v16049_v12 = vand.u32 4294901760, %v5303_v48 }
 0x635   :  { %v16011_v33 = vadd.f32 %v15926_v55, %v4272_v39 }
 0x636   :  { %v15991_v51 = vsub.f32 %v5311_v11, %v15980_v46  ;;  %5448 = vmatpush.msrb.mxu2 %v15980_v46  ;;  %v16020_v11 = vsub.f32 %v5307_v4, %v15983_v27  ;;  %v5302_v4 = vmax.f32 %v15996_v7, 0.0  ;;  %v16045_v52 = vadd.f32 %v15914_v40, %v4264_v44 }
 0x637   :  { %v16004_v2 = vpop.f32.mrf.mxu1  ;;  %v5301_v39 = vmax.f32 %v16011_v33, 0.0  ;;  %v5503_v18 = vsub.f32 %v15986_v38, %v19507_v58  ;;  %v4256_v40 = vadd.f32 %v15898_v41, %v19881_v49  ;;  %v4794_v44 = vadd.f32 %v15908_v23, %v4260_v8  ;;  %v19882_v23 = vld [vmem:[#allocation12_spill] sm:$0xff] }
 0x638   :  { %v16013_v62 = vpop.f32.mrf.mxu0  ;;  %5450 = vmatpush.msrb.mxu2 %v15963_v6  ;;  %v19509_v0 = vand.u32 4294901760, %v15991_v51  ;;  %v19510_v45 = vand.u32 4294901760, %v16020_v11  ;;  %v5300_v33 = vmax.f32 %v16024_v10, 0.0  ;;  %v16063_v31 = vand.u32 4294901760, %v5302_v4 }
 0x639   :  { %v19511_v41 = vand.u32 4294901760, %v16038_v1  ;;  %v4252_v10 = vadd.f32 %v15892_v29, %v19882_v23  ;;  %v4790_v8 = vadd.f32 %v15902_v21, %v4256_v40  ;;  %v16084_v14 = vsub.f32 %v5303_v48, %v16049_v12  ;;  %v5424_v48 = vld [vmem:[%s19323_s1] sm:$0xff] }
 0x63a   :  { %4912 = vmatmul.f32.gmra.mxu1 %v19874_v54  ;;  %5452 = vmatpush.msrb.mxu2 %v15968_v36  ;;  %v5491_v55 = vsub.f32 %v15991_v51, %v19509_v0  ;;  %v19508_v54 = vand.u32 4294901760, %v16002_v59  ;;  %v5515_v0 = vsub.f32 %v16020_v11, %v19510_v45  ;;  %v19512_v29 = vand.u32 4294901760, %v16052_v5  ;;  %5428 = vst [vmem:[#allocation1] ss:$4 sm:$0xff] %v5424_v48 }
 0x63b   :  { %4382 = vmatmul.f32.gmra.mxu0 %v19879_v30  ;;  %v4786_v21 = vadd.f32 %v15896_v47, %v4252_v10  ;;  %v16091_v40 = vand.u32 4294901760, %v5300_v33  ;;  %v5521_v47 = vsub.f32 %v16038_v1, %v19511_v41  ;;  %v19898_v37 = vand.u32 4294901760, %v15991_v51 }
 0x63c   :  { %5454 = vmatpush.msrb.mxu2 %v15975_v19  ;;  %v5492_v7 = vand.u32 4294901760, %v5491_v55  ;;  %v5498_v55 = vand.u32 4294901760, %v5497_v3  ;;  %v5509_v58 = vsub.f32 %v16002_v59, %v19508_v54  ;;  %v5299_v3 = vmax.f32 %v16045_v52, 0.0 }
 0x63d   :  { %v5504_v54 = vand.u32 4294901760, %v5503_v18  ;;  %v5298_v52 = vmax.f32 %v4794_v44, 0.0  ;;  %v16099_v18 = vsub.f32 %v5302_v4, %v16063_v31  ;;  %v19513_v44 = vand.u32 4294901760, %v16066_v17 }
 0x63e   :  { %5456 = vmatpush.msrb.mxu2 %v15983_v27  ;;  %5493 = vmatpush.msrb.mxu3 %v5492_v7  ;;  %v16078_v7 = vand.u32 4294901760, %v5301_v39  ;;  %v5510_v23 = vand.u32 4294901760, %v5509_v58  ;;  %v16106_v10 = vand.u32 4294901760, %v5299_v3  ;;  %v5516_v4 = vand.u32 4294901760, %v5515_v0 }
 0x63f   :  { %v16068_v20 = vpop.f32.mrf.mxu1  ;;  %v5527_v58 = vsub.f32 %v16052_v5, %v19512_v29  ;;  %v5296_v41 = vmax.f32 %v4786_v21, 0.0  ;;  %v16116_v35 = vand.u32 4294901760, %v5298_v52  ;;  %v5533_v0 = vsub.f32 %v16066_v17, %v19513_v44 }
 0x640   :  { %v16080_v49 = vpop.f32.mrf.mxu0  ;;  %5458 = vmatpush.msrb.mxu2 %v15999_v22  ;;  %5499 = vmatpush.msrb.mxu3 %v5498_v55  ;;  %v19883_v55 = vld [vmem:[#allocation24_spill] sm:$0xff]  ;;  %v16110_v45 = vsub.f32 %v5301_v39, %v16078_v7  ;;  %v5522_v39 = vand.u32 4294901760, %v5521_v47 }
 0x641   :  { %v16140_v44 = vand.u32 4294901760, %v5296_v41  ;;  %v5431_v63 = vld.sshfl [vmem:[#allocation1] sm:$0xff pattern:$0x73625140] }
 0x642   :  { %4916 = vmatmul.f32.gmra.mxu1 %v19879_v30  ;;  %5460 = vmatpush.msrb.mxu2 %v16017_v50  ;;  %v5297_v30 = vmax.f32 %v4790_v8, 0.0  ;;  %v16120_v8 = vsub.f32 %v5300_v33, %v16091_v40  ;;  %v5528_v33 = vand.u32 4294901760, %v5527_v58  ;;  %v5534_v58 = vand.u32 4294901760, %v5533_v0 }
 0x643   :  { %4386 = vmatmul.f32.gmra.mxu0 %v19883_v55  ;;  %5505 = vmatpush.msrb.mxu3 %v5504_v54  ;;  %v16134_v54 = vsub.f32 %v5299_v3, %v16106_v10  ;;  %v19885_v3 = vld [vmem:[#allocation26_spill] sm:$0xff]  ;;  %v16152_v15 = vand.u32 4294901760, %v5431_v63  ;;  %v19887_v28 = vand.u32 4294901760, %v16110_v45 }
 0x644   :  { %5462 = vmatpush.msrb.mxu2 %v16035_v42  ;;  %v16128_v29 = vand.u32 4294901760, %v5297_v30 }
 0x645   :  { %5511 = vmatpush.msrb.mxu3 %v5510_v23  ;;  %v16143_v23 = vsub.f32 %v5298_v52, %v16116_v35  ;;  %v16163_v26 = vsub.f32 %v5431_v63, %v16152_v15 }
 0x646   :  { %5464 = vmatpush.msrb.mxu2 %v16049_v12  ;;  %v16155_v52 = vsub.f32 %v5297_v30, %v16128_v29 }
 0x647   :  { %5517 = vmatpush.msrb.mxu3 %v5516_v4  ;;  %v16122_v48 = vpop.f32.mrf.mxu1  ;;  %v19884_v4 = vand.u32 4294901760, %v16084_v14  ;;  %v19520_v0 = vand.u32 4294901760, %v16163_v26 }
 0x648   :  { %v16130_v21 = vpop.f32.mrf.mxu0  ;;  %5466 = vmatpush.msrb.mxu2 %v16063_v31 }
 0x649   :  { %5523 = vmatpush.msrb.mxu3 %v5522_v39  ;;  %v5539_v47 = vsub.f32 %v16084_v14, %v19884_v4  ;;  %v19886_v39 = vand.u32 4294901760, %v16099_v18 }
 0x64a   :  { %4920 = vmatmul.f32.gmra.mxu1 %v19883_v55  ;;  %5468 = vmatpush.msrb.mxu2 %v16078_v7 }
 0x64b   :  { %4390 = vmatmul.f32.gmra.mxu0 %v19885_v3  ;;  %5529 = vmatpush.msrb.mxu3 %v5528_v33  ;;  %v5545_v4 = vsub.f32 %v16099_v18, %v19886_v39  ;;  %v5540_v55 = vand.u32 4294901760, %v5539_v47  ;;  %v5551_v33 = vsub.f32 %v16110_v45, %v19887_v28  ;;  %v16166_v39 = vsub.f32 %v5296_v41, %v16140_v44  ;;  %v19890_v28 = vld [vmem:[#allocation28_spill] sm:$0xff] }
 0x64c   :  { %5470 = vmatpush.msrb.mxu2 %v16091_v40  ;;  %v19888_v47 = vand.u32 4294901760, %v16120_v8  ;;  %v19889_v41 = vand.u32 4294901760, %v16134_v54 }
 0x64d   :  { %5535 = vmatpush.msrb.mxu3 %v5534_v58  ;;  %v5546_v13 = vand.u32 4294901760, %v5545_v4  ;;  %v5552_v63 = vand.u32 4294901760, %v5551_v33  ;;  %v19524_v4 = vand.u32 4294901760, %v16155_v52 }
 0x64e   :  { %5472 = vmatpush.msrb.mxu2 %v16106_v10  ;;  %v5557_v58 = vsub.f32 %v16120_v8, %v19888_v47  ;;  %v5482_v47 = vsub.f32 %v16163_v26, %v19520_v0 }
 0x64f   :  { %5541 = vmatpush.msrb.mxu3 %v5540_v55  ;;  %v16169_v30 = vpop.f32.mrf.mxu1  ;;  %v5563_v55 = vsub.f32 %v16134_v54, %v19889_v41  ;;  %v19523_v41 = vand.u32 4294901760, %v16166_v39 }
 0x650   :  { %v16176_v34 = vpop.f32.mrf.mxu0  ;;  %5474 = vmatpush.msrb.mxu2 %v16116_v35  ;;  %v5558_v25 = vand.u32 4294901760, %v5557_v58  ;;  %v5483_v43 = vand.u32 4294901760, %v5482_v47 }
 0x651   :  { %5547 = vmatpush.msrb.mxu3 %v5546_v13  ;;  %v19891_v13 = vand.u32 4294901760, %v16143_v23  ;;  %v5564_v0 = vand.u32 4294901760, %v5563_v55 }
 0x652   :  { %4924 = vmatmul.f32.gmra.mxu1 %v19885_v3  ;;  %5476 = vmatpush.msrb.mxu2 %v16128_v29  ;;  %v5575_v3 = vsub.f32 %v16155_v52, %v19524_v4 }
 0x653   :  { %4394 = vmatmul.f32.gmra.mxu0 %v19890_v28  ;;  %5553 = vmatpush.msrb.mxu3 %v5552_v63  ;;  %v5569_v33 = vsub.f32 %v16143_v23, %v19891_v13  ;;  %v19892_v13 = vld [vmem:[#allocation30_spill] sm:$0xff] }
 0x654   :  { %5478 = vmatpush.msrb.mxu2 %v16140_v44  ;;  %v5576_v55 = vand.u32 4294901760, %v5575_v3 }
 0x655   :  { %5559 = vmatpush.msrb.mxu3 %v5558_v25  ;;  %5484 = vmatmul.f32.vlgmr.msrb.gmra.mxu2 %v5483_v43  ;;  %v5570_v63 = vand.u32 4294901760, %v5569_v33  ;;  %v5581_v25 = vsub.f32 %v16166_v39, %v19523_v41  ;;  %v19896_v41 = vld [vmem:[#allocation43_spill] sm:$0xff] }
 0x656   :  { %5591 = vmatpush.msra.mxu2 %v15991_v51  ;;  %v19903_v51 = vand.u32 4294901760, %v16002_v59 }
 0x657   :  { %5565 = vmatpush.msrb.mxu3 %v5564_v0  ;;  %v16200_v58 = vpop.f32.mrf.mxu1  ;;  %v5582_v43 = vand.u32 4294901760, %v5581_v25  ;;  %v16214_v0 = vpop.f32.mrf.mxu3 }
 0x658   :  { %5594 = vmatpush.msra.mxu2 %v15971_v53  ;;  %v16206_v47 = vpop.f32.mrf.mxu0  ;;  %19893 = vst [vmem:[#allocation21_spill] sm:$0xff] %v16214_v0 }
 0x659   :  { %5571 = vmatpush.msrb.mxu3 %v5570_v63 }
 0x65a   :  { %5597 = vmatpush.msra.mxu2 %v15986_v38  ;;  %4928 = vmatmul.f32.gmra.mxu1 %v19890_v28  ;;  %v19894_v28 = vld [vmem:[#allocation32_spill] sm:$0xff] }
 0x65b   :  { %4398 = vmatmul.f32.gmra.mxu0 %v19892_v13  ;;  %5577 = vmatpush.msrb.mxu3 %v5576_v55  ;;  %v19895_v55 = vld [vmem:[#allocation34_spill] sm:$0xff] }
 0x65c   :  { %5600 = vmatpush.msra.mxu2 %v16002_v59 }
 0x65d   :  { %5583 = vmatpush.msrb.mxu3 %v5582_v43 }
 0x65e   :  { %5603 = vmatpush.msra.mxu2 %v16020_v11  ;;  %5585 = vmatmul.f32.vlgmr.msrb.gmra.mxu3 %v16152_v15 }
 0x65f   :  { %5644 = vmatpush.msra.mxu3 %v15980_v46  ;;  %v16216_v33 = vpop.f32.mrf.mxu1 }
 0x660   :  { %v16219_v3 = vpop.f32.mrf.mxu0  ;;  %5606 = vmatpush.msra.mxu2 %v16038_v1 }
 0x661   :  { %5646 = vmatpush.msra.mxu3 %v15963_v6 }
 0x662   :  { %5609 = vmatpush.msra.mxu2 %v16052_v5  ;;  %4932 = vmatmul.f32.gmra.mxu1 %v19892_v13 }
 0x663   :  { %5648 = vmatpush.msra.mxu3 %v15968_v36  ;;  %4402 = vmatmul.f32.gmra.mxu0 %v19894_v28 }
 0x664   :  { %5612 = vmatpush.msra.mxu2 %v16066_v17 }
 0x665   :  { %5650 = vmatpush.msra.mxu3 %v15975_v19 }
 0x666   :  { %5615 = vmatpush.msra.mxu2 %v16084_v14 }
 0x667   :  { %5652 = vmatpush.msra.mxu3 %v15983_v27  ;;  %v16231_v63 = vpop.f32.mrf.mxu1 }
 0x668   :  { %v16233_v25 = vpop.f32.mrf.mxu0  ;;  %5618 = vmatpush.msra.mxu2 %v16099_v18 }
 0x669   :  { %5654 = vmatpush.msra.mxu3 %v15999_v22 }
 0x66a   :  { %5621 = vmatpush.msra.mxu2 %v16110_v45  ;;  %4936 = vmatmul.f32.gmra.mxu1 %v19894_v28  ;;  %v19897_v28 = vld [vmem:[#allocation36_spill] sm:$0xff] }
 0x66b   :  { %5656 = vmatpush.msra.mxu3 %v16017_v50  ;;  %4406 = vmatmul.f32.gmra.mxu0 %v19895_v55 }
 0x66c   :  { %5624 = vmatpush.msra.mxu2 %v16120_v8 }
 0x66d   :  { %5658 = vmatpush.msra.mxu3 %v16035_v42 }
 0x66e   :  { %5627 = vmatpush.msra.mxu2 %v16134_v54 }
 0x66f   :  { %5660 = vmatpush.msra.mxu3 %v16049_v12  ;;  %v16245_v13 = vpop.f32.mrf.mxu1 }
 0x670   :  { %v4347_v43 = vpop.f32.mrf.mxu0  ;;  %5630 = vmatpush.msra.mxu2 %v16143_v23 }
 0x671   :  { %5662 = vmatpush.msra.mxu3 %v16063_v31  ;;  %v4348_v4 = vadd.f32 %v4347_v43, %v19896_v41  ;;  %v19900_v41 = vand.u32 4294901760, %v15971_v53  ;;  %v16278_v53 = vpop.f32.mrf.mxu3 }
 0x672   :  { %5633 = vmatpush.msra.mxu2 %v16155_v52  ;;  %4940 = vmatmul.f32.gmra.mxu1 %v19895_v55  ;;  %19904 = vst [vmem:[#allocation20_spill] sm:$0xff] %v16278_v53 }
 0x673   :  { %5664 = vmatpush.msra.mxu3 %v16078_v7  ;;  %4410 = vmatmul.f32.gmra.mxu0 %v19897_v28 }
 0x674   :  { %5636 = vmatpush.msra.mxu2 %v16166_v39 }
 0x675   :  { %5666 = vmatpush.msra.mxu3 %v16091_v40  ;;  %5639 = vmatmul.f32.vlgmr.msra.gmra.mxu2 %v16163_v26 }
 0x676   :  { %5685 = vmatpush.msrb.mxu2 %v19898_v37  ;;  %v19902_v37 = vld [vmem:[#allocation38_spill] sm:$0xff] }
 0x677   :  { %5668 = vmatpush.msra.mxu3 %v16106_v10  ;;  %v4881_v43 = vpop.f32.mrf.mxu1 }
 0x678   :  { %5689 = vmatpush.msrb.mxu2 %v19900_v41  ;;  %v16264_v0 = vpop.f32.mrf.mxu0  ;;  %v16266_v55 = vadd.f32 %v4881_v43, %v4348_v4  ;;  %v19905_v4 = vand.u32 4294901760, %v16020_v11  ;;  %v19909_v41 = vld [vmem:[#allocation40_spill] sm:$0xff] }
 0x679   :  { %5670 = vmatpush.msra.mxu3 %v16116_v35 }
 0x67a   :  { %5693 = vmatpush.msrb.mxu2 %v19901_v32  ;;  %4944 = vmatmul.f32.gmra.mxu1 %v19897_v28  ;;  %v19906_v32 = vand.u32 4294901760, %v16163_v26  ;;  %v19907_v28 = vand.u32 4294901760, %v16038_v1  ;;  %v19910_v26 = vand.u32 4294901760, %v16066_v17  ;;  %v19914_v17 = vld [vmem:[#allocation42_spill] sm:$0xff] }
 0x67b   :  { %5672 = vmatpush.msra.mxu3 %v16128_v29  ;;  %4414 = vmatmul.f32.gmra.mxu0 %v19902_v37 }
 0x67c   :  { %5697 = vmatpush.msrb.mxu2 %v19903_v51 }
 0x67d   :  { %5674 = vmatpush.msra.mxu3 %v16140_v44 }
 0x67e   :  { %5701 = vmatpush.msrb.mxu2 %v19905_v4  ;;  %5678 = vmatmul.f32.vlgmr.msra.gmra.mxu3 %v19906_v32 }
 0x67f   :  { %5752 = vmatpush.msrb.mxu3 %v15980_v46  ;;  %v16285_v38 = vpop.f32.mrf.mxu1  ;;  %v19908_v46 = vand.u32 4294901760, %v16052_v5  ;;  %v19913_v5 = vand.u32 4294901760, %v16110_v45  ;;  %v19917_v45 = vand.u32 4294901760, %v16143_v23 }
 0x680   :  { %5705 = vmatpush.msrb.mxu2 %v19907_v28  ;;  %v4355_v59 = vpop.f32.mrf.mxu0  ;;  %v19928_v28 = vld [vmem:[#allocation49_spill] sm:$0xff] }
 0x681   :  { %5754 = vmatpush.msrb.mxu3 %v15963_v6  ;;  %v19911_v6 = vand.u32 4294901760, %v16084_v14  ;;  %v19918_v14 = vand.u32 4294901760, %v16155_v52  ;;  %v19924_v52 = vld [vmem:[#allocation48_spill] sm:$0xff] }
 0x682   :  { %5709 = vmatpush.msrb.mxu2 %v19908_v46  ;;  %4948 = vmatmul.f32.gmra.mxu1 %v19902_v37  ;;  %v19927_v37 = vld [vmem:[#allocation51_spill] sm:$0xff] }
 0x683   :  { %5756 = vmatpush.msrb.mxu3 %v15968_v36  ;;  %4418 = vmatmul.f32.gmra.mxu0 %v19909_v41  ;;  %v19912_v36 = vand.u32 4294901760, %v16099_v18  ;;  %v19919_v18 = vld [vmem:[#allocation44_spill] sm:$0xff] }
 0x684   :  { %5713 = vmatpush.msrb.mxu2 %v19910_v26  ;;  %v19929_v26 = vld [vmem:[#allocation50_spill] sm:$0xff] }
 0x685   :  { %5758 = vmatpush.msrb.mxu3 %v15975_v19  ;;  %v19915_v19 = vand.u32 4294901760, %v16120_v8  ;;  %v16334_v8 = vpop.f32.mrf.mxu3 }
 0x686   :  { %5717 = vmatpush.msrb.mxu2 %v19911_v6  ;;  %19923 = vst [vmem:[#allocation22_spill] sm:$0xff] %v16334_v8  ;;  %v19930_v6 = vld [vmem:[#allocation47_spill] sm:$0xff] }
 0x687   :  { %5760 = vmatpush.msrb.mxu3 %v15983_v27  ;;  %v4889_v11 = vpop.f32.mrf.mxu1  ;;  %v19916_v27 = vand.u32 4294901760, %v16134_v54 }
 0x688   :  { %5721 = vmatpush.msrb.mxu2 %v19912_v36  ;;  %v4359_v1 = vpop.f32.mrf.mxu0  ;;  %v4356_v36 = vadd.f32 %v4355_v59, %v19930_v6 }
 0x689   :  { %5762 = vmatpush.msrb.mxu3 %v15999_v22  ;;  %v4360_v46 = vadd.f32 %v4359_v1, %v19928_v28 }
 0x68a   :  { %5725 = vmatpush.msrb.mxu2 %v19913_v5  ;;  %4952 = vmatmul.f32.gmra.mxu1 %v19909_v41 }
 0x68b   :  { %5764 = vmatpush.msrb.mxu3 %v16017_v50  ;;  %4422 = vmatmul.f32.gmra.mxu0 %v19914_v17 }
 0x68c   :  { %5729 = vmatpush.msrb.mxu2 %v19915_v19  ;;  %v19931_v19 = vld [vmem:[#allocation45_spill] sm:$0xff] }
 0x68d   :  { %5766 = vmatpush.msrb.mxu3 %v16035_v42  ;;  %v19920_v42 = vand.u32 4294901760, %v16166_v39  ;;  %v19926_v39 = vld [vmem:[#allocation55_spill] sm:$0xff] }
 0x68e   :  { %5733 = vmatpush.msrb.mxu2 %v19916_v27  ;;  %v4352_v27 = vadd.f32 %v16264_v0, %v19931_v19 }
 0x68f   :  { %5768 = vmatpush.msrb.mxu3 %v16049_v12  ;;  %v4893_v22 = vpop.f32.mrf.mxu1  ;;  %v16325_v12 = vpop.f32.mrf.mxu2 }
 0x690   :  { %5737 = vmatpush.msrb.mxu2 %v19917_v45  ;;  %v4363_v50 = vpop.f32.mrf.mxu0  ;;  %19921 = vst [vmem:[#allocation19_spill] sm:$0xff] %v16325_v12  ;;  %v4894_v5 = vadd.f32 %v4893_v22, %v4360_v46  ;;  %v4890_v45 = vadd.f32 %v4889_v11, %v4356_v36  ;;  %v19933_v22 = vld [vmem:[#allocation41_spill] sm:$0xff] }
 0x691   :  { %5770 = vmatpush.msrb.mxu3 %v16063_v31  ;;  %v4364_v51 = vadd.f32 %v4363_v50, %v19927_v37 }
 0x692   :  { %5741 = vmatpush.msrb.mxu2 %v19918_v14  ;;  %4956 = vmatmul.f32.gmra.mxu1 %v19914_v17  ;;  %v19932_v14 = vld [vmem:[#allocation57_spill] sm:$0xff] }
 0x693   :  { %5772 = vmatpush.msrb.mxu3 %v16078_v7  ;;  %4426 = vmatmul.f32.gmra.mxu0 %v19919_v18  ;;  %v19922_v7 = vld [vmem:[#allocation46_spill] sm:$0xff] }
 0x694   :  { %5745 = vmatpush.msrb.mxu2 %v19920_v42 }
 0x695   :  { %5774 = vmatpush.msrb.mxu3 %v16091_v40  ;;  %5747 = vmatmul.f32.vlgmr.msrb.gmra.mxu2 %v16152_v15 }
 0x697   :  { %5776 = vmatpush.msrb.mxu3 %v16106_v10  ;;  %v4897_v31 = vpop.f32.mrf.mxu1 }
 0x698   :  { %v4367_v54 = vpop.f32.mrf.mxu0  ;;  %v4898_v41 = vadd.f32 %v4897_v31, %v4364_v51  ;;  %v4886_v31 = vadd.f32 %v16285_v38, %v4352_v27 }
 0x699   :  { %5778 = vmatpush.msrb.mxu3 %v16116_v35  ;;  %v19925_v35 = vld [vmem:[#allocation53_spill] sm:$0xff] }
 0x69a   :  { %4960 = vmatmul.f32.gmra.mxu1 %v19919_v18  ;;  %v4368_v10 = vadd.f32 %v4367_v54, %v19925_v35  ;;  %v5324_v50 = vmax.f32 %v4898_v41, 0.0  ;;  %v5323_v54 = vmax.f32 %v4894_v5, 0.0 }
 0x69b   :  { %5780 = vmatpush.msrb.mxu3 %v16128_v29  ;;  %4430 = vmatmul.f32.gmra.mxu0 %v19922_v7 }
 0x69c   :  { %v16358_v0 = vand.u32 4294901760, %v5324_v50  ;;  %v16368_v37 = vand.u32 4294901760, %v5323_v54 }
 0x69d   :  { %5782 = vmatpush.msrb.mxu3 %v16140_v44 }
 0x69e   :  { %5784 = vmatmul.f32.vlgmr.msrb.gmra.mxu3 %v16152_v15  ;;  %v16384_v28 = vsub.f32 %v5324_v50, %v16358_v0  ;;  %v16401_v36 = vsub.f32 %v5323_v54, %v16368_v37 }
 0x69f   :  { %v4901_v40 = vpop.f32.mrf.mxu1 }
 0x6a0   :  { %v4371_v23 = vpop.f32.mrf.mxu0  ;;  %v4902_v4 = vadd.f32 %v4901_v40, %v4368_v10  ;;  %v19934_v10 = vld [vmem:[#allocation39_spill] sm:$0xff] }
 0x6a1   :  { %v4372_v29 = vadd.f32 %v4371_v23, %v19926_v39  ;;  %v4344_v23 = vadd.f32 %v16233_v25, %v19933_v22  ;;  %v4340_v39 = vadd.f32 %v16219_v3, %v19934_v10  ;;  %v5320_v3 = vmax.f32 %v16266_v55, 0.0  ;;  %v19941_v10 = vld [vmem:[#allocation29_spill] sm:$0xff] }
 0x6a2   :  { %4964 = vmatmul.f32.gmra.mxu1 %v19922_v7  ;;  %v5325_v17 = vmax.f32 %v4902_v4, 0.0  ;;  %v19936_v4 = vld [vmem:[#allocation37_spill] sm:$0xff] }
 0x6a3   :  { %4434 = vmatmul.f32.gmra.mxu0 %v19924_v52  ;;  %v4878_v38 = vadd.f32 %v16245_v13, %v4344_v23  ;;  %v16414_v50 = vand.u32 4294901760, %v5320_v3  ;;  %v19940_v23 = vld [vmem:[#allocation54_spill] sm:$0xff] }
 0x6a4   :  { %v16352_v7 = vand.u32 4294901760, %v5325_v17 }
 0x6a6   :  { %v16371_v25 = vsub.f32 %v5325_v17, %v16352_v7 }
 0x6a7   :  { %v4905_v43 = vpop.f32.mrf.mxu1 }
 0x6a8   :  { %v4375_v32 = vpop.f32.mrf.mxu0  ;;  %v4906_v44 = vadd.f32 %v4905_v43, %v4372_v29  ;;  %v19935_v29 = vld [vmem:[#allocation52_spill] sm:$0xff]  ;;  %v5321_v43 = vmax.f32 %v4886_v31, 0.0  ;;  %v19538_v19 = vand.u32 4294901760, %v16371_v25 }
 0x6a9   :  { %v4376_v18 = vadd.f32 %v4375_v32, %v19932_v14  ;;  %v4336_v32 = vadd.f32 %v16206_v47, %v19936_v4 }
 0x6aa   :  { %v5326_v15 = vmax.f32 %v4906_v44, 0.0  ;;  %4968 = vmatmul.f32.gmra.mxu1 %v19924_v52  ;;  %v5322_v52 = vmax.f32 %v4890_v45, 0.0  ;;  %v16378_v44 = vadd.f32 %v16231_v63, %v4340_v39  ;;  %v16398_v6 = vand.u32 4294901760, %v5321_v43 }
 0x6ab   :  { %4438 = vmatmul.f32.gmra.mxu0 %v19929_v26  ;;  %v16394_v63 = vadd.f32 %v16216_v33, %v4336_v32  ;;  %v4320_v39 = vadd.f32 %v16013_v62, %v19941_v10  ;;  %v19942_v62 = vld [vmem:[#allocation27_spill] sm:$0xff] }
 0x6ac   :  { %v16349_v42 = vand.u32 4294901760, %v5326_v15  ;;  %v16381_v13 = vand.u32 4294901760, %v5322_v52  ;;  %v5318_v45 = vmax.f32 %v16378_v44, 0.0 }
 0x6ae   :  { %v16361_v11 = vsub.f32 %v5326_v15, %v16349_v42  ;;  %v19937_v15 = vld [vmem:[#allocation35_spill] sm:$0xff]  ;;  %v16417_v14 = vsub.f32 %v5322_v52, %v16381_v13  ;;  %v16436_v52 = vsub.f32 %v5321_v43, %v16398_v6  ;;  %v16450_v43 = vsub.f32 %v5320_v3, %v16414_v50 }
 0x6af   :  { %v4909_v1 = vpop.f32.mrf.mxu1  ;;  %v4332_v47 = vadd.f32 %v16176_v34, %v19937_v15  ;;  %v19938_v34 = vld [vmem:[#allocation33_spill] sm:$0xff] }
 0x6b0   :  { %v16354_v40 = vpop.f32.mrf.mxu0  ;;  %v4910_v59 = vadd.f32 %v4909_v1, %v4376_v18  ;;  %v19540_v41 = vand.u32 4294901760, %v16361_v11  ;;  %v4328_v33 = vadd.f32 %v16130_v21, %v19938_v34  ;;  %v19939_v1 = vld [vmem:[#allocation31_spill] sm:$0xff]  ;;  %v19533_v15 = vand.u32 4294901760, %v16417_v14 }
 0x6b1   :  { %v16411_v27 = vadd.f32 %v16200_v58, %v4332_v47  ;;  %v19536_v58 = vand.u32 4294901760, %v16384_v28  ;;  %v4324_v31 = vadd.f32 %v16080_v49, %v19939_v1  ;;  %v5844_v49 = vsub.f32 %v16371_v25, %v19538_v19 }
 0x6b2   :  { %v5327_v35 = vmax.f32 %v4910_v59, 0.0  ;;  %4972 = vmatmul.f32.gmra.mxu1 %v19929_v26  ;;  %v5319_v26 = vmax.f32 %v4878_v38, 0.0  ;;  %v5838_v21 = vsub.f32 %v16361_v11, %v19540_v41  ;;  %v4862_v54 = vadd.f32 %v16169_v30, %v4328_v33 }
 0x6b3   :  { %4442 = vmatmul.f32.gmra.mxu0 %v19935_v29  ;;  %v5317_v59 = vmax.f32 %v16394_v63, 0.0  ;;  %v19534_v30 = vand.u32 4294901760, %v16401_v36  ;;  %v4858_v38 = vadd.f32 %v16122_v48, %v4324_v31  ;;  %v5316_v4 = vmax.f32 %v16411_v27, 0.0 }
 0x6b4   :  { %v16373_v51 = vand.u32 4294901760, %v5327_v35  ;;  %v16431_v22 = vand.u32 4294901760, %v5319_v26  ;;  %v5839_v32 = vand.u32 4294901760, %v5838_v21  ;;  %v5850_v44 = vsub.f32 %v16384_v28, %v19536_v58  ;;  %v5432_v58 = vld.sshfl [vmem:[#allocation1 + $0x8] sm:$0xff pattern:$0x73625140] }
 0x6b5   :  { %v4316_v48 = vadd.f32 %v15966_v61, %v19942_v62  ;;  %v4854_v47 = vadd.f32 %v16068_v20, %v4320_v39  ;;  %v5315_v63 = vmax.f32 %v4862_v54, 0.0  ;;  %v16460_v34 = vand.u32 4294901760, %v5317_v59 }
 0x6b6   :  { %v16387_v46 = vsub.f32 %v5327_v35, %v16373_v51  ;;  %5789 = vmatpush.msra.mxu2 %v16373_v51  ;;  %v16465_v33 = vsub.f32 %v5319_v26, %v16431_v22  ;;  %v5856_v61 = vsub.f32 %v16401_v36, %v19534_v30  ;;  %v19531_v20 = vand.u32 4294901760, %v16436_v52 }
 0x6b7   :  { %v16396_v55 = vpop.f32.mrf.mxu1  ;;  %v4850_v21 = vadd.f32 %v16004_v2, %v4316_v48  ;;  %v5314_v1 = vmax.f32 %v4858_v38, 0.0  ;;  %v16475_v31 = vand.u32 4294901760, %v5316_v4  ;;  %v5851_v54 = vand.u32 4294901760, %v5850_v44  ;;  %v19943_v2 = vld [vmem:[#allocation56_spill] sm:$0xff] }
 0x6b8   :  { %v19542_v5 = vand.u32 4294901760, %v16387_v46  ;;  %v16404_v17 = vpop.f32.mrf.mxu0  ;;  %5791 = vmatpush.msra.mxu2 %v16349_v42  ;;  %v5313_v10 = vmax.f32 %v4854_v47, 0.0  ;;  %v16485_v39 = vand.u32 4294901760, %v5315_v63  ;;  %v5857_v38 = vand.u32 4294901760, %v5856_v61 }
 0x6b9   :  { %v19535_v44 = vand.u32 4294901760, %v16465_v33  ;;  %v5312_v62 = vmax.f32 %v4850_v21, 0.0  ;;  %v16497_v48 = vand.u32 4294901760, %v5314_v1  ;;  %v16500_v47 = vsub.f32 %v5316_v4, %v16475_v31 }
 0x6ba   :  { %5793 = vmatpush.msra.mxu2 %v16352_v7  ;;  %v5832_v18 = vsub.f32 %v16387_v46, %v19542_v5  ;;  %4976 = vmatmul.f32.gmra.mxu1 %v19935_v29  ;;  %v16447_v29 = vand.u32 4294901760, %v5318_v45  ;;  %v16507_v61 = vand.u32 4294901760, %v5313_v10  ;;  %v16512_v21 = vsub.f32 %v5315_v63, %v16485_v39 }
 0x6bb   :  { %4446 = vmatmul.f32.gmra.mxu0 %v19940_v23 }
 0x6bc   :  { %5795 = vmatpush.msra.mxu2 %v16358_v0  ;;  %v5833_v35 = vand.u32 4294901760, %v5832_v18  ;;  %v5845_v18 = vand.u32 4294901760, %v5844_v49  ;;  %v16478_v26 = vsub.f32 %v5318_v45, %v16447_v29  ;;  %v19532_v49 = vand.u32 4294901760, %v16450_v43 }
 0x6bd   :  { %v16490_v45 = vsub.f32 %v5317_v59, %v16460_v34  ;;  %v16532_v30 = vsub.f32 %v5313_v10, %v16507_v61 }
 0x6be   :  { %5797 = vmatpush.msra.mxu2 %v16368_v37  ;;  %5834 = vmatpush.msra.mxu3 %v5833_v35  ;;  %v5862_v35 = vsub.f32 %v16417_v14, %v19533_v15  ;;  %v16524_v15 = vsub.f32 %v5314_v1, %v16497_v48 }
 0x6bf   :  { %v16462_v3 = vpop.f32.mrf.mxu1 }
 0x6c0   :  { %v16467_v27 = vpop.f32.mrf.mxu0  ;;  %5799 = vmatpush.msra.mxu2 %v16381_v13  ;;  %5840 = vmatpush.msra.mxu3 %v5839_v32  ;;  %v5868_v32 = vsub.f32 %v16436_v52, %v19531_v20  ;;  %v5863_v59 = vand.u32 4294901760, %v5862_v35  ;;  %v5880_v35 = vsub.f32 %v16465_v33, %v19535_v44  ;;  %v19944_v44 = vld [vmem:[#allocation58_spill] sm:$0xff] }
 0x6c2   :  { %5801 = vmatpush.msra.mxu2 %v16398_v6  ;;  %5846 = vmatpush.msra.mxu3 %v5845_v18  ;;  %v19537_v18 = vand.u32 4294901760, %v16478_v26  ;;  %v5869_v4 = vand.u32 4294901760, %v5868_v32  ;;  %v19541_v32 = vand.u32 4294901760, %v16500_v47  ;;  %v5881_v1 = vand.u32 4294901760, %v5880_v35 }
 0x6c3   :  { %4450 = vmatmul.f32.gmra.mxu0 %v19943_v2  ;;  %4980 = vmatmul.f32.gmra.mxu1 %v19940_v23  ;;  %v5874_v23 = vsub.f32 %v16450_v43, %v19532_v49  ;;  %v16521_v49 = vand.u32 4294901760, %v5312_v62  ;;  %v19544_v35 = vand.u32 4294901760, %v16524_v15 }
 0x6c4   :  { %5803 = vmatpush.msra.mxu2 %v16414_v50  ;;  %5852 = vmatpush.msra.mxu3 %v5851_v54 }
 0x6c5   :  { %v5875_v63 = vand.u32 4294901760, %v5874_v23  ;;  %v16544_v10 = vsub.f32 %v5312_v62, %v16521_v49  ;;  %v5910_v5 = vsub.f32 %v16524_v15, %v19544_v35  ;;  %v16579_v35 = vpop.f32.mrf.mxu2 }
 0x6c6   :  { %5805 = vmatpush.msra.mxu2 %v16431_v22  ;;  %5858 = vmatpush.msra.mxu3 %v5857_v38  ;;  %v19539_v38 = vand.u32 4294901760, %v16490_v45  ;;  %19946 = vst [vmem:[#allocation18_spill] sm:$0xff] %v16579_v35  ;;  %v19957_v35 = vand.u32 4294901760, %v16371_v25 }
 0x6c7   :  { %v16509_v54 = vpop.f32.mrf.mxu1  ;;  %v5911_v53 = vand.u32 4294901760, %v5910_v5  ;;  %v16594_v5 = vpop.f32.mrf.mxu3 }
 0x6c8   :  { %v16514_v20 = vpop.f32.mrf.mxu0  ;;  %5807 = vmatpush.msra.mxu2 %v16447_v29  ;;  %5864 = vmatpush.msra.mxu3 %v5863_v59  ;;  %v5886_v59 = vsub.f32 %v16478_v26, %v19537_v18  ;;  %v5892_v23 = vsub.f32 %v16490_v45, %v19539_v38  ;;  %v16541_v18 = vand.u32 4294901760, %v5432_v58  ;;  %19949 = vst [vmem:[#allocation17_spill] sm:$0xff] %v16594_v5  ;;  %v19954_v5 = vand.u32 4294901760, %v16387_v46 }
 0x6ca   :  { %5809 = vmatpush.msra.mxu2 %v16460_v34  ;;  %5870 = vmatpush.msra.mxu3 %v5869_v4  ;;  %v19543_v4 = vand.u32 4294901760, %v16512_v21  ;;  %v16552_v19 = vsub.f32 %v5432_v58, %v16541_v18  ;;  %v5893_v62 = vand.u32 4294901760, %v5892_v23 }
 0x6cb   :  { %4454 = vmatmul.f32.gmra.mxu0 %v19944_v44  ;;  %4984 = vmatmul.f32.gmra.mxu1 %v19943_v2  ;;  %v5887_v2 = vand.u32 4294901760, %v5886_v59 }
 0x6cc   :  { %5811 = vmatpush.msra.mxu2 %v16475_v31  ;;  %5876 = vmatpush.msra.mxu3 %v5875_v63  ;;  %v5898_v63 = vsub.f32 %v16500_v47, %v19541_v32  ;;  %v5904_v59 = vsub.f32 %v16512_v21, %v19543_v4  ;;  %v19545_v32 = vand.u32 4294901760, %v16552_v19 }
 0x6cd   :  { %v16639_v16 = vpop.f32.mrf.mxu2 }
 0x6ce   :  { %5813 = vmatpush.msra.mxu2 %v16485_v39  ;;  %5882 = vmatpush.msra.mxu3 %v5881_v1  ;;  %v19546_v1 = vand.u32 4294901760, %v16532_v30  ;;  %v5899_v58 = vand.u32 4294901760, %v5898_v63  ;;  %v5823_v23 = vsub.f32 %v16552_v19, %v19545_v32  ;;  %v5905_v4 = vand.u32 4294901760, %v5904_v59  ;;  %19955 = vst [vmem:[#allocation15_spill] sm:$0xff] %v16639_v16 }
 0x6cf   :  { %v16554_v38 = vpop.f32.mrf.mxu1  ;;  %v19947_v32 = vand.u32 4294901760, %v16544_v10 }
 0x6d0   :  { %v16556_v41 = vpop.f32.mrf.mxu0  ;;  %5815 = vmatpush.msra.mxu2 %v16497_v48  ;;  %5888 = vmatpush.msra.mxu3 %v5887_v2  ;;  %v19945_v2 = vld [vmem:[#allocation60_spill] sm:$0xff]  ;;  %v5916_v63 = vsub.f32 %v16532_v30, %v19546_v1  ;;  %v19948_v1 = vld [vmem:[#allocation62_spill] sm:$0xff] }
 0x6d1   :  { %v5922_v8 = vsub.f32 %v16544_v10, %v19947_v32  ;;  %v19950_v32 = vld [vmem:[#allocation64_spill] sm:$0xff] }
 0x6d2   :  { %5817 = vmatpush.msra.mxu2 %v16507_v61  ;;  %5894 = vmatpush.msra.mxu3 %v5893_v62  ;;  %v5824_v62 = vand.u32 4294901760, %v5823_v23 }
 0x6d3   :  { %4458 = vmatmul.f32.gmra.mxu0 %v19945_v2  ;;  %4988 = vmatmul.f32.gmra.mxu1 %v19944_v44  ;;  %v5923_v23 = vand.u32 4294901760, %v5922_v8 }
 0x6d4   :  { %5819 = vmatpush.msra.mxu2 %v16521_v49  ;;  %5900 = vmatpush.msra.mxu3 %v5899_v58  ;;  %v5917_v58 = vand.u32 4294901760, %v5916_v63 }
 0x6d5   :  { %5825 = vmatmul.f32.vlgmr.msra.gmra.mxu2 %v5824_v62 }
 0x6d6   :  { %5932 = vmatpush.msrb.mxu2 %v16387_v46  ;;  %5906 = vmatpush.msra.mxu3 %v5905_v4  ;;  %v19958_v46 = vld [vmem:[#allocation70_spill] sm:$0xff] }
 0x6d7   :  { %v16584_v44 = vpop.f32.mrf.mxu1 }
 0x6d8   :  { %5935 = vmatpush.msrb.mxu2 %v16361_v11  ;;  %v16587_v59 = vpop.f32.mrf.mxu0  ;;  %5912 = vmatpush.msra.mxu3 %v5911_v53 }
 0x6da   :  { %5938 = vmatpush.msrb.mxu2 %v16371_v25  ;;  %5918 = vmatpush.msra.mxu3 %v5917_v58  ;;  %v19952_v58 = vld [vmem:[#allocation75_spill] sm:$0xff]  ;;  %v19962_v25 = vand.u32 4294901760, %v16552_v19 }
 0x6db   :  { %4462 = vmatmul.f32.gmra.mxu0 %v19948_v1  ;;  %4992 = vmatmul.f32.gmra.mxu1 %v19945_v2 }
 0x6dc   :  { %5941 = vmatpush.msrb.mxu2 %v16384_v28  ;;  %5924 = vmatpush.msra.mxu3 %v5923_v23 }
 0x6dd   :  { %5926 = vmatmul.f32.vlgmr.msra.gmra.mxu3 %v16541_v18 }
 0x6de   :  { %5985 = vmatpush.msrb.mxu3 %v16373_v51  ;;  %5944 = vmatpush.msrb.mxu2 %v16401_v36 }
 0x6df   :  { %v16601_v8 = vpop.f32.mrf.mxu1 }
 0x6e0   :  { %5987 = vmatpush.msrb.mxu3 %v16349_v42  ;;  %v16599_v53 = vpop.f32.mrf.mxu0  ;;  %5947 = vmatpush.msrb.mxu2 %v16417_v14 }
 0x6e2   :  { %5989 = vmatpush.msrb.mxu3 %v16352_v7  ;;  %5950 = vmatpush.msrb.mxu2 %v16436_v52 }
 0x6e3   :  { %4466 = vmatmul.f32.gmra.mxu0 %v19950_v32  ;;  %4996 = vmatmul.f32.gmra.mxu1 %v19948_v1  ;;  %v19951_v1 = vld [vmem:[#allocation66_spill] sm:$0xff] }
 0x6e4   :  { %5953 = vmatpush.msrb.mxu2 %v16450_v43  ;;  %5991 = vmatpush.msrb.mxu3 %v16358_v0 }
 0x6e6   :  { %5956 = vmatpush.msrb.mxu2 %v16465_v33  ;;  %5993 = vmatpush.msrb.mxu3 %v16368_v37 }
 0x6e7   :  { %v16614_v2 = vpop.f32.mrf.mxu1 }
 0x6e8   :  { %v16612_v4 = vpop.f32.mrf.mxu0  ;;  %5959 = vmatpush.msrb.mxu2 %v16478_v26  ;;  %5995 = vmatpush.msrb.mxu3 %v16381_v13 }
 0x6ea   :  { %5962 = vmatpush.msrb.mxu2 %v16490_v45  ;;  %5997 = vmatpush.msrb.mxu3 %v16398_v6 }
 0x6eb   :  { %4470 = vmatmul.f32.gmra.mxu0 %v19951_v1  ;;  %5000 = vmatmul.f32.gmra.mxu1 %v19950_v32  ;;  %v19953_v32 = vld [vmem:[#allocation68_spill] sm:$0xff] }
 0x6ec   :  { %5965 = vmatpush.msrb.mxu2 %v16500_v47  ;;  %5999 = vmatpush.msrb.mxu3 %v16414_v50 }
 0x6ee   :  { %5968 = vmatpush.msrb.mxu2 %v16512_v21  ;;  %6001 = vmatpush.msrb.mxu3 %v16431_v22 }
 0x6ef   :  { %v16626_v62 = vpop.f32.mrf.mxu1 }
 0x6f0   :  { %v4411_v63 = vpop.f32.mrf.mxu0  ;;  %5971 = vmatpush.msrb.mxu2 %v16524_v15  ;;  %6003 = vmatpush.msrb.mxu3 %v16447_v29 }
 0x6f1   :  { %v4412_v23 = vadd.f32 %v4411_v63, %v19952_v58  ;;  %v19956_v63 = vand.u32 4294901760, %v16361_v11  ;;  %v16659_v11 = vpop.f32.mrf.mxu3 }
 0x6f2   :  { %5974 = vmatpush.msrb.mxu2 %v16532_v30  ;;  %6005 = vmatpush.msrb.mxu3 %v16460_v34  ;;  %19960 = vst [vmem:[#allocation16_spill] sm:$0xff] %v16659_v11  ;;  %v20001_v11 = vld [vmem:[#allocation92_spill] sm:$0xff] }
 0x6f3   :  { %4474 = vmatmul.f32.gmra.mxu0 %v19953_v32  ;;  %5004 = vmatmul.f32.gmra.mxu1 %v19951_v1 }
 0x6f4   :  { %5977 = vmatpush.msrb.mxu2 %v16544_v10  ;;  %6007 = vmatpush.msrb.mxu3 %v16475_v31 }
 0x6f5   :  { %5980 = vmatmul.f32.vlgmr.msrb.gmra.mxu2 %v16552_v19  ;;  %v19968_v19 = vand.u32 4294901760, %v16478_v26  ;;  %v19974_v26 = vand.u32 4294901760, %v16532_v30 }
 0x6f6   :  { %6026 = vmatpush.msra.mxu2 %v19954_v5  ;;  %6009 = vmatpush.msrb.mxu3 %v16485_v39  ;;  %v19959_v5 = vand.u32 4294901760, %v16384_v28 }
 0x6f7   :  { %v4945_v12 = vpop.f32.mrf.mxu1 }
 0x6f8   :  { %6030 = vmatpush.msra.mxu2 %v19956_v63  ;;  %v16645_v58 = vpop.f32.mrf.mxu0  ;;  %6011 = vmatpush.msrb.mxu3 %v16497_v48  ;;  %v16648_v1 = vadd.f32 %v4945_v12, %v4412_v23  ;;  %v19961_v12 = vand.u32 4294901760, %v16401_v36  ;;  %v19966_v36 = vand.u32 4294901760, %v16450_v43  ;;  %v19970_v43 = vld [vmem:[#allocation74_spill] sm:$0xff] }
 0x6fa   :  { %6034 = vmatpush.msra.mxu2 %v19957_v35  ;;  %6013 = vmatpush.msrb.mxu3 %v16507_v61  ;;  %v19963_v35 = vand.u32 4294901760, %v16417_v14 }
 0x6fb   :  { %4478 = vmatmul.f32.gmra.mxu0 %v19958_v46  ;;  %5008 = vmatmul.f32.gmra.mxu1 %v19953_v32  ;;  %v19965_v32 = vld [vmem:[#allocation72_spill] sm:$0xff] }
 0x6fc   :  { %6038 = vmatpush.msra.mxu2 %v19959_v5  ;;  %6015 = vmatpush.msrb.mxu3 %v16521_v49 }
 0x6fd   :  { %6019 = vmatmul.f32.vlgmr.msrb.gmra.mxu3 %v19962_v25 }
 0x6fe   :  { %6093 = vmatpush.msra.mxu3 %v16373_v51  ;;  %6042 = vmatpush.msra.mxu2 %v19961_v12  ;;  %v19964_v51 = vand.u32 4294901760, %v16436_v52  ;;  %v19969_v52 = vand.u32 4294901760, %v16490_v45  ;;  %v19975_v45 = vld [vmem:[#allocation76_spill] sm:$0xff]  ;;  %v19983_v12 = vld [vmem:[#allocation83_spill] sm:$0xff] }
 0x6ff   :  { %v16668_v28 = vpop.f32.mrf.mxu1 }
 0x700   :  { %6095 = vmatpush.msra.mxu3 %v16349_v42  ;;  %6046 = vmatpush.msra.mxu2 %v19963_v35  ;;  %v4419_v23 = vpop.f32.mrf.mxu0  ;;  %v19967_v42 = vand.u32 4294901760, %v16465_v33 }
 0x702   :  { %6097 = vmatpush.msra.mxu3 %v16352_v7  ;;  %6050 = vmatpush.msra.mxu2 %v19964_v51  ;;  %v19984_v51 = vld [vmem:[#allocation82_spill] sm:$0xff] }
 0x703   :  { %4482 = vmatmul.f32.gmra.mxu0 %v19965_v32  ;;  %5012 = vmatmul.f32.gmra.mxu1 %v19958_v46 }
 0x704   :  { %6054 = vmatpush.msra.mxu2 %v19966_v36  ;;  %6099 = vmatpush.msra.mxu3 %v16358_v0  ;;  %v19971_v0 = vand.u32 4294901760, %v16500_v47 }
 0x706   :  { %6058 = vmatpush.msra.mxu2 %v19967_v42  ;;  %6101 = vmatpush.msra.mxu3 %v16368_v37  ;;  %v19972_v37 = vand.u32 4294901760, %v16512_v21  ;;  %v19980_v21 = vld [vmem:[#allocation80_spill] sm:$0xff]  ;;  %v19986_v42 = vld [vmem:[#allocation79_spill] sm:$0xff] }
 0x707   :  { %v4953_v14 = vpop.f32.mrf.mxu1 }
 0x708   :  { %6062 = vmatpush.msra.mxu2 %v19968_v19  ;;  %6103 = vmatpush.msra.mxu3 %v16381_v13  ;;  %v4423_v7 = vpop.f32.mrf.mxu0  ;;  %v19973_v13 = vand.u32 4294901760, %v16524_v15  ;;  %v19978_v15 = vld [vmem:[#allocation78_spill] sm:$0xff]  ;;  %v4420_v19 = vadd.f32 %v4419_v23, %v19986_v42 }
 0x70a   :  { %6066 = vmatpush.msra.mxu2 %v19969_v52  ;;  %6105 = vmatpush.msra.mxu3 %v16398_v6 }
 0x70b   :  { %4486 = vmatmul.f32.gmra.mxu0 %v19970_v43  ;;  %5016 = vmatmul.f32.gmra.mxu1 %v19965_v32 }
 0x70c   :  { %6070 = vmatpush.msra.mxu2 %v19971_v0  ;;  %6107 = vmatpush.msra.mxu3 %v16414_v50  ;;  %v19976_v50 = vand.u32 4294901760, %v16544_v10  ;;  %v19982_v10 = vld [vmem:[#allocation85_spill] sm:$0xff] }
 0x70d   :  { %v19987_v0 = vld [vmem:[#allocation89_spill] sm:$0xff] }
 0x70e   :  { %6074 = vmatpush.msra.mxu2 %v19972_v37  ;;  %6109 = vmatpush.msra.mxu3 %v16431_v22  ;;  %v16706_v22 = vpop.f32.mrf.mxu2 }
 0x70f   :  { %v4957_v33 = vpop.f32.mrf.mxu1  ;;  %19977 = vst [vmem:[#allocation23_spill] sm:$0xff] %v16706_v22 }
 0x710   :  { %6078 = vmatpush.msra.mxu2 %v19973_v13  ;;  %6111 = vmatpush.msra.mxu3 %v16447_v29  ;;  %v4427_v6 = vpop.f32.mrf.mxu0 }
 0x711   :  { %v4428_v25 = vadd.f32 %v4427_v6, %v19983_v12 }
 0x712   :  { %6082 = vmatpush.msra.mxu2 %v19974_v26  ;;  %6113 = vmatpush.msra.mxu3 %v16460_v34  ;;  %v16715_v34 = vpop.f32.mrf.mxu3  ;;  %v19988_v26 = vld [vmem:[#allocation77_spill] sm:$0xff] }
 0x713   :  { %4490 = vmatmul.f32.gmra.mxu0 %v19975_v45  ;;  %5020 = vmatmul.f32.gmra.mxu1 %v19970_v43  ;;  %19979 = vst [vmem:[#allocation14_spill] sm:$0xff] %v16715_v34  ;;  %v4416_v6 = vadd.f32 %v16645_v58, %v19988_v26  ;;  %v19990_v58 = vld [vmem:[#allocation73_spill] sm:$0xff] }
 0x714   :  { %6086 = vmatpush.msra.mxu2 %v19976_v50  ;;  %6115 = vmatpush.msra.mxu3 %v16475_v31 }
 0x715   :  { %6088 = vmatmul.f32.vlgmr.msra.gmra.mxu2 %v16541_v18 }
 0x716   :  { %6117 = vmatpush.msra.mxu3 %v16485_v39  ;;  %v19981_v39 = vld [vmem:[#allocation87_spill] sm:$0xff] }
 0x717   :  { %v4961_v29 = vpop.f32.mrf.mxu1 }
 0x718   :  { %6119 = vmatpush.msra.mxu3 %v16497_v48  ;;  %v4431_v30 = vpop.f32.mrf.mxu0  ;;  %v4962_v36 = vadd.f32 %v4961_v29, %v4428_v25  ;;  %v19992_v25 = vld [vmem:[#allocation69_spill] sm:$0xff] }
 0x71a   :  { %6121 = vmatpush.msra.mxu3 %v16507_v61  ;;  %v4432_v61 = vadd.f32 %v4431_v30, %v19982_v10  ;;  %v5340_v50 = vmax.f32 %v4962_v36, 0.0  ;;  %v19991_v10 = vld [vmem:[#allocation71_spill] sm:$0xff] }
 0x71b   :  { %4494 = vmatmul.f32.gmra.mxu0 %v19978_v15  ;;  %5024 = vmatmul.f32.gmra.mxu1 %v19975_v45  ;;  %v4954_v45 = vadd.f32 %v4953_v14, %v4420_v19  ;;  %v4408_v14 = vadd.f32 %v16612_v4, %v19990_v58  ;;  %v19994_v19 = vld [vmem:[#allocation67_spill] sm:$0xff] }
 0x71c   :  { %6123 = vmatpush.msra.mxu3 %v16521_v49 }
 0x71d   :  { %6125 = vmatmul.f32.vlgmr.msra.gmra.mxu3 %v16541_v18  ;;  %v19985_v18 = vld [vmem:[#allocation81_spill] sm:$0xff] }
 0x71e   :  { %v4424_v32 = vadd.f32 %v4423_v7, %v19985_v18  ;;  %v4950_v7 = vadd.f32 %v16668_v28, %v4416_v6  ;;  %v4404_v28 = vadd.f32 %v16599_v53, %v19991_v10 }
 0x71f   :  { %v4965_v47 = vpop.f32.mrf.mxu1 }
 0x720   :  { %v4435_v31 = vpop.f32.mrf.mxu0  ;;  %v4966_v49 = vadd.f32 %v4965_v47, %v4432_v61  ;;  %v4958_v52 = vadd.f32 %v4957_v33, %v4424_v32 }
 0x721   :  { %v4436_v48 = vadd.f32 %v4435_v31, %v19981_v39  ;;  %v5338_v39 = vmax.f32 %v4954_v45, 0.0 }
 0x722   :  { %v5341_v43 = vmax.f32 %v4966_v49, 0.0  ;;  %v5339_v29 = vmax.f32 %v4958_v52, 0.0  ;;  %v4400_v49 = vadd.f32 %v16587_v59, %v19992_v25  ;;  %v19993_v59 = vld [vmem:[#allocation65_spill] sm:$0xff]  ;;  %v4396_v52 = vadd.f32 %v16556_v41, %v19994_v19 }
 0x723   :  { %4498 = vmatmul.f32.gmra.mxu0 %v19980_v21  ;;  %5028 = vmatmul.f32.gmra.mxu1 %v19978_v15  ;;  %v4392_v42 = vadd.f32 %v16514_v20, %v19993_v59  ;;  %v19995_v20 = vld [vmem:[#allocation86_spill] sm:$0xff] }
 0x724   :  { %v16735_v47 = vand.u32 4294901760, %v5341_v43  ;;  %v16788_v6 = vadd.f32 %v16584_v44, %v4396_v52 }
 0x726   :  { %v16754_v12 = vsub.f32 %v5341_v43, %v16735_v47  ;;  %v4934_v43 = vadd.f32 %v16601_v8, %v4400_v49 }
 0x727   :  { %v4969_v46 = vpop.f32.mrf.mxu1 }
 0x728   :  { %v4439_v63 = vpop.f32.mrf.mxu0  ;;  %v4970_v5 = vadd.f32 %v4969_v46, %v4436_v48  ;;  %v16744_v48 = vand.u32 4294901760, %v5340_v50  ;;  %v5337_v46 = vmax.f32 %v4950_v7, 0.0  ;;  %v19553_v26 = vand.u32 4294901760, %v16754_v12 }
 0x729   :  { %v4440_v37 = vadd.f32 %v4439_v63, %v19987_v0  ;;  %v4942_v63 = vadd.f32 %v16626_v62, %v4408_v14  ;;  %v5336_v62 = vmax.f32 %v16648_v1, 0.0  ;;  %v20013_v22 = vand.u32 4294901760, %v16754_v12 }
 0x72a   :  { %v5342_v35 = vmax.f32 %v4970_v5, 0.0  ;;  %v16751_v5 = vand.u32 4294901760, %v5339_v29  ;;  %v16768_v18 = vsub.f32 %v5340_v50, %v16744_v48  ;;  %v16781_v0 = vand.u32 4294901760, %v5337_v46 }
 0x72b   :  { %4502 = vmatmul.f32.gmra.mxu0 %v19984_v51  ;;  %5032 = vmatmul.f32.gmra.mxu1 %v19980_v21  ;;  %v19989_v21 = vld [vmem:[#allocation84_spill] sm:$0xff]  ;;  %v5335_v1 = vmax.f32 %v4942_v63, 0.0  ;;  %v16798_v50 = vand.u32 4294901760, %v5336_v62  ;;  %v5332_v63 = vmax.f32 %v16788_v6, 0.0 }
 0x72c   :  { %v16728_v13 = vand.u32 4294901760, %v5342_v35  ;;  %v19552_v44 = vand.u32 4294901760, %v16768_v18  ;;  %v16811_v14 = vsub.f32 %v5337_v46, %v16781_v0 }
 0x72d   :  { %v16808_v58 = vand.u32 4294901760, %v5335_v1  ;;  %v16825_v46 = vsub.f32 %v5336_v62, %v16798_v50 }
 0x72e   :  { %v16738_v23 = vsub.f32 %v5342_v35, %v16728_v13  ;;  %v4938_v35 = vadd.f32 %v16614_v2, %v4404_v28  ;;  %v19997_v28 = vld [vmem:[#allocation61_spill] sm:$0xff] }
 0x72f   :  { %v4973_v15 = vpop.f32.mrf.mxu1  ;;  %v16842_v6 = vsub.f32 %v5335_v1, %v16808_v58 }
 0x730   :  { %v16732_v30 = vpop.f32.mrf.mxu0  ;;  %v4974_v31 = vadd.f32 %v4973_v15, %v4440_v37  ;;  %v19555_v53 = vand.u32 4294901760, %v16738_v23  ;;  %v16784_v37 = vsub.f32 %v5339_v29, %v16751_v5  ;;  %v5334_v45 = vmax.f32 %v4938_v35, 0.0 }
 0x731   :  { %v4926_v29 = vadd.f32 %v16554_v38, %v4392_v42  ;;  %v19998_v42 = vld [vmem:[#allocation59_spill] sm:$0xff] }
 0x732   :  { %v5343_v33 = vmax.f32 %v4974_v31, 0.0  ;;  %v6179_v8 = vsub.f32 %v16738_v23, %v19555_v53  ;;  %v19996_v31 = vld [vmem:[#allocation63_spill] sm:$0xff]  ;;  %v19550_v10 = vand.u32 4294901760, %v16784_v37  ;;  %v16822_v49 = vand.u32 4294901760, %v5334_v45 }
 0x733   :  { %4506 = vmatmul.f32.gmra.mxu0 %v19989_v21  ;;  %5036 = vmatmul.f32.gmra.mxu1 %v19984_v51  ;;  %v16765_v51 = vand.u32 4294901760, %v5338_v39  ;;  %v4388_v7 = vadd.f32 %v16467_v27, %v19996_v31  ;;  %v4384_v27 = vadd.f32 %v16404_v17, %v19997_v28  ;;  %v6191_v17 = vsub.f32 %v16768_v18, %v19552_v44 }
 0x734   :  { %v16748_v61 = vand.u32 4294901760, %v5343_v33  ;;  %v6180_v25 = vand.u32 4294901760, %v6179_v8  ;;  %v4380_v19 = vadd.f32 %v16354_v40, %v19998_v42  ;;  %v6197_v8 = vsub.f32 %v16784_v37, %v19550_v10  ;;  %v20000_v10 = vld [vmem:[#allocation90_spill] sm:$0xff] }
 0x735   :  { %v16801_v15 = vsub.f32 %v5338_v39, %v16765_v51  ;;  %v6185_v39 = vsub.f32 %v16754_v12, %v19553_v26  ;;  %v4922_v38 = vadd.f32 %v16509_v54, %v4388_v7  ;;  %v4918_v52 = vadd.f32 %v16462_v3, %v4384_v27 }
 0x736   :  { %v16759_v4 = vsub.f32 %v5343_v33, %v16748_v61  ;;  %6130 = vmatpush.msrb.mxu2 %v16748_v61  ;;  %v5333_v33 = vmax.f32 %v4934_v43, 0.0  ;;  %v5331_v43 = vmax.f32 %v4926_v29, 0.0  ;;  %v19547_v31 = vand.u32 4294901760, %v16811_v14  ;;  %v19999_v29 = vld [vmem:[#allocation88_spill] sm:$0xff] }
 0x737   :  { %v16772_v36 = vpop.f32.mrf.mxu1  ;;  %v19548_v54 = vand.u32 4294901760, %v16801_v15  ;;  %v4914_v40 = vadd.f32 %v16396_v55, %v4380_v19  ;;  %v5330_v7 = vmax.f32 %v4922_v38, 0.0  ;;  %v16850_v3 = vand.u32 4294901760, %v5332_v63 }
 0x738   :  { %v16770_v32 = vpop.f32.mrf.mxu0  ;;  %v19557_v2 = vand.u32 4294901760, %v16759_v4  ;;  %6132 = vmatpush.msrb.mxu2 %v16728_v13  ;;  %v16839_v62 = vand.u32 4294901760, %v5333_v33  ;;  %v16855_v1 = vsub.f32 %v5334_v45, %v16822_v49  ;;  %v19549_v55 = vand.u32 4294901760, %v16825_v46 }
 0x739   :  { %v5329_v28 = vmax.f32 %v4918_v52, 0.0  ;;  %v16862_v27 = vand.u32 4294901760, %v5331_v43  ;;  %v6209_v45 = vsub.f32 %v16811_v14, %v19547_v31  ;;  %v16872_v42 = vand.u32 4294901760, %v5330_v7 }
 0x73a   :  { %v6173_v41 = vsub.f32 %v16759_v4, %v19557_v2  ;;  %6134 = vmatpush.msrb.mxu2 %v16735_v47  ;;  %v16865_v38 = vsub.f32 %v5333_v33, %v16839_v62  ;;  %v16875_v19 = vsub.f32 %v5332_v63, %v16850_v3 }
 0x73b   :  { %4510 = vmatmul.f32.gmra.mxu0 %v19995_v20  ;;  %5040 = vmatmul.f32.gmra.mxu1 %v19989_v21  ;;  %v16889_v31 = vsub.f32 %v5331_v43, %v16862_v27  ;;  %v6210_v63 = vand.u32 4294901760, %v6209_v45  ;;  %v5433_v43 = vld.sshfl [vmem:[#allocation1 + $0x10] sm:$0xff pattern:$0x73625140] }
 0x73c   :  { %v6174_v21 = vand.u32 4294901760, %v6173_v41  ;;  %6136 = vmatpush.msrb.mxu2 %v16744_v48  ;;  %v6186_v41 = vand.u32 4294901760, %v6185_v39  ;;  %v6203_v39 = vsub.f32 %v16801_v15, %v19548_v54  ;;  %v16908_v44 = vand.u32 4294901760, %v5433_v43 }
 0x73e   :  { %6175 = vmatpush.msrb.mxu3 %v6174_v21  ;;  %6138 = vmatpush.msrb.mxu2 %v16751_v5  ;;  %v6192_v21 = vand.u32 4294901760, %v6191_v17  ;;  %v5328_v17 = vmax.f32 %v4914_v40, 0.0  ;;  %v16886_v40 = vand.u32 4294901760, %v5329_v28  ;;  %v16919_v26 = vsub.f32 %v5433_v43, %v16908_v44 }
 0x740   :  { %v16828_v35 = vpop.f32.mrf.mxu0  ;;  %v16830_v59 = vpop.f32.mrf.mxu1  ;;  %6181 = vmatpush.msrb.mxu3 %v6180_v25  ;;  %6140 = vmatpush.msrb.mxu2 %v16765_v51  ;;  %v19551_v25 = vand.u32 4294901760, %v16842_v6  ;;  %v16896_v54 = vand.u32 4294901760, %v5328_v17  ;;  %v19560_v43 = vand.u32 4294901760, %v16919_v26 }
 0x742   :  { %6142 = vmatpush.msrb.mxu2 %v16781_v0  ;;  %6187 = vmatpush.msrb.mxu3 %v6186_v41  ;;  %v6204_v41 = vand.u32 4294901760, %v6203_v39  ;;  %v19556_v39 = vand.u32 4294901760, %v16865_v38 }
 0x743   :  { %4514 = vmatmul.f32.gmra.mxu0 %v19999_v29  ;;  %5044 = vmatmul.f32.gmra.mxu1 %v19995_v20  ;;  %v6198_v20 = vand.u32 4294901760, %v6197_v8  ;;  %v6215_v8 = vsub.f32 %v16825_v46, %v19549_v55  ;;  %v16899_v55 = vsub.f32 %v5330_v7, %v16872_v42  ;;  %v16911_v7 = vsub.f32 %v5329_v28, %v16886_v40 }
 0x744   :  { %6144 = vmatpush.msrb.mxu2 %v16798_v50  ;;  %6193 = vmatpush.msrb.mxu3 %v6192_v21  ;;  %v19554_v21 = vand.u32 4294901760, %v16855_v1 }
 0x745   :  { %v6216_v45 = vand.u32 4294901760, %v6215_v8  ;;  %v19559_v8 = vand.u32 4294901760, %v16889_v31 }
 0x746   :  { %6146 = vmatpush.msrb.mxu2 %v16808_v58  ;;  %6199 = vmatpush.msrb.mxu3 %v6198_v20  ;;  %v6221_v20 = vsub.f32 %v16842_v6, %v19551_v25  ;;  %v19558_v25 = vand.u32 4294901760, %v16875_v19 }
 0x748   :  { %v16878_v33 = vpop.f32.mrf.mxu0  ;;  %v16880_v52 = vpop.f32.mrf.mxu1  ;;  %6148 = vmatpush.msrb.mxu2 %v16822_v49  ;;  %6205 = vmatpush.msrb.mxu3 %v6204_v41  ;;  %v6227_v41 = vsub.f32 %v16855_v1, %v19554_v21  ;;  %v16922_v21 = vsub.f32 %v5328_v17, %v16896_v54 }
 0x74a   :  { %6150 = vmatpush.msrb.mxu2 %v16839_v62  ;;  %6211 = vmatpush.msrb.mxu3 %v6210_v63  ;;  %v6233_v63 = vsub.f32 %v16865_v38, %v19556_v39  ;;  %v19561_v39 = vand.u32 4294901760, %v16899_v55 }
 0x74b   :  { %4518 = vmatmul.f32.gmra.mxu0 %v20000_v10  ;;  %5048 = vmatmul.f32.gmra.mxu1 %v19999_v29  ;;  %v6222_v29 = vand.u32 4294901760, %v6221_v20  ;;  %v6228_v20 = vand.u32 4294901760, %v6227_v41  ;;  %v6164_v41 = vsub.f32 %v16919_v26, %v19560_v43  ;;  %v20002_v43 = vand.u32 4294901760, %v16911_v7 }
 0x74c   :  { %6152 = vmatpush.msrb.mxu2 %v16850_v3  ;;  %6217 = vmatpush.msrb.mxu3 %v6216_v45  ;;  %v6239_v45 = vsub.f32 %v16875_v19, %v19558_v25  ;;  %v6234_v17 = vand.u32 4294901760, %v6233_v63  ;;  %v6251_v63 = vsub.f32 %v16899_v55, %v19561_v39 }
 0x74d   :  { %v6257_v34 = vsub.f32 %v16911_v7, %v20002_v43  ;;  %v20004_v43 = vld [vmem:[#allocation94_spill] sm:$0xff] }
 0x74e   :  { %6154 = vmatpush.msrb.mxu2 %v16862_v27  ;;  %6223 = vmatpush.msrb.mxu3 %v6222_v29  ;;  %v6245_v29 = vsub.f32 %v16889_v31, %v19559_v8  ;;  %v6240_v25 = vand.u32 4294901760, %v6239_v45  ;;  %v6165_v8 = vand.u32 4294901760, %v6164_v41  ;;  %v6252_v39 = vand.u32 4294901760, %v6251_v63 }
 0x750   :  { %v16925_v28 = vpop.f32.mrf.mxu0  ;;  %v16927_v53 = vpop.f32.mrf.mxu1  ;;  %6156 = vmatpush.msrb.mxu2 %v16872_v42  ;;  %6229 = vmatpush.msrb.mxu3 %v6228_v20  ;;  %v19562_v20 = vand.u32 4294901760, %v16922_v21  ;;  %v6246_v2 = vand.u32 4294901760, %v6245_v29 }
 0x751   :  { %v16968_v29 = vpop.f32.mrf.mxu3 }
 0x752   :  { %6158 = vmatpush.msrb.mxu2 %v16886_v40  ;;  %6235 = vmatpush.msrb.mxu3 %v6234_v17  ;;  %v6263_v41 = vsub.f32 %v16922_v21, %v19562_v20  ;;  %20005 = vst [vmem:[#allocation12_spill] sm:$0xff] %v16968_v29  ;;  %v20010_v29 = vand.u32 4294901760, %v16759_v4 }
 0x753   :  { %4522 = vmatmul.f32.gmra.mxu0 %v20001_v11  ;;  %5052 = vmatmul.f32.gmra.mxu1 %v20000_v10  ;;  %v16953_v10 = vpop.f32.mrf.mxu2 }
 0x754   :  { %6160 = vmatpush.msrb.mxu2 %v16896_v54  ;;  %6241 = vmatpush.msrb.mxu3 %v6240_v25  ;;  %20003 = vst [vmem:[#allocation13_spill] sm:$0xff] %v16953_v10  ;;  %v6258_v25 = vand.u32 4294901760, %v6257_v34 }
 0x755   :  { %6166 = vmatmul.f32.vlgmr.msrb.gmra.mxu2 %v6165_v8 }
 0x756   :  { %6273 = vmatpush.msra.mxu2 %v16759_v4  ;;  %6247 = vmatpush.msrb.mxu3 %v6246_v2  ;;  %v6264_v2 = vand.u32 4294901760, %v6263_v41  ;;  %v20007_v41 = vld [vmem:[#allocation98_spill] sm:$0xff] }
 0x757   :  { %v20014_v4 = vld [vmem:[#allocation102_spill] sm:$0xff] }
 0x758   :  { %v16956_v45 = vpop.f32.mrf.mxu0  ;;  %v16958_v17 = vpop.f32.mrf.mxu1  ;;  %6276 = vmatpush.msra.mxu2 %v16738_v23  ;;  %6253 = vmatpush.msrb.mxu3 %v6252_v39 }
 0x75a   :  { %6279 = vmatpush.msra.mxu2 %v16754_v12  ;;  %6259 = vmatpush.msrb.mxu3 %v6258_v25 }
 0x75b   :  { %4526 = vmatmul.f32.gmra.mxu0 %v20004_v43  ;;  %5056 = vmatmul.f32.gmra.mxu1 %v20001_v11  ;;  %v20006_v11 = vld [vmem:[#allocation96_spill] sm:$0xff] }
 0x75c   :  { %6282 = vmatpush.msra.mxu2 %v16768_v18  ;;  %6265 = vmatpush.msrb.mxu3 %v6264_v2  ;;  %v20008_v2 = vld [vmem:[#allocation107_spill] sm:$0xff] }
 0x75d   :  { %6267 = vmatmul.f32.vlgmr.msrb.gmra.mxu3 %v16908_v44 }
 0x75e   :  { %6285 = vmatpush.msra.mxu2 %v16784_v37  ;;  %6326 = vmatpush.msra.mxu3 %v16748_v61 }
 0x760   :  { %v16972_v8 = vpop.f32.mrf.mxu0  ;;  %v16974_v34 = vpop.f32.mrf.mxu1  ;;  %6288 = vmatpush.msra.mxu2 %v16801_v15  ;;  %6328 = vmatpush.msra.mxu3 %v16728_v13 }
 0x762   :  { %6291 = vmatpush.msra.mxu2 %v16811_v14  ;;  %6330 = vmatpush.msra.mxu3 %v16735_v47 }
 0x763   :  { %4530 = vmatmul.f32.gmra.mxu0 %v20006_v11  ;;  %5060 = vmatmul.f32.gmra.mxu1 %v20004_v43 }
 0x764   :  { %6294 = vmatpush.msra.mxu2 %v16825_v46  ;;  %6332 = vmatpush.msra.mxu3 %v16744_v48 }
 0x766   :  { %6297 = vmatpush.msra.mxu2 %v16842_v6  ;;  %6334 = vmatpush.msra.mxu3 %v16751_v5 }
 0x768   :  { %v16987_v39 = vpop.f32.mrf.mxu0  ;;  %v16989_v63 = vpop.f32.mrf.mxu1  ;;  %6300 = vmatpush.msra.mxu2 %v16855_v1  ;;  %6336 = vmatpush.msra.mxu3 %v16765_v51 }
 0x76a   :  { %6303 = vmatpush.msra.mxu2 %v16865_v38  ;;  %6338 = vmatpush.msra.mxu3 %v16781_v0 }
 0x76b   :  { %4534 = vmatmul.f32.gmra.mxu0 %v20007_v41  ;;  %5064 = vmatmul.f32.gmra.mxu1 %v20006_v11  ;;  %v20009_v11 = vld [vmem:[#allocation100_spill] sm:$0xff] }
 0x76c   :  { %6306 = vmatpush.msra.mxu2 %v16875_v19  ;;  %6340 = vmatpush.msra.mxu3 %v16798_v50 }
 0x76e   :  { %6309 = vmatpush.msra.mxu2 %v16889_v31  ;;  %6342 = vmatpush.msra.mxu3 %v16808_v58 }
 0x770   :  { %v4475_v25 = vpop.f32.mrf.mxu0  ;;  %v17001_v43 = vpop.f32.mrf.mxu1  ;;  %6312 = vmatpush.msra.mxu2 %v16899_v55  ;;  %6344 = vmatpush.msra.mxu3 %v16822_v49 }
 0x771   :  { %v4476_v20 = vadd.f32 %v4475_v25, %v20008_v2  ;;  %v17014_v25 = vpop.f32.mrf.mxu2  ;;  %v20012_v2 = vand.u32 4294901760, %v16738_v23  ;;  %v17034_v23 = vpop.f32.mrf.mxu3 }
 0x772   :  { %6315 = vmatpush.msra.mxu2 %v16911_v7  ;;  %6346 = vmatpush.msra.mxu3 %v16839_v62  ;;  %20011 = vst [vmem:[#allocation24_spill] sm:$0xff] %v17014_v25 }
 0x773   :  { %4538 = vmatmul.f32.gmra.mxu0 %v20009_v11  ;;  %5068 = vmatmul.f32.gmra.mxu1 %v20007_v41  ;;  %20016 = vst [vmem:[#allocation26_spill] sm:$0xff] %v17034_v23  ;;  %v20057_v23 = vld [vmem:[#allocation124_spill] sm:$0xff] }
 0x774   :  { %6318 = vmatpush.msra.mxu2 %v16922_v21  ;;  %6348 = vmatpush.msra.mxu3 %v16850_v3 }
 0x775   :  { %6321 = vmatmul.f32.vlgmr.msra.gmra.mxu2 %v16919_v26 }
 0x776   :  { %6367 = vmatpush.msrb.mxu2 %v20010_v29  ;;  %6350 = vmatpush.msra.mxu3 %v16862_v27  ;;  %v20015_v29 = vand.u32 4294901760, %v16768_v18  ;;  %v20019_v18 = vand.u32 4294901760, %v16801_v15 }
 0x778   :  { %6371 = vmatpush.msrb.mxu2 %v20012_v2  ;;  %v17020_v16 = vpop.f32.mrf.mxu0  ;;  %v5009_v10 = vpop.f32.mrf.mxu1  ;;  %6352 = vmatpush.msra.mxu3 %v16872_v42 }
 0x779   :  { %v17022_v41 = vadd.f32 %v5009_v10, %v4476_v20  ;;  %v20017_v20 = vand.u32 4294901760, %v16784_v37  ;;  %v20022_v37 = vand.u32 4294901760, %v16825_v46  ;;  %v20026_v46 = vld [vmem:[#allocation106_spill] sm:$0xff] }
 0x77a   :  { %6375 = vmatpush.msrb.mxu2 %v20013_v22  ;;  %6354 = vmatpush.msra.mxu3 %v16886_v40  ;;  %v20018_v22 = vand.u32 4294901760, %v16919_v26 }
 0x77b   :  { %4542 = vmatmul.f32.gmra.mxu0 %v20014_v4  ;;  %5072 = vmatmul.f32.gmra.mxu1 %v20009_v11  ;;  %v20021_v11 = vld [vmem:[#allocation104_spill] sm:$0xff] }
 0x77c   :  { %6379 = vmatpush.msrb.mxu2 %v20015_v29  ;;  %6356 = vmatpush.msra.mxu3 %v16896_v54  ;;  %v20039_v29 = vld [vmem:[#allocation115_spill] sm:$0xff] }
 0x77d   :  { %6360 = vmatmul.f32.vlgmr.msra.gmra.mxu3 %v20018_v22 }
 0x77e   :  { %6434 = vmatpush.msrb.mxu3 %v16748_v61  ;;  %6383 = vmatpush.msrb.mxu2 %v20017_v20  ;;  %v20020_v61 = vand.u32 4294901760, %v16811_v14  ;;  %v20025_v14 = vand.u32 4294901760, %v16865_v38  ;;  %v20031_v38 = vld [vmem:[#allocation108_spill] sm:$0xff] }
 0x780   :  { %6436 = vmatpush.msrb.mxu3 %v16728_v13  ;;  %v4483_v12 = vpop.f32.mrf.mxu0  ;;  %v17041_v10 = vpop.f32.mrf.mxu1  ;;  %6387 = vmatpush.msrb.mxu2 %v20019_v18  ;;  %v20023_v13 = vand.u32 4294901760, %v16842_v6  ;;  %v20040_v18 = vld [vmem:[#allocation113_spill] sm:$0xff] }
 0x782   :  { %6438 = vmatpush.msrb.mxu3 %v16735_v47  ;;  %6391 = vmatpush.msrb.mxu2 %v20020_v61  ;;  %v20024_v47 = vand.u32 4294901760, %v16855_v1  ;;  %v20029_v1 = vand.u32 4294901760, %v16899_v55  ;;  %v17090_v55 = vpop.f32.mrf.mxu3 }
 0x783   :  { %4546 = vmatmul.f32.gmra.mxu0 %v20021_v11  ;;  %5076 = vmatmul.f32.gmra.mxu1 %v20014_v4  ;;  %20035 = vst [vmem:[#allocation30_spill] sm:$0xff] %v17090_v55 }
 0x784   :  { %6395 = vmatpush.msrb.mxu2 %v20022_v37  ;;  %6440 = vmatpush.msrb.mxu3 %v16744_v48  ;;  %v20027_v48 = vand.u32 4294901760, %v16875_v19  ;;  %v20041_v37 = vld [vmem:[#allocation114_spill] sm:$0xff] }
 0x786   :  { %6399 = vmatpush.msrb.mxu2 %v20023_v13  ;;  %6442 = vmatpush.msrb.mxu3 %v16751_v5  ;;  %v20028_v5 = vand.u32 4294901760, %v16889_v31  ;;  %v20042_v13 = vld [vmem:[#allocation111_spill] sm:$0xff] }
 0x788   :  { %v4487_v26 = vpop.f32.mrf.mxu0  ;;  %v5017_v15 = vpop.f32.mrf.mxu1  ;;  %6403 = vmatpush.msrb.mxu2 %v20024_v47  ;;  %6444 = vmatpush.msrb.mxu3 %v16765_v51  ;;  %v4484_v47 = vadd.f32 %v4483_v12, %v20042_v13 }
 0x789   :  { %v4488_v61 = vadd.f32 %v4487_v26, %v20040_v18 }
 0x78a   :  { %6407 = vmatpush.msrb.mxu2 %v20025_v14  ;;  %6446 = vmatpush.msrb.mxu3 %v16781_v0  ;;  %v20030_v0 = vand.u32 4294901760, %v16911_v7  ;;  %v20038_v7 = vld [vmem:[#allocation119_spill] sm:$0xff] }
 0x78b   :  { %4550 = vmatmul.f32.gmra.mxu0 %v20026_v46  ;;  %5080 = vmatmul.f32.gmra.mxu1 %v20021_v11 }
 0x78c   :  { %6411 = vmatpush.msrb.mxu2 %v20027_v48  ;;  %6448 = vmatpush.msrb.mxu3 %v16798_v50  ;;  %v20032_v50 = vand.u32 4294901760, %v16922_v21  ;;  %v20036_v21 = vld [vmem:[#allocation112_spill] sm:$0xff]  ;;  %v20043_v48 = vld [vmem:[#allocation109_spill] sm:$0xff] }
 0x78e   :  { %6415 = vmatpush.msrb.mxu2 %v20028_v5  ;;  %6450 = vmatpush.msrb.mxu3 %v16808_v58  ;;  %v17081_v58 = vpop.f32.mrf.mxu2  ;;  %v4480_v5 = vadd.f32 %v17020_v16, %v20043_v48  ;;  %v20050_v48 = vld [vmem:[#allocation97_spill] sm:$0xff] }
 0x78f   :  { %20033 = vst [vmem:[#allocation28_spill] sm:$0xff] %v17081_v58 }
 0x790   :  { %v4491_v51 = vpop.f32.mrf.mxu0  ;;  %v5021_v6 = vpop.f32.mrf.mxu1  ;;  %6419 = vmatpush.msrb.mxu2 %v20029_v1  ;;  %6452 = vmatpush.msrb.mxu3 %v16822_v49  ;;  %v5018_v1 = vadd.f32 %v5017_v15, %v4484_v47 }
 0x791   :  { %v4492_v20 = vadd.f32 %v4491_v51, %v20039_v29  ;;  %v5022_v14 = vadd.f32 %v5021_v6, %v4488_v61  ;;  %v20044_v51 = vld [vmem:[#allocation121_spill] sm:$0xff] }
 0x792   :  { %6423 = vmatpush.msrb.mxu2 %v20030_v0  ;;  %6454 = vmatpush.msrb.mxu3 %v16839_v62  ;;  %v20034_v62 = vld [vmem:[#allocation110_spill] sm:$0xff]  ;;  %v20045_v6 = vld [vmem:[#allocation105_spill] sm:$0xff] }
 0x793   :  { %4554 = vmatmul.f32.gmra.mxu0 %v20031_v38  ;;  %5084 = vmatmul.f32.gmra.mxu1 %v20026_v46 }
 0x794   :  { %6427 = vmatpush.msrb.mxu2 %v20032_v50  ;;  %6456 = vmatpush.msrb.mxu3 %v16850_v3 }
 0x795   :  { %6429 = vmatmul.f32.vlgmr.msrb.gmra.mxu2 %v16908_v44 }
 0x796   :  { %6458 = vmatpush.msrb.mxu3 %v16862_v27  ;;  %v20037_v27 = vld [vmem:[#allocation117_spill] sm:$0xff] }
 0x798   :  { %v4495_v49 = vpop.f32.mrf.mxu0  ;;  %v5025_v31 = vpop.f32.mrf.mxu1  ;;  %6460 = vmatpush.msrb.mxu3 %v16872_v42 }
 0x799   :  { %v4496_v42 = vadd.f32 %v4495_v49, %v20037_v27  ;;  %v5026_v11 = vadd.f32 %v5025_v31, %v4492_v20  ;;  %v5014_v31 = vadd.f32 %v17041_v10, %v4480_v5  ;;  %v20047_v10 = vld [vmem:[#allocation116_spill] sm:$0xff]  ;;  %v20048_v20 = vld [vmem:[#allocation101_spill] sm:$0xff] }
 0x79a   :  { %6462 = vmatpush.msrb.mxu3 %v16886_v40 }
 0x79b   :  { %4558 = vmatmul.f32.gmra.mxu0 %v20034_v62  ;;  %5088 = vmatmul.f32.gmra.mxu1 %v20031_v38  ;;  %v5356_v0 = vmax.f32 %v5026_v11, 0.0 }
 0x79c   :  { %6464 = vmatpush.msrb.mxu3 %v16896_v54 }
 0x79d   :  { %6466 = vmatmul.f32.vlgmr.msrb.gmra.mxu3 %v16908_v44  ;;  %v17114_v16 = vand.u32 4294901760, %v5356_v0 }
 0x79f   :  { %v17142_v18 = vsub.f32 %v5356_v0, %v17114_v16 }
 0x7a0   :  { %v4499_v3 = vpop.f32.mrf.mxu0  ;;  %v5029_v19 = vpop.f32.mrf.mxu1 }
 0x7a1   :  { %v4500_v40 = vadd.f32 %v4499_v3, %v20038_v7  ;;  %v5030_v22 = vadd.f32 %v5029_v19, %v4496_v42  ;;  %v4472_v19 = vadd.f32 %v16987_v39, %v20045_v6  ;;  %v20046_v42 = vld [vmem:[#allocation103_spill] sm:$0xff] }
 0x7a2   :  { %v4468_v7 = vadd.f32 %v16972_v8, %v20046_v42  ;;  %v20053_v42 = vld [vmem:[#allocation93_spill] sm:$0xff] }
 0x7a3   :  { %4562 = vmatmul.f32.gmra.mxu0 %v20036_v21  ;;  %5092 = vmatmul.f32.gmra.mxu1 %v20034_v62  ;;  %v5357_v46 = vmax.f32 %v5030_v22, 0.0  ;;  %v5355_v62 = vmax.f32 %v5022_v14, 0.0  ;;  %v4464_v22 = vadd.f32 %v16956_v45, %v20048_v20 }
 0x7a4   :  { %v17136_v8 = vadd.f32 %v16989_v63, %v4468_v7  ;;  %v4448_v7 = vadd.f32 %v16770_v32, %v20053_v42  ;;  %v20054_v32 = vld [vmem:[#allocation91_spill] sm:$0xff] }
 0x7a5   :  { %v17110_v3 = vand.u32 4294901760, %v5357_v46  ;;  %v17152_v63 = vadd.f32 %v16974_v34, %v4464_v22  ;;  %v4456_v34 = vadd.f32 %v16878_v33, %v20050_v48 }
 0x7a7   :  { %v17129_v39 = vsub.f32 %v5357_v46, %v17110_v3 }
 0x7a8   :  { %v4503_v2 = vpop.f32.mrf.mxu0  ;;  %v5033_v4 = vpop.f32.mrf.mxu1 }
 0x7a9   :  { %v5034_v54 = vadd.f32 %v5033_v4, %v4500_v40  ;;  %v4504_v38 = vadd.f32 %v4503_v2, %v20044_v51  ;;  %v17122_v40 = vadd.f32 %v17001_v43, %v4472_v19  ;;  %v5353_v2 = vmax.f32 %v5014_v31, 0.0  ;;  %v20052_v19 = vld [vmem:[#allocation118_spill] sm:$0xff] }
 0x7aa   :  { %v17126_v4 = vand.u32 4294901760, %v5355_v62  ;;  %v5352_v43 = vmax.f32 %v17022_v41, 0.0  ;;  %v20068_v25 = vand.u32 4294901760, %v17129_v39 }
 0x7ab   :  { %v5358_v44 = vmax.f32 %v5034_v54, 0.0  ;;  %4566 = vmatmul.f32.gmra.mxu0 %v20041_v37  ;;  %5096 = vmatmul.f32.gmra.mxu1 %v20036_v21  ;;  %v5354_v21 = vmax.f32 %v5018_v1, 0.0  ;;  %v5351_v41 = vmax.f32 %v17122_v40, 0.0  ;;  %v17159_v47 = vand.u32 4294901760, %v5353_v2 }
 0x7ac   :  { %v17162_v14 = vsub.f32 %v5355_v62, %v17126_v4  ;;  %v5350_v1 = vmax.f32 %v17136_v8, 0.0  ;;  %v17173_v0 = vand.u32 4294901760, %v5352_v43  ;;  %v17189_v62 = vadd.f32 %v16927_v53, %v4456_v34 }
 0x7ad   :  { %v17105_v50 = vand.u32 4294901760, %v5358_v44  ;;  %v17139_v54 = vand.u32 4294901760, %v5354_v21  ;;  %v17192_v6 = vand.u32 4294901760, %v5351_v41 }
 0x7ae   :  { %v19565_v53 = vand.u32 4294901760, %v17162_v14 }
 0x7af   :  { %v17117_v15 = vsub.f32 %v5358_v44, %v17105_v50  ;;  %v20049_v44 = vld [vmem:[#allocation99_spill] sm:$0xff]  ;;  %v17176_v51 = vsub.f32 %v5354_v21, %v17139_v54  ;;  %v17197_v21 = vsub.f32 %v5353_v2, %v17159_v47  ;;  %v17211_v2 = vsub.f32 %v5352_v43, %v17173_v0 }
 0x7b0   :  { %v17107_v26 = vpop.f32.mrf.mxu0  ;;  %v5037_v49 = vpop.f32.mrf.mxu1  ;;  %v4460_v45 = vadd.f32 %v16925_v28, %v20049_v44  ;;  %v19568_v28 = vand.u32 4294901760, %v17129_v39 }
 0x7b1   :  { %v5038_v12 = vadd.f32 %v5037_v49, %v4504_v38  ;;  %v19570_v11 = vand.u32 4294901760, %v17117_v15  ;;  %v20051_v49 = vld [vmem:[#allocation95_spill] sm:$0xff]  ;;  %v19563_v44 = vand.u32 4294901760, %v17176_v51  ;;  %v19566_v42 = vand.u32 4294901760, %v17211_v2 }
 0x7b2   :  { %v17170_v5 = vadd.f32 %v16958_v17, %v4460_v45  ;;  %v19567_v17 = vand.u32 4294901760, %v17142_v18  ;;  %v4452_v31 = vadd.f32 %v16828_v35, %v20051_v49  ;;  %v6526_v35 = vsub.f32 %v17129_v39, %v19568_v28 }
 0x7b3   :  { %v5359_v27 = vmax.f32 %v5038_v12, 0.0  ;;  %4570 = vmatmul.f32.gmra.mxu0 %v20047_v10  ;;  %5100 = vmatmul.f32.gmra.mxu1 %v20041_v37  ;;  %v6520_v33 = vsub.f32 %v17117_v15, %v19570_v11  ;;  %v5349_v12 = vmax.f32 %v17152_v63, 0.0  ;;  %v4982_v45 = vadd.f32 %v16830_v59, %v4448_v7 }
 0x7b4   :  { %v4986_v40 = vadd.f32 %v16880_v52, %v4452_v31  ;;  %v5348_v20 = vmax.f32 %v17170_v5, 0.0  ;;  %v6532_v8 = vsub.f32 %v17142_v18, %v19567_v17  ;;  %v4444_v52 = vadd.f32 %v16732_v30, %v20054_v32  ;;  %v5434_v5 = vld.sshfl [vmem:[#allocation1 + $0x18] sm:$0xff pattern:$0x73625140] }
 0x7b5   :  { %v17131_v29 = vand.u32 4294901760, %v5359_v27  ;;  %v6521_v22 = vand.u32 4294901760, %v6520_v33  ;;  %v5347_v63 = vmax.f32 %v17189_v62, 0.0  ;;  %v17222_v48 = vand.u32 4294901760, %v5349_v12 }
 0x7b6   :  { %v6527_v33 = vand.u32 4294901760, %v6526_v35  ;;  %v6538_v30 = vsub.f32 %v17162_v14, %v19565_v53  ;;  %v19564_v59 = vand.u32 4294901760, %v17197_v21  ;;  %v4978_v49 = vadd.f32 %v16772_v36, %v4444_v52 }
 0x7b7   :  { %v17145_v61 = vsub.f32 %v5359_v27, %v17131_v29  ;;  %6471 = vmatpush.msra.mxu2 %v17131_v29  ;;  %v5346_v31 = vmax.f32 %v4986_v40, 0.0  ;;  %v17237_v62 = vand.u32 4294901760, %v5348_v20  ;;  %v6544_v35 = vsub.f32 %v17176_v51, %v19563_v44  ;;  %v20055_v40 = vld [vmem:[#allocation120_spill] sm:$0xff] }
 0x7b8   :  { %v17155_v37 = vpop.f32.mrf.mxu0  ;;  %v17157_v13 = vpop.f32.mrf.mxu1  ;;  %v17247_v7 = vand.u32 4294901760, %v5434_v5  ;;  %v17249_v36 = vand.u32 4294901760, %v5347_v63  ;;  %v6550_v32 = vsub.f32 %v17197_v21, %v19564_v59 }
 0x7b9   :  { %v19573_v46 = vand.u32 4294901760, %v17145_v61  ;;  %6473 = vmatpush.msra.mxu2 %v17105_v50  ;;  %v17264_v44 = vsub.f32 %v5348_v20, %v17237_v62 }
 0x7ba   :  { %v17281_v20 = vsub.f32 %v5347_v63, %v17249_v36 }
 0x7bb   :  { %6475 = vmatpush.msra.mxu2 %v17110_v3  ;;  %v6514_v38 = vsub.f32 %v17145_v61, %v19573_v46  ;;  %4574 = vmatmul.f32.gmra.mxu0 %v20052_v19 }
 0x7bc   :  { %5104 = vmatmul.f32.gmra.mxu1 %v20047_v10  ;;  %v17208_v10 = vand.u32 4294901760, %v5350_v1 }
 0x7bd   :  { %6477 = vmatpush.msra.mxu2 %v17114_v16  ;;  %v6515_v27 = vand.u32 4294901760, %v6514_v38  ;;  %v17229_v38 = vsub.f32 %v5351_v41, %v17192_v6  ;;  %v6533_v41 = vand.u32 4294901760, %v6532_v8  ;;  %v6539_v8 = vand.u32 4294901760, %v6538_v30 }
 0x7bf   :  { %6479 = vmatpush.msra.mxu2 %v17126_v4  ;;  %6516 = vmatpush.msra.mxu3 %v6515_v27  ;;  %v17240_v27 = vsub.f32 %v5350_v1, %v17208_v10  ;;  %v17254_v1 = vsub.f32 %v5349_v12, %v17222_v48  ;;  %v19569_v52 = vand.u32 4294901760, %v17229_v38  ;;  %v6545_v12 = vand.u32 4294901760, %v6544_v35 }
 0x7c0   :  { %v17224_v43 = vpop.f32.mrf.mxu0  ;;  %v17226_v34 = vpop.f32.mrf.mxu1  ;;  %v6551_v35 = vand.u32 4294901760, %v6550_v32  ;;  %v19574_v32 = vand.u32 4294901760, %v17264_v44 }
 0x7c1   :  { %6481 = vmatpush.msra.mxu2 %v17139_v54  ;;  %6522 = vmatpush.msra.mxu3 %v6521_v22  ;;  %v5345_v22 = vmax.f32 %v4982_v45, 0.0  ;;  %v5344_v45 = vmax.f32 %v4978_v49, 0.0  ;;  %v19571_v30 = vand.u32 4294901760, %v17240_v27 }
 0x7c3   :  { %6483 = vmatpush.msra.mxu2 %v17159_v47  ;;  %6528 = vmatpush.msra.mxu3 %v6527_v33  ;;  %v17261_v33 = vand.u32 4294901760, %v5346_v31  ;;  %v17274_v59 = vand.u32 4294901760, %v5345_v22 }
 0x7c4   :  { %4578 = vmatmul.f32.gmra.mxu0 %v20055_v40  ;;  %5108 = vmatmul.f32.gmra.mxu1 %v20052_v19  ;;  %v6556_v19 = vsub.f32 %v17211_v2, %v19566_v42  ;;  %v17288_v42 = vand.u32 4294901760, %v5344_v45 }
 0x7c5   :  { %6485 = vmatpush.msra.mxu2 %v17173_v0  ;;  %6534 = vmatpush.msra.mxu3 %v6533_v41  ;;  %v17272_v41 = vsub.f32 %v5434_v5, %v17247_v7  ;;  %v19572_v5 = vand.u32 4294901760, %v17254_v1  ;;  %v17291_v17 = vsub.f32 %v5346_v31, %v17261_v33  ;;  %v17302_v11 = vsub.f32 %v5345_v22, %v17274_v59 }
 0x7c6   :  { %v6557_v63 = vand.u32 4294901760, %v6556_v19  ;;  %v6580_v22 = vsub.f32 %v17264_v44, %v19574_v32 }
 0x7c7   :  { %6487 = vmatpush.msra.mxu2 %v17192_v6  ;;  %6540 = vmatpush.msra.mxu3 %v6539_v8  ;;  %v6562_v8 = vsub.f32 %v17229_v38, %v19569_v52  ;;  %v19575_v28 = vand.u32 4294901760, %v17272_v41  ;;  %v20056_v52 = vld [vmem:[#allocation122_spill] sm:$0xff]  ;;  %v6574_v19 = vsub.f32 %v17254_v1, %v19572_v5 }
 0x7c8   :  { %v17276_v49 = vpop.f32.mrf.mxu0  ;;  %v17278_v53 = vpop.f32.mrf.mxu1  ;;  %v6581_v32 = vand.u32 4294901760, %v6580_v22 }
 0x7c9   :  { %6489 = vmatpush.msra.mxu2 %v17208_v10  ;;  %6546 = vmatpush.msra.mxu3 %v6545_v12  ;;  %v6568_v12 = vsub.f32 %v17240_v27, %v19571_v30  ;;  %v6563_v31 = vand.u32 4294901760, %v6562_v8  ;;  %v17310_v30 = vsub.f32 %v5344_v45, %v17288_v42  ;;  %v6505_v8 = vsub.f32 %v17272_v41, %v19575_v28  ;;  %v17341_v22 = vpop.f32.mrf.mxu2 }
 0x7ca   :  { %v6575_v45 = vand.u32 4294901760, %v6574_v19  ;;  %20058 = vst [vmem:[#allocation32_spill] sm:$0xff] %v17341_v22 }
 0x7cb   :  { %6491 = vmatpush.msra.mxu2 %v17222_v48  ;;  %6552 = vmatpush.msra.mxu3 %v6551_v35  ;;  %v19579_v35 = vand.u32 4294901760, %v17281_v20  ;;  %v19578_v55 = vand.u32 4294901760, %v17310_v30  ;;  %v6506_v58 = vand.u32 4294901760, %v6505_v8 }
 0x7cc   :  { %4582 = vmatmul.f32.gmra.mxu0 %v20056_v52  ;;  %5112 = vmatmul.f32.gmra.mxu1 %v20055_v40  ;;  %v6569_v40 = vand.u32 4294901760, %v6568_v12 }
 0x7cd   :  { %6493 = vmatpush.msra.mxu2 %v17237_v62  ;;  %6558 = vmatpush.msra.mxu3 %v6557_v63  ;;  %v19577_v63 = vand.u32 4294901760, %v17291_v17  ;;  %v6586_v12 = vsub.f32 %v17281_v20, %v19579_v35  ;;  %v6604_v8 = vsub.f32 %v17310_v30, %v19578_v55  ;;  %v20065_v35 = vand.u32 4294901760, %v17145_v61 }
 0x7cf   :  { %6495 = vmatpush.msra.mxu2 %v17249_v36  ;;  %6564 = vmatpush.msra.mxu3 %v6563_v31  ;;  %v19576_v31 = vand.u32 4294901760, %v17302_v11  ;;  %v6592_v28 = vsub.f32 %v17291_v17, %v19577_v63  ;;  %v6587_v19 = vand.u32 4294901760, %v6586_v12  ;;  %v20059_v63 = vld [vmem:[#allocation126_spill] sm:$0xff] }
 0x7d0   :  { %v17320_v5 = vpop.f32.mrf.mxu0  ;;  %v17322_v46 = vpop.f32.mrf.mxu1 }
 0x7d1   :  { %6497 = vmatpush.msra.mxu2 %v17261_v33  ;;  %6570 = vmatpush.msra.mxu3 %v6569_v40  ;;  %v6598_v40 = vsub.f32 %v17302_v11, %v19576_v31  ;;  %v6605_v31 = vand.u32 4294901760, %v6604_v8 }
 0x7d3   :  { %6499 = vmatpush.msra.mxu2 %v17274_v59  ;;  %6576 = vmatpush.msra.mxu3 %v6575_v45  ;;  %v6593_v45 = vand.u32 4294901760, %v6592_v28  ;;  %v6599_v12 = vand.u32 4294901760, %v6598_v40 }
 0x7d4   :  { %4586 = vmatmul.f32.gmra.mxu0 %v20057_v23  ;;  %5116 = vmatmul.f32.gmra.mxu1 %v20056_v52 }
 0x7d5   :  { %6501 = vmatpush.msra.mxu2 %v17288_v42  ;;  %6582 = vmatpush.msra.mxu3 %v6581_v32 }
 0x7d6   :  { %6507 = vmatmul.f32.vlgmr.msra.gmra.mxu2 %v6506_v58  ;;  %v17356_v58 = vpop.f32.mrf.mxu3 }
 0x7d7   :  { %6614 = vmatpush.msrb.mxu2 %v17145_v61  ;;  %6588 = vmatpush.msra.mxu3 %v6587_v19  ;;  %20060 = vst [vmem:[#allocation34_spill] sm:$0xff] %v17356_v58  ;;  %v17401_v58 = vpop.f32.mrf.mxu2  ;;  %v20069_v61 = vld [vmem:[#allocation134_spill] sm:$0xff] }
 0x7d8   :  { %v17346_v52 = vpop.f32.mrf.mxu0  ;;  %v17349_v32 = vpop.f32.mrf.mxu1  ;;  %20066 = vst [vmem:[#allocation43_spill] sm:$0xff] %v17401_v58 }
 0x7d9   :  { %6617 = vmatpush.msrb.mxu2 %v17117_v15  ;;  %6594 = vmatpush.msra.mxu3 %v6593_v45 }
 0x7db   :  { %6620 = vmatpush.msrb.mxu2 %v17129_v39  ;;  %6600 = vmatpush.msra.mxu3 %v6599_v12  ;;  %v20063_v12 = vld [vmem:[#allocation139_spill] sm:$0xff]  ;;  %v20074_v39 = vand.u32 4294901760, %v17176_v51 }
 0x7dc   :  { %4590 = vmatmul.f32.gmra.mxu0 %v20059_v63  ;;  %5120 = vmatmul.f32.gmra.mxu1 %v20057_v23  ;;  %v20061_v23 = vld [vmem:[#allocation128_spill] sm:$0xff] }
 0x7dd   :  { %6623 = vmatpush.msrb.mxu2 %v17142_v18  ;;  %6606 = vmatpush.msra.mxu3 %v6605_v31 }
 0x7de   :  { %6608 = vmatmul.f32.vlgmr.msra.gmra.mxu3 %v17247_v7 }
 0x7df   :  { %6667 = vmatpush.msrb.mxu3 %v17131_v29  ;;  %6626 = vmatpush.msrb.mxu2 %v17162_v14 }
 0x7e0   :  { %v17361_v28 = vpop.f32.mrf.mxu0  ;;  %v17363_v19 = vpop.f32.mrf.mxu1 }
 0x7e1   :  { %6669 = vmatpush.msrb.mxu3 %v17105_v50  ;;  %6629 = vmatpush.msrb.mxu2 %v17176_v51  ;;  %v20079_v51 = vand.u32 4294901760, %v17240_v27 }
 0x7e3   :  { %6671 = vmatpush.msrb.mxu3 %v17110_v3  ;;  %6632 = vmatpush.msrb.mxu2 %v17197_v21 }
 0x7e4   :  { %4594 = vmatmul.f32.gmra.mxu0 %v20061_v23  ;;  %5124 = vmatmul.f32.gmra.mxu1 %v20059_v63  ;;  %v20062_v63 = vld [vmem:[#allocation130_spill] sm:$0xff] }
 0x7e5   :  { %6635 = vmatpush.msrb.mxu2 %v17211_v2  ;;  %6673 = vmatpush.msrb.mxu3 %v17114_v16 }
 0x7e7   :  { %6638 = vmatpush.msrb.mxu2 %v17229_v38  ;;  %6675 = vmatpush.msrb.mxu3 %v17126_v4 }
 0x7e8   :  { %v17374_v31 = vpop.f32.mrf.mxu0  ;;  %v17376_v40 = vpop.f32.mrf.mxu1 }
 0x7e9   :  { %6641 = vmatpush.msrb.mxu2 %v17240_v27  ;;  %6677 = vmatpush.msrb.mxu3 %v17139_v54  ;;  %v20085_v27 = vand.u32 4294901760, %v17302_v11 }
 0x7eb   :  { %6644 = vmatpush.msrb.mxu2 %v17254_v1  ;;  %6679 = vmatpush.msrb.mxu3 %v17159_v47 }
 0x7ec   :  { %4598 = vmatmul.f32.gmra.mxu0 %v20062_v63  ;;  %5128 = vmatmul.f32.gmra.mxu1 %v20061_v23  ;;  %v20064_v23 = vld [vmem:[#allocation132_spill] sm:$0xff] }
 0x7ed   :  { %6647 = vmatpush.msrb.mxu2 %v17264_v44  ;;  %6681 = vmatpush.msrb.mxu3 %v17173_v0 }
 0x7ef   :  { %6650 = vmatpush.msrb.mxu2 %v17281_v20  ;;  %6683 = vmatpush.msrb.mxu3 %v17192_v6 }
 0x7f0   :  { %v4539_v45 = vpop.f32.mrf.mxu0  ;;  %v17388_v8 = vpop.f32.mrf.mxu1 }
 0x7f1   :  { %6653 = vmatpush.msrb.mxu2 %v17291_v17  ;;  %6685 = vmatpush.msrb.mxu3 %v17208_v10  ;;  %v4540_v55 = vadd.f32 %v4539_v45, %v20063_v12  ;;  %v20067_v45 = vand.u32 4294901760, %v17117_v15  ;;  %v17421_v15 = vpop.f32.mrf.mxu3 }
 0x7f2   :  { %20071 = vst [vmem:[#allocation36_spill] sm:$0xff] %v17421_v15 }
 0x7f3   :  { %6656 = vmatpush.msrb.mxu2 %v17302_v11  ;;  %6687 = vmatpush.msrb.mxu3 %v17222_v48 }
 0x7f4   :  { %4602 = vmatmul.f32.gmra.mxu0 %v20064_v23  ;;  %5132 = vmatmul.f32.gmra.mxu1 %v20062_v63 }
 0x7f5   :  { %6659 = vmatpush.msrb.mxu2 %v17310_v30  ;;  %6689 = vmatpush.msrb.mxu3 %v17237_v62 }
 0x7f6   :  { %6662 = vmatmul.f32.vlgmr.msrb.gmra.mxu2 %v17272_v41 }
 0x7f7   :  { %6708 = vmatpush.msra.mxu2 %v20065_v35  ;;  %6691 = vmatpush.msrb.mxu3 %v17249_v36  ;;  %v20070_v35 = vand.u32 4294901760, %v17142_v18 }
 0x7f8   :  { %v17407_v12 = vpop.f32.mrf.mxu0  ;;  %v5073_v22 = vpop.f32.mrf.mxu1 }
 0x7f9   :  { %6712 = vmatpush.msra.mxu2 %v20067_v45  ;;  %6693 = vmatpush.msrb.mxu3 %v17261_v33  ;;  %v17410_v63 = vadd.f32 %v5073_v22, %v4540_v55  ;;  %v20072_v55 = vand.u32 4294901760, %v17162_v14  ;;  %v20077_v14 = vand.u32 4294901760, %v17211_v2  ;;  %v20081_v2 = vld [vmem:[#allocation138_spill] sm:$0xff] }
 0x7fb   :  { %6716 = vmatpush.msra.mxu2 %v20068_v25  ;;  %6695 = vmatpush.msrb.mxu3 %v17274_v59  ;;  %v20073_v25 = vand.u32 4294901760, %v17272_v41  ;;  %v20080_v41 = vand.u32 4294901760, %v17254_v1 }
 0x7fc   :  { %4606 = vmatmul.f32.gmra.mxu0 %v20069_v61  ;;  %5136 = vmatmul.f32.gmra.mxu1 %v20064_v23  ;;  %v20076_v23 = vld [vmem:[#allocation136_spill] sm:$0xff] }
 0x7fd   :  { %6720 = vmatpush.msra.mxu2 %v20070_v35  ;;  %6697 = vmatpush.msrb.mxu3 %v17288_v42 }
 0x7fe   :  { %6701 = vmatmul.f32.vlgmr.msrb.gmra.mxu3 %v20073_v25 }
 0x7ff   :  { %6775 = vmatpush.msra.mxu3 %v17131_v29  ;;  %6724 = vmatpush.msra.mxu2 %v20072_v55  ;;  %v20075_v29 = vand.u32 4294901760, %v17197_v21  ;;  %v20094_v55 = vld [vmem:[#allocation147_spill] sm:$0xff] }
 0x800   :  { %v4547_v22 = vpop.f32.mrf.mxu0  ;;  %v17430_v18 = vpop.f32.mrf.mxu1 }
 0x801   :  { %6777 = vmatpush.msra.mxu3 %v17105_v50  ;;  %6728 = vmatpush.msra.mxu2 %v20074_v39  ;;  %v20078_v50 = vand.u32 4294901760, %v17229_v38 }
 0x803   :  { %6779 = vmatpush.msra.mxu3 %v17110_v3  ;;  %6732 = vmatpush.msra.mxu2 %v20075_v29  ;;  %v20095_v29 = vld [vmem:[#allocation146_spill] sm:$0xff] }
 0x804   :  { %4610 = vmatmul.f32.gmra.mxu0 %v20076_v23  ;;  %5140 = vmatmul.f32.gmra.mxu1 %v20069_v61 }
 0x805   :  { %6736 = vmatpush.msra.mxu2 %v20077_v14  ;;  %6781 = vmatpush.msra.mxu3 %v17114_v16  ;;  %v20082_v16 = vand.u32 4294901760, %v17264_v44  ;;  %v20086_v44 = vld [vmem:[#allocation140_spill] sm:$0xff] }
 0x807   :  { %6740 = vmatpush.msra.mxu2 %v20078_v50  ;;  %6783 = vmatpush.msra.mxu3 %v17126_v4  ;;  %v20083_v4 = vand.u32 4294901760, %v17281_v20  ;;  %v20093_v20 = vld [vmem:[#allocation149_spill] sm:$0xff] }
 0x808   :  { %v4551_v3 = vpop.f32.mrf.mxu0  ;;  %v5081_v21 = vpop.f32.mrf.mxu1 }
 0x809   :  { %6744 = vmatpush.msra.mxu2 %v20079_v51  ;;  %6785 = vmatpush.msra.mxu3 %v17139_v54  ;;  %v20084_v54 = vand.u32 4294901760, %v17291_v17  ;;  %v17468_v17 = vpop.f32.mrf.mxu2  ;;  %v20097_v51 = vld [vmem:[#allocation143_spill] sm:$0xff] }
 0x80a   :  { %20088 = vst [vmem:[#allocation38_spill] sm:$0xff] %v17468_v17 }
 0x80b   :  { %6748 = vmatpush.msra.mxu2 %v20080_v41  ;;  %6787 = vmatpush.msra.mxu3 %v17159_v47  ;;  %v4548_v41 = vadd.f32 %v4547_v22, %v20097_v51  ;;  %v20105_v51 = vld [vmem:[#allocation131_spill] sm:$0xff] }
 0x80c   :  { %4614 = vmatmul.f32.gmra.mxu0 %v20081_v2  ;;  %5144 = vmatmul.f32.gmra.mxu1 %v20076_v23  ;;  %v20096_v23 = vld [vmem:[#allocation145_spill] sm:$0xff] }
 0x80d   :  { %6752 = vmatpush.msra.mxu2 %v20082_v16  ;;  %6789 = vmatpush.msra.mxu3 %v17173_v0  ;;  %v20087_v0 = vand.u32 4294901760, %v17310_v30  ;;  %v20091_v30 = vld [vmem:[#allocation144_spill] sm:$0xff]  ;;  %v4552_v14 = vadd.f32 %v4551_v3, %v20096_v23 }
 0x80f   :  { %6756 = vmatpush.msra.mxu2 %v20083_v4  ;;  %6791 = vmatpush.msra.mxu3 %v17192_v6  ;;  %v20098_v4 = vld [vmem:[#allocation153_spill] sm:$0xff] }
 0x810   :  { %v4555_v47 = vpop.f32.mrf.mxu0  ;;  %v5085_v38 = vpop.f32.mrf.mxu1 }
 0x811   :  { %6760 = vmatpush.msra.mxu2 %v20084_v54  ;;  %6793 = vmatpush.msra.mxu3 %v17208_v10  ;;  %v20089_v10 = vld [vmem:[#allocation142_spill] sm:$0xff] }
 0x813   :  { %6764 = vmatpush.msra.mxu2 %v20085_v27  ;;  %6795 = vmatpush.msra.mxu3 %v17222_v48  ;;  %v17477_v48 = vpop.f32.mrf.mxu3 }
 0x814   :  { %4618 = vmatmul.f32.gmra.mxu0 %v20086_v44  ;;  %5148 = vmatmul.f32.gmra.mxu1 %v20081_v2  ;;  %20090 = vst [vmem:[#allocation40_spill] sm:$0xff] %v17477_v48  ;;  %v5086_v2 = vadd.f32 %v5085_v38, %v4552_v14  ;;  %v20112_v48 = vld [vmem:[#allocation156_spill] sm:$0xff] }
 0x815   :  { %6768 = vmatpush.msra.mxu2 %v20087_v0  ;;  %6797 = vmatpush.msra.mxu3 %v17237_v62  ;;  %v5082_v0 = vadd.f32 %v5081_v21, %v4548_v41  ;;  %v4524_v41 = vadd.f32 %v17320_v5, %v20105_v51 }
 0x816   :  { %6770 = vmatmul.f32.vlgmr.msra.gmra.mxu2 %v17247_v7 }
 0x817   :  { %6799 = vmatpush.msra.mxu3 %v17249_v36  ;;  %v20092_v36 = vld [vmem:[#allocation151_spill] sm:$0xff] }
 0x818   :  { %v4559_v11 = vpop.f32.mrf.mxu0  ;;  %v5089_v6 = vpop.f32.mrf.mxu1 }
 0x819   :  { %6801 = vmatpush.msra.mxu3 %v17261_v33  ;;  %v4560_v45 = vadd.f32 %v4559_v11, %v20093_v20  ;;  %v20102_v20 = vld [vmem:[#allocation135_spill] sm:$0xff] }
 0x81b   :  { %6803 = vmatpush.msra.mxu3 %v17274_v59  ;;  %v5425_v59 = vld [vmem:[%s19323_s1 + $0x8] sm:$0xff] }
 0x81c   :  { %4622 = vmatmul.f32.gmra.mxu0 %v20089_v10  ;;  %5152 = vmatmul.f32.gmra.mxu1 %v20086_v44  ;;  %5430 = vst [vmem:[#allocation1 + $0x20] ss:$4 sm:$0xff] %v5425_v59  ;;  %v20099_v44 = vld [vmem:[#allocation141_spill] sm:$0xff]  ;;  %v20100_v59 = vld [vmem:[#allocation148_spill] sm:$0xff] }
 0x81d   :  { %6805 = vmatpush.msra.mxu3 %v17288_v42 }
 0x81e   :  { %6807 = vmatmul.f32.vlgmr.msra.gmra.mxu3 %v17247_v7  ;;  %v4556_v7 = vadd.f32 %v4555_v47, %v20094_v55  ;;  %v4544_v47 = vadd.f32 %v17407_v12, %v20099_v44  ;;  %v20101_v12 = vld [vmem:[#allocation137_spill] sm:$0xff] }
 0x81f   :  { %v4536_v21 = vadd.f32 %v17374_v31, %v20101_v12 }
 0x820   :  { %v4563_v62 = vpop.f32.mrf.mxu0  ;;  %v5093_v1 = vpop.f32.mrf.mxu1  ;;  %v5090_v50 = vadd.f32 %v5089_v6, %v4556_v7  ;;  %v5078_v3 = vadd.f32 %v17430_v18, %v4544_v47  ;;  %v5371_v6 = vmax.f32 %v5086_v2, 0.0  ;;  %v4532_v18 = vadd.f32 %v17361_v28, %v20102_v20  ;;  %v20103_v7 = vld [vmem:[#allocation133_spill] sm:$0xff]  ;;  %v20106_v47 = vld [vmem:[#allocation150_spill] sm:$0xff] }
 0x821   :  { %v4564_v33 = vadd.f32 %v4563_v62, %v20092_v36  ;;  %v5094_v25 = vadd.f32 %v5093_v1, %v4560_v45  ;;  %v5370_v36 = vmax.f32 %v5082_v0, 0.0 }
 0x822   :  { %v5372_v11 = vmax.f32 %v5090_v50, 0.0  ;;  %v17524_v31 = vadd.f32 %v17376_v40, %v4532_v18  ;;  %v20104_v40 = vld [vmem:[#allocation129_spill] sm:$0xff] }
 0x823   :  { %v5373_v16 = vmax.f32 %v5094_v25, 0.0  ;;  %v4528_v25 = vadd.f32 %v17346_v52, %v20103_v7  ;;  %v4520_v50 = vadd.f32 %v17276_v49, %v20104_v40  ;;  %v17557_v49 = vadd.f32 %v17349_v32, %v4524_v41 }
 0x824   :  { %4626 = vmatmul.f32.gmra.mxu0 %v20091_v30  ;;  %5156 = vmatmul.f32.gmra.mxu1 %v20089_v10  ;;  %v5366_v5 = vmax.f32 %v17524_v31, 0.0 }
 0x825   :  { %v17546_v2 = vadd.f32 %v17363_v19, %v4528_v25 }
 0x827   :  { %v5365_v12 = vmax.f32 %v17546_v2, 0.0 }
 0x828   :  { %v4567_v42 = vpop.f32.mrf.mxu0  ;;  %v5097_v61 = vpop.f32.mrf.mxu1 }
 0x829   :  { %v5098_v35 = vadd.f32 %v5097_v61, %v4564_v33  ;;  %v4568_v54 = vadd.f32 %v4567_v42, %v20098_v4  ;;  %v17509_v33 = vand.u32 4294901760, %v5372_v11  ;;  %v5070_v42 = vadd.f32 %v17388_v8, %v4536_v21 }
 0x82a   :  { %v5369_v61 = vmax.f32 %v5078_v3, 0.0  ;;  %v5368_v8 = vmax.f32 %v17410_v63, 0.0  ;;  %v17613_v2 = vand.u32 4294901760, %v5365_v12 }
 0x82b   :  { %v5374_v39 = vmax.f32 %v5098_v35, 0.0  ;;  %v17516_v35 = vand.u32 4294901760, %v5371_v6  ;;  %v17535_v23 = vsub.f32 %v5372_v11, %v17509_v33  ;;  %v20107_v11 = vld [vmem:[#allocation125_spill] sm:$0xff] }
 0x82c   :  { %4630 = vmatmul.f32.gmra.mxu0 %v20095_v29  ;;  %5160 = vmatmul.f32.gmra.mxu1 %v20091_v30  ;;  %v17500_v30 = vand.u32 4294901760, %v5373_v16  ;;  %v17550_v4 = vand.u32 4294901760, %v5369_v61 }
 0x82d   :  { %v17493_v27 = vand.u32 4294901760, %v5374_v39  ;;  %v19584_v3 = vand.u32 4294901760, %v17535_v23 }
 0x82e   :  { %v17519_v55 = vsub.f32 %v5373_v16, %v17500_v30  ;;  %v5367_v16 = vmax.f32 %v5070_v42, 0.0  ;;  %v17595_v42 = vand.u32 4294901760, %v5366_v5 }
 0x82f   :  { %v17503_v22 = vsub.f32 %v5374_v39, %v17493_v27  ;;  %v6873_v40 = vsub.f32 %v17535_v23, %v19584_v3 }
 0x830   :  { %v17497_v10 = vpop.f32.mrf.mxu0  ;;  %v5101_v62 = vpop.f32.mrf.mxu1  ;;  %v19585_v44 = vand.u32 4294901760, %v17519_v55  ;;  %v17583_v20 = vand.u32 4294901760, %v5367_v16  ;;  %v20122_v58 = vand.u32 4294901760, %v17519_v55 }
 0x831   :  { %v5102_v1 = vadd.f32 %v5101_v62, %v4568_v54  ;;  %v19587_v28 = vand.u32 4294901760, %v17503_v22  ;;  %v17553_v54 = vsub.f32 %v5371_v6, %v17516_v35  ;;  %v4512_v62 = vadd.f32 %v17155_v37, %v20107_v11  ;;  %v20108_v6 = vld [vmem:[#allocation127_spill] sm:$0xff] }
 0x832   :  { %v17586_v37 = vsub.f32 %v5369_v61, %v17550_v4 }
 0x833   :  { %v5375_v38 = vmax.f32 %v5102_v1, 0.0  ;;  %v6861_v0 = vsub.f32 %v17503_v22, %v19587_v28  ;;  %v17570_v1 = vand.u32 4294901760, %v5368_v8  ;;  %v19582_v18 = vand.u32 4294901760, %v17553_v54 }
 0x834   :  { %4634 = vmatmul.f32.gmra.mxu0 %v20100_v59  ;;  %5164 = vmatmul.f32.gmra.mxu1 %v20095_v29  ;;  %v17532_v29 = vand.u32 4294901760, %v5370_v36  ;;  %v5046_v41 = vadd.f32 %v17226_v34, %v4512_v62 }
 0x835   :  { %v17513_v45 = vand.u32 4294901760, %v5375_v38  ;;  %v6862_v7 = vand.u32 4294901760, %v6861_v0  ;;  %v17598_v25 = vsub.f32 %v5368_v8, %v17570_v1  ;;  %v6879_v11 = vsub.f32 %v17553_v54, %v19582_v18 }
 0x836   :  { %v17573_v32 = vsub.f32 %v5370_v36, %v17532_v29  ;;  %v6867_v36 = vsub.f32 %v17519_v55, %v19585_v44  ;;  %v20111_v44 = vld [vmem:[#allocation154_spill] sm:$0xff] }
 0x837   :  { %v17527_v39 = vsub.f32 %v5375_v38, %v17513_v45  ;;  %6812 = vmatpush.msrb.mxu2 %v17513_v45  ;;  %v4516_v38 = vadd.f32 %v17224_v43, %v20108_v6 }
 0x838   :  { %v17537_v14 = vpop.f32.mrf.mxu0  ;;  %v6868_v0 = vand.u32 4294901760, %v6867_v36 }
 0x839   :  { %v17539_v52 = vpop.f32.mrf.mxu1  ;;  %v19589_v63 = vand.u32 4294901760, %v17527_v39  ;;  %6814 = vmatpush.msrb.mxu2 %v17493_v27  ;;  %v5050_v43 = vadd.f32 %v17278_v53, %v4516_v38  ;;  %v19580_v53 = vand.u32 4294901760, %v17573_v32  ;;  %v17627_v38 = vsub.f32 %v5366_v5, %v17595_v42 }
 0x83a   :  { %v17641_v5 = vsub.f32 %v5365_v12, %v17613_v2 }
 0x83b   :  { %v6855_v19 = vsub.f32 %v17527_v39, %v19589_v63  ;;  %6816 = vmatpush.msrb.mxu2 %v17500_v30  ;;  %v5362_v62 = vmax.f32 %v5050_v43, 0.0  ;;  %v5361_v43 = vmax.f32 %v5046_v41, 0.0 }
 0x83c   :  { %4638 = vmatmul.f32.gmra.mxu0 %v20106_v47  ;;  %5168 = vmatmul.f32.gmra.mxu1 %v20100_v59  ;;  %v17580_v59 = vadd.f32 %v17322_v46, %v4520_v50  ;;  %v5364_v46 = vmax.f32 %v17557_v49, 0.0  ;;  %v20109_v50 = vld [vmem:[#allocation123_spill] sm:$0xff]  ;;  %v5435_v49 = vld.sshfl [vmem:[#allocation1 + $0x20] sm:$0xff pattern:$0x73625140] }
 0x83d   :  { %v6856_v21 = vand.u32 4294901760, %v6855_v19  ;;  %6818 = vmatpush.msrb.mxu2 %v17509_v33  ;;  %v4508_v51 = vadd.f32 %v17107_v26, %v20109_v50  ;;  %v17616_v19 = vsub.f32 %v5367_v16, %v17583_v20  ;;  %v19581_v26 = vand.u32 4294901760, %v17586_v37 }
 0x83e   :  { %v5363_v8 = vmax.f32 %v17580_v59, 0.0  ;;  %v17624_v6 = vand.u32 4294901760, %v5364_v46  ;;  %v20110_v59 = vld [vmem:[#allocation152_spill] sm:$0xff]  ;;  %v6874_v16 = vand.u32 4294901760, %v6873_v40  ;;  %v17636_v36 = vand.u32 4294901760, %v5435_v49 }
 0x83f   :  { %6857 = vmatpush.msrb.mxu3 %v6856_v21  ;;  %6820 = vmatpush.msrb.mxu2 %v17516_v35  ;;  %v5042_v34 = vadd.f32 %v17157_v13, %v4508_v51  ;;  %v6885_v21 = vsub.f32 %v17573_v32, %v19580_v53  ;;  %v19583_v13 = vand.u32 4294901760, %v17598_v25  ;;  %v6891_v40 = vsub.f32 %v17586_v37, %v19581_v26 }
 0x840   :  { %v19586_v50 = vand.u32 4294901760, %v17616_v19  ;;  %v17651_v41 = vsub.f32 %v5364_v46, %v17624_v6  ;;  %v19588_v26 = vand.u32 4294901760, %v17627_v38  ;;  %v17665_v18 = vand.u32 4294901760, %v5361_v43 }
 0x841   :  { %v17601_v61 = vpop.f32.mrf.mxu0  ;;  %v17603_v31 = vpop.f32.mrf.mxu1  ;;  %6863 = vmatpush.msrb.mxu3 %v6862_v7  ;;  %6822 = vmatpush.msrb.mxu2 %v17532_v29  ;;  %v17638_v7 = vand.u32 4294901760, %v5363_v8  ;;  %v5360_v51 = vmax.f32 %v5042_v34, 0.0  ;;  %v17663_v34 = vsub.f32 %v5435_v49, %v17636_v36 }
 0x842   :  { %v17689_v28 = vsub.f32 %v5361_v43, %v17665_v18 }
 0x843   :  { %6824 = vmatpush.msrb.mxu2 %v17550_v4  ;;  %6869 = vmatpush.msrb.mxu3 %v6868_v0  ;;  %v17648_v0 = vand.u32 4294901760, %v5362_v62  ;;  %v17668_v46 = vsub.f32 %v5363_v8, %v17638_v7  ;;  %v17675_v3 = vand.u32 4294901760, %v5360_v51 }
 0x844   :  { %4642 = vmatmul.f32.gmra.mxu0 %v20110_v59  ;;  %5172 = vmatmul.f32.gmra.mxu1 %v20106_v47  ;;  %v6880_v47 = vand.u32 4294901760, %v6879_v11  ;;  %v6886_v11 = vand.u32 4294901760, %v6885_v21  ;;  %v6903_v21 = vsub.f32 %v17616_v19, %v19586_v50  ;;  %v19592_v50 = vand.u32 4294901760, %v17663_v34 }
 0x845   :  { %6826 = vmatpush.msrb.mxu2 %v17570_v1  ;;  %6875 = vmatpush.msrb.mxu3 %v6874_v16  ;;  %v6897_v16 = vsub.f32 %v17598_v25, %v19583_v13  ;;  %v19590_v13 = vand.u32 4294901760, %v17641_v5  ;;  %v17678_v49 = vsub.f32 %v5362_v62, %v17648_v0 }
 0x846   :  { %v6904_v62 = vand.u32 4294901760, %v6903_v21 }
 0x847   :  { %6828 = vmatpush.msrb.mxu2 %v17583_v20  ;;  %6881 = vmatpush.msrb.mxu3 %v6880_v47  ;;  %v6892_v47 = vand.u32 4294901760, %v6891_v40  ;;  %v6898_v8 = vand.u32 4294901760, %v6897_v16  ;;  %v6909_v40 = vsub.f32 %v17627_v38, %v19588_v26  ;;  %v19593_v16 = vand.u32 4294901760, %v17668_v46 }
 0x849   :  { %v17654_v12 = vpop.f32.mrf.mxu0  ;;  %v17656_v53 = vpop.f32.mrf.mxu1  ;;  %6830 = vmatpush.msrb.mxu2 %v17595_v42  ;;  %6887 = vmatpush.msrb.mxu3 %v6886_v11  ;;  %v19591_v11 = vand.u32 4294901760, %v17651_v41  ;;  %v6910_v63 = vand.u32 4294901760, %v6909_v40  ;;  %v19596_v40 = vand.u32 4294901760, %v17689_v28 }
 0x84b   :  { %6832 = vmatpush.msrb.mxu2 %v17613_v2  ;;  %6893 = vmatpush.msrb.mxu3 %v6892_v47  ;;  %v17697_v47 = vsub.f32 %v5360_v51, %v17675_v3  ;;  %v6921_v21 = vsub.f32 %v17651_v41, %v19591_v11  ;;  %v6939_v17 = vsub.f32 %v17689_v28, %v19596_v40 }
 0x84c   :  { %4646 = vmatmul.f32.gmra.mxu0 %v20111_v44  ;;  %5176 = vmatmul.f32.gmra.mxu1 %v20110_v59  ;;  %v6915_v59 = vsub.f32 %v17641_v5, %v19590_v13  ;;  %v6846_v13 = vsub.f32 %v17663_v34, %v19592_v50 }
 0x84d   :  { %6834 = vmatpush.msrb.mxu2 %v17624_v6  ;;  %6899 = vmatpush.msrb.mxu3 %v6898_v8  ;;  %v19594_v8 = vand.u32 4294901760, %v17678_v49  ;;  %v6922_v11 = vand.u32 4294901760, %v6921_v21 }
 0x84e   :  { %v6916_v51 = vand.u32 4294901760, %v6915_v59  ;;  %v6847_v59 = vand.u32 4294901760, %v6846_v13 }
 0x84f   :  { %6836 = vmatpush.msrb.mxu2 %v17638_v7  ;;  %6905 = vmatpush.msrb.mxu3 %v6904_v62  ;;  %v6927_v62 = vsub.f32 %v17668_v46, %v19593_v16  ;;  %v6933_v50 = vsub.f32 %v17678_v49, %v19594_v8 }
 0x851   :  { %v17700_v26 = vpop.f32.mrf.mxu0  ;;  %v17702_v43 = vpop.f32.mrf.mxu1  ;;  %6838 = vmatpush.msrb.mxu2 %v17648_v0  ;;  %6911 = vmatpush.msrb.mxu3 %v6910_v63  ;;  %v19595_v63 = vand.u32 4294901760, %v17697_v47  ;;  %v6928_v16 = vand.u32 4294901760, %v6927_v62  ;;  %v6934_v8 = vand.u32 4294901760, %v6933_v50  ;;  %v20114_v62 = vld [vmem:[#allocation158_spill] sm:$0xff] }
 0x852   :  { %v17742_v50 = vpop.f32.mrf.mxu3 }
 0x853   :  { %6840 = vmatpush.msrb.mxu2 %v17665_v18  ;;  %6917 = vmatpush.msrb.mxu3 %v6916_v51  ;;  %v6945_v13 = vsub.f32 %v17697_v47, %v19595_v63  ;;  %20115 = vst [vmem:[#allocation44_spill] sm:$0xff] %v17742_v50  ;;  %v20118_v63 = vld [vmem:[#allocation171_spill] sm:$0xff]  ;;  %v20120_v50 = vand.u32 4294901760, %v17527_v39 }
 0x854   :  { %4650 = vmatmul.f32.gmra.mxu0 %v20112_v48  ;;  %5180 = vmatmul.f32.gmra.mxu1 %v20111_v44  ;;  %v17727_v44 = vpop.f32.mrf.mxu2 }
 0x855   :  { %6842 = vmatpush.msrb.mxu2 %v17675_v3  ;;  %6923 = vmatpush.msrb.mxu3 %v6922_v11  ;;  %20113 = vst [vmem:[#allocation42_spill] sm:$0xff] %v17727_v44  ;;  %v6940_v11 = vand.u32 4294901760, %v6939_v17 }
 0x856   :  { %6848 = vmatmul.f32.vlgmr.msrb.gmra.mxu2 %v6847_v59 }
 0x857   :  { %6955 = vmatpush.msra.mxu2 %v17527_v39  ;;  %6929 = vmatpush.msrb.mxu3 %v6928_v16  ;;  %v6946_v16 = vand.u32 4294901760, %v6945_v13  ;;  %v20123_v39 = vld [vmem:[#allocation166_spill] sm:$0xff] }
 0x859   :  { %v17730_v21 = vpop.f32.mrf.mxu0  ;;  %v17732_v51 = vpop.f32.mrf.mxu1  ;;  %6958 = vmatpush.msra.mxu2 %v17503_v22  ;;  %6935 = vmatpush.msrb.mxu3 %v6934_v8 }
 0x85b   :  { %6961 = vmatpush.msra.mxu2 %v17519_v55  ;;  %6941 = vmatpush.msrb.mxu3 %v6940_v11  ;;  %v20117_v11 = vld [vmem:[#allocation162_spill] sm:$0xff] }
 0x85c   :  { %4654 = vmatmul.f32.gmra.mxu0 %v20114_v62  ;;  %5184 = vmatmul.f32.gmra.mxu1 %v20112_v48  ;;  %v20116_v48 = vld [vmem:[#allocation160_spill] sm:$0xff] }
 0x85d   :  { %6964 = vmatpush.msra.mxu2 %v17535_v23  ;;  %6947 = vmatpush.msrb.mxu3 %v6946_v16 }
 0x85e   :  { %6949 = vmatmul.f32.vlgmr.msrb.gmra.mxu3 %v17636_v36 }
 0x85f   :  { %6967 = vmatpush.msra.mxu2 %v17553_v54  ;;  %7008 = vmatpush.msra.mxu3 %v17513_v45 }
 0x861   :  { %v17746_v59 = vpop.f32.mrf.mxu0  ;;  %v17748_v17 = vpop.f32.mrf.mxu1  ;;  %6970 = vmatpush.msra.mxu2 %v17573_v32  ;;  %7010 = vmatpush.msra.mxu3 %v17493_v27 }
 0x863   :  { %6973 = vmatpush.msra.mxu2 %v17586_v37  ;;  %7012 = vmatpush.msra.mxu3 %v17500_v30 }
 0x864   :  { %4658 = vmatmul.f32.gmra.mxu0 %v20116_v48  ;;  %5188 = vmatmul.f32.gmra.mxu1 %v20114_v62 }
 0x865   :  { %6976 = vmatpush.msra.mxu2 %v17598_v25  ;;  %7014 = vmatpush.msra.mxu3 %v17509_v33 }
 0x867   :  { %6979 = vmatpush.msra.mxu2 %v17616_v19  ;;  %7016 = vmatpush.msra.mxu3 %v17516_v35 }
 0x869   :  { %v17761_v8 = vpop.f32.mrf.mxu0  ;;  %v17763_v13 = vpop.f32.mrf.mxu1  ;;  %6982 = vmatpush.msra.mxu2 %v17627_v38  ;;  %7018 = vmatpush.msra.mxu3 %v17532_v29 }
 0x86b   :  { %6985 = vmatpush.msra.mxu2 %v17641_v5  ;;  %7020 = vmatpush.msra.mxu3 %v17550_v4 }
 0x86c   :  { %4662 = vmatmul.f32.gmra.mxu0 %v20117_v11  ;;  %5192 = vmatmul.f32.gmra.mxu1 %v20116_v48  ;;  %v20119_v48 = vld [vmem:[#allocation164_spill] sm:$0xff] }
 0x86d   :  { %6988 = vmatpush.msra.mxu2 %v17651_v41  ;;  %7022 = vmatpush.msra.mxu3 %v17570_v1 }
 0x86f   :  { %6991 = vmatpush.msra.mxu2 %v17668_v46  ;;  %7024 = vmatpush.msra.mxu3 %v17583_v20 }
 0x871   :  { %v4603_v62 = vpop.f32.mrf.mxu0  ;;  %v17775_v16 = vpop.f32.mrf.mxu1  ;;  %6994 = vmatpush.msra.mxu2 %v17678_v49  ;;  %7026 = vmatpush.msra.mxu3 %v17595_v42 }
 0x872   :  { %v4604_v40 = vadd.f32 %v4603_v62, %v20118_v63  ;;  %v17788_v63 = vpop.f32.mrf.mxu2  ;;  %v20121_v62 = vand.u32 4294901760, %v17503_v22  ;;  %v20126_v22 = vand.u32 4294901760, %v17553_v54  ;;  %v20131_v54 = vand.u32 4294901760, %v17598_v25  ;;  %v20135_v25 = vld [vmem:[#allocation170_spill] sm:$0xff] }
 0x873   :  { %6997 = vmatpush.msra.mxu2 %v17689_v28  ;;  %7028 = vmatpush.msra.mxu3 %v17613_v2 }
 0x874   :  { %4666 = vmatmul.f32.gmra.mxu0 %v20119_v48  ;;  %5196 = vmatmul.f32.gmra.mxu1 %v20117_v11 }
 0x875   :  { %7000 = vmatpush.msra.mxu2 %v17697_v47  ;;  %7030 = vmatpush.msra.mxu3 %v17624_v6 }
 0x876   :  { %7003 = vmatmul.f32.vlgmr.msra.gmra.mxu2 %v17663_v34 }
 0x877   :  { %7049 = vmatpush.msrb.mxu2 %v20120_v50  ;;  %7032 = vmatpush.msra.mxu3 %v17638_v7  ;;  %v20124_v50 = vand.u32 4294901760, %v17535_v23  ;;  %v20128_v23 = vand.u32 4294901760, %v17573_v32 }
 0x879   :  { %7053 = vmatpush.msrb.mxu2 %v20121_v62  ;;  %v17794_v44 = vpop.f32.mrf.mxu0  ;;  %v5137_v15 = vpop.f32.mrf.mxu1  ;;  %7034 = vmatpush.msra.mxu3 %v17648_v0 }
 0x87a   :  { %v17796_v11 = vadd.f32 %v5137_v15, %v4604_v40  ;;  %v17808_v15 = vpop.f32.mrf.mxu3 }
 0x87b   :  { %7057 = vmatpush.msrb.mxu2 %v20122_v58  ;;  %7036 = vmatpush.msra.mxu3 %v17665_v18  ;;  %20125 = vst [vmem:[#allocation46_spill] sm:$0xff] %v17808_v15  ;;  %v20127_v58 = vand.u32 4294901760, %v17663_v34  ;;  %v20166_v15 = vld [vmem:[#allocation188_spill] sm:$0xff] }
 0x87c   :  { %4670 = vmatmul.f32.gmra.mxu0 %v20123_v39  ;;  %5200 = vmatmul.f32.gmra.mxu1 %v20119_v48  ;;  %v20130_v48 = vld [vmem:[#allocation168_spill] sm:$0xff] }
 0x87d   :  { %7061 = vmatpush.msrb.mxu2 %v20124_v50  ;;  %7038 = vmatpush.msra.mxu3 %v17675_v3  ;;  %v20148_v50 = vld [vmem:[#allocation179_spill] sm:$0xff] }
 0x87e   :  { %7042 = vmatmul.f32.vlgmr.msra.gmra.mxu3 %v20127_v58 }
 0x87f   :  { %7116 = vmatpush.msrb.mxu3 %v17513_v45  ;;  %7065 = vmatpush.msrb.mxu2 %v20126_v22  ;;  %v20129_v45 = vand.u32 4294901760, %v17586_v37  ;;  %v20134_v37 = vand.u32 4294901760, %v17641_v5  ;;  %v20140_v5 = vld [vmem:[#allocation172_spill] sm:$0xff] }
 0x881   :  { %7118 = vmatpush.msrb.mxu3 %v17493_v27  ;;  %v4611_v55 = vpop.f32.mrf.mxu0  ;;  %v17815_v40 = vpop.f32.mrf.mxu1  ;;  %7069 = vmatpush.msrb.mxu2 %v20128_v23  ;;  %v20132_v27 = vand.u32 4294901760, %v17616_v19  ;;  %v20149_v23 = vld [vmem:[#allocation177_spill] sm:$0xff] }
 0x883   :  { %7120 = vmatpush.msrb.mxu3 %v17500_v30  ;;  %7073 = vmatpush.msrb.mxu2 %v20129_v45  ;;  %v20133_v30 = vand.u32 4294901760, %v17627_v38  ;;  %v20138_v38 = vand.u32 4294901760, %v17678_v49  ;;  %v20145_v49 = vld [vmem:[#allocation176_spill] sm:$0xff] }
 0x884   :  { %4674 = vmatmul.f32.gmra.mxu0 %v20130_v48  ;;  %5204 = vmatmul.f32.gmra.mxu1 %v20123_v39 }
 0x885   :  { %7077 = vmatpush.msrb.mxu2 %v20131_v54  ;;  %7122 = vmatpush.msrb.mxu3 %v17509_v33  ;;  %v20136_v33 = vand.u32 4294901760, %v17651_v41  ;;  %v17864_v41 = vpop.f32.mrf.mxu3  ;;  %v20150_v54 = vld [vmem:[#allocation178_spill] sm:$0xff] }
 0x886   :  { %20144 = vst [vmem:[#allocation53_spill] sm:$0xff] %v17864_v41 }
 0x887   :  { %7081 = vmatpush.msrb.mxu2 %v20132_v27  ;;  %7124 = vmatpush.msrb.mxu3 %v17516_v35  ;;  %v20137_v35 = vand.u32 4294901760, %v17668_v46  ;;  %v20151_v27 = vld [vmem:[#allocation175_spill] sm:$0xff] }
 0x889   :  { %v4615_v32 = vpop.f32.mrf.mxu0  ;;  %v5145_v34 = vpop.f32.mrf.mxu1  ;;  %7085 = vmatpush.msrb.mxu2 %v20133_v30  ;;  %7126 = vmatpush.msrb.mxu3 %v17532_v29  ;;  %v4612_v30 = vadd.f32 %v4611_v55, %v20151_v27 }
 0x88a   :  { %v4616_v45 = vadd.f32 %v4615_v32, %v20149_v23 }
 0x88b   :  { %7089 = vmatpush.msrb.mxu2 %v20134_v37  ;;  %7128 = vmatpush.msrb.mxu3 %v17550_v4  ;;  %v20139_v4 = vand.u32 4294901760, %v17689_v28 }
 0x88c   :  { %4678 = vmatmul.f32.gmra.mxu0 %v20135_v25  ;;  %5208 = vmatmul.f32.gmra.mxu1 %v20130_v48 }
 0x88d   :  { %7093 = vmatpush.msrb.mxu2 %v20136_v33  ;;  %7130 = vmatpush.msrb.mxu3 %v17570_v1  ;;  %v20141_v1 = vand.u32 4294901760, %v17697_v47  ;;  %v20147_v47 = vld [vmem:[#allocation183_spill] sm:$0xff]  ;;  %v20152_v33 = vld [vmem:[#allocation173_spill] sm:$0xff] }
 0x88f   :  { %7097 = vmatpush.msrb.mxu2 %v20137_v35  ;;  %7132 = vmatpush.msrb.mxu3 %v17583_v20  ;;  %v17855_v20 = vpop.f32.mrf.mxu2  ;;  %v4608_v35 = vadd.f32 %v17794_v44, %v20152_v33  ;;  %v20159_v33 = vld [vmem:[#allocation161_spill] sm:$0xff] }
 0x890   :  { %20142 = vst [vmem:[#allocation48_spill] sm:$0xff] %v17855_v20 }
 0x891   :  { %v4619_v29 = vpop.f32.mrf.mxu0  ;;  %v5149_v19 = vpop.f32.mrf.mxu1  ;;  %7101 = vmatpush.msrb.mxu2 %v20138_v38  ;;  %7134 = vmatpush.msrb.mxu3 %v17595_v42  ;;  %v5146_v38 = vadd.f32 %v5145_v34, %v4612_v30 }
 0x892   :  { %v4620_v22 = vadd.f32 %v4619_v29, %v20148_v50  ;;  %v5150_v37 = vadd.f32 %v5149_v19, %v4616_v45  ;;  %v20153_v29 = vld [vmem:[#allocation185_spill] sm:$0xff] }
 0x893   :  { %7105 = vmatpush.msrb.mxu2 %v20139_v4  ;;  %7136 = vmatpush.msrb.mxu3 %v17613_v2  ;;  %v20143_v2 = vld [vmem:[#allocation174_spill] sm:$0xff]  ;;  %v20154_v19 = vld [vmem:[#allocation169_spill] sm:$0xff] }
 0x894   :  { %4682 = vmatmul.f32.gmra.mxu0 %v20140_v5  ;;  %5212 = vmatmul.f32.gmra.mxu1 %v20135_v25 }
 0x895   :  { %7109 = vmatpush.msrb.mxu2 %v20141_v1  ;;  %7138 = vmatpush.msrb.mxu3 %v17624_v6 }
 0x896   :  { %7111 = vmatmul.f32.vlgmr.msrb.gmra.mxu2 %v17636_v36 }
 0x897   :  { %7140 = vmatpush.msrb.mxu3 %v17638_v7  ;;  %v20146_v7 = vld [vmem:[#allocation181_spill] sm:$0xff] }
 0x899   :  { %v4623_v42 = vpop.f32.mrf.mxu0  ;;  %v5153_v28 = vpop.f32.mrf.mxu1  ;;  %7142 = vmatpush.msrb.mxu3 %v17648_v0 }
 0x89a   :  { %v4624_v0 = vadd.f32 %v4623_v42, %v20146_v7  ;;  %v5154_v48 = vadd.f32 %v5153_v28, %v4620_v22  ;;  %v5142_v28 = vadd.f32 %v17815_v40, %v4608_v35  ;;  %v20156_v40 = vld [vmem:[#allocation180_spill] sm:$0xff]  ;;  %v20157_v22 = vld [vmem:[#allocation165_spill] sm:$0xff] }
 0x89b   :  { %7144 = vmatpush.msrb.mxu3 %v17665_v18 }
 0x89c   :  { %4686 = vmatmul.f32.gmra.mxu0 %v20143_v2  ;;  %5216 = vmatmul.f32.gmra.mxu1 %v20140_v5  ;;  %v5388_v4 = vmax.f32 %v5154_v48, 0.0 }
 0x89d   :  { %7146 = vmatpush.msrb.mxu3 %v17675_v3 }
 0x89e   :  { %7148 = vmatmul.f32.vlgmr.msrb.gmra.mxu3 %v17636_v36  ;;  %v17888_v44 = vand.u32 4294901760, %v5388_v4 }
 0x8a0   :  { %v17916_v23 = vsub.f32 %v5388_v4, %v17888_v44 }
 0x8a1   :  { %v4627_v6 = vpop.f32.mrf.mxu0  ;;  %v5157_v46 = vpop.f32.mrf.mxu1 }
 0x8a2   :  { %v4628_v18 = vadd.f32 %v4627_v6, %v20147_v47  ;;  %v5158_v58 = vadd.f32 %v5157_v46, %v4624_v0  ;;  %v4600_v46 = vadd.f32 %v17761_v8, %v20154_v19  ;;  %v20155_v0 = vld [vmem:[#allocation167_spill] sm:$0xff] }
 0x8a3   :  { %v4596_v47 = vadd.f32 %v17746_v59, %v20155_v0  ;;  %v20162_v0 = vld [vmem:[#allocation157_spill] sm:$0xff] }
 0x8a4   :  { %4690 = vmatmul.f32.gmra.mxu0 %v20145_v49  ;;  %5220 = vmatmul.f32.gmra.mxu1 %v20143_v2  ;;  %v5389_v25 = vmax.f32 %v5158_v58, 0.0  ;;  %v5387_v2 = vmax.f32 %v5150_v37, 0.0  ;;  %v4592_v58 = vadd.f32 %v17730_v21, %v20157_v22 }
 0x8a5   :  { %v17910_v59 = vadd.f32 %v17763_v13, %v4596_v47  ;;  %v4576_v47 = vadd.f32 %v17537_v14, %v20162_v0  ;;  %v20163_v14 = vld [vmem:[#allocation155_spill] sm:$0xff] }
 0x8a6   :  { %v17884_v6 = vand.u32 4294901760, %v5389_v25  ;;  %v17926_v13 = vadd.f32 %v17748_v17, %v4592_v58  ;;  %v4584_v17 = vadd.f32 %v17654_v12, %v20159_v33 }
 0x8a8   :  { %v17903_v8 = vsub.f32 %v5389_v25, %v17884_v6 }
 0x8a9   :  { %v4631_v62 = vpop.f32.mrf.mxu0  ;;  %v5161_v39 = vpop.f32.mrf.mxu1 }
 0x8aa   :  { %v5162_v3 = vadd.f32 %v5161_v39, %v4628_v18  ;;  %v4632_v5 = vadd.f32 %v4631_v62, %v20153_v29  ;;  %v17896_v18 = vadd.f32 %v17775_v16, %v4600_v46  ;;  %v5385_v62 = vmax.f32 %v5142_v28, 0.0  ;;  %v20161_v46 = vld [vmem:[#allocation182_spill] sm:$0xff] }
 0x8ab   :  { %v17900_v39 = vand.u32 4294901760, %v5387_v2  ;;  %v5384_v16 = vmax.f32 %v17796_v11, 0.0 }
 0x8ac   :  { %v5390_v36 = vmax.f32 %v5162_v3, 0.0  ;;  %4694 = vmatmul.f32.gmra.mxu0 %v20150_v54  ;;  %5224 = vmatmul.f32.gmra.mxu1 %v20145_v49  ;;  %v5386_v49 = vmax.f32 %v5146_v38, 0.0  ;;  %v5383_v11 = vmax.f32 %v17896_v18, 0.0  ;;  %v17933_v30 = vand.u32 4294901760, %v5385_v62 }
 0x8ad   :  { %v17936_v37 = vsub.f32 %v5387_v2, %v17900_v39  ;;  %v5382_v38 = vmax.f32 %v17910_v59, 0.0  ;;  %v17947_v4 = vand.u32 4294901760, %v5384_v16  ;;  %v17963_v2 = vadd.f32 %v17702_v43, %v4584_v17 }
 0x8ae   :  { %v17879_v1 = vand.u32 4294901760, %v5390_v36  ;;  %v17913_v3 = vand.u32 4294901760, %v5386_v49  ;;  %v17966_v19 = vand.u32 4294901760, %v5383_v11 }
 0x8af   :  { %v19599_v43 = vand.u32 4294901760, %v17936_v37 }
 0x8b0   :  { %v17891_v34 = vsub.f32 %v5390_v36, %v17879_v1  ;;  %v20158_v36 = vld [vmem:[#allocation163_spill] sm:$0xff]  ;;  %v17950_v29 = vsub.f32 %v5386_v49, %v17913_v3  ;;  %v17971_v49 = vsub.f32 %v5385_v62, %v17933_v30  ;;  %v17985_v62 = vsub.f32 %v5384_v16, %v17947_v4 }
 0x8b1   :  { %v17881_v32 = vpop.f32.mrf.mxu0  ;;  %v5165_v42 = vpop.f32.mrf.mxu1  ;;  %v4588_v21 = vadd.f32 %v17700_v26, %v20158_v36  ;;  %v19602_v26 = vand.u32 4294901760, %v17903_v8 }
 0x8b2   :  { %v5166_v55 = vadd.f32 %v5165_v42, %v4632_v5  ;;  %v19604_v48 = vand.u32 4294901760, %v17891_v34  ;;  %v20160_v42 = vld [vmem:[#allocation159_spill] sm:$0xff]  ;;  %v19597_v36 = vand.u32 4294901760, %v17950_v29  ;;  %v19600_v0 = vand.u32 4294901760, %v17985_v62 }
 0x8b3   :  { %v17944_v35 = vadd.f32 %v17732_v51, %v4588_v21  ;;  %v19601_v51 = vand.u32 4294901760, %v17916_v23  ;;  %v4580_v28 = vadd.f32 %v17601_v61, %v20160_v42  ;;  %v7208_v61 = vsub.f32 %v17903_v8, %v19602_v26 }
 0x8b4   :  { %v5391_v7 = vmax.f32 %v5166_v55, 0.0  ;;  %4698 = vmatmul.f32.gmra.mxu0 %v20156_v40  ;;  %5228 = vmatmul.f32.gmra.mxu1 %v20150_v54  ;;  %v7202_v12 = vsub.f32 %v17891_v34, %v19604_v48  ;;  %v5381_v55 = vmax.f32 %v17926_v13, 0.0  ;;  %v5110_v21 = vadd.f32 %v17603_v31, %v4576_v47 }
 0x8b5   :  { %v5114_v18 = vadd.f32 %v17656_v53, %v4580_v28  ;;  %v5380_v22 = vmax.f32 %v17944_v35, 0.0  ;;  %v7214_v59 = vsub.f32 %v17916_v23, %v19601_v51  ;;  %v4572_v53 = vadd.f32 %v17497_v10, %v20163_v14  ;;  %v5436_v35 = vld.sshfl [vmem:[#allocation1 + $0x28] sm:$0xff pattern:$0x73625140] }
 0x8b6   :  { %v17905_v50 = vand.u32 4294901760, %v5391_v7  ;;  %v7203_v58 = vand.u32 4294901760, %v7202_v12  ;;  %v5379_v13 = vmax.f32 %v17963_v2, 0.0  ;;  %v17996_v33 = vand.u32 4294901760, %v5381_v55 }
 0x8b7   :  { %v7209_v12 = vand.u32 4294901760, %v7208_v61  ;;  %v7220_v10 = vsub.f32 %v17936_v37, %v19599_v43  ;;  %v19598_v31 = vand.u32 4294901760, %v17971_v49  ;;  %v5106_v42 = vadd.f32 %v17539_v52, %v4572_v53 }
 0x8b8   :  { %v17919_v45 = vsub.f32 %v5391_v7, %v17905_v50  ;;  %7153 = vmatpush.msra.mxu2 %v17905_v50  ;;  %v5378_v28 = vmax.f32 %v5114_v18, 0.0  ;;  %v18011_v2 = vand.u32 4294901760, %v5380_v22  ;;  %v7226_v61 = vsub.f32 %v17950_v29, %v19597_v36  ;;  %v20164_v18 = vld [vmem:[#allocation184_spill] sm:$0xff] }
 0x8b9   :  { %v17929_v54 = vpop.f32.mrf.mxu0  ;;  %v17931_v27 = vpop.f32.mrf.mxu1  ;;  %v18021_v47 = vand.u32 4294901760, %v5436_v35  ;;  %v18023_v52 = vand.u32 4294901760, %v5379_v13  ;;  %v7232_v14 = vsub.f32 %v17971_v49, %v19598_v31 }
 0x8ba   :  { %v19607_v25 = vand.u32 4294901760, %v17919_v45  ;;  %7155 = vmatpush.msra.mxu2 %v17879_v1  ;;  %v18038_v36 = vsub.f32 %v5380_v22, %v18011_v2 }
 0x8bb   :  { %v18055_v22 = vsub.f32 %v5379_v13, %v18023_v52 }
 0x8bc   :  { %7157 = vmatpush.msra.mxu2 %v17884_v6  ;;  %v7196_v5 = vsub.f32 %v17919_v45, %v19607_v25  ;;  %4702 = vmatmul.f32.gmra.mxu0 %v20161_v46 }
 0x8bd   :  { %5232 = vmatmul.f32.gmra.mxu1 %v20156_v40  ;;  %v17982_v40 = vand.u32 4294901760, %v5382_v38 }
 0x8be   :  { %7159 = vmatpush.msra.mxu2 %v17888_v44  ;;  %v7197_v7 = vand.u32 4294901760, %v7196_v5  ;;  %v18003_v5 = vsub.f32 %v5383_v11, %v17966_v19  ;;  %v7215_v11 = vand.u32 4294901760, %v7214_v59  ;;  %v7221_v59 = vand.u32 4294901760, %v7220_v10 }
 0x8c0   :  { %7161 = vmatpush.msra.mxu2 %v17900_v39  ;;  %7198 = vmatpush.msra.mxu3 %v7197_v7  ;;  %v18014_v7 = vsub.f32 %v5382_v38, %v17982_v40  ;;  %v18028_v38 = vsub.f32 %v5381_v55, %v17996_v33  ;;  %v19603_v53 = vand.u32 4294901760, %v18003_v5  ;;  %v7227_v55 = vand.u32 4294901760, %v7226_v61 }
 0x8c1   :  { %v17998_v16 = vpop.f32.mrf.mxu0  ;;  %v18000_v17 = vpop.f32.mrf.mxu1  ;;  %v7233_v61 = vand.u32 4294901760, %v7232_v14  ;;  %v19608_v14 = vand.u32 4294901760, %v18038_v36 }
 0x8c2   :  { %7163 = vmatpush.msra.mxu2 %v17913_v3  ;;  %7204 = vmatpush.msra.mxu3 %v7203_v58  ;;  %v5377_v58 = vmax.f32 %v5110_v21, 0.0  ;;  %v5376_v21 = vmax.f32 %v5106_v42, 0.0  ;;  %v19605_v10 = vand.u32 4294901760, %v18014_v7 }
 0x8c4   :  { %7165 = vmatpush.msra.mxu2 %v17933_v30  ;;  %7210 = vmatpush.msra.mxu3 %v7209_v12  ;;  %v18035_v12 = vand.u32 4294901760, %v5378_v28  ;;  %v18048_v31 = vand.u32 4294901760, %v5377_v58 }
 0x8c5   :  { %4706 = vmatmul.f32.gmra.mxu0 %v20164_v18  ;;  %5236 = vmatmul.f32.gmra.mxu1 %v20161_v46  ;;  %v7238_v46 = vsub.f32 %v17985_v62, %v19600_v0  ;;  %v18062_v0 = vand.u32 4294901760, %v5376_v21 }
 0x8c6   :  { %7167 = vmatpush.msra.mxu2 %v17947_v4  ;;  %7216 = vmatpush.msra.mxu3 %v7215_v11  ;;  %v18046_v11 = vsub.f32 %v5436_v35, %v18021_v47  ;;  %v19606_v35 = vand.u32 4294901760, %v18028_v38  ;;  %v18065_v51 = vsub.f32 %v5378_v28, %v18035_v12  ;;  %v18076_v48 = vsub.f32 %v5377_v58, %v18048_v31 }
 0x8c7   :  { %v7239_v13 = vand.u32 4294901760, %v7238_v46  ;;  %v7262_v58 = vsub.f32 %v18038_v36, %v19608_v14 }
 0x8c8   :  { %7169 = vmatpush.msra.mxu2 %v17966_v19  ;;  %7222 = vmatpush.msra.mxu3 %v7221_v59  ;;  %v7244_v59 = vsub.f32 %v18003_v5, %v19603_v53  ;;  %v19609_v26 = vand.u32 4294901760, %v18046_v11  ;;  %v20165_v53 = vld [vmem:[#allocation186_spill] sm:$0xff]  ;;  %v7256_v46 = vsub.f32 %v18028_v38, %v19606_v35 }
 0x8c9   :  { %v18050_v42 = vpop.f32.mrf.mxu0  ;;  %v18052_v43 = vpop.f32.mrf.mxu1  ;;  %v7263_v14 = vand.u32 4294901760, %v7262_v58 }
 0x8ca   :  { %7171 = vmatpush.msra.mxu2 %v17982_v40  ;;  %7228 = vmatpush.msra.mxu3 %v7227_v55  ;;  %v7250_v55 = vsub.f32 %v18014_v7, %v19605_v10  ;;  %v7245_v28 = vand.u32 4294901760, %v7244_v59  ;;  %v18084_v10 = vsub.f32 %v5376_v21, %v18062_v0  ;;  %v7187_v59 = vsub.f32 %v18046_v11, %v19609_v26  ;;  %v18115_v58 = vpop.f32.mrf.mxu2 }
 0x8cb   :  { %v7257_v21 = vand.u32 4294901760, %v7256_v46  ;;  %20167 = vst [vmem:[#allocation55_spill] sm:$0xff] %v18115_v58 }
 0x8cc   :  { %7173 = vmatpush.msra.mxu2 %v17996_v33  ;;  %7234 = vmatpush.msra.mxu3 %v7233_v61  ;;  %v19613_v61 = vand.u32 4294901760, %v18055_v22  ;;  %v19611_v41 = vand.u32 4294901760, %v18084_v10  ;;  %v7188_v20 = vand.u32 4294901760, %v7187_v59 }
 0x8cd   :  { %4710 = vmatmul.f32.gmra.mxu0 %v20165_v53  ;;  %5240 = vmatmul.f32.gmra.mxu1 %v20164_v18  ;;  %v7251_v18 = vand.u32 4294901760, %v7250_v55 }
 0x8ce   :  { %7175 = vmatpush.msra.mxu2 %v18011_v2  ;;  %7240 = vmatpush.msra.mxu3 %v7239_v13  ;;  %v19612_v13 = vand.u32 4294901760, %v18065_v51  ;;  %v7268_v55 = vsub.f32 %v18055_v22, %v19613_v61  ;;  %v7286_v59 = vsub.f32 %v18084_v10, %v19611_v41 }
 0x8d0   :  { %7177 = vmatpush.msra.mxu2 %v18023_v52  ;;  %7246 = vmatpush.msra.mxu3 %v7245_v28  ;;  %v19610_v28 = vand.u32 4294901760, %v18076_v48  ;;  %v7274_v26 = vsub.f32 %v18065_v51, %v19612_v13  ;;  %v7269_v46 = vand.u32 4294901760, %v7268_v55  ;;  %v20172_v13 = vand.u32 4294901760, %v17919_v45 }
 0x8d1   :  { %v18094_v35 = vpop.f32.mrf.mxu0  ;;  %v18096_v25 = vpop.f32.mrf.mxu1 }
 0x8d2   :  { %7179 = vmatpush.msra.mxu2 %v18035_v12  ;;  %7252 = vmatpush.msra.mxu3 %v7251_v18  ;;  %v7280_v18 = vsub.f32 %v18076_v48, %v19610_v28  ;;  %v7287_v28 = vand.u32 4294901760, %v7286_v59  ;;  %v18184_v61 = vpop.f32.mrf.mxu2 }
 0x8d4   :  { %7181 = vmatpush.msra.mxu2 %v18048_v31  ;;  %7258 = vmatpush.msra.mxu3 %v7257_v21  ;;  %v7275_v21 = vand.u32 4294901760, %v7274_v26  ;;  %v7281_v55 = vand.u32 4294901760, %v7280_v18 }
 0x8d5   :  { %4714 = vmatmul.f32.gmra.mxu0 %v20166_v15  ;;  %5244 = vmatmul.f32.gmra.mxu1 %v20165_v53 }
 0x8d6   :  { %7183 = vmatpush.msra.mxu2 %v18062_v0  ;;  %7264 = vmatpush.msra.mxu3 %v7263_v14 }
 0x8d7   :  { %7189 = vmatmul.f32.vlgmr.msra.gmra.mxu2 %v7188_v20  ;;  %v18130_v20 = vpop.f32.mrf.mxu3 }
 0x8d8   :  { %7296 = vmatpush.msrb.mxu2 %v17919_v45  ;;  %7270 = vmatpush.msra.mxu3 %v7269_v46  ;;  %20168 = vst [vmem:[#allocation51_spill] sm:$0xff] %v18130_v20  ;;  %v20175_v45 = vld [vmem:[#allocation196_spill] sm:$0xff] }
 0x8d9   :  { %v18120_v53 = vpop.f32.mrf.mxu0  ;;  %v18123_v14 = vpop.f32.mrf.mxu1 }
 0x8da   :  { %7299 = vmatpush.msrb.mxu2 %v17891_v34  ;;  %7276 = vmatpush.msra.mxu3 %v7275_v21 }
 0x8dc   :  { %7302 = vmatpush.msrb.mxu2 %v17903_v8  ;;  %7282 = vmatpush.msra.mxu3 %v7281_v55 }
 0x8dd   :  { %4718 = vmatmul.f32.gmra.mxu0 %v15661_v9  ;;  %5248 = vmatmul.f32.gmra.mxu1 %v20166_v15  ;;  %v20169_v15 = vld [vmem:[#allocation191_spill] sm:$0xff] }
 0x8de   :  { %7305 = vmatpush.msrb.mxu2 %v17916_v23  ;;  %7288 = vmatpush.msra.mxu3 %v7287_v28 }
 0x8df   :  { %7290 = vmatmul.f32.vlgmr.msra.gmra.mxu3 %v18021_v47 }
 0x8e0   :  { %7349 = vmatpush.msrb.mxu3 %v17905_v50  ;;  %7308 = vmatpush.msrb.mxu2 %v17936_v37 }
 0x8e1   :  { %v18135_v26 = vpop.f32.mrf.mxu0  ;;  %v18137_v46 = vpop.f32.mrf.mxu1 }
 0x8e2   :  { %7351 = vmatpush.msrb.mxu3 %v17879_v1  ;;  %7311 = vmatpush.msrb.mxu2 %v17950_v29 }
 0x8e4   :  { %7353 = vmatpush.msrb.mxu3 %v17884_v6  ;;  %7314 = vmatpush.msrb.mxu2 %v17971_v49 }
 0x8e5   :  { %4722 = vmatmul.f32.gmra.mxu0 %v20169_v15  ;;  %5252 = vmatmul.f32.gmra.mxu1 %v15661_v9  ;;  %v18157_v9 = vld [vmem:[%s19326_s4] ss:$0 sm:$0xff] }
 0x8e6   :  { %7317 = vmatpush.msrb.mxu2 %v17985_v62  ;;  %7355 = vmatpush.msrb.mxu3 %v17888_v44  ;;  %v2021_v21 = vadd.f32 %v18157_v9, %v15718_v24 }
 0x8e8   :  { %7320 = vmatpush.msrb.mxu2 %v18003_v5  ;;  %7357 = vmatpush.msrb.mxu3 %v17900_v39  ;;  %v2667_v59 = vadd.f32 %v15728_v57, %v2021_v21  ;;  %v20171_v57 = vld [vmem:[#allocation21_spill] sm:$0xff] }
 0x8e9   :  { %v18148_v28 = vpop.f32.mrf.mxu0  ;;  %v18150_v18 = vpop.f32.mrf.mxu1 }
 0x8ea   :  { %7323 = vmatpush.msrb.mxu2 %v18014_v7  ;;  %7359 = vmatpush.msrb.mxu3 %v17913_v3  ;;  %v3311_v41 = vadd.f32 %v16198_v60, %v2667_v59  ;;  %v20173_v59 = vand.u32 4294901760, %v17891_v34  ;;  %v18204_v34 = vpop.f32.mrf.mxu3 }
 0x8ec   :  { %7326 = vmatpush.msrb.mxu2 %v18028_v38  ;;  %7361 = vmatpush.msrb.mxu3 %v17933_v30  ;;  %v4078_v21 = vadd.f32 %v20171_v57, %v3311_v41  ;;  %v20174_v41 = vand.u32 4294901760, %v17903_v8  ;;  %v20178_v8 = vand.u32 4294901760, %v18046_v11  ;;  %v20181_v57 = vld [vmem:[#allocation198_spill] sm:$0xff] }
 0x8ed   :  { %4726 = vmatmul.f32.gmra.mxu0 %v15683_v56  ;;  %5256 = vmatmul.f32.gmra.mxu1 %v20169_v15  ;;  %v20170_v15 = vld [vmem:[#allocation194_spill] sm:$0xff] }
 0x8ee   :  { %7329 = vmatpush.msrb.mxu2 %v18038_v36  ;;  %7363 = vmatpush.msrb.mxu3 %v17947_v4 }
 0x8f0   :  { %7332 = vmatpush.msrb.mxu2 %v18055_v22  ;;  %7365 = vmatpush.msrb.mxu3 %v17966_v19 }
 0x8f1   :  { %v4667_v55 = vpop.f32.mrf.mxu0  ;;  %v18170_v24 = vpop.f32.mrf.mxu1 }
 0x8f2   :  { %7335 = vmatpush.msrb.mxu2 %v18065_v51  ;;  %7367 = vmatpush.msrb.mxu3 %v17982_v40  ;;  %v4668_v60 = vadd.f32 %v4667_v55, %v4078_v21  ;;  %v20179_v55 = vand.u32 4294901760, %v17950_v29  ;;  %v20184_v29 = vand.u32 4294901760, %v18014_v7  ;;  %v20190_v7 = vand.u32 4294901760, %v18076_v48  ;;  %v20196_v21 = vld [vmem:[#allocation206_spill] sm:$0xff] }
 0x8f4   :  { %7338 = vmatpush.msrb.mxu2 %v18076_v48  ;;  %7369 = vmatpush.msrb.mxu3 %v17996_v33 }
 0x8f5   :  { %4730 = vmatmul.f32.gmra.mxu0 %v20170_v15  ;;  %5260 = vmatmul.f32.gmra.mxu1 %v15683_v56 }
 0x8f6   :  { %7341 = vmatpush.msrb.mxu2 %v18084_v10  ;;  %7371 = vmatpush.msrb.mxu3 %v18011_v2 }
 0x8f7   :  { %7344 = vmatmul.f32.vlgmr.msrb.gmra.mxu2 %v18046_v11  ;;  %v20185_v11 = vand.u32 4294901760, %v18028_v38  ;;  %v20194_v38 = vld [vmem:[#allocation215_spill] sm:$0xff] }
 0x8f8   :  { %7390 = vmatpush.msra.mxu2 %v20172_v13  ;;  %7373 = vmatpush.msrb.mxu3 %v18023_v52  ;;  %v20176_v13 = vand.u32 4294901760, %v17916_v23 }
 0x8f9   :  { %v18190_v56 = vpop.f32.mrf.mxu0  ;;  %v5201_v20 = vpop.f32.mrf.mxu1 }
 0x8fa   :  { %7394 = vmatpush.msra.mxu2 %v20173_v59  ;;  %7375 = vmatpush.msrb.mxu3 %v18035_v12  ;;  %v18193_v58 = vadd.f32 %v5201_v20, %v4668_v60  ;;  %v20177_v20 = vand.u32 4294901760, %v17936_v37  ;;  %v20182_v37 = vand.u32 4294901760, %v17985_v62  ;;  %v20189_v62 = vand.u32 4294901760, %v18065_v51  ;;  %v18259_v51 = vpop.f32.mrf.mxu2  ;;  %v20198_v60 = vld [vmem:[#allocation214_spill] sm:$0xff] }
 0x8fc   :  { %7398 = vmatpush.msra.mxu2 %v20174_v41  ;;  %7377 = vmatpush.msrb.mxu3 %v18048_v31  ;;  %v20199_v41 = vld [vmem:[#allocation216_spill] sm:$0xff] }
 0x8fd   :  { %4734 = vmatmul.f32.gmra.mxu0 %v20175_v45  ;;  %5264 = vmatmul.f32.gmra.mxu1 %v20170_v15 }
 0x8fe   :  { %7402 = vmatpush.msra.mxu2 %v20176_v13  ;;  %7379 = vmatpush.msrb.mxu3 %v18062_v0  ;;  %v18278_v13 = vpop.f32.mrf.mxu3 }
 0x8ff   :  { %7383 = vmatmul.f32.vlgmr.msrb.gmra.mxu3 %v20178_v8  ;;  %20200 = vst [vmem:[#allocation49_spill] sm:$0xff] %v18278_v13  ;;  %v20202_v8 = vld [vmem:[#allocation211_spill] sm:$0xff] }
 0x900   :  { %7457 = vmatpush.msra.mxu3 %v17905_v50  ;;  %7406 = vmatpush.msra.mxu2 %v20177_v20  ;;  %v20180_v50 = vand.u32 4294901760, %v17971_v49 }
 0x901   :  { %v18213_v15 = vpop.f32.mrf.mxu0  ;;  %v18215_v23 = vpop.f32.mrf.mxu1 }
 0x902   :  { %7459 = vmatpush.msra.mxu3 %v17879_v1  ;;  %7410 = vmatpush.msra.mxu2 %v20179_v55  ;;  %v20183_v1 = vand.u32 4294901760, %v18003_v5 }
 0x904   :  { %7461 = vmatpush.msra.mxu3 %v17884_v6  ;;  %7414 = vmatpush.msra.mxu2 %v20180_v50  ;;  %v20203_v50 = vld [vmem:[#allocation201_spill] sm:$0xff] }
 0x905   :  { %4738 = vmatmul.f32.gmra.mxu0 %v20181_v57  ;;  %5268 = vmatmul.f32.gmra.mxu1 %v20175_v45 }
 0x906   :  { %7418 = vmatpush.msra.mxu2 %v20182_v37  ;;  %7463 = vmatpush.msra.mxu3 %v17888_v44  ;;  %v20186_v44 = vld [vmem:[#allocation200_spill] sm:$0xff] }
 0x907   :  { %v20204_v37 = vld [vmem:[#allocation208_spill] sm:$0xff] }
 0x908   :  { %7422 = vmatpush.msra.mxu2 %v20183_v1  ;;  %7465 = vmatpush.msra.mxu3 %v17900_v39  ;;  %v20187_v39 = vand.u32 4294901760, %v18038_v36  ;;  %v20191_v36 = vld [vmem:[#allocation203_spill] sm:$0xff] }
 0x909   :  { %v18231_v6 = vpop.f32.mrf.mxu0  ;;  %v18233_v49 = vpop.f32.mrf.mxu1 }
 0x90a   :  { %7426 = vmatpush.msra.mxu2 %v20184_v29  ;;  %7467 = vmatpush.msra.mxu3 %v17913_v3  ;;  %v20188_v3 = vand.u32 4294901760, %v18055_v22  ;;  %v2069_v22 = vadd.f32 %v18157_v9, %v20194_v38  ;;  %v20205_v29 = vld [vmem:[#allocation217_spill] sm:$0xff]  ;;  %v20211_v38 = vld [vmem:[#allocation202_spill] sm:$0xff] }
 0x90c   :  { %7430 = vmatpush.msra.mxu2 %v20185_v11  ;;  %7469 = vmatpush.msra.mxu3 %v17933_v30  ;;  %v2691_v45 = vadd.f32 %v20199_v41, %v2069_v22 }
 0x90d   :  { %4742 = vmatmul.f32.gmra.mxu0 %v20186_v44  ;;  %5272 = vmatmul.f32.gmra.mxu1 %v20181_v57  ;;  %v2029_v57 = vadd.f32 %v18157_v9, %v20203_v50 }
 0x90e   :  { %7434 = vmatpush.msra.mxu2 %v20187_v39  ;;  %7471 = vmatpush.msra.mxu3 %v17947_v4  ;;  %v20192_v4 = vand.u32 4294901760, %v18084_v10  ;;  %v20195_v10 = vld [vmem:[#allocation210_spill] sm:$0xff]  ;;  %v20206_v39 = vld [vmem:[#allocation23_spill] sm:$0xff] }
 0x90f   :  { %v2671_v22 = vadd.f32 %v20211_v38, %v2029_v57 }
 0x910   :  { %7438 = vmatpush.msra.mxu2 %v20188_v3  ;;  %7473 = vmatpush.msra.mxu3 %v17966_v19 }
 0x911   :  { %v4683_v30 = vpop.f32.mrf.mxu0  ;;  %v18249_v5 = vpop.f32.mrf.mxu1 }
 0x912   :  { %7442 = vmatpush.msra.mxu2 %v20189_v62  ;;  %7475 = vmatpush.msra.mxu3 %v17982_v40  ;;  %v20193_v40 = vld [vmem:[#allocation213_spill] sm:$0xff] }
 0x913   :  { %v20207_v62 = vld [vmem:[#allocation13_spill] sm:$0xff] }
 0x914   :  { %7446 = vmatpush.msra.mxu2 %v20190_v7  ;;  %7477 = vmatpush.msra.mxu3 %v17996_v33  ;;  %v2061_v33 = vadd.f32 %v18157_v9, %v20193_v40  ;;  %v3341_v7 = vadd.f32 %v20207_v62, %v2691_v45  ;;  %v20220_v62 = vld [vmem:[#allocation25_spill] sm:$0xff] }
 0x915   :  { %4746 = vmatmul.f32.gmra.mxu0 %v20191_v36  ;;  %5276 = vmatmul.f32.gmra.mxu1 %v20186_v44 }
 0x916   :  { %7450 = vmatpush.msra.mxu2 %v20192_v4  ;;  %7479 = vmatpush.msra.mxu3 %v18011_v2  ;;  %v2053_v2 = vadd.f32 %v18157_v9, %v20195_v10  ;;  %v2687_v59 = vadd.f32 %v20198_v60, %v2061_v33  ;;  %v20209_v4 = vld [vmem:[#allocation15_spill] sm:$0xff]  ;;  %v20210_v33 = vld [vmem:[#allocation209_spill] sm:$0xff]  ;;  %v20212_v10 = vld [vmem:[#allocation18_spill] sm:$0xff] }
 0x917   :  { %7452 = vmatmul.f32.vlgmr.msra.gmra.mxu2 %v18021_v47  ;;  %v20214_v60 = vld [vmem:[#allocation14_spill] sm:$0xff] }
 0x918   :  { %7481 = vmatpush.msra.mxu3 %v18023_v52  ;;  %v20197_v52 = vld [vmem:[#allocation207_spill] sm:$0xff]  ;;  %v2683_v55 = vadd.f32 %v20202_v8, %v2053_v2  ;;  %v3336_v3 = vadd.f32 %v20206_v39, %v2687_v59 }
 0x919   :  { %v4687_v48 = vpop.f32.mrf.mxu0  ;;  %v5217_v19 = vpop.f32.mrf.mxu1  ;;  %v20216_v8 = vld [vmem:[#allocation219_spill] sm:$0xff] }
 0x91a   :  { %7483 = vmatpush.msra.mxu3 %v18035_v12  ;;  %v2045_v12 = vadd.f32 %v18157_v9, %v20197_v52  ;;  %v3331_v40 = vadd.f32 %v20209_v4, %v2683_v55  ;;  %v20213_v52 = vld [vmem:[#allocation218_spill] sm:$0xff]  ;;  %v4108_v41 = vadd.f32 %v20214_v60, %v3336_v3  ;;  %v2085_v45 = vadd.f32 %v18157_v9, %v20216_v8  ;;  %v20218_v55 = vld [vmem:[#allocation221_spill] sm:$0xff]  ;;  %v20222_v4 = vld [vmem:[#allocation24_spill] sm:$0xff] }
 0x91b   :  { %v20224_v8 = vld [vmem:[#allocation22_spill] sm:$0xff] }
 0x91c   :  { %7485 = vmatpush.msra.mxu3 %v18048_v31  ;;  %v20201_v31 = vld [vmem:[#allocation204_spill] sm:$0xff]  ;;  %v2679_v1 = vadd.f32 %v20204_v37, %v2045_v12  ;;  %v2093_v37 = vadd.f32 %v18157_v9, %v20218_v55  ;;  %v4688_v39 = vadd.f32 %v4687_v48, %v4108_v41  ;;  %v20225_v55 = vld [vmem:[#allocation222_spill] sm:$0xff] }
 0x91d   :  { %4750 = vmatmul.f32.gmra.mxu0 %v20196_v21  ;;  %5280 = vmatmul.f32.gmra.mxu1 %v20191_v36  ;;  %v2037_v20 = vadd.f32 %v18157_v9, %v20201_v31  ;;  %v20215_v31 = vld [vmem:[#allocation12_spill] sm:$0xff] }
 0x91e   :  { %7487 = vmatpush.msra.mxu3 %v18062_v0  ;;  %v2077_v0 = vadd.f32 %v18157_v9, %v20205_v29  ;;  %v3326_v2 = vadd.f32 %v20212_v10, %v2679_v1  ;;  %v4114_v59 = vadd.f32 %v20215_v31, %v3341_v7  ;;  %v20219_v29 = vld [vmem:[#allocation16_spill] sm:$0xff]  ;;  %v3316_v1 = vadd.f32 %v20220_v62, %v2671_v22 }
 0x91f   :  { %7489 = vmatmul.f32.vlgmr.msra.gmra.mxu3 %v18021_v47  ;;  %v20208_v47 = vld [vmem:[#allocation205_spill] sm:$0xff]  ;;  %v20223_v10 = vld [vmem:[#allocation220_spill] sm:$0xff]  ;;  %v2703_v13 = vadd.f32 %v20225_v55, %v2093_v37 }
 0x920   :  { %v2675_v36 = vadd.f32 %v20208_v47, %v2037_v20  ;;  %v2695_v12 = vadd.f32 %v20213_v52, %v2077_v0  ;;  %v20217_v20 = vld [vmem:[#allocation19_spill] sm:$0xff]  ;;  %v20221_v47 = vld [vmem:[#allocation17_spill] sm:$0xff]  ;;  %v2699_v52 = vadd.f32 %v20223_v10, %v2085_v45  ;;  %v20227_v41 = vld [vmem:[#allocation212_spill] sm:$0xff] }
 0x921   :  { %v4691_v11 = vpop.f32.mrf.mxu0  ;;  %v5221_v44 = vpop.f32.mrf.mxu1  ;;  %v4096_v0 = vadd.f32 %v20221_v47, %v3326_v2  ;;  %v20232_v62 = vld [vmem:[#allocation224_spill] sm:$0xff] }
 0x922   :  { %v3321_v50 = vadd.f32 %v20217_v20, %v2675_v36  ;;  %v4692_v57 = vadd.f32 %v4691_v11, %v4114_v59  ;;  %v3346_v3 = vadd.f32 %v20222_v4, %v2695_v12  ;;  %v5222_v31 = vadd.f32 %v5221_v44, %v4688_v39  ;;  %v20228_v12 = vld [vmem:[#allocation20_spill] sm:$0xff]  ;;  %v20229_v44 = vld [vmem:[#allocation26_spill] sm:$0xff] }
 0x923   :  { %v4680_v11 = vadd.f32 %v18231_v6, %v4096_v0  ;;  %v4084_v59 = vadd.f32 %v20228_v12, %v3316_v1  ;;  %v20231_v39 = vld [vmem:[#allocation32_spill] sm:$0xff]  ;;  %v20239_v12 = vld [vmem:[#allocation197_spill] sm:$0xff] }
 0x924   :  { %v4090_v20 = vadd.f32 %v20224_v8, %v3321_v50  ;;  %v4120_v45 = vadd.f32 %v20229_v44, %v3346_v3  ;;  %v20230_v50 = vld [vmem:[#allocation28_spill] sm:$0xff]  ;;  %v20240_v44 = vld [vmem:[#allocation189_spill] sm:$0xff] }
 0x925   :  { %4754 = vmatmul.f32.gmra.mxu0 %v20210_v33  ;;  %5284 = vmatmul.f32.gmra.mxu1 %v20196_v21  ;;  %v4102_v21 = vadd.f32 %v20219_v29, %v3331_v40  ;;  %v20226_v40 = vld [vmem:[#allocation223_spill] sm:$0xff]  ;;  %v3351_v29 = vadd.f32 %v20230_v50, %v2699_v52  ;;  %v5214_v37 = vadd.f32 %v18249_v5, %v4680_v11 }
 0x926   :  { %v2101_v48 = vadd.f32 %v18157_v9, %v20226_v40  ;;  %v4672_v6 = vadd.f32 %v18190_v56, %v4084_v59  ;;  %v20238_v11 = vld [vmem:[#allocation187_spill] sm:$0xff]  ;;  %v4660_v59 = vadd.f32 %v18135_v26, %v20239_v12  ;;  %v5400_v26 = vmax.f32 %v18193_v58, 0.0 }
 0x927   :  { %v4684_v60 = vadd.f32 %v4683_v30, %v4102_v21  ;;  %v4676_v30 = vadd.f32 %v18213_v15, %v4090_v20  ;;  %v5405_v21 = vmax.f32 %v5222_v31, 0.0  ;;  %v5403_v5 = vmax.f32 %v5214_v37, 0.0  ;;  %v20235_v31 = vld [vmem:[#allocation225_spill] sm:$0xff]  ;;  %v20237_v20 = vld [vmem:[#allocation43_spill] sm:$0xff] }
 0x928   :  { %v2707_v47 = vadd.f32 %v20232_v62, %v2101_v48  ;;  %v5206_v15 = vadd.f32 %v18215_v23, %v4672_v6  ;;  %v18367_v37 = vadd.f32 %v18150_v18, %v4660_v59  ;;  %v20242_v6 = vld [vmem:[#allocation193_spill] sm:$0xff] }
 0x929   :  { %v4695_v38 = vpop.f32.mrf.mxu0  ;;  %v5225_v7 = vpop.f32.mrf.mxu1  ;;  %v5218_v22 = vadd.f32 %v5217_v19, %v4684_v60  ;;  %v5210_v19 = vadd.f32 %v18233_v49, %v4676_v30  ;;  %v18330_v52 = vand.u32 4294901760, %v5405_v21  ;;  %v20234_v60 = vld [vmem:[#allocation34_spill] sm:$0xff]  ;;  %v18335_v49 = vadd.f32 %v18157_v9, %v20235_v31 }
 0x92a   :  { %v5226_v36 = vadd.f32 %v5225_v7, %v4692_v57  ;;  %v3356_v57 = vadd.f32 %v20231_v39, %v2703_v13  ;;  %v4696_v0 = vadd.f32 %v4695_v38, %v4120_v45  ;;  %v20233_v7 = vld [vmem:[#allocation30_spill] sm:$0xff]  ;;  %v18340_v23 = vadd.f32 %v20237_v20, %v2707_v47 }
 0x92b   :  { %v4126_v10 = vadd.f32 %v20233_v7, %v3351_v29  ;;  %v5402_v8 = vmax.f32 %v5210_v19, 0.0  ;;  %v5401_v30 = vmax.f32 %v5206_v15, 0.0  ;;  %v4640_v45 = vadd.f32 %v17929_v54, %v20240_v44 }
 0x92c   :  { %v5406_v2 = vmax.f32 %v5226_v36, 0.0  ;;  %v4132_v56 = vadd.f32 %v20234_v60, %v3356_v57  ;;  %v20236_v36 = vld [vmem:[#allocation199_spill] sm:$0xff]  ;;  %v18357_v50 = vand.u32 4294901760, %v5403_v5  ;;  %v5398_v7 = vmax.f32 %v18367_v37, 0.0  ;;  %v20244_v60 = vld [vmem:[#allocation190_spill] sm:$0xff] }
 0x92d   :  { %4758 = vmatmul.f32.gmra.mxu0 %v20227_v41  ;;  %5288 = vmatmul.f32.gmra.mxu1 %v20210_v33  ;;  %v5404_v33 = vmax.f32 %v5218_v22, 0.0  ;;  %v4664_v38 = vadd.f32 %v18148_v28, %v20236_v36  ;;  %v18350_v22 = vadd.f32 %v17881_v32, %v20238_v11  ;;  %v18385_v19 = vand.u32 4294901760, %v5401_v30 }
 0x92e   :  { %v18326_v1 = vand.u32 4294901760, %v5406_v2  ;;  %v4644_v31 = vadd.f32 %v17998_v16, %v20244_v60  ;;  %v18434_v59 = vand.u32 4294901760, %v5398_v7  ;;  %v18445_v37 = vadd.f32 %v18000_v17, %v4640_v45 }
 0x92f   :  { %v18342_v55 = vand.u32 4294901760, %v5404_v33  ;;  %v5198_v28 = vadd.f32 %v18170_v24, %v4664_v38  ;;  %v18370_v24 = vand.u32 4294901760, %v5402_v8  ;;  %v18423_v20 = vsub.f32 %v5401_v30, %v18385_v19 }
 0x930   :  { %v18345_v40 = vsub.f32 %v5406_v2, %v18326_v1  ;;  %v18360_v2 = vsub.f32 %v5405_v21, %v18330_v52  ;;  %v18431_v16 = vadd.f32 %v18052_v43, %v4644_v31  ;;  %v5437_v43 = vld.sshfl [vmem:[#allocation1 + $0x30] sm:$0xff pattern:$0x73625140] }
 0x931   :  { %v4699_v4 = vpop.f32.mrf.mxu0  ;;  %v5229_v3 = vpop.f32.mrf.mxu1  ;;  %v18373_v39 = vsub.f32 %v5404_v33, %v18342_v55  ;;  %v5399_v58 = vmax.f32 %v5198_v28, 0.0  ;;  %v18388_v33 = vsub.f32 %v5403_v5, %v18357_v50  ;;  %v18404_v5 = vsub.f32 %v5402_v8, %v18370_v24  ;;  %v20246_v31 = vld [vmem:[#allocation226_spill] sm:$0xff] }
 0x932   :  { %v5230_v13 = vadd.f32 %v5229_v3, %v4696_v0  ;;  %v4700_v54 = vadd.f32 %v4699_v4, %v4126_v10  ;;  %v19623_v21 = vand.u32 4294901760, %v18345_v40  ;;  %v19622_v4 = vand.u32 4294901760, %v18360_v2 }
 0x933   :  { %v18401_v10 = vand.u32 4294901760, %v5400_v26  ;;  %v18420_v8 = vand.u32 4294901760, %v5399_v58  ;;  %v19618_v12 = vand.u32 4294901760, %v18388_v33  ;;  %v19616_v45 = vand.u32 4294901760, %v18423_v20 }
 0x934   :  { %v5407_v48 = vmax.f32 %v5230_v13, 0.0  ;;  %v7549_v11 = vsub.f32 %v18360_v2, %v19622_v4 }
 0x935   :  { %5292 = vmatmul.f32.gmra.mxu1 %v20227_v41  ;;  %v20241_v41 = vld [vmem:[#allocation195_spill] sm:$0xff]  ;;  %v18437_v28 = vsub.f32 %v5400_v26, %v18401_v10  ;;  %v7561_v17 = vsub.f32 %v18388_v33, %v19618_v12 }
 0x936   :  { %v18362_v29 = vand.u32 4294901760, %v5407_v48  ;;  %v4656_v32 = vadd.f32 %v18120_v53, %v20241_v41  ;;  %v4652_v53 = vadd.f32 %v18094_v35, %v20242_v6  ;;  %v20243_v35 = vld [vmem:[#allocation192_spill] sm:$0xff] }
 0x937   :  { %v19614_v60 = vand.u32 4294901760, %v18437_v28 }
 0x938   :  { %v18376_v57 = vsub.f32 %v5407_v48, %v18362_v29  ;;  %7494 = vmatpush.msrb.mxu2 %v18362_v29  ;;  %v18383_v18 = vadd.f32 %v18137_v46, %v4656_v32  ;;  %v4648_v46 = vadd.f32 %v18050_v42, %v20243_v35  ;;  %v18398_v3 = vadd.f32 %v18123_v14, %v4652_v53 }
 0x939   :  { %v4703_v62 = vpop.f32.mrf.mxu0  ;;  %v7543_v42 = vsub.f32 %v18345_v40, %v19623_v21  ;;  %v19621_v14 = vand.u32 4294901760, %v18373_v39  ;;  %v19617_v32 = vand.u32 4294901760, %v18404_v5 }
 0x93a   :  { %v5233_v47 = vpop.f32.mrf.mxu1  ;;  %v7536_v0 = vand.u32 4294901760, %v18376_v57  ;;  %7496 = vmatpush.msrb.mxu2 %v18326_v1  ;;  %v18417_v36 = vadd.f32 %v18096_v25, %v4648_v46  ;;  %v5397_v38 = vmax.f32 %v18383_v18, 0.0  ;;  %v5396_v25 = vmax.f32 %v18398_v3, 0.0 }
 0x93b   :  { %v18391_v15 = vadd.f32 %v5233_v47, %v4700_v54  ;;  %v4704_v30 = vadd.f32 %v4703_v62, %v4132_v56  ;;  %v7544_v44 = vand.u32 4294901760, %v7543_v42  ;;  %v7555_v41 = vsub.f32 %v18373_v39, %v19621_v14 }
 0x93c   :  { %v7537_v13 = vsub.f32 %v18376_v57, %v7536_v0  ;;  %7498 = vmatpush.msrb.mxu2 %v18330_v52  ;;  %v5395_v54 = vmax.f32 %v18417_v36, 0.0  ;;  %v18448_v6 = vand.u32 4294901760, %v5397_v38  ;;  %v18451_v56 = vsub.f32 %v5399_v58, %v18420_v8 }
 0x93d   :  { %v7550_v62 = vand.u32 4294901760, %v7549_v11  ;;  %v5170_v47 = vadd.f32 %v17931_v27, %v18350_v22  ;;  %v5394_v58 = vmax.f32 %v18431_v16, 0.0  ;;  %v18463_v35 = vand.u32 4294901760, %v5396_v25  ;;  %v20245_v27 = vld [vmem:[#allocation36_spill] sm:$0xff] }
 0x93e   :  { %7500 = vmatpush.msrb.mxu2 %v18342_v55  ;;  %v7538_v48 = vand.u32 4294901760, %v7537_v13  ;;  %v18465_v46 = vand.u32 4294901760, %v5437_v43  ;;  %v18468_v3 = vsub.f32 %v5398_v7, %v18434_v59  ;;  %v7556_v13 = vand.u32 4294901760, %v7555_v41 }
 0x93f   :  { %v7567_v42 = vsub.f32 %v18404_v5, %v19617_v32  ;;  %v4138_v22 = vadd.f32 %v20245_v27, %v18340_v23  ;;  %v2711_v36 = vadd.f32 %v20246_v31, %v18335_v49  ;;  %v18480_v7 = vand.u32 4294901760, %v5395_v54  ;;  %v20248_v27 = vld [vmem:[#allocation38_spill] sm:$0xff] }
 0x940   :  { %7502 = vmatpush.msrb.mxu2 %v18357_v50  ;;  %7539 = vmatpush.msrb.mxu3 %v7538_v48  ;;  %v5393_v48 = vmax.f32 %v18445_v37, 0.0  ;;  %v18483_v11 = vsub.f32 %v5397_v38, %v18448_v6  ;;  %v7562_v16 = vand.u32 4294901760, %v7561_v17  ;;  %v19615_v23 = vand.u32 4294901760, %v18451_v56 }
 0x941   :  { %v18490_v41 = vand.u32 4294901760, %v5394_v58  ;;  %v18493_v49 = vsub.f32 %v5396_v25, %v18463_v35  ;;  %v18496_v37 = vsub.f32 %v5437_v43, %v18465_v46  ;;  %v19619_v17 = vand.u32 4294901760, %v18468_v3 }
 0x942   :  { %v4707_v26 = vpop.f32.mrf.mxu0  ;;  %v5237_v53 = vpop.f32.mrf.mxu1  ;;  %7504 = vmatpush.msrb.mxu2 %v18370_v24  ;;  %7545 = vmatpush.msrb.mxu3 %v7544_v44  ;;  %v5392_v44 = vmax.f32 %v5170_v47, 0.0  ;;  %v20247_v47 = vld [vmem:[#allocation227_spill] sm:$0xff]  ;;  %v3366_v25 = vadd.f32 %v20248_v27, %v2711_v36  ;;  %v18506_v31 = vand.u32 4294901760, %v5393_v48  ;;  %v18509_v43 = vsub.f32 %v5395_v54, %v18480_v7 }
 0x943   :  { %v18453_v18 = vadd.f32 %v5237_v53, %v4704_v30  ;;  %v7573_v30 = vsub.f32 %v18423_v20, %v19616_v45  ;;  %v4708_v38 = vadd.f32 %v4707_v26, %v4138_v22  ;;  %v7568_v53 = vand.u32 4294901760, %v7567_v42  ;;  %v20250_v45 = vld [vmem:[#allocation228_spill] sm:$0xff] }
 0x944   :  { %7506 = vmatpush.msrb.mxu2 %v18385_v19  ;;  %7551 = vmatpush.msrb.mxu3 %v7550_v62  ;;  %v7579_v62 = vsub.f32 %v18437_v28, %v19614_v60  ;;  %v7585_v60 = vsub.f32 %v18451_v56, %v19615_v23  ;;  %v18518_v36 = vand.u32 4294901760, %v5392_v44  ;;  %v7527_v27 = vand.u32 4294901760, %v18496_v37 }
 0x945   :  { %v7574_v42 = vand.u32 4294901760, %v7573_v30  ;;  %v18522_v54 = vsub.f32 %v5394_v58, %v18490_v41  ;;  %v7591_v30 = vsub.f32 %v18468_v3, %v19619_v17  ;;  %v18532_v12 = vsub.f32 %v5393_v48, %v18506_v31 }
 0x946   :  { %7508 = vmatpush.msrb.mxu2 %v18401_v10  ;;  %7557 = vmatpush.msrb.mxu3 %v7556_v13  ;;  %v2117_v13 = vadd.f32 %v18157_v9, %v20247_v47  ;;  %v19620_v47 = vand.u32 4294901760, %v18483_v11  ;;  %v7586_v58 = vand.u32 4294901760, %v7585_v60  ;;  %v18540_v17 = vsub.f32 %v5392_v44, %v18518_v36  ;;  %v20252_v44 = vld [vmem:[#allocation42_spill] sm:$0xff] }
 0x947   :  { %v7592_v48 = vand.u32 4294901760, %v7591_v30  ;;  %v19626_v30 = vand.u32 4294901760, %v18532_v12 }
 0x948   :  { %7510 = vmatpush.msrb.mxu2 %v18420_v8  ;;  %7563 = vmatpush.msrb.mxu3 %v7562_v16  ;;  %v2715_v32 = vadd.f32 %v20250_v45, %v2117_v13  ;;  %v7528_v45 = vsub.f32 %v18496_v37, %v7527_v27 }
 0x94a   :  { %v4711_v26 = vpop.f32.mrf.mxu0  ;;  %v5241_v22 = vpop.f32.mrf.mxu1  ;;  %7512 = vmatpush.msrb.mxu2 %v18434_v59  ;;  %7569 = vmatpush.msrb.mxu3 %v7568_v53  ;;  %v7602_v53 = vand.u32 4294901760, %v18493_v49 }
 0x94b   :  { %v18511_v16 = vadd.f32 %v5241_v22, %v4708_v38  ;;  %v7580_v38 = vand.u32 4294901760, %v7579_v62  ;;  %v20249_v22 = vld [vmem:[#allocation40_spill] sm:$0xff]  ;;  %v7597_v62 = vsub.f32 %v18483_v11, %v19620_v47  ;;  %v3371_v47 = vadd.f32 %v20252_v44, %v2715_v32 }
 0x94c   :  { %7514 = vmatpush.msrb.mxu2 %v18448_v6  ;;  %7575 = vmatpush.msrb.mxu3 %v7574_v42  ;;  %v4144_v23 = vadd.f32 %v20249_v22, %v3366_v25  ;;  %v19624_v42 = vand.u32 4294901760, %v18509_v43  ;;  %v7603_v60 = vsub.f32 %v18493_v49, %v7602_v53  ;;  %v19625_v25 = vand.u32 4294901760, %v18522_v54 }
 0x94d   :  { %v19627_v32 = vand.u32 4294901760, %v18540_v17 }
 0x94e   :  { %7516 = vmatpush.msrb.mxu2 %v18463_v35  ;;  %7581 = vmatpush.msrb.mxu3 %v7580_v38  ;;  %v4712_v13 = vadd.f32 %v4711_v26, %v4144_v23  ;;  %v20251_v38 = vld [vmem:[#allocation229_spill] sm:$0xff]  ;;  %v7598_v23 = vand.u32 4294901760, %v7597_v62  ;;  %v7609_v26 = vsub.f32 %v18509_v43, %v19624_v42  ;;  %v20254_v62 = vld [vmem:[#allocation230_spill] sm:$0xff] }
 0x94f   :  { %v2125_v22 = vadd.f32 %v18157_v9, %v20251_v38  ;;  %v7604_v38 = vand.u32 4294901760, %v7603_v60 }
 0x950   :  { %7518 = vmatpush.msrb.mxu2 %v18480_v7  ;;  %7587 = vmatpush.msrb.mxu3 %v7586_v58  ;;  %v7529_v58 = vand.u32 4294901760, %v7528_v45  ;;  %v7610_v42 = vand.u32 4294901760, %v7609_v26  ;;  %v7621_v45 = vsub.f32 %v18532_v12, %v19626_v30 }
 0x951   :  { %v2719_v44 = vadd.f32 %v20254_v62, %v2125_v22 }
 0x952   :  { %v4715_v14 = vpop.f32.mrf.mxu0  ;;  %v5245_v4 = vpop.f32.mrf.mxu1  ;;  %7520 = vmatpush.msrb.mxu2 %v18490_v41  ;;  %7593 = vmatpush.msrb.mxu3 %v7592_v48 }
 0x953   :  { %v18553_v21 = vadd.f32 %v5245_v4, %v4712_v13  ;;  %v7615_v4 = vsub.f32 %v18522_v54, %v19625_v25  ;;  %v20253_v13 = vld [vmem:[#allocation44_spill] sm:$0xff]  ;;  %v3376_v62 = vadd.f32 %v17788_v63, %v2719_v44 }
 0x954   :  { %7522 = vmatpush.msrb.mxu2 %v18506_v31  ;;  %7599 = vmatpush.msrb.mxu3 %v7598_v23  ;;  %v4150_v48 = vadd.f32 %v20253_v13, %v3371_v47  ;;  %v18571_v23 = vpop.f32.mrf.mxu2  ;;  %v7627_v47 = vsub.f32 %v18540_v17, %v19627_v32 }
 0x955   :  { %v7616_v25 = vand.u32 4294901760, %v7615_v4 }
 0x956   :  { %7524 = vmatpush.msrb.mxu2 %v18518_v36  ;;  %7605 = vmatpush.msrb.mxu3 %v7604_v38  ;;  %v4716_v60 = vadd.f32 %v4715_v14, %v4150_v48  ;;  %v20255_v38 = vld [vmem:[#allocation231_spill] sm:$0xff]  ;;  %v7622_v14 = vand.u32 4294901760, %v7621_v45  ;;  %v20257_v48 = vld [vmem:[#allocation232_spill] sm:$0xff]  ;;  %v20258_v45 = vld [vmem:[#allocation233_spill] sm:$0xff] }
 0x957   :  { %7530 = vmatmul.f32.vlgmr.msrb.gmra.mxu2 %v7529_v58  ;;  %v2133_v26 = vadd.f32 %v18157_v9, %v20255_v38  ;;  %v20256_v58 = vld [vmem:[#allocation46_spill] sm:$0xff]  ;;  %v18587_v38 = vpop.f32.mrf.mxu3 }
 0x958   :  { %7637 = vmatpush.msra.mxu2 %v18376_v57  ;;  %7611 = vmatpush.msrb.mxu3 %v7610_v42  ;;  %v7628_v42 = vand.u32 4294901760, %v7627_v47  ;;  %v4156_v4 = vadd.f32 %v20256_v58, %v3376_v62  ;;  %v20259_v47 = vld [vmem:[#allocation48_spill] sm:$0xff]  ;;  %v20268_v57 = vand.u32 4294901760, %v18373_v39 }
 0x959   :  { %v2723_v32 = vadd.f32 %v20257_v48, %v2133_v26  ;;  %v20262_v48 = vld [vmem:[#allocation235_spill] sm:$0xff] }
 0x95a   :  { %v4719_v22 = vpop.f32.mrf.mxu0  ;;  %v5249_v13 = vpop.f32.mrf.mxu1  ;;  %7640 = vmatpush.msra.mxu2 %v18345_v40  ;;  %7617 = vmatpush.msrb.mxu3 %v7616_v25 }
 0x95b   :  { %v18580_v30 = vadd.f32 %v5249_v13, %v4716_v60  ;;  %v4720_v63 = vadd.f32 %v4719_v22, %v4156_v4  ;;  %v2141_v60 = vadd.f32 %v18157_v9, %v20258_v45  ;;  %v3381_v13 = vadd.f32 %v20259_v47, %v2723_v32  ;;  %v20260_v22 = vld [vmem:[#allocation53_spill] sm:$0xff] }
 0x95c   :  { %7643 = vmatpush.msra.mxu2 %v18360_v2  ;;  %7623 = vmatpush.msrb.mxu3 %v7622_v14  ;;  %v20261_v14 = vld [vmem:[#allocation234_spill] sm:$0xff] }
 0x95d   :  { %v4162_v62 = vadd.f32 %v20260_v22, %v3381_v13  ;;  %v20265_v13 = vld [vmem:[#allocation236_spill] sm:$0xff] }
 0x95e   :  { %7646 = vmatpush.msra.mxu2 %v18373_v39  ;;  %7629 = vmatpush.msrb.mxu3 %v7628_v42  ;;  %v2727_v42 = vadd.f32 %v20261_v14, %v2141_v60  ;;  %v20271_v39 = vand.u32 4294901760, %v18423_v20 }
 0x95f   :  { %7631 = vmatmul.f32.vlgmr.msrb.gmra.mxu3 %v18465_v46 }
 0x960   :  { %7649 = vmatpush.msra.mxu2 %v18388_v33  ;;  %7690 = vmatpush.msra.mxu3 %v18362_v29 }
 0x962   :  { %v4723_v25 = vpop.f32.mrf.mxu0  ;;  %v5253_v44 = vpop.f32.mrf.mxu1  ;;  %7652 = vmatpush.msra.mxu2 %v18404_v5  ;;  %7692 = vmatpush.msra.mxu3 %v18326_v1 }
 0x963   :  { %v18595_v26 = vadd.f32 %v5253_v44, %v4720_v63  ;;  %v4724_v58 = vadd.f32 %v4723_v25, %v4162_v62  ;;  %v2149_v63 = vadd.f32 %v18157_v9, %v20262_v48  ;;  %v20263_v44 = vld [vmem:[#allocation55_spill] sm:$0xff]  ;;  %v18632_v48 = vpop.f32.mrf.mxu2 }
 0x964   :  { %7655 = vmatpush.msra.mxu2 %v18423_v20  ;;  %7694 = vmatpush.msra.mxu3 %v18330_v52  ;;  %v3386_v45 = vadd.f32 %v20263_v44, %v2727_v42  ;;  %v20264_v25 = vld [vmem:[#allocation51_spill] sm:$0xff] }
 0x965   :  { %v2731_v22 = vadd.f32 %v20265_v13, %v2149_v63  ;;  %v20270_v13 = vand.u32 4294901760, %v18404_v5 }
 0x966   :  { %7658 = vmatpush.msra.mxu2 %v18437_v28  ;;  %7696 = vmatpush.msra.mxu3 %v18342_v55  ;;  %v4168_v60 = vadd.f32 %v20264_v25, %v3386_v45  ;;  %v20266_v45 = vand.u32 4294901760, %v18345_v40  ;;  %v20267_v25 = vand.u32 4294901760, %v18360_v2  ;;  %v20269_v40 = vand.u32 4294901760, %v18388_v33 }
 0x967   :  { %v20273_v33 = vand.u32 4294901760, %v18451_v56 }
 0x968   :  { %7661 = vmatpush.msra.mxu2 %v18451_v56  ;;  %7698 = vmatpush.msra.mxu3 %v18357_v50 }
 0x96a   :  { %v4727_v32 = vpop.f32.mrf.mxu0  ;;  %v5257_v4 = vpop.f32.mrf.mxu1  ;;  %7664 = vmatpush.msra.mxu2 %v18468_v3  ;;  %7700 = vmatpush.msra.mxu3 %v18370_v24 }
 0x96b   :  { %v18610_v47 = vadd.f32 %v5257_v4, %v4724_v58  ;;  %v4728_v62 = vadd.f32 %v4727_v32, %v4168_v60  ;;  %v3391_v58 = vadd.f32 %v18184_v61, %v2731_v22 }
 0x96c   :  { %7667 = vmatpush.msra.mxu2 %v18483_v11  ;;  %7702 = vmatpush.msra.mxu3 %v18385_v19 }
 0x96d   :  { %v4174_v32 = vadd.f32 %v18204_v34, %v3391_v58  ;;  %v20287_v58 = vld [vmem:[#allocation244_spill] sm:$0xff] }
 0x96e   :  { %7670 = vmatpush.msra.mxu2 %v18493_v49  ;;  %7704 = vmatpush.msra.mxu3 %v18401_v10  ;;  %v20280_v49 = vld [vmem:[#allocation245_spill] sm:$0xff] }
 0x970   :  { %7673 = vmatpush.msra.mxu2 %v18509_v43  ;;  %7706 = vmatpush.msra.mxu3 %v18420_v8 }
 0x972   :  { %v4731_v14 = vpop.f32.mrf.mxu0  ;;  %v5261_v42 = vpop.f32.mrf.mxu1  ;;  %7676 = vmatpush.msra.mxu2 %v18522_v54  ;;  %7708 = vmatpush.msra.mxu3 %v18434_v59 }
 0x973   :  { %v18623_v4 = vadd.f32 %v5261_v42, %v4728_v62  ;;  %v4732_v61 = vadd.f32 %v4731_v14, %v4174_v32  ;;  %v20285_v62 = vld [vmem:[#allocation248_spill] sm:$0xff]  ;;  %v20286_v42 = vld [vmem:[#allocation239_spill] sm:$0xff] }
 0x974   :  { %7679 = vmatpush.msra.mxu2 %v18532_v12  ;;  %7710 = vmatpush.msra.mxu3 %v18448_v6 }
 0x976   :  { %7682 = vmatpush.msra.mxu2 %v18540_v17  ;;  %7712 = vmatpush.msra.mxu3 %v18463_v35 }
 0x977   :  { %7685 = vmatmul.f32.vlgmr.msra.gmra.mxu2 %v18496_v37  ;;  %v20272_v37 = vand.u32 4294901760, %v18437_v28 }
 0x978   :  { %7731 = vmatpush.msrb.mxu2 %v7536_v0  ;;  %7714 = vmatpush.msra.mxu3 %v18480_v7  ;;  %v18651_v0 = vpop.f32.mrf.mxu3 }
 0x97a   :  { %v18638_v63 = vpop.f32.mrf.mxu0  ;;  %v5265_v44 = vpop.f32.mrf.mxu1  ;;  %7735 = vmatpush.msrb.mxu2 %v20266_v45  ;;  %7716 = vmatpush.msra.mxu3 %v18490_v41 }
 0x97b   :  { %v18642_v34 = vadd.f32 %v5265_v44, %v4732_v61  ;;  %v20288_v61 = vld [vmem:[#allocation237_spill] sm:$0xff]  ;;  %v20289_v44 = vld [vmem:[#allocation242_spill] sm:$0xff] }
 0x97c   :  { %7739 = vmatpush.msrb.mxu2 %v20267_v25  ;;  %7718 = vmatpush.msra.mxu3 %v18506_v31 }
 0x97e   :  { %7743 = vmatpush.msrb.mxu2 %v20268_v57  ;;  %7720 = vmatpush.msra.mxu3 %v18518_v36 }
 0x97f   :  { %7724 = vmatmul.f32.vlgmr.msra.gmra.mxu3 %v7527_v27 }
 0x980   :  { %7747 = vmatpush.msrb.mxu2 %v20269_v40  ;;  %7798 = vmatpush.msrb.mxu3 %v18362_v29  ;;  %v3410_v29 = vpop.f32.mrf.mxu2 }
 0x982   :  { %v18658_v60 = vpop.f32.mrf.mxu0  ;;  %v18660_v2 = vpop.f32.mrf.mxu1  ;;  %7751 = vmatpush.msrb.mxu2 %v20270_v13  ;;  %7800 = vmatpush.msrb.mxu3 %v18326_v1  ;;  %v20274_v1 = vand.u32 4294901760, %v18468_v3  ;;  %v20290_v13 = vld [vmem:[#allocation249_spill] sm:$0xff] }
 0x984   :  { %7755 = vmatpush.msrb.mxu2 %v20271_v39  ;;  %7802 = vmatpush.msrb.mxu3 %v18330_v52  ;;  %v20275_v52 = vand.u32 4294901760, %v18483_v11  ;;  %v2205_v39 = vadd.f32 %v18157_v9, %v20290_v13 }
 0x986   :  { %7759 = vmatpush.msrb.mxu2 %v20272_v37  ;;  %7804 = vmatpush.msrb.mxu3 %v18342_v55  ;;  %v4197_v55 = vpop.f32.mrf.mxu3 }
 0x988   :  { %7763 = vmatpush.msrb.mxu2 %v20273_v33  ;;  %7806 = vmatpush.msrb.mxu3 %v18357_v50  ;;  %v20276_v50 = vand.u32 4294901760, %v18509_v43  ;;  %v3415_v56 = vpop.f32.mrf.mxu2  ;;  %v20281_v43 = vld [vmem:[#allocation247_spill] sm:$0xff]  ;;  %v20291_v33 = vld [vmem:[#allocation240_spill] sm:$0xff] }
 0x98a   :  { %v18674_v5 = vpop.f32.mrf.mxu0  ;;  %v18676_v27 = vpop.f32.mrf.mxu1  ;;  %7767 = vmatpush.msrb.mxu2 %v20274_v1  ;;  %7808 = vmatpush.msrb.mxu3 %v18370_v24  ;;  %v20277_v24 = vand.u32 4294901760, %v18522_v54 }
 0x98c   :  { %7771 = vmatpush.msrb.mxu2 %v20275_v52  ;;  %7810 = vmatpush.msrb.mxu3 %v18385_v19  ;;  %v20278_v19 = vand.u32 4294901760, %v18532_v12  ;;  %v2197_v12 = vadd.f32 %v18157_v9, %v20281_v43  ;;  %v20292_v52 = vld [vmem:[#allocation238_spill] sm:$0xff] }
 0x98e   :  { %7775 = vmatpush.msrb.mxu2 %v7602_v53  ;;  %7812 = vmatpush.msrb.mxu3 %v18401_v10  ;;  %v20279_v10 = vand.u32 4294901760, %v18540_v17  ;;  %v4203_v3 = vpop.f32.mrf.mxu3  ;;  %v2755_v14 = vadd.f32 %v20285_v62, %v2197_v12 }
 0x990   :  { %7779 = vmatpush.msrb.mxu2 %v20276_v50  ;;  %7814 = vmatpush.msrb.mxu3 %v18420_v8  ;;  %v3420_v53 = vpop.f32.mrf.mxu2 }
 0x991   :  { %v3421_v37 = vadd.f32 %v3420_v53, %v2755_v14 }
 0x992   :  { %v4747_v20 = vpop.f32.mrf.mxu0  ;;  %v5277_v28 = vpop.f32.mrf.mxu1  ;;  %7783 = vmatpush.msrb.mxu2 %v20277_v24  ;;  %7816 = vmatpush.msrb.mxu3 %v18434_v59  ;;  %v2189_v59 = vadd.f32 %v18157_v9, %v20280_v49  ;;  %v20293_v49 = vld [vmem:[#allocation250_spill] sm:$0xff] }
 0x994   :  { %7787 = vmatpush.msrb.mxu2 %v20278_v19  ;;  %7818 = vmatpush.msrb.mxu3 %v18448_v6  ;;  %v20282_v6 = vld [vmem:[#allocation243_spill] sm:$0xff] }
 0x995   :  { %v2181_v17 = vadd.f32 %v18157_v9, %v20282_v6 }
 0x996   :  { %7791 = vmatpush.msrb.mxu2 %v20279_v10  ;;  %7820 = vmatpush.msrb.mxu3 %v18463_v35  ;;  %v20283_v35 = vld [vmem:[#allocation241_spill] sm:$0xff]  ;;  %v4209_v25 = vpop.f32.mrf.mxu3 }
 0x997   :  { %7793 = vmatmul.f32.vlgmr.msrb.gmra.mxu2 %v18465_v46  ;;  %v2173_v54 = vadd.f32 %v18157_v9, %v20283_v35  ;;  %v2747_v32 = vadd.f32 %v20287_v58, %v2181_v17  ;;  %v4210_v10 = vadd.f32 %v4209_v25, %v3421_v37 }
 0x998   :  { %7822 = vmatpush.msrb.mxu3 %v18480_v7  ;;  %v20284_v7 = vld [vmem:[#allocation246_spill] sm:$0xff]  ;;  %v3425_v43 = vpop.f32.mrf.mxu2 }
 0x999   :  { %v2751_v22 = vadd.f32 %v20284_v7, %v2189_v59  ;;  %v2743_v45 = vadd.f32 %v20289_v44, %v2173_v54  ;;  %v3411_v1 = vadd.f32 %v3410_v29, %v2747_v32  ;;  %v2759_v59 = vadd.f32 %v20293_v49, %v2205_v39 }
 0x99a   :  { %v4751_v8 = vpop.f32.mrf.mxu0  ;;  %v5281_v11 = vpop.f32.mrf.mxu1  ;;  %7824 = vmatpush.msrb.mxu3 %v18490_v41  ;;  %v2165_v41 = vadd.f32 %v18157_v9, %v20286_v42 }
 0x99b   :  { %v3416_v40 = vadd.f32 %v3415_v56, %v2751_v22  ;;  %v3406_v24 = vadd.f32 %v18632_v48, %v2743_v45  ;;  %v4198_v56 = vadd.f32 %v4197_v55, %v3411_v1  ;;  %v3426_v29 = vadd.f32 %v3425_v43, %v2759_v59 }
 0x99c   :  { %7826 = vmatpush.msrb.mxu3 %v18506_v31  ;;  %v2157_v31 = vadd.f32 %v18157_v9, %v20288_v61  ;;  %v5415_v1 = vmax.f32 %v18623_v4, 0.0 }
 0x99d   :  { %v4204_v19 = vadd.f32 %v4203_v3, %v3416_v40  ;;  %v4192_v35 = vadd.f32 %v18651_v0, %v3406_v24  ;;  %v4748_v53 = vadd.f32 %v4747_v20, %v4198_v56 }
 0x99e   :  { %7828 = vmatpush.msrb.mxu3 %v18518_v36  ;;  %v2735_v50 = vadd.f32 %v20292_v52, %v2157_v31  ;;  %v4215_v48 = vpop.f32.mrf.mxu3 }
 0x99f   :  { %7830 = vmatmul.f32.vlgmr.msrb.gmra.mxu3 %v18465_v46  ;;  %v2739_v46 = vadd.f32 %v20291_v33, %v2165_v41  ;;  %v4752_v6 = vadd.f32 %v4751_v8, %v4204_v19  ;;  %v4744_v62 = vadd.f32 %v18674_v5, %v4192_v35  ;;  %v5282_v14 = vadd.f32 %v5281_v11, %v4748_v53 }
 0x9a0   :  { %v3396_v9 = vadd.f32 %v18259_v51, %v2735_v50  ;;  %v4216_v41 = vadd.f32 %v4215_v48, %v3426_v29  ;;  %v5414_v19 = vmax.f32 %v18610_v47, 0.0  ;;  %v18788_v47 = vand.u32 4294901760, %v5415_v1 }
 0x9a1   :  { %v3401_v12 = vadd.f32 %v18571_v23, %v2739_v46  ;;  %v20294_v23 = vld [vmem:[#allocation49_spill] sm:$0xff]  ;;  %v5278_v58 = vadd.f32 %v5277_v28, %v4744_v62  ;;  %v5420_v61 = vmax.f32 %v5282_v14, 0.0  ;;  %v5412_v35 = vmax.f32 %v18580_v30, 0.0 }
 0x9a2   :  { %v5285_v57 = vpop.f32.mrf.mxu1  ;;  %v4755_v36 = vpop.f32.mrf.mxu0  ;;  %v4180_v55 = vadd.f32 %v20294_v23, %v3396_v9  ;;  %v5411_v48 = vmax.f32 %v18553_v21, 0.0  ;;  %v18813_v30 = vsub.f32 %v5415_v1, %v18788_v47  ;;  %v5410_v23 = vmax.f32 %v18511_v16, 0.0 }
 0x9a3   :  { %v4756_v17 = vadd.f32 %v4755_v36, %v4210_v10  ;;  %v5286_v7 = vadd.f32 %v5285_v57, %v4752_v6  ;;  %v4186_v3 = vadd.f32 %v18587_v38, %v3401_v12  ;;  %v5419_v11 = vmax.f32 %v5278_v58, 0.0 }
 0x9a4   :  { %v4736_v32 = vadd.f32 %v18638_v63, %v4180_v55  ;;  %v18741_v40 = vand.u32 4294901760, %v5420_v61  ;;  %v5413_v12 = vmax.f32 %v18595_v26, 0.0  ;;  %v18821_v55 = vand.u32 4294901760, %v5412_v35 }
 0x9a5   :  { %v4740_v51 = vadd.f32 %v18658_v60, %v4186_v3  ;;  %v5421_v0 = vmax.f32 %v5286_v7, 0.0  ;;  %v18834_v16 = vand.u32 4294901760, %v5411_v48 }
 0x9a6   :  { %v5270_v5 = vadd.f32 %v18660_v2, %v4736_v32  ;;  %v5416_v2 = vmax.f32 %v18642_v34, 0.0  ;;  %v18757_v36 = vsub.f32 %v5420_v61, %v18741_v40  ;;  %v18810_v3 = vand.u32 4294901760, %v5413_v12 }
 0x9a7   :  { %v5274_v20 = vadd.f32 %v18676_v27, %v4740_v51  ;;  %v18739_v45 = vand.u32 4294901760, %v5421_v0  ;;  %v18746_v27 = vand.u32 4294901760, %v5419_v11 }
 0x9a8   :  { %v5417_v28 = vmax.f32 %v5270_v5, 0.0  ;;  %v18774_v10 = vand.u32 4294901760, %v5416_v2  ;;  %v7895_v43 = vand.u32 4294901760, %v18757_v36  ;;  %v18837_v32 = vsub.f32 %v5413_v12, %v18810_v3 }
 0x9a9   :  { %v5418_v57 = vmax.f32 %v5274_v20, 0.0  ;;  %v18749_v13 = vsub.f32 %v5421_v0, %v18739_v45  ;;  %v18768_v50 = vsub.f32 %v5419_v11, %v18746_v27  ;;  %v5409_v0 = vmax.f32 %v18453_v18, 0.0 }
 0x9aa   :  { %v5289_v54 = vpop.f32.mrf.mxu1  ;;  %v4759_v8 = vpop.f32.mrf.mxu0  ;;  %v18765_v52 = vand.u32 4294901760, %v5417_v28  ;;  %v18802_v26 = vsub.f32 %v5416_v2, %v18774_v10  ;;  %v7896_v53 = vsub.f32 %v18757_v36, %v7895_v43  ;;  %v18845_v5 = vand.u32 4294901760, %v5410_v23 }
 0x9ab   :  { %v5290_v22 = vadd.f32 %v5289_v54, %v4756_v17  ;;  %v4760_v31 = vadd.f32 %v4759_v8, %v4216_v41  ;;  %v18754_v37 = vand.u32 4294901760, %v5418_v57  ;;  %v7889_v24 = vand.u32 4294901760, %v18749_v13 }
 0x9ac   :  { %v18791_v56 = vsub.f32 %v5417_v28, %v18765_v52  ;;  %v7901_v9 = vand.u32 4294901760, %v18768_v50  ;;  %v18799_v54 = vand.u32 4294901760, %v5414_v19  ;;  %v7897_v41 = vand.u32 4294901760, %v7896_v53 }
 0x9ad   :  { %v5422_v42 = vmax.f32 %v5290_v22, 0.0  ;;  %v18777_v49 = vsub.f32 %v5418_v57, %v18754_v37  ;;  %v7890_v17 = vsub.f32 %v18749_v13, %v7889_v24  ;;  %v5438_v22 = vld.sshfl [vmem:[#allocation1 + $0x38] sm:$0xff pattern:$0x73625140]  ;;  %v7919_v58 = vand.u32 4294901760, %v18802_v26 }
 0x9ae   :  { %v7902_v14 = vsub.f32 %v18768_v50, %v7901_v9  ;;  %v18823_v21 = vand.u32 4294901760, %v5438_v22  ;;  %v18826_v8 = vsub.f32 %v5414_v19, %v18799_v54  ;;  %v18851_v11 = vsub.f32 %v5412_v35, %v18821_v55 }
 0x9af   :  { %v18736_v44 = vand.u32 4294901760, %v5422_v42  ;;  %v7907_v7 = vand.u32 4294901760, %v18777_v49  ;;  %v7891_v62 = vand.u32 4294901760, %v7890_v17  ;;  %v7920_v57 = vsub.f32 %v18802_v26, %v7919_v58 }
 0x9b0   :  { %v7903_v20 = vand.u32 4294901760, %v7902_v14  ;;  %v18848_v18 = vsub.f32 %v5438_v22, %v18823_v21  ;;  %v18858_v28 = vand.u32 4294901760, %v5409_v0  ;;  %v7937_v19 = vand.u32 4294901760, %v18837_v32 }
 0x9b1   :  { %v18744_v60 = vsub.f32 %v5422_v42, %v18736_v44  ;;  %v7913_v42 = vand.u32 4294901760, %v18791_v56  ;;  %v7908_v51 = vsub.f32 %v18777_v49, %v7907_v7  ;;  %v18872_v12 = vsub.f32 %v5410_v23, %v18845_v5 }
 0x9b2   :  { %v5293_v38 = vpop.f32.mrf.mxu1  ;;  %v7943_v35 = vand.u32 4294901760, %v18851_v11  ;;  %v7938_v22 = vsub.f32 %v18837_v32, %v7937_v19 }
 0x9b3   :  { %v5294_v25 = vadd.f32 %v5293_v38, %v4760_v31  ;;  %v7883_v46 = vand.u32 4294901760, %v18744_v60  ;;  %v7914_v61 = vsub.f32 %v18791_v56, %v7913_v42  ;;  %v7925_v31 = vand.u32 4294901760, %v18813_v30 }
 0x9b4   :  { %v5408_v38 = vmax.f32 %v18391_v15, 0.0  ;;  %v18861_v15 = vsub.f32 %v5411_v48, %v18834_v16 }
 0x9b5   :  { %v5423_v63 = vmax.f32 %v5294_v25, 0.0  ;;  %v7884_v59 = vsub.f32 %v18744_v60, %v7883_v46  ;;  %v7909_v25 = vand.u32 4294901760, %v7908_v51  ;;  %v7915_v2 = vand.u32 4294901760, %v7914_v61 }
 0x9b6   :  { %v7926_v1 = vsub.f32 %v18813_v30, %v7925_v31  ;;  %v7949_v48 = vand.u32 4294901760, %v18861_v15  ;;  %v7955_v51 = vand.u32 4294901760, %v18872_v12 }
 0x9b7   :  { %v18751_v39 = vand.u32 4294901760, %v5423_v63  ;;  %v7885_v29 = vand.u32 4294901760, %v7884_v59  ;;  %v7868_v59 = vand.u32 4294901760, %v18848_v18 }
 0x9b8   :  { %v7927_v53 = vand.u32 4294901760, %v7926_v1 }
 0x9b9   :  { %v18760_v33 = vsub.f32 %v5423_v63, %v18751_v39  ;;  %7835 = vmatpush.msra.mxu2 %v18751_v39  ;;  %v7931_v63 = vand.u32 4294901760, %v18826_v8 }
 0x9bb   :  { %v7877_v34 = vand.u32 4294901760, %v18760_v33  ;;  %7837 = vmatpush.msra.mxu2 %v18736_v44  ;;  %v7932_v17 = vsub.f32 %v18826_v8, %v7931_v63 }
 0x9bd   :  { %v7878_v4 = vsub.f32 %v18760_v33, %v7877_v34  ;;  %7839 = vmatpush.msra.mxu2 %v18739_v45  ;;  %v7933_v23 = vand.u32 4294901760, %v7932_v17  ;;  %v18912_v17 = vpop.f32.mrf.mxu2 }
 0x9bf   :  { %7841 = vmatpush.msra.mxu2 %v18741_v40  ;;  %v7879_v6 = vand.u32 4294901760, %v7878_v4  ;;  %v18868_v4 = vand.u32 4294901760, %v5408_v38 }
 0x9c1   :  { %7843 = vmatpush.msra.mxu2 %v18746_v27  ;;  %7880 = vmatpush.msra.mxu3 %v7879_v6  ;;  %v7921_v6 = vand.u32 4294901760, %v7920_v57  ;;  %v18891_v14 = vsub.f32 %v5408_v38, %v18868_v4  ;;  %v7956_v57 = vsub.f32 %v18872_v12, %v7955_v51 }
 0x9c3   :  { %7845 = vmatpush.msra.mxu2 %v18754_v37  ;;  %7886 = vmatpush.msra.mxu3 %v7885_v29  ;;  %v18880_v29 = vsub.f32 %v5409_v0, %v18858_v28  ;;  %v7939_v0 = vand.u32 4294901760, %v7938_v22 }
 0x9c5   :  { %7847 = vmatpush.msra.mxu2 %v18765_v52  ;;  %7892 = vmatpush.msra.mxu3 %v7891_v62  ;;  %v7869_v62 = vsub.f32 %v18848_v18, %v7868_v59  ;;  %v7961_v61 = vand.u32 4294901760, %v18880_v29 }
 0x9c7   :  { %7849 = vmatpush.msra.mxu2 %v18774_v10  ;;  %7898 = vmatpush.msra.mxu3 %v7897_v41  ;;  %v7944_v41 = vsub.f32 %v18851_v11, %v7943_v35  ;;  %v7870_v38 = vand.u32 4294901760, %v7869_v62 }
 0x9c9   :  { %7851 = vmatpush.msra.mxu2 %v18788_v47  ;;  %7904 = vmatpush.msra.mxu3 %v7903_v20  ;;  %v7950_v20 = vsub.f32 %v18861_v15, %v7949_v48 }
 0x9cb   :  { %7853 = vmatpush.msra.mxu2 %v18799_v54  ;;  %7910 = vmatpush.msra.mxu3 %v7909_v25  ;;  %v7945_v25 = vand.u32 4294901760, %v7944_v41  ;;  %v7951_v1 = vand.u32 4294901760, %v7950_v20 }
 0x9cd   :  { %7855 = vmatpush.msra.mxu2 %v18810_v3  ;;  %7916 = vmatpush.msra.mxu3 %v7915_v2  ;;  %v7967_v2 = vand.u32 4294901760, %v18891_v14 }
 0x9cf   :  { %7857 = vmatpush.msra.mxu2 %v18821_v55  ;;  %7922 = vmatpush.msra.mxu3 %v7921_v6  ;;  %v7962_v6 = vsub.f32 %v18880_v29, %v7961_v61  ;;  %v7968_v22 = vsub.f32 %v18891_v14, %v7967_v2 }
 0x9d1   :  { %7859 = vmatpush.msra.mxu2 %v18834_v16  ;;  %7928 = vmatpush.msra.mxu3 %v7927_v53  ;;  %v7957_v53 = vand.u32 4294901760, %v7956_v57  ;;  %v7963_v62 = vand.u32 4294901760, %v7962_v6  ;;  %v7969_v41 = vand.u32 4294901760, %v7968_v22 }
 0x9d3   :  { %7861 = vmatpush.msra.mxu2 %v18845_v5  ;;  %7934 = vmatpush.msra.mxu3 %v7933_v23  ;;  %v18919_v23 = vpop.f32.mrf.mxu3 }
 0x9d5   :  { %7863 = vmatpush.msra.mxu2 %v18858_v28  ;;  %7940 = vmatpush.msra.mxu3 %v7939_v0  ;;  %v18926_v0 = vpop.f32.mrf.mxu2 }
 0x9d7   :  { %7865 = vmatpush.msra.mxu2 %v18868_v4  ;;  %7946 = vmatpush.msra.mxu3 %v7945_v25 }
 0x9d8   :  { %7871 = vmatmul.f32.vlgmr.msra.gmra.mxu2 %v7870_v38 }
 0x9d9   :  { %7978 = vmatpush.msrb.mxu2 %v18760_v33  ;;  %7952 = vmatpush.msra.mxu3 %v7951_v1 }
 0x9db   :  { %7981 = vmatpush.msrb.mxu2 %v18744_v60  ;;  %7958 = vmatpush.msra.mxu3 %v7957_v53  ;;  %v18932_v20 = vpop.f32.mrf.mxu3 }
 0x9dd   :  { %7984 = vmatpush.msrb.mxu2 %v18749_v13  ;;  %7964 = vmatpush.msra.mxu3 %v7963_v62  ;;  %v18940_v38 = vpop.f32.mrf.mxu2 }
 0x9df   :  { %7987 = vmatpush.msrb.mxu2 %v18757_v36  ;;  %7970 = vmatpush.msra.mxu3 %v7969_v41  ;;  %v8175_v41 = vld [vmem:[%s19325_s3] sm:$0xff] }
 0x9e0   :  { %7972 = vmatmul.f32.vlgmr.msra.gmra.mxu3 %v18823_v21 }
 0x9e1   :  { %7990 = vmatpush.msrb.mxu2 %v18768_v50  ;;  %8031 = vmatpush.msrb.mxu3 %v18751_v39 }
 0x9e3   :  { %7993 = vmatpush.msrb.mxu2 %v18777_v49  ;;  %8033 = vmatpush.msrb.mxu3 %v18736_v44  ;;  %v18946_v25 = vpop.f32.mrf.mxu3 }
 0x9e5   :  { %7996 = vmatpush.msrb.mxu2 %v18791_v56  ;;  %8035 = vmatpush.msrb.mxu3 %v18739_v45  ;;  %v18954_v57 = vpop.f32.mrf.mxu2 }
 0x9e7   :  { %7999 = vmatpush.msrb.mxu2 %v18802_v26  ;;  %8037 = vmatpush.msrb.mxu3 %v18741_v40 }
 0x9e9   :  { %8002 = vmatpush.msrb.mxu2 %v18813_v30  ;;  %8039 = vmatpush.msrb.mxu3 %v18746_v27 }
 0x9eb   :  { %8005 = vmatpush.msrb.mxu2 %v18826_v8  ;;  %8041 = vmatpush.msrb.mxu3 %v18754_v37  ;;  %v5927_v1 = vpop.f32.mrf.mxu3 }
 0x9ed   :  { %8008 = vmatpush.msrb.mxu2 %v18837_v32  ;;  %8043 = vmatpush.msrb.mxu3 %v18765_v52  ;;  %v5981_v33 = vpop.f32.mrf.mxu2 }
 0x9ef   :  { %8011 = vmatpush.msrb.mxu2 %v18851_v11  ;;  %8045 = vmatpush.msrb.mxu3 %v18774_v10 }
 0x9f1   :  { %8014 = vmatpush.msrb.mxu2 %v18861_v15  ;;  %8047 = vmatpush.msrb.mxu3 %v18788_v47 }
 0x9f3   :  { %8017 = vmatpush.msrb.mxu2 %v18872_v12  ;;  %8049 = vmatpush.msrb.mxu3 %v18799_v54  ;;  %v6020_v60 = vpop.f32.mrf.mxu3 }
 0x9f5   :  { %8020 = vmatpush.msrb.mxu2 %v18880_v29  ;;  %8051 = vmatpush.msrb.mxu3 %v18810_v3  ;;  %v6089_v13 = vpop.f32.mrf.mxu2 }
 0x9f7   :  { %8023 = vmatpush.msrb.mxu2 %v18891_v14  ;;  %8053 = vmatpush.msrb.mxu3 %v18821_v55 }
 0x9f8   :  { %8026 = vmatmul.f32.vlgmr.msrb.gmra.mxu2 %v18848_v18 }
 0x9f9   :  { %8072 = vmatpush.msra.mxu2 %v7877_v34  ;;  %8055 = vmatpush.msrb.mxu3 %v18834_v16 }
 0x9fb   :  { %8076 = vmatpush.msra.mxu2 %v7883_v46  ;;  %8057 = vmatpush.msrb.mxu3 %v18845_v5  ;;  %v5587_v46 = vadd.f32 %v18919_v23, %v18912_v17 }
 0x9fd   :  { %8080 = vmatpush.msra.mxu2 %v7889_v24  ;;  %8059 = vmatpush.msrb.mxu3 %v18858_v28  ;;  %v5641_v50 = vadd.f32 %v18926_v0, %v5587_v46 }
 0x9ff   :  { %8084 = vmatpush.msra.mxu2 %v7895_v43  ;;  %8061 = vmatpush.msrb.mxu3 %v18868_v4  ;;  %v5680_v24 = vadd.f32 %v18932_v20, %v5641_v50  ;;  %v8202_v20 = vand.u32 4294901760, %v8175_v41 }
 0xa00   :  { %8065 = vmatmul.f32.vlgmr.msrb.gmra.mxu3 %v7868_v59 }
 0xa01   :  { %8088 = vmatpush.msra.mxu2 %v7901_v9  ;;  %8139 = vmatpush.msra.mxu3 %v18751_v39  ;;  %v5749_v49 = vadd.f32 %v18940_v38, %v5680_v24 }
 0xa03   :  { %8092 = vmatpush.msra.mxu2 %v7907_v7  ;;  %8141 = vmatpush.msra.mxu3 %v18736_v44  ;;  %v6126_v44 = vpop.f32.mrf.mxu3 }
 0xa05   :  { %8096 = vmatpush.msra.mxu2 %v7913_v42  ;;  %8143 = vmatpush.msra.mxu3 %v18739_v45  ;;  %v6167_v45 = vpop.f32.mrf.mxu2 }
 0xa07   :  { %8100 = vmatpush.msra.mxu2 %v7919_v58  ;;  %8145 = vmatpush.msra.mxu3 %v18741_v40 }
 0xa09   :  { %8104 = vmatpush.msra.mxu2 %v7925_v31  ;;  %8147 = vmatpush.msra.mxu3 %v18746_v27 }
 0xa0b   :  { %8108 = vmatpush.msra.mxu2 %v7931_v63  ;;  %8149 = vmatpush.msra.mxu3 %v18754_v37  ;;  %v6268_v40 = vpop.f32.mrf.mxu3 }
 0xa0d   :  { %8112 = vmatpush.msra.mxu2 %v7937_v19  ;;  %8151 = vmatpush.msra.mxu3 %v18765_v52  ;;  %v6322_v27 = vpop.f32.mrf.mxu2 }
 0xa0f   :  { %8116 = vmatpush.msra.mxu2 %v7943_v35  ;;  %8153 = vmatpush.msra.mxu3 %v18774_v10 }
 0xa11   :  { %8120 = vmatpush.msra.mxu2 %v7949_v48  ;;  %8155 = vmatpush.msra.mxu3 %v18788_v47  ;;  %v5786_v47 = vadd.f32 %v18946_v25, %v5749_v49 }
 0xa13   :  { %8124 = vmatpush.msra.mxu2 %v7955_v51  ;;  %8157 = vmatpush.msra.mxu3 %v18799_v54  ;;  %v6361_v39 = vpop.f32.mrf.mxu3  ;;  %v5827_v9 = vadd.f32 %v18954_v57, %v5786_v47  ;;  %v8229_v57 = vsub.f32 %v8175_v41, %v8202_v20 }
 0xa15   :  { %8128 = vmatpush.msra.mxu2 %v7961_v61  ;;  %8159 = vmatpush.msra.mxu3 %v18810_v3  ;;  %v6430_v37 = vpop.f32.mrf.mxu2  ;;  %v5928_v26 = vadd.f32 %v5927_v1, %v5827_v9 }
 0xa17   :  { %8132 = vmatpush.msra.mxu2 %v7967_v2  ;;  %8161 = vmatpush.msra.mxu3 %v18821_v55  ;;  %v5982_v3 = vadd.f32 %v5981_v33, %v5928_v26  ;;  %v8230_v33 = vand.u32 4294901760, %v8229_v57  ;;  %v8176_v26 = vld [vmem:[%s19325_s3 + $0x8] sm:$0xff] }
 0xa18   :  { %8134 = vmatmul.f32.vlgmr.msra.gmra.mxu2 %v18823_v21 }
 0xa19   :  { %8163 = vmatpush.msra.mxu3 %v18834_v16  ;;  %v6021_v42 = vadd.f32 %v6020_v60, %v5982_v3  ;;  %8203 = vmatpush.msrb.mxu2 %v8202_v20 }
 0xa1b   :  { %8165 = vmatpush.msra.mxu3 %v18845_v5  ;;  %v6467_v36 = vpop.f32.mrf.mxu3  ;;  %8256 = vmatpush.msra.mxu2 %v8229_v57 }
 0xa1d   :  { %8167 = vmatpush.msra.mxu3 %v18858_v28  ;;  %v6508_v52 = vpop.f32.mrf.mxu2 }
 0xa1f   :  { %8169 = vmatpush.msra.mxu3 %v18868_v4 }
 0xa20   :  { %8171 = vmatmul.f32.vlgmr.msra.gmra.mxu3 %v18823_v21  ;;  %v6090_v21 = vadd.f32 %v6089_v13, %v6021_v42 }
 0xa22   :  { %v6127_v58 = vadd.f32 %v6126_v44, %v6090_v21  ;;  %v8231_v44 = vsub.f32 %v8229_v57, %v8230_v33 }
 0xa23   :  { %v6609_v34 = vpop.f32.mrf.mxu3 }
 0xa24   :  { %v6168_v32 = vadd.f32 %v6167_v45, %v6127_v58 }
 0xa25   :  { %v6663_v10 = vpop.f32.mrf.mxu2 }
 0xa26   :  { %v6269_v5 = vadd.f32 %v6268_v40, %v6168_v32  ;;  %v8232_v40 = vand.u32 4294901760, %v8231_v44 }
 0xa28   :  { %v6323_v11 = vadd.f32 %v6322_v27, %v6269_v5  ;;  %8233 = vmatpush.msrb.mxu3 %v8232_v40 }
 0xa2a   :  { %v6362_v28 = vadd.f32 %v6361_v39, %v6323_v11  ;;  %8279 = vmatpush.msra.mxu3 %v8202_v20 }
 0xa2b   :  { %v6702_v43 = vpop.f32.mrf.mxu3 }
 0xa2c   :  { %v6431_v15 = vadd.f32 %v6430_v37, %v6362_v28 }
 0xa2d   :  { %v6771_v56 = vpop.f32.mrf.mxu2 }
 0xa2e   :  { %v6468_v4 = vadd.f32 %v6467_v36, %v6431_v15 }
 0xa30   :  { %v6509_v59 = vadd.f32 %v6508_v52, %v6468_v4  ;;  %v8177_v4 = vld [vmem:[%s19325_s3 + $0x10] sm:$0xff] }
 0xa32   :  { %v6610_v35 = vadd.f32 %v6609_v34, %v6509_v59  ;;  %v8494_v59 = vand.u32 4294901760, %v8177_v4 }
 0xa33   :  { %v6808_v54 = vpop.f32.mrf.mxu3 }
 0xa34   :  { %v6664_v29 = vadd.f32 %v6663_v10, %v6610_v35 }
 0xa35   :  { %v6849_v7 = vpop.f32.mrf.mxu2 }
 0xa36   :  { %v6703_v14 = vadd.f32 %v6702_v43, %v6664_v29 }
 0xa38   :  { %v6772_v51 = vadd.f32 %v6771_v56, %v6703_v14  ;;  %v8178_v14 = vld [vmem:[%s19325_s3 + $0x18] sm:$0xff] }
 0xa3a   :  { %v6809_v2 = vadd.f32 %v6808_v54, %v6772_v51  ;;  %v8640_v51 = vand.u32 4294901760, %v8178_v14 }
 0xa3b   :  { %v6950_v30 = vpop.f32.mrf.mxu3 }
 0xa3c   :  { %v6850_v6 = vadd.f32 %v6849_v7, %v6809_v2 }
 0xa3d   :  { %v7004_v55 = vpop.f32.mrf.mxu2 }
 0xa3e   :  { %v6951_v53 = vadd.f32 %v6950_v30, %v6850_v6  ;;  %v8348_v30 = vand.u32 4294901760, %v8176_v26 }
 0xa40   :  { %v7005_v22 = vadd.f32 %v7004_v55, %v6951_v53  ;;  %v8179_v53 = vld [vmem:[%s19325_s3 + $0x20] sm:$0xff] }
 0xa43   :  { %v7043_v8 = vpop.f32.mrf.mxu3 }
 0xa44   :  { %v7044_v23 = vadd.f32 %v7043_v8, %v7005_v22  ;;  %v8375_v8 = vsub.f32 %v8176_v26, %v8348_v30  ;;  %v8786_v22 = vand.u32 4294901760, %v8179_v53 }
 0xa45   :  { %v7112_v16 = vpop.f32.mrf.mxu2 }
 0xa46   :  { %v7113_v0 = vadd.f32 %v7112_v16, %v7044_v23 }
 0xa4b   :  { %v7149_v31 = vpop.f32.mrf.mxu3 }
 0xa4c   :  { %v7150_v25 = vadd.f32 %v7149_v31, %v7113_v0  ;;  %v8376_v31 = vand.u32 4294901760, %v8375_v8 }
 0xa4d   :  { %v7190_v18 = vpop.f32.mrf.mxu2 }
 0xa4e   :  { %v7191_v1 = vadd.f32 %v7190_v18, %v7150_v25  ;;  %v8377_v11 = vsub.f32 %v8375_v8, %v8376_v31 }
 0xa50   :  { %v8378_v15 = vand.u32 4294901760, %v8377_v11 }
 0xa53   :  { %v7291_v63 = vpop.f32.mrf.mxu3 }
 0xa54   :  { %v7292_v13 = vadd.f32 %v7291_v63, %v7191_v1 }
 0xa55   :  { %v7345_v19 = vpop.f32.mrf.mxu2 }
 0xa56   :  { %v7346_v45 = vadd.f32 %v7345_v19, %v7292_v13 }
 0xa5b   :  { %v7384_v12 = vpop.f32.mrf.mxu3 }
 0xa5c   :  { %v7385_v39 = vadd.f32 %v7384_v12, %v7346_v45  ;;  %v8521_v12 = vsub.f32 %v8177_v4, %v8494_v59 }
 0xa5d   :  { %v7453_v48 = vpop.f32.mrf.mxu2 }
 0xa5e   :  { %v7454_v37 = vadd.f32 %v7453_v48, %v7385_v39  ;;  %v8522_v35 = vand.u32 4294901760, %v8521_v12  ;;  %v8182_v39 = vld [vmem:[%s19325_s3 + $0x38] sm:$0xff] }
 0xa60   :  { %v8523_v29 = vsub.f32 %v8521_v12, %v8522_v35 }
 0xa62   :  { %v8524_v48 = vand.u32 4294901760, %v8523_v29 }
 0xa63   :  { %v7490_v61 = vpop.f32.mrf.mxu3 }
 0xa64   :  { %v7491_v46 = vadd.f32 %v7490_v61, %v7454_v37  ;;  %v8667_v61 = vsub.f32 %v8178_v14, %v8640_v51 }
 0xa65   :  { %v7531_v17 = vpop.f32.mrf.mxu2 }
 0xa66   :  { %v7532_v52 = vadd.f32 %v7531_v17, %v7491_v46  ;;  %v8668_v2 = vand.u32 4294901760, %v8667_v61 }
 0xa68   :  { %v8669_v6 = vsub.f32 %v8667_v61, %v8668_v2 }
 0xa6a   :  { %v8670_v17 = vand.u32 4294901760, %v8669_v6 }
 0xa6b   :  { %v7632_v62 = vpop.f32.mrf.mxu3 }
 0xa6c   :  { %v7633_v34 = vadd.f32 %v7632_v62, %v7532_v52  ;;  %v8813_v62 = vsub.f32 %v8179_v53, %v8786_v22 }
 0xa6d   :  { %v7686_v38 = vpop.f32.mrf.mxu2 }
 0xa6e   :  { %v7687_v24 = vadd.f32 %v7686_v38, %v7633_v34  ;;  %v8814_v23 = vand.u32 4294901760, %v8813_v62 }
 0xa70   :  { %v8815_v41 = vsub.f32 %v8813_v62, %v8814_v23 }
 0xa72   :  { %v8816_v0 = vand.u32 4294901760, %v8815_v41 }
 0xa73   :  { %v7725_v60 = vpop.f32.mrf.mxu3 }
 0xa74   :  { %v7726_v49 = vadd.f32 %v7725_v60, %v7687_v24  ;;  %v8181_v60 = vld [vmem:[%s19325_s3 + $0x30] sm:$0xff] }
 0xa75   :  { %v7794_v27 = vpop.f32.mrf.mxu2  ;;  %v9078_v13 = vand.u32 4294901760, %v8181_v60 }
 0xa76   :  { %v7795_v43 = vadd.f32 %v7794_v27, %v7726_v49 }
 0xa77   :  { %v9105_v44 = vsub.f32 %v8181_v60, %v9078_v13 }
 0xa79   :  { %v9106_v45 = vand.u32 4294901760, %v9105_v44 }
 0xa7b   :  { %v7831_v36 = vpop.f32.mrf.mxu3  ;;  %v9107_v40 = vsub.f32 %v9105_v44, %v9106_v45 }
 0xa7c   :  { %v7832_v56 = vadd.f32 %v7831_v36, %v7795_v43  ;;  %v9224_v36 = vand.u32 4294901760, %v8182_v39 }
 0xa7d   :  { %v7872_v50 = vpop.f32.mrf.mxu2  ;;  %v9108_v27 = vand.u32 4294901760, %v9107_v40 }
 0xa7e   :  { %v7873_v9 = vadd.f32 %v7872_v50, %v7832_v56  ;;  %v9251_v46 = vsub.f32 %v8182_v39, %v9224_v36 }
 0xa80   :  { %v9252_v24 = vand.u32 4294901760, %v9251_v46 }
 0xa83   :  { %v7973_v10 = vpop.f32.mrf.mxu3 }
 0xa84   :  { %v7974_v7 = vadd.f32 %v7973_v10, %v7873_v9  ;;  %v9253_v10 = vsub.f32 %v9251_v46, %v9252_v24 }
 0xa85   :  { %v8027_v47 = vpop.f32.mrf.mxu2 }
 0xa86   :  { %v8028_v3 = vadd.f32 %v8027_v47, %v7974_v7  ;;  %v9254_v56 = vand.u32 4294901760, %v9253_v10 }
 0xa8b   :  { %v8066_v54 = vpop.f32.mrf.mxu3 }
 0xa8c   :  { %v8067_v55 = vadd.f32 %v8066_v54, %v8028_v3 }
 0xa9b   :  { %v8135_v42 = vpop.f32.mrf.mxu2 }
 0xa9c   :  { %v8136_v21 = vadd.f32 %v8135_v42, %v8067_v55 }
 0xaa3   :  { %v8172_v58 = vpop.f32.mrf.mxu3 }
 0xaa4   :  { %v8173_v16 = vadd.f32 %v8172_v58, %v8136_v21 }
 0xaa6   :  { %v8185_v32 = vsel %vm8183_vm2, %v8173_v16, 0 }
 0xaa7   :  { %v19028_v5 = vand.u32 4294901760, %v8185_v32 }
 0xaa9   :  { %v19031_v18 = vsub.f32 %v8185_v32, %v19028_v5  ;;  %8235 = vmatmul.f32.vlgmr.msrb.gmra.mxu3 %v19028_v5 }
 0xaaa   :  { %8327 = vmatpush.msrb.mxu3 %v8202_v20  ;;  %v8180_v20 = vld [vmem:[%s19325_s3 + $0x28] sm:$0xff] }
 0xaab   :  { %v19035_v63 = vand.u32 4294901760, %v19031_v18  ;;  %v8932_v38 = vand.u32 4294901760, %v8180_v20 }
 0xaad   :  { %v8207_v28 = vsub.f32 %v19031_v18, %v19035_v63  ;;  %v8959_v25 = vsub.f32 %v8180_v20, %v8932_v38 }
 0xaaf   :  { %v19039_v19 = vand.u32 4294901760, %v8207_v28  ;;  %v8960_v57 = vand.u32 4294901760, %v8959_v25 }
 0xab1   :  { %8209 = vmatmul.f32.vlgmr.msrb.gmra.mxu2 %v19039_v19  ;;  %8283 = vmatmul.f32.vlgmr.msra.gmra.mxu3 %v19035_v63  ;;  %v8961_v1 = vsub.f32 %v8959_v25, %v8960_v57 }
 0xab2   :  { %8305 = vmatpush.msrb.mxu2 %v8230_v33  ;;  %8379 = vmatpush.msra.mxu3 %v8378_v15 }
 0xab3   :  { %v8962_v33 = vand.u32 4294901760, %v8961_v1 }
 0xab9   :  { %8259 = vmatmul.f32.vlgmr.msra.gmra.mxu2 %v19031_v18  ;;  %8329 = vmatmul.f32.vlgmr.msrb.gmra.mxu3 %v19028_v5 }
 0xaba   :  { %8349 = vmatpush.msra.mxu2 %v8348_v30  ;;  %8425 = vmatpush.msrb.mxu3 %v8348_v30 }
 0xac1   :  { %8307 = vmatmul.f32.vlgmr.msrb.gmra.mxu2 %v19028_v5  ;;  %8381 = vmatmul.f32.vlgmr.msra.gmra.mxu3 %v19028_v5 }
 0xac2   :  { %8402 = vmatpush.msrb.mxu2 %v8375_v8  ;;  %8473 = vmatpush.msra.mxu3 %v8348_v30 }
 0xac9   :  { %8355 = vmatmul.f32.vlgmr.msra.gmra.mxu2 %v19039_v19  ;;  %8429 = vmatmul.f32.vlgmr.msrb.gmra.mxu3 %v19035_v63 }
 0xaca   :  { %8451 = vmatpush.msra.mxu2 %v8376_v31  ;;  %8525 = vmatpush.msrb.mxu3 %v8524_v48 }
 0xad1   :  { %8405 = vmatmul.f32.vlgmr.msrb.gmra.mxu2 %v19031_v18  ;;  %8475 = vmatmul.f32.vlgmr.msra.gmra.mxu3 %v19028_v5 }
 0xad2   :  { %8495 = vmatpush.msrb.mxu2 %v8494_v59  ;;  %8571 = vmatpush.msra.mxu3 %v8494_v59 }
 0xad9   :  { %8453 = vmatmul.f32.vlgmr.msra.gmra.mxu2 %v19028_v5  ;;  %8527 = vmatmul.f32.vlgmr.msrb.gmra.mxu3 %v19028_v5 }
 0xada   :  { %8548 = vmatpush.msra.mxu2 %v8521_v12  ;;  %8619 = vmatpush.msrb.mxu3 %v8494_v59 }
 0xae1   :  { %8501 = vmatmul.f32.vlgmr.msrb.gmra.mxu2 %v19039_v19  ;;  %8575 = vmatmul.f32.vlgmr.msra.gmra.mxu3 %v19035_v63 }
 0xae2   :  { %8597 = vmatpush.msrb.mxu2 %v8522_v35  ;;  %8671 = vmatpush.msra.mxu3 %v8670_v17 }
 0xae9   :  { %8551 = vmatmul.f32.vlgmr.msra.gmra.mxu2 %v19031_v18  ;;  %8621 = vmatmul.f32.vlgmr.msrb.gmra.mxu3 %v19028_v5 }
 0xaea   :  { %8641 = vmatpush.msra.mxu2 %v8640_v51  ;;  %8717 = vmatpush.msrb.mxu3 %v8640_v51 }
 0xaf1   :  { %8599 = vmatmul.f32.vlgmr.msrb.gmra.mxu2 %v19028_v5  ;;  %8673 = vmatmul.f32.vlgmr.msra.gmra.mxu3 %v19028_v5 }
 0xaf2   :  { %8694 = vmatpush.msrb.mxu2 %v8667_v61  ;;  %8765 = vmatpush.msra.mxu3 %v8640_v51 }
 0xaf9   :  { %8647 = vmatmul.f32.vlgmr.msra.gmra.mxu2 %v19039_v19  ;;  %8721 = vmatmul.f32.vlgmr.msrb.gmra.mxu3 %v19035_v63 }
 0xafa   :  { %8743 = vmatpush.msra.mxu2 %v8668_v2  ;;  %8817 = vmatpush.msrb.mxu3 %v8816_v0 }
 0xb01   :  { %8697 = vmatmul.f32.vlgmr.msrb.gmra.mxu2 %v19031_v18  ;;  %8767 = vmatmul.f32.vlgmr.msra.gmra.mxu3 %v19028_v5 }
 0xb02   :  { %8787 = vmatpush.msrb.mxu2 %v8786_v22  ;;  %8863 = vmatpush.msra.mxu3 %v8786_v22 }
 0xb09   :  { %8745 = vmatmul.f32.vlgmr.msra.gmra.mxu2 %v19028_v5  ;;  %8819 = vmatmul.f32.vlgmr.msrb.gmra.mxu3 %v19028_v5 }
 0xb0a   :  { %8840 = vmatpush.msra.mxu2 %v8813_v62  ;;  %8911 = vmatpush.msrb.mxu3 %v8786_v22 }
 0xb11   :  { %8793 = vmatmul.f32.vlgmr.msrb.gmra.mxu2 %v19039_v19  ;;  %8867 = vmatmul.f32.vlgmr.msra.gmra.mxu3 %v19035_v63 }
 0xb12   :  { %8889 = vmatpush.msrb.mxu2 %v8814_v23  ;;  %8963 = vmatpush.msra.mxu3 %v8962_v33 }
 0xb19   :  { %8843 = vmatmul.f32.vlgmr.msra.gmra.mxu2 %v19031_v18  ;;  %8913 = vmatmul.f32.vlgmr.msrb.gmra.mxu3 %v19028_v5 }
 0xb1a   :  { %8933 = vmatpush.msra.mxu2 %v8932_v38  ;;  %9009 = vmatpush.msrb.mxu3 %v8932_v38 }
 0xb21   :  { %8891 = vmatmul.f32.vlgmr.msrb.gmra.mxu2 %v19028_v5  ;;  %8965 = vmatmul.f32.vlgmr.msra.gmra.mxu3 %v19028_v5 }
 0xb22   :  { %8986 = vmatpush.msrb.mxu2 %v8959_v25  ;;  %9057 = vmatpush.msra.mxu3 %v8932_v38 }
 0xb29   :  { %8939 = vmatmul.f32.vlgmr.msra.gmra.mxu2 %v19039_v19  ;;  %9013 = vmatmul.f32.vlgmr.msrb.gmra.mxu3 %v19035_v63 }
 0xb2a   :  { %9035 = vmatpush.msra.mxu2 %v8960_v57  ;;  %9109 = vmatpush.msrb.mxu3 %v9108_v27 }
 0xb2c   :  { %v8236_v37 = vpop.f32.mrf.mxu3 }
 0xb31   :  { %8989 = vmatmul.f32.vlgmr.msrb.gmra.mxu2 %v19031_v18  ;;  %9059 = vmatmul.f32.vlgmr.msra.gmra.mxu3 %v19028_v5 }
 0xb32   :  { %9079 = vmatpush.msrb.mxu2 %v9078_v13  ;;  %9155 = vmatpush.msra.mxu3 %v9078_v13 }
 0xb34   :  { %v8210_v52 = vpop.f32.mrf.mxu2  ;;  %v8284_v50 = vpop.f32.mrf.mxu3 }
 0xb35   :  { %v8237_v34 = vadd.f32 %v8236_v37, %v8210_v52 }
 0xb39   :  { %9037 = vmatmul.f32.vlgmr.msra.gmra.mxu2 %v19028_v5  ;;  %9111 = vmatmul.f32.vlgmr.msrb.gmra.mxu3 %v19028_v5 }
 0xb3a   :  { %9132 = vmatpush.msra.mxu2 %v9105_v44  ;;  %9203 = vmatpush.msrb.mxu3 %v9078_v13 }
 0xb3c   :  { %v8260_v49 = vpop.f32.mrf.mxu2  ;;  %v8330_v43 = vpop.f32.mrf.mxu3 }
 0xb3d   :  { %v8261_v47 = vadd.f32 %v8260_v49, %v8237_v34 }
 0xb3f   :  { %v8285_v9 = vadd.f32 %v8284_v50, %v8261_v47 }
 0xb41   :  { %9085 = vmatmul.f32.vlgmr.msrb.gmra.mxu2 %v19039_v19  ;;  %9159 = vmatmul.f32.vlgmr.msra.gmra.mxu3 %v19035_v63 }
 0xb42   :  { %9181 = vmatpush.msrb.mxu2 %v9106_v45  ;;  %9255 = vmatpush.msra.mxu3 %v9254_v56 }
 0xb44   :  { %v8308_v54 = vpop.f32.mrf.mxu2  ;;  %v8382_v26 = vpop.f32.mrf.mxu3 }
 0xb45   :  { %v8309_v7 = vadd.f32 %v8308_v54, %v8285_v9 }
 0xb47   :  { %v19097_v3 = vadd.f32 %v8330_v43, %v8309_v7 }
 0xb49   :  { %v9355_v30 = vand.u32 2147483647, %v19097_v3  ;;  %9135 = vmatmul.f32.vlgmr.msra.gmra.mxu2 %v19031_v18  ;;  %9205 = vmatmul.f32.vlgmr.msrb.gmra.mxu3 %v19028_v5 }
 0xb4a   :  { %9225 = vmatpush.msra.mxu2 %v9224_v36  ;;  %9301 = vmatpush.msrb.mxu3 %v9224_v36 }
 0xb4c   :  { %v8356_v42 = vpop.f32.mrf.mxu2  ;;  %v8430_v55 = vpop.f32.mrf.mxu3 }
 0xb4d   :  { %v8383_v21 = vadd.f32 %v8382_v26, %v8356_v42 }
 0xb51   :  { %9183 = vmatmul.f32.vlgmr.msrb.gmra.mxu2 %v19028_v5  ;;  %9257 = vmatmul.f32.vlgmr.msra.gmra.mxu3 %v19028_v5 }
 0xb52   :  { %9278 = vmatpush.msrb.mxu2 %v9251_v46  ;;  %9349 = vmatpush.msra.mxu3 %v9224_v36 }
 0xb54   :  { %v8406_v8 = vpop.f32.mrf.mxu2  ;;  %v8476_v58 = vpop.f32.mrf.mxu3 }
 0xb55   :  { %v8407_v16 = vadd.f32 %v8406_v8, %v8383_v21 }
 0xb57   :  { %v8431_v32 = vadd.f32 %v8430_v55, %v8407_v16 }
 0xb59   :  { %9231 = vmatmul.f32.vlgmr.msra.gmra.mxu2 %v19039_v19  ;;  %9305 = vmatmul.f32.vlgmr.msrb.gmra.mxu3 %v19035_v63 }
 0xb5a   :  { %9327 = vmatpush.msra.mxu2 %v9252_v24 }
 0xb5c   :  { %v8454_v31 = vpop.f32.mrf.mxu2  ;;  %v8528_v11 = vpop.f32.mrf.mxu3 }
 0xb5d   :  { %v8455_v28 = vadd.f32 %v8454_v31, %v8431_v32 }
 0xb5f   :  { %v19106_v15 = vadd.f32 %v8476_v58, %v8455_v28 }
 0xb61   :  { %v9356_v4 = vand.u32 2147483647, %v19106_v15  ;;  %9281 = vmatmul.f32.vlgmr.msrb.gmra.mxu2 %v19031_v18  ;;  %9351 = vmatmul.f32.vlgmr.msra.gmra.mxu3 %v19028_v5 }
 0xb64   :  { %v8502_v59 = vpop.f32.mrf.mxu2  ;;  %v8576_v12 = vpop.f32.mrf.mxu3 }
 0xb65   :  { %v8529_v35 = vadd.f32 %v8528_v11, %v8502_v59 }
 0xb69   :  { %9329 = vmatmul.f32.vlgmr.msra.gmra.mxu2 %v19028_v5 }
 0xb6c   :  { %v8552_v19 = vpop.f32.mrf.mxu2  ;;  %v8622_v29 = vpop.f32.mrf.mxu3 }
 0xb6d   :  { %v8553_v63 = vadd.f32 %v8552_v19, %v8529_v35 }
 0xb6f   :  { %v8577_v48 = vadd.f32 %v8576_v12, %v8553_v63 }
 0xb74   :  { %v8600_v14 = vpop.f32.mrf.mxu2  ;;  %v8674_v51 = vpop.f32.mrf.mxu3 }
 0xb75   :  { %v8601_v61 = vadd.f32 %v8600_v14, %v8577_v48 }
 0xb77   :  { %v19112_v2 = vadd.f32 %v8622_v29, %v8601_v61 }
 0xb79   :  { %v9357_v6 = vand.u32 2147483647, %v19112_v2 }
 0xb7c   :  { %v8648_v17 = vpop.f32.mrf.mxu2  ;;  %v8722_v18 = vpop.f32.mrf.mxu3 }
 0xb7d   :  { %v8675_v53 = vadd.f32 %v8674_v51, %v8648_v17 }
 0xb84   :  { %v8698_v22 = vpop.f32.mrf.mxu2  ;;  %v8768_v62 = vpop.f32.mrf.mxu3 }
 0xb85   :  { %v8699_v23 = vadd.f32 %v8698_v22, %v8675_v53 }
 0xb87   :  { %v8723_v41 = vadd.f32 %v8722_v18, %v8699_v23 }
 0xb8c   :  { %v8746_v0 = vpop.f32.mrf.mxu2  ;;  %v8820_v5 = vpop.f32.mrf.mxu3 }
 0xb8d   :  { %v8747_v20 = vadd.f32 %v8746_v0, %v8723_v41 }
 0xb8f   :  { %v19115_v38 = vadd.f32 %v8768_v62, %v8747_v20 }
 0xb91   :  { %v9358_v25 = vand.u32 2147483647, %v19115_v38 }
 0xb94   :  { %v8794_v57 = vpop.f32.mrf.mxu2  ;;  %v8868_v1 = vpop.f32.mrf.mxu3 }
 0xb95   :  { %v8821_v33 = vadd.f32 %v8820_v5, %v8794_v57 }
 0xb9c   :  { %v8844_v60 = vpop.f32.mrf.mxu2  ;;  %v8914_v13 = vpop.f32.mrf.mxu3 }
 0xb9d   :  { %v8845_v44 = vadd.f32 %v8844_v60, %v8821_v33 }
 0xb9f   :  { %v8869_v45 = vadd.f32 %v8868_v1, %v8845_v44 }
 0xba4   :  { %v8892_v40 = vpop.f32.mrf.mxu2  ;;  %v8966_v27 = vpop.f32.mrf.mxu3 }
 0xba5   :  { %v8893_v39 = vadd.f32 %v8892_v40, %v8869_v45 }
 0xba7   :  { %v19118_v37 = vadd.f32 %v8914_v13, %v8893_v39 }
 0xba9   :  { %v9359_v36 = vand.u32 2147483647, %v19118_v37 }
 0xbac   :  { %v8940_v46 = vpop.f32.mrf.mxu2  ;;  %v9014_v52 = vpop.f32.mrf.mxu3 }
 0xbad   :  { %v8967_v24 = vadd.f32 %v8966_v27, %v8940_v46 }
 0xbb4   :  { %v8990_v50 = vpop.f32.mrf.mxu2  ;;  %v9060_v34 = vpop.f32.mrf.mxu3 }
 0xbb5   :  { %v8991_v10 = vadd.f32 %v8990_v50, %v8967_v24 }
 0xbb7   :  { %v9015_v49 = vadd.f32 %v9014_v52, %v8991_v10 }
 0xbbc   :  { %v9038_v43 = vpop.f32.mrf.mxu2  ;;  %v9112_v47 = vpop.f32.mrf.mxu3 }
 0xbbd   :  { %v9039_v56 = vadd.f32 %v9038_v43, %v9015_v49 }
 0xbbf   :  { %v19121_v9 = vadd.f32 %v9060_v34, %v9039_v56 }
 0xbc1   :  { %v9360_v54 = vand.u32 2147483647, %v19121_v9 }
 0xbc4   :  { %v9086_v26 = vpop.f32.mrf.mxu2  ;;  %v9160_v7 = vpop.f32.mrf.mxu3 }
 0xbc5   :  { %v9113_v55 = vadd.f32 %v9112_v47, %v9086_v26 }
 0xbcc   :  { %v9136_v42 = vpop.f32.mrf.mxu2  ;;  %v9206_v8 = vpop.f32.mrf.mxu3 }
 0xbcd   :  { %v9137_v21 = vadd.f32 %v9136_v42, %v9113_v55 }
 0xbcf   :  { %v9161_v58 = vadd.f32 %v9160_v7, %v9137_v21 }
 0xbd4   :  { %v9184_v16 = vpop.f32.mrf.mxu2  ;;  %v9258_v28 = vpop.f32.mrf.mxu3 }
 0xbd5   :  { %v9185_v32 = vadd.f32 %v9184_v16, %v9161_v58 }
 0xbd7   :  { %v19124_v31 = vadd.f32 %v9206_v8, %v9185_v32 }
 0xbd9   :  { %v9361_v11 = vand.u32 2147483647, %v19124_v31 }
 0xbdc   :  { %v9232_v59 = vpop.f32.mrf.mxu2  ;;  %v9306_v12 = vpop.f32.mrf.mxu3 }
 0xbdd   :  { %v9259_v19 = vadd.f32 %v9258_v28, %v9232_v59 }
 0xbe4   :  { %v9282_v35 = vpop.f32.mrf.mxu2  ;;  %v9352_v51 = vpop.f32.mrf.mxu3 }
 0xbe5   :  { %v9283_v29 = vadd.f32 %v9282_v35, %v9259_v19 }
 0xbe7   :  { %v9307_v63 = vadd.f32 %v9306_v12, %v9283_v29 }
 0xbec   :  { %v9330_v48 = vpop.f32.mrf.mxu2 }
 0xbed   :  { %v9331_v14 = vadd.f32 %v9330_v48, %v9307_v63 }
 0xbef   :  { %v19127_v61 = vadd.f32 %v9352_v51, %v9331_v14 }
 0xbf1   :  { %v9362_v17 = vand.u32 2147483647, %v19127_v61 }
 0xbf2   :  { %13426 = dma.done.wait [#allocation4], 32768 }
 0xbf3   :  { %13427 = vsyncadd [#allocation4], 4294934528  ;;  %v12084_v18 = vld [vmem:[#allocation2 + $0xe0] sm:$0xf]  ;;  %v13156_v53 = vld [vmem:[#allocation2 + $0xec] sm:$0xf0] }
 0xbf4   :  { %v12212_v22 = vld [vmem:[#allocation2 + $0x1e0] sm:$0xf]  ;;  %v12085_v62 = vor.u32 %v13156_v53, %v12084_v18  ;;  %v13188_v23 = vld [vmem:[#allocation2 + $0x1ec] sm:$0xf0]  ;;  %v12310_v31 = vld [vmem:[#allocation2 + $0x2b0] sm:$0xf0] }
 0xbf5   :  { %v12068_v41 = vld [vmem:[#allocation2 + $0xc0] sm:$0xf]  ;;  %v13152_v0 = vld [vmem:[#allocation2 + $0xcc] sm:$0xf0]  ;;  %v12213_v5 = vor.u32 %v13188_v23, %v12212_v22 }
 0xbf6   :  { %v12196_v20 = vld [vmem:[#allocation2 + $0x1c0] sm:$0xf]  ;;  %v13184_v57 = vld [vmem:[#allocation2 + $0x1cc] sm:$0xf0]  ;;  %10920 = vmatpush.bf16.msrb.mxu2 %v12085_v62  ;;  %v12069_v1 = vor.u32 %v13152_v0, %v12068_v41 }
 0xbf7   :  { %10933 = vmatpush.bf16.msrb.mxu3 %v12213_v5  ;;  %v12197_v33 = vor.u32 %v13184_v57, %v12196_v20  ;;  %v12052_v60 = vld [vmem:[#allocation2 + $0xa0] sm:$0xf]  ;;  %v13148_v13 = vld [vmem:[#allocation2 + $0xac] sm:$0xf0] }
 0xbf8   :  { %v12180_v44 = vld [vmem:[#allocation2 + $0x1a0] sm:$0xf]  ;;  %v13180_v45 = vld [vmem:[#allocation2 + $0x1ac] sm:$0xf0]  ;;  %v12053_v40 = vor.u32 %v13148_v13, %v12052_v60 }
 0xbf9   :  { %v12181_v27 = vor.u32 %v13180_v45, %v12180_v44  ;;  %v12036_v39 = vld [vmem:[#allocation2 + $0x80] sm:$0xf]  ;;  %v13144_v46 = vld [vmem:[#allocation2 + $0x8c] sm:$0xf0] }
 0xbfa   :  { %10921 = vmatpush.bf16.msrb.mxu2 %v12069_v1  ;;  %v12164_v52 = vld [vmem:[#allocation2 + $0x180] sm:$0xf]  ;;  %v13176_v50 = vld [vmem:[#allocation2 + $0x18c] sm:$0xf0]  ;;  %v12037_v34 = vor.u32 %v13144_v46, %v12036_v39 }
 0xbfb   :  { %10934 = vmatpush.bf16.msrb.mxu3 %v12197_v33  ;;  %v12165_v24 = vor.u32 %v13176_v50, %v12164_v52  ;;  %v12020_v10 = vld [vmem:[#allocation2 + $0x60] sm:$0xf]  ;;  %v13140_v49 = vld [vmem:[#allocation2 + $0x6c] sm:$0xf0] }
 0xbfc   :  { %v12148_v43 = vld [vmem:[#allocation2 + $0x160] sm:$0xf]  ;;  %v13172_v47 = vld [vmem:[#allocation2 + $0x16c] sm:$0xf0]  ;;  %v12021_v26 = vor.u32 %v13140_v49, %v12020_v10 }
 0xbfd   :  { %v12596_v56 = vld [vmem:[#allocation2 + $0x4e0] sm:$0xf]  ;;  %v13136_v42 = vld [vmem:[#allocation2 + $0x4c] sm:$0xf0]  ;;  %v12149_v21 = vor.u32 %v13172_v47, %v12148_v43 }
 0xbfe   :  { %10922 = vmatpush.bf16.msrb.mxu2 %v12053_v40  ;;  %v12004_v7 = vld [vmem:[#allocation2 + $0x40] sm:$0xf]  ;;  %v13284_v55 = vld [vmem:[#allocation2 + $0x4ec] sm:$0xf0] }
 0xbff   :  { %10935 = vmatpush.bf16.msrb.mxu3 %v12181_v27  ;;  %v12132_v8 = vld [vmem:[#allocation2 + $0x140] sm:$0xf]  ;;  %v13168_v58 = vld [vmem:[#allocation2 + $0x14c] sm:$0xf0]  ;;  %v12597_v16 = vor.u32 %v13284_v55, %v12596_v56  ;;  %v12005_v29 = vor.u32 %v13136_v42, %v12004_v7 }
 0xc00   :  { %v12724_v32 = vld [vmem:[#allocation2 + $0x5e0] sm:$0xf]  ;;  %v13316_v28 = vld [vmem:[#allocation2 + $0x5ec] sm:$0xf0]  ;;  %v12133_v51 = vor.u32 %v13168_v58, %v12132_v8 }
 0xc01   :  { %v12580_v59 = vld [vmem:[#allocation2 + $0x4c0] sm:$0xf]  ;;  %v13280_v12 = vld [vmem:[#allocation2 + $0x4cc] sm:$0xf0]  ;;  %10972 = vmatpush.bf16.msra.mxu0 %v12597_v16  ;;  %v12725_v35 = vor.u32 %v13316_v28, %v12724_v32  ;;  %v19133_v16 = vpack.c.bf16 %v9355_v30, %v9355_v30 }
 0xc02   :  { %10923 = vmatpush.bf16.msrb.mxu2 %v12037_v34  ;;  %v12581_v19 = vor.u32 %v13280_v12, %v12580_v59  ;;  %v11988_v63 = vld [vmem:[#allocation2 + $0x20] sm:$0xf]  ;;  %v13312_v14 = vld [vmem:[#allocation2 + $0x5cc] sm:$0xf0]  ;;  %v19138_v12 = vpack.c.bf16 %v9356_v4, %v9356_v4 }
 0xc03   :  { %10936 = vmatpush.bf16.msrb.mxu3 %v12165_v24  ;;  %v12708_v48 = vld [vmem:[#allocation2 + $0x5c0] sm:$0xf]  ;;  %v13132_v18 = vld [vmem:[#allocation2 + $0x2c] sm:$0xf0]  ;;  %10985 = vmatpush.bf16.msra.mxu1 %v12725_v35 }
 0xc04   :  { %v12709_v53 = vor.u32 %v13312_v14, %v12708_v48  ;;  %v12564_v22 = vld [vmem:[#allocation2 + $0x4a0] sm:$0xf]  ;;  %v13276_v62 = vld [vmem:[#allocation2 + $0x4ac] sm:$0xf0]  ;;  %v11989_v57 = vor.u32 %v13132_v18, %v11988_v63 }
 0xc05   :  { %v12116_v23 = vld [vmem:[#allocation2 + $0x120] sm:$0xf]  ;;  %v13164_v41 = vld [vmem:[#allocation2 + $0x12c] sm:$0xf0]  ;;  %10973 = vmatpush.bf16.msra.mxu0 %v12581_v19  ;;  %v12565_v0 = vor.u32 %v13276_v62, %v12564_v22 }
 0xc06   :  { %10924 = vmatpush.bf16.msrb.mxu2 %v12021_v26  ;;  %v12692_v5 = vld [vmem:[#allocation2 + $0x5a0] sm:$0xf]  ;;  %v13308_v20 = vld [vmem:[#allocation2 + $0x5ac] sm:$0xf0]  ;;  %v12117_v13 = vor.u32 %v13164_v41, %v12116_v23 }
 0xc07   :  { %10937 = vmatpush.bf16.msrb.mxu3 %v12149_v21  ;;  %v11972_v1 = vld [vmem:[#allocation2] sm:$0xf]  ;;  %v13272_v60 = vld [vmem:[#allocation2 + $0x48c] sm:$0xf0]  ;;  %10986 = vmatpush.bf16.msra.mxu1 %v12709_v53  ;;  %v12693_v27 = vor.u32 %v13308_v20, %v12692_v5 }
 0xc08   :  { %v12548_v33 = vld [vmem:[#allocation2 + $0x480] sm:$0xf]  ;;  %v13128_v44 = vld [vmem:[#allocation2 + $0xc] sm:$0xf0] }
 0xc09   :  { %v12100_v45 = vld [vmem:[#allocation2 + $0x100] sm:$0xf]  ;;  %v13160_v40 = vld [vmem:[#allocation2 + $0x10c] sm:$0xf0]  ;;  %10974 = vmatpush.bf16.msra.mxu0 %v12565_v0  ;;  %v12549_v34 = vor.u32 %v13272_v60, %v12548_v33  ;;  %v11973_v49 = vor.u32 %v13128_v44, %v11972_v1 }
 0xc0a   :  { %10925 = vmatpush.bf16.msrb.mxu2 %v12005_v29  ;;  %v12340_v39 = vld [vmem:[#allocation2 + $0x2e0] sm:$0xf]  ;;  %v13220_v46 = vld [vmem:[#allocation2 + $0x2ec] sm:$0xf0]  ;;  %v12101_v56 = vor.u32 %v13160_v40, %v12100_v45 }
 0xc0b   :  { %10938 = vmatpush.bf16.msrb.mxu3 %v12133_v51  ;;  %v12468_v52 = vld [vmem:[#allocation2 + $0x3e0] sm:$0xf]  ;;  %v13252_v50 = vld [vmem:[#allocation2 + $0x3ec] sm:$0xf0]  ;;  %v12341_v26 = vor.u32 %v13220_v46, %v12340_v39  ;;  %10987 = vmatpush.bf16.msra.mxu1 %v12693_v27 }
 0xc0c   :  { %v12676_v24 = vld [vmem:[#allocation2 + $0x580] sm:$0xf]  ;;  %v13304_v10 = vld [vmem:[#allocation2 + $0x58c] sm:$0xf0]  ;;  %v12469_v7 = vor.u32 %v13252_v50, %v12468_v52 }
 0xc0d   :  { %v12532_v43 = vld [vmem:[#allocation2 + $0x460] sm:$0xf]  ;;  %v13268_v47 = vld [vmem:[#allocation2 + $0x46c] sm:$0xf0]  ;;  %v12677_v8 = vor.u32 %v13304_v10, %v12676_v24  ;;  %10975 = vmatpush.bf16.msra.mxu0 %v12549_v34 }
 0xc0e   :  { %10926 = vmatpush.bf16.msrb.mxu2 %v11989_v57  ;;  %v12324_v42 = vld [vmem:[#allocation2 + $0x2c0] sm:$0xf]  ;;  %v13216_v55 = vld [vmem:[#allocation2 + $0x2cc] sm:$0xf0]  ;;  %v12533_v32 = vor.u32 %v13268_v47, %v12532_v43 }
 0xc0f   :  { %10939 = vmatpush.bf16.msrb.mxu3 %v12117_v13  ;;  %v12452_v21 = vld [vmem:[#allocation2 + $0x3c0] sm:$0xf]  ;;  %v13248_v58 = vld [vmem:[#allocation2 + $0x3cc] sm:$0xf0]  ;;  %v12325_v29 = vor.u32 %v13216_v55, %v12324_v42  ;;  %10988 = vmatpush.bf16.msra.mxu1 %v12677_v8  ;;  %v19145_v55 = vpack.c.bf16 %v9359_v36, %v9359_v36  ;;  %v19150_v8 = vpack.c.bf16 %v9360_v54, %v9360_v54  ;;  %v13186_v36 = vld [vmem:[#allocation2 + $0x1e4] sm:$0xf] }
 0xc10   :  { %v12660_v28 = vld [vmem:[#allocation2 + $0x560] sm:$0xf]  ;;  %v13300_v59 = vld [vmem:[#allocation2 + $0x56c] sm:$0xf0]  ;;  %v12453_v3 = vor.u32 %v13248_v58, %v12452_v21  ;;  %v13154_v58 = vld [vmem:[#allocation2 + $0xe4] sm:$0xf] }
 0xc11   :  { %v12516_v35 = vld [vmem:[#allocation2 + $0x440] sm:$0xf]  ;;  %v13264_v19 = vld [vmem:[#allocation2 + $0x44c] sm:$0xf0]  ;;  %v12661_v14 = vor.u32 %v13300_v59, %v12660_v28  ;;  %10976 = vmatpush.bf16.msra.mxu0 %v12533_v32  ;;  %v12086_v32 = vld [vmem:[#allocation2 + $0xf0] sm:$0xf0] }
 0xc12   :  { %10927 = vmatpush.bf16.msrb.mxu2 %v11973_v49  ;;  %v12308_v63 = vld [vmem:[#allocation2 + $0x2a0] sm:$0xf]  ;;  %v13212_v30 = vld [vmem:[#allocation2 + $0x2ac] sm:$0xf0]  ;;  %v12517_v15 = vor.u32 %v13264_v19, %v12516_v35 }
 0xc13   :  { %10940 = vmatpush.bf16.msrb.mxu3 %v12101_v56  ;;  %v12436_v48 = vld [vmem:[#allocation2 + $0x3a0] sm:$0xf]  ;;  %v13244_v51 = vld [vmem:[#allocation2 + $0x3ac] sm:$0xf0]  ;;  %v12309_v62 = vor.u32 %v13212_v30, %v12308_v63  ;;  %10989 = vmatpush.bf16.msra.mxu1 %v12661_v14  ;;  %v12070_v14 = vld [vmem:[#allocation2 + $0xd0] sm:$0xf0] }
 0xc14   :  { %v12644_v18 = vld [vmem:[#allocation2 + $0x540] sm:$0xf]  ;;  %v13296_v4 = vld [vmem:[#allocation2 + $0x54c] sm:$0xf0]  ;;  %v12437_v23 = vor.u32 %v13244_v51, %v12436_v48  ;;  %v13150_v48 = vld [vmem:[#allocation2 + $0xc4] sm:$0xf] }
 0xc15   :  { %10928 = vmatmul.bf16.vlgmr.msrb.gmra.mxu2 %v19133_v16  ;;  %v12500_v53 = vld [vmem:[#allocation2 + $0x420] sm:$0xf]  ;;  %v13260_v22 = vld [vmem:[#allocation2 + $0x42c] sm:$0xf0]  ;;  %v12645_v20 = vor.u32 %v13296_v4, %v12644_v18  ;;  %10977 = vmatpush.bf16.msra.mxu0 %v12517_v15 }
 0xc16   :  { %10946 = vmatpush.bf16.msra.mxu2 %v12341_v26  ;;  %10941 = vmatmul.bf16.vlgmr.msrb.gmra.mxu3 %v19138_v12  ;;  %v12292_v41 = vld [vmem:[#allocation2 + $0x280] sm:$0xf]  ;;  %v13208_v0 = vld [vmem:[#allocation2 + $0x28c] sm:$0xf0]  ;;  %v12501_v1 = vor.u32 %v13260_v22, %v12500_v53  ;;  %v12073_v53 = vor.u32 %v13150_v48, %v12070_v14 }
 0xc17   :  { %10959 = vmatpush.bf16.msra.mxu3 %v12469_v7  ;;  %v12420_v5 = vld [vmem:[#allocation2 + $0x380] sm:$0xf]  ;;  %v13240_v57 = vld [vmem:[#allocation2 + $0x38c] sm:$0xf0]  ;;  %v12293_v45 = vor.u32 %v13208_v0, %v12292_v41  ;;  %10990 = vmatpush.bf16.msra.mxu1 %v12645_v20 }
 0xc18   :  { %v12628_v33 = vld [vmem:[#allocation2 + $0x520] sm:$0xf]  ;;  %v13292_v60 = vld [vmem:[#allocation2 + $0x52c] sm:$0xf0]  ;;  %v12421_v40 = vor.u32 %v13240_v57, %v12420_v5  ;;  %v13146_v57 = vld [vmem:[#allocation2 + $0xa4] sm:$0xf] }
 0xc19   :  { %v12484_v13 = vld [vmem:[#allocation2 + $0x400] sm:$0xf]  ;;  %v13256_v44 = vld [vmem:[#allocation2 + $0x40c] sm:$0xf0]  ;;  %v12629_v52 = vor.u32 %v13292_v60, %v12628_v33  ;;  %10978 = vmatpush.bf16.msra.mxu0 %v12501_v1  ;;  %v12054_v1 = vld [vmem:[#allocation2 + $0xb0] sm:$0xf0] }
 0xc1a   :  { %10947 = vmatpush.bf16.msra.mxu2 %v12325_v29  ;;  %v12276_v27 = vld [vmem:[#allocation2 + $0x260] sm:$0xf]  ;;  %v13204_v39 = vld [vmem:[#allocation2 + $0x26c] sm:$0xf0]  ;;  %v12485_v34 = vor.u32 %v13256_v44, %v12484_v13  ;;  %v12089_v29 = vor.u32 %v13154_v58, %v12086_v32  ;;  %v12057_v44 = vor.u32 %v13146_v57, %v12054_v1  ;;  %v12022_v58 = vld [vmem:[#allocation2 + $0x70] sm:$0xf0] }
 0xc1b   :  { %10960 = vmatpush.bf16.msra.mxu3 %v12453_v3  ;;  %v12404_v46 = vld [vmem:[#allocation2 + $0x360] sm:$0xf]  ;;  %v13236_v50 = vld [vmem:[#allocation2 + $0x36c] sm:$0xf0]  ;;  %v12277_v49 = vor.u32 %v13204_v39, %v12276_v27  ;;  %10991 = vmatpush.bf16.msra.mxu1 %v12629_v52  ;;  %v12214_v3 = vld [vmem:[#allocation2 + $0x1f0] sm:$0xf0] }
 0xc1c   :  { %v12612_v24 = vld [vmem:[#allocation2 + $0x500] sm:$0xf]  ;;  %v13288_v10 = vld [vmem:[#allocation2 + $0x50c] sm:$0xf0]  ;;  %v12405_v43 = vor.u32 %v13236_v50, %v12404_v46  ;;  %v12217_v9 = vor.u32 %v13186_v36, %v12214_v3  ;;  %v13178_v27 = vld [vmem:[#allocation2 + $0x1a4] sm:$0xf]  ;;  %v19157_v46 = vpack.c.bf16 %v9357_v6, %v9357_v6 }
 0xc1d   :  { %v12260_v47 = vld [vmem:[#allocation2 + $0x240] sm:$0xf]  ;;  %v13200_v56 = vld [vmem:[#allocation2 + $0x24c] sm:$0xf0]  ;;  %v12613_v26 = vor.u32 %v13288_v10, %v12612_v24  ;;  %10979 = vmatpush.bf16.msra.mxu0 %v12485_v34  ;;  %v12182_v39 = vld [vmem:[#allocation2 + $0x1b0] sm:$0xf0]  ;;  %v19162_v24 = vpack.c.bf16 %v9358_v25, %v9358_v25 }
 0xc1e   :  { %10948 = vmatpush.bf16.msra.mxu2 %v12309_v62  ;;  %v12388_v7 = vld [vmem:[#allocation2 + $0x340] sm:$0xf]  ;;  %v13232_v42 = vld [vmem:[#allocation2 + $0x34c] sm:$0xf0]  ;;  %v12261_v21 = vor.u32 %v13200_v56, %v12260_v47  ;;  %v13182_v62 = vld [vmem:[#allocation2 + $0x1c4] sm:$0xf]  ;;  %v12185_v34 = vor.u32 %v13178_v27, %v12182_v39 }
 0xc1f   :  { %10961 = vmatpush.bf16.msra.mxu3 %v12437_v23  ;;  %v12389_v28 = vor.u32 %v13232_v42, %v12388_v7  ;;  %v12244_v59 = vld [vmem:[#allocation2 + $0x220] sm:$0xf]  ;;  %v13196_v35 = vld [vmem:[#allocation2 + $0x22c] sm:$0xf0]  ;;  %10992 = vmatpush.bf16.msra.mxu1 %v12613_v26  ;;  %v12198_v23 = vld [vmem:[#allocation2 + $0x1d0] sm:$0xf0] }
 0xc20   :  { %v12372_v19 = vld [vmem:[#allocation2 + $0x320] sm:$0xf]  ;;  %v13228_v37 = vld [vmem:[#allocation2 + $0x32c] sm:$0xf0]  ;;  %10980 = vmatmul.bf16.vlgmr.msra.gmra.mxu0 %v19145_v55  ;;  %v12245_v54 = vor.u32 %v13196_v35, %v12244_v59  ;;  %v12201_v5 = vor.u32 %v13182_v62, %v12198_v23  ;;  %v13142_v10 = vld [vmem:[#allocation2 + $0x84] sm:$0xf] }
 0xc21   :  { %v12228_v63 = vld [vmem:[#allocation2 + $0x200] sm:$0xf]  ;;  %11024 = vmatpush.bf16.msrb.mxu0 %v12089_v29  ;;  %v13192_v30 = vld [vmem:[#allocation2 + $0x20c] sm:$0xf0]  ;;  %v12373_v51 = vor.u32 %v13228_v37, %v12372_v19  ;;  %v13174_v7 = vld [vmem:[#allocation2 + $0x184] sm:$0xf] }
 0xc22   :  { %10949 = vmatpush.bf16.msra.mxu2 %v12293_v45  ;;  %10993 = vmatmul.bf16.vlgmr.msra.gmra.mxu1 %v19150_v8  ;;  %v12356_v15 = vld [vmem:[#allocation2 + $0x300] sm:$0xf]  ;;  %v13224_v18 = vld [vmem:[#allocation2 + $0x30c] sm:$0xf0]  ;;  %v12229_v20 = vor.u32 %v13192_v30, %v12228_v63  ;;  %v12166_v42 = vld [vmem:[#allocation2 + $0x190] sm:$0xf0] }
 0xc23   :  { %10962 = vmatpush.bf16.msra.mxu3 %v12421_v40  ;;  %v12852_v4 = vld [vmem:[#allocation2 + $0x6e0] sm:$0xf]  ;;  %11037 = vmatpush.bf16.msrb.mxu1 %v12217_v9  ;;  %v13348_v22 = vld [vmem:[#allocation2 + $0x6ec] sm:$0xf0]  ;;  %v12357_v33 = vor.u32 %v13224_v18, %v12356_v15  ;;  %v12169_v25 = vor.u32 %v13174_v7, %v12166_v42  ;;  %v13170_v37 = vld [vmem:[#allocation2 + $0x164] sm:$0xf] }
 0xc24   :  { %v12980_v41 = vld [vmem:[#allocation2 + $0x7e0] sm:$0xf]  ;;  %v13380_v0 = vld [vmem:[#allocation2 + $0x7ec] sm:$0xf0]  ;;  %v12853_v60 = vor.u32 %v13348_v22, %v12852_v4  ;;  %v12150_v36 = vld [vmem:[#allocation2 + $0x170] sm:$0xf0] }
 0xc25   :  { %11025 = vmatpush.bf16.msrb.mxu0 %v12073_v53  ;;  %v12836_v13 = vld [vmem:[#allocation2 + $0x6c0] sm:$0xf]  ;;  %v12981_v45 = vor.u32 %v13380_v0, %v12980_v41  ;;  %v13344_v40 = vld [vmem:[#allocation2 + $0x6cc] sm:$0xf0]  ;;  %v12153_v63 = vor.u32 %v13170_v37, %v12150_v36  ;;  %v13134_v9 = vld [vmem:[#allocation2 + $0x44] sm:$0xf] }
 0xc26   :  { %10950 = vmatpush.bf16.msra.mxu2 %v12277_v49  ;;  %v12964_v52 = vld [vmem:[#allocation2 + $0x7c0] sm:$0xf]  ;;  %v13376_v50 = vld [vmem:[#allocation2 + $0x7cc] sm:$0xf0]  ;;  %v12038_v49 = vld [vmem:[#allocation2 + $0x90] sm:$0xf0] }
 0xc27   :  { %10963 = vmatpush.bf16.msra.mxu3 %v12405_v43  ;;  %11038 = vmatpush.bf16.msrb.mxu1 %v12201_v5  ;;  %v12837_v43 = vor.u32 %v13344_v40, %v12836_v13  ;;  %v12820_v47 = vld [vmem:[#allocation2 + $0x6a0] sm:$0xf]  ;;  %v13340_v2 = vld [vmem:[#allocation2 + $0x6ac] sm:$0xf0]  ;;  %v12041_v56 = vor.u32 %v13142_v10, %v12038_v49  ;;  %v12965_v6 = vor.u32 %v13376_v50, %v12964_v52  ;;  %v13166_v4 = vld [vmem:[#allocation2 + $0x144] sm:$0xf] }
 0xc28   :  { %v12948_v26 = vld [vmem:[#allocation2 + $0x7a0] sm:$0xf]  ;;  %v13372_v38 = vld [vmem:[#allocation2 + $0x7ac] sm:$0xf0]  ;;  %v12134_v53 = vld [vmem:[#allocation2 + $0x150] sm:$0xf0] }
 0xc29   :  { %11026 = vmatpush.bf16.msrb.mxu0 %v12057_v44  ;;  %v12804_v59 = vld [vmem:[#allocation2 + $0x680] sm:$0xf]  ;;  %v13336_v35 = vld [vmem:[#allocation2 + $0x68c] sm:$0xf0]  ;;  %v12949_v19 = vor.u32 %v13372_v38, %v12948_v26  ;;  %v12137_v62 = vor.u32 %v13166_v4, %v12134_v53  ;;  %v13130_v23 = vld [vmem:[#allocation2 + $0x24] sm:$0xf] }
 0xc2a   :  { %10951 = vmatpush.bf16.msra.mxu2 %v12261_v21  ;;  %v13138_v21 = vld [vmem:[#allocation2 + $0x64] sm:$0xf]  ;;  %v12932_v29 = vld [vmem:[#allocation2 + $0x780] sm:$0xf]  ;;  %v13368_v3 = vld [vmem:[#allocation2 + $0x78c] sm:$0xf0]  ;;  %v12805_v48 = vor.u32 %v13336_v35, %v12804_v59 }
 0xc2b   :  { %10964 = vmatpush.bf16.msra.mxu3 %v12389_v28  ;;  %11039 = vmatpush.bf16.msrb.mxu1 %v12185_v34  ;;  %v12025_v32 = vor.u32 %v13138_v21, %v12022_v58  ;;  %v12821_v28 = vor.u32 %v13340_v2, %v12820_v47  ;;  %v12788_v14 = vld [vmem:[#allocation2 + $0x660] sm:$0xf]  ;;  %v12933_v15 = vor.u32 %v13368_v3, %v12932_v29  ;;  %v13364_v22 = vld [vmem:[#allocation2 + $0x76c] sm:$0xf0]  ;;  %v11990_v41 = vld [vmem:[#allocation2 + $0x30] sm:$0xf0] }
 0xc2c   :  { %v12916_v18 = vld [vmem:[#allocation2 + $0x760] sm:$0xf]  ;;  %v11993_v0 = vor.u32 %v13130_v23, %v11990_v41  ;;  %v13328_v57 = vld [vmem:[#allocation2 + $0x64c] sm:$0xf0]  ;;  %v12118_v13 = vld [vmem:[#allocation2 + $0x130] sm:$0xf0] }
 0xc2d   :  { %11027 = vmatpush.bf16.msrb.mxu0 %v12041_v56  ;;  %v12917_v1 = vor.u32 %v13364_v22, %v12916_v18  ;;  %v13360_v44 = vld [vmem:[#allocation2 + $0x74c] sm:$0xf0]  ;;  %v13126_v40 = vld [vmem:[#allocation2 + $0x4] sm:$0xf]  ;;  %v11974_v27 = vld [vmem:[#allocation2 + $0x10] sm:$0xf0] }
 0xc2e   :  { %10952 = vmatpush.bf16.msra.mxu2 %v12245_v54  ;;  %v12006_v54 = vld [vmem:[#allocation2 + $0x50] sm:$0xf0]  ;;  %v12756_v39 = vld [vmem:[#allocation2 + $0x620] sm:$0xf]  ;;  %v11977_v52 = vor.u32 %v13126_v40, %v11974_v27  ;;  %v13324_v34 = vld [vmem:[#allocation2 + $0x62c] sm:$0xf0] }
 0xc2f   :  { %10965 = vmatpush.bf16.msra.mxu3 %v12373_v51  ;;  %11040 = vmatpush.bf16.msrb.mxu1 %v12169_v25  ;;  %v12009_v30 = vor.u32 %v13134_v9, %v12006_v54  ;;  %v13332_v51 = vld [vmem:[#allocation2 + $0x66c] sm:$0xf0]  ;;  %v13282_v10 = vld [vmem:[#allocation2 + $0x4e4] sm:$0xf]  ;;  %v12598_v49 = vld [vmem:[#allocation2 + $0x4f0] sm:$0xf0]  ;;  %v12757_v58 = vor.u32 %v13324_v34, %v12756_v39 }
 0xc30   :  { %v12789_v5 = vor.u32 %v13332_v51, %v12788_v14  ;;  %v12884_v47 = vld [vmem:[#allocation2 + $0x720] sm:$0xf]  ;;  %v12601_v2 = vor.u32 %v13282_v10, %v12598_v49  ;;  %v13158_v56 = vld [vmem:[#allocation2 + $0x104] sm:$0xf]  ;;  %v13356_v26 = vld [vmem:[#allocation2 + $0x72c] sm:$0xf0] }
 0xc31   :  { %11028 = vmatpush.bf16.msrb.mxu0 %v12025_v32  ;;  %v13314_v42 = vld [vmem:[#allocation2 + $0x5e4] sm:$0xf]  ;;  %v12726_v38 = vld [vmem:[#allocation2 + $0x5f0] sm:$0xf0]  ;;  %v12740_v25 = vld [vmem:[#allocation2 + $0x600] sm:$0xf]  ;;  %v12885_v35 = vor.u32 %v13356_v26, %v12884_v47 }
 0xc32   :  { %10953 = vmatpush.bf16.msra.mxu2 %v12229_v20  ;;  %v12772_v20 = vld [vmem:[#allocation2 + $0x640] sm:$0xf]  ;;  %v12729_v21 = vor.u32 %v13314_v42, %v12726_v38  ;;  %v13320_v32 = vld [vmem:[#allocation2 + $0x60c] sm:$0xf0]  ;;  %v12582_v59 = vld [vmem:[#allocation2 + $0x4d0] sm:$0xf0] }
 0xc33   :  { %10966 = vmatpush.bf16.msra.mxu3 %v12357_v33  ;;  %11041 = vmatpush.bf16.msrb.mxu1 %v12153_v63  ;;  %v12900_v33 = vld [vmem:[#allocation2 + $0x740] sm:$0xf]  ;;  %v12773_v50 = vor.u32 %v13328_v57, %v12772_v20  ;;  %v13352_v29 = vld [vmem:[#allocation2 + $0x70c] sm:$0xf0]  ;;  %v13218_v37 = vld [vmem:[#allocation2 + $0x2e4] sm:$0xf]  ;;  %v12741_v14 = vor.u32 %v13320_v32, %v12740_v25  ;;  %v19171_v20 = vpack.c.bf16 %v9361_v11, %v9361_v11 }
 0xc34   :  { %v12342_v3 = vld [vmem:[#allocation2 + $0x2f0] sm:$0xf0]  ;;  %v13310_v63 = vld [vmem:[#allocation2 + $0x5c4] sm:$0xf] }
 0xc35   :  { %10954 = vmatmul.bf16.vlgmr.msra.gmra.mxu2 %v19157_v46  ;;  %11029 = vmatpush.bf16.msrb.mxu0 %v12009_v30  ;;  %v12710_v9 = vld [vmem:[#allocation2 + $0x5d0] sm:$0xf0]  ;;  %v13250_v54 = vld [vmem:[#allocation2 + $0x3e4] sm:$0xf]  ;;  %v12345_v4 = vor.u32 %v13218_v37, %v12342_v3 }
 0xc36   :  { %10998 = vmatpush.bf16.msrb.mxu2 %v12853_v60  ;;  %10967 = vmatmul.bf16.vlgmr.msra.gmra.mxu3 %v19162_v24  ;;  %v13162_v60 = vld [vmem:[#allocation2 + $0x124] sm:$0xf]  ;;  %v12470_v30 = vld [vmem:[#allocation2 + $0x3f0] sm:$0xf0] }
 0xc37   :  { %11011 = vmatpush.bf16.msrb.mxu3 %v12981_v45  ;;  %11042 = vmatpush.bf16.msrb.mxu1 %v12137_v62  ;;  %v12121_v45 = vor.u32 %v13162_v60, %v12118_v13  ;;  %v13274_v51 = vld [vmem:[#allocation2 + $0x4a4] sm:$0xf]  ;;  %v12326_v22 = vld [vmem:[#allocation2 + $0x2d0] sm:$0xf0]  ;;  %v12473_v23 = vor.u32 %v13250_v54, %v12470_v30  ;;  %v19176_v13 = vpack.c.bf16 %v9362_v17, %v9362_v17 }
 0xc38   :  { %v13214_v53 = vld [vmem:[#allocation2 + $0x2c4] sm:$0xf]  ;;  %v12454_v57 = vld [vmem:[#allocation2 + $0x3d0] sm:$0xf0] }
 0xc39   :  { %11030 = vmatpush.bf16.msrb.mxu0 %v11993_v0  ;;  %v13246_v41 = vld [vmem:[#allocation2 + $0x3c4] sm:$0xf]  ;;  %v12550_v60 = vld [vmem:[#allocation2 + $0x490] sm:$0xf0] }
 0xc3a   :  { %10999 = vmatpush.bf16.msrb.mxu2 %v12837_v43  ;;  %v12901_v43 = vor.u32 %v13360_v44, %v12900_v33  ;;  %v13306_v0 = vld [vmem:[#allocation2 + $0x5a4] sm:$0xf]  ;;  %v12457_v11 = vor.u32 %v13246_v41, %v12454_v57  ;;  %v12534_v17 = vld [vmem:[#allocation2 + $0x470] sm:$0xf0]  ;;  %v12092_v57 = vld [vmem:[#allocation2 + $0xe8] sm:$0xf] }
 0xc3b   :  { %11012 = vmatpush.bf16.msrb.mxu3 %v12965_v6  ;;  %11043 = vmatpush.bf16.msrb.mxu1 %v12121_v45  ;;  %v12102_v6 = vld [vmem:[#allocation2 + $0x110] sm:$0xf0]  ;;  %v13270_v33 = vld [vmem:[#allocation2 + $0x484] sm:$0xf]  ;;  %v12329_v45 = vor.u32 %v13214_v53, %v12326_v22 }
 0xc3c   :  { %v12105_v7 = vor.u32 %v13158_v56, %v12102_v6  ;;  %v12553_v44 = vor.u32 %v13270_v33, %v12550_v60  ;;  %v13210_v40 = vld [vmem:[#allocation2 + $0x2a4] sm:$0xf]  ;;  %v12294_v47 = vld [vmem:[#allocation2 + $0x290] sm:$0xf0] }
 0xc3d   :  { %11031 = vmatpush.bf16.msrb.mxu0 %v11977_v52  ;;  %v13242_v27 = vld [vmem:[#allocation2 + $0x3a4] sm:$0xf]  ;;  %v12678_v52 = vld [vmem:[#allocation2 + $0x590] sm:$0xf0]  ;;  %v12313_v49 = vor.u32 %v13210_v40, %v12310_v31 }
 0xc3e   :  { %11000 = vmatpush.bf16.msrb.mxu2 %v12821_v28  ;;  %v13278_v28 = vld [vmem:[#allocation2 + $0x4c4] sm:$0xf]  ;;  %v12662_v26 = vld [vmem:[#allocation2 + $0x570] sm:$0xf0] }
 0xc3f   :  { %11013 = vmatpush.bf16.msrb.mxu3 %v12949_v19  ;;  %v12868_v19 = vld [vmem:[#allocation2 + $0x700] sm:$0xf]  ;;  %11044 = vmatpush.bf16.msrb.mxu1 %v12105_v7  ;;  %v12585_v36 = vor.u32 %v13278_v28, %v12582_v59  ;;  %v13302_v39 = vld [vmem:[#allocation2 + $0x584] sm:$0xf]  ;;  %v12422_v7 = vld [vmem:[#allocation2 + $0x390] sm:$0xf0] }
 0xc40   :  { %11032 = vmatmul.bf16.vlgmr.msrb.gmra.mxu0 %v19133_v16  ;;  %v12869_v18 = vor.u32 %v13352_v29, %v12868_v19  ;;  %v12681_v61 = vor.u32 %v13302_v39, %v12678_v52  ;;  %v13266_v34 = vld [vmem:[#allocation2 + $0x464] sm:$0xf]  ;;  %v12518_v25 = vld [vmem:[#allocation2 + $0x450] sm:$0xf0]  ;;  %v13189_v39 = vld [vmem:[#allocation2 + $0x1f4] sm:$0xf0] }
 0xc41   :  { %11076 = vmatpush.bf16.msra.mxu0 %v12601_v2  ;;  %v12537_v10 = vor.u32 %v13266_v34, %v12534_v17  ;;  %v13238_v56 = vld [vmem:[#allocation2 + $0x384] sm:$0xf]  ;;  %v12278_v28 = vld [vmem:[#allocation2 + $0x270] sm:$0xf0]  ;;  %v12076_v17 = vld [vmem:[#allocation2 + $0xc8] sm:$0xf] }
 0xc42   :  { %11001 = vmatpush.bf16.msrb.mxu2 %v12805_v48  ;;  %v12713_v48 = vor.u32 %v13310_v63, %v12710_v9  ;;  %11045 = vmatmul.bf16.vlgmr.msrb.gmra.mxu1 %v19138_v12  ;;  %v13298_v6 = vld [vmem:[#allocation2 + $0x564] sm:$0xf]  ;;  %v12425_v59 = vor.u32 %v13238_v56, %v12422_v7  ;;  %v12646_v29 = vld [vmem:[#allocation2 + $0x550] sm:$0xf0]  ;;  %v13185_v7 = vld [vmem:[#allocation2 + $0x1d4] sm:$0xf0] }
 0xc43   :  { %11014 = vmatpush.bf16.msrb.mxu3 %v12933_v15  ;;  %11089 = vmatpush.bf16.msra.mxu1 %v12729_v21  ;;  %v12566_v15 = vld [vmem:[#allocation2 + $0x4b0] sm:$0xf0]  ;;  %v12665_v42 = vor.u32 %v13298_v6, %v12662_v26  ;;  %v13262_v38 = vld [vmem:[#allocation2 + $0x444] sm:$0xf]  ;;  %v12204_v26 = vld [vmem:[#allocation2 + $0x1c8] sm:$0xf] }
 0xc44   :  { %v12569_v62 = vor.u32 %v13274_v51, %v12566_v15  ;;  %v12521_v21 = vor.u32 %v13262_v38, %v12518_v25  ;;  %v13202_v32 = vld [vmem:[#allocation2 + $0x264] sm:$0xf]  ;;  %v12406_v37 = vld [vmem:[#allocation2 + $0x370] sm:$0xf0]  ;;  %v12205_v25 = vor.u32 %v13185_v7, %v12204_v26  ;;  %v13133_v26 = vld [vmem:[#allocation2 + $0x34] sm:$0xf0] }
 0xc45   :  { %11077 = vmatpush.bf16.msra.mxu0 %v12585_v36  ;;  %v13294_v19 = vld [vmem:[#allocation2 + $0x544] sm:$0xf]  ;;  %v12502_v63 = vld [vmem:[#allocation2 + $0x430] sm:$0xf0]  ;;  %v12281_v54 = vor.u32 %v13202_v32, %v12278_v28  ;;  %v13149_v32 = vld [vmem:[#allocation2 + $0xb4] sm:$0xf0] }
 0xc46   :  { %11002 = vmatpush.bf16.msrb.mxu2 %v12789_v5  ;;  %v12694_v5 = vld [vmem:[#allocation2 + $0x5b0] sm:$0xf0]  ;;  %v12649_v36 = vor.u32 %v13294_v19, %v12646_v29  ;;  %v13258_v3 = vld [vmem:[#allocation2 + $0x424] sm:$0xf] }
 0xc47   :  { %11015 = vmatpush.bf16.msrb.mxu3 %v12917_v1  ;;  %11090 = vmatpush.bf16.msra.mxu1 %v12713_v48  ;;  %v12697_v1 = vor.u32 %v13306_v0, %v12694_v5  ;;  %v12505_v9 = vor.u32 %v13258_v3, %v12502_v63  ;;  %v13198_v30 = vld [vmem:[#allocation2 + $0x244] sm:$0xf]  ;;  %v12262_v48 = vld [vmem:[#allocation2 + $0x250] sm:$0xf0]  ;;  %v12188_v3 = vld [vmem:[#allocation2 + $0x1a8] sm:$0xf] }
 0xc48   :  { %v13230_v51 = vld [vmem:[#allocation2 + $0x344] sm:$0xf]  ;;  %v12265_v0 = vor.u32 %v13198_v30, %v12262_v48  ;;  %v12246_v5 = vld [vmem:[#allocation2 + $0x230] sm:$0xf0]  ;;  %v13181_v63 = vld [vmem:[#allocation2 + $0x1b4] sm:$0xf0] }
 0xc49   :  { %11078 = vmatpush.bf16.msra.mxu0 %v12569_v62  ;;  %v13290_v15 = vld [vmem:[#allocation2 + $0x524] sm:$0xf]  ;;  %v12486_v62 = vld [vmem:[#allocation2 + $0x410] sm:$0xf0]  ;;  %v12044_v30 = vld [vmem:[#allocation2 + $0x88] sm:$0xf] }
 0xc4a   :  { %11003 = vmatpush.bf16.msrb.mxu2 %v12773_v50  ;;  %v12438_v50 = vld [vmem:[#allocation2 + $0x3b0] sm:$0xf0]  ;;  %v13254_v22 = vld [vmem:[#allocation2 + $0x404] sm:$0xf]  ;;  %v13145_v48 = vld [vmem:[#allocation2 + $0x94] sm:$0xf0] }
 0xc4b   :  { %11016 = vmatpush.bf16.msrb.mxu3 %v12901_v43  ;;  %11091 = vmatpush.bf16.msra.mxu1 %v12697_v1  ;;  %v13206_v43 = vld [vmem:[#allocation2 + $0x284] sm:$0xf]  ;;  %v12441_v2 = vor.u32 %v13242_v27, %v12438_v50  ;;  %v12489_v41 = vor.u32 %v13254_v22, %v12486_v62  ;;  %v13157_v1 = vld [vmem:[#allocation2 + $0xf4] sm:$0xf0]  ;;  %v12614_v40 = vld [vmem:[#allocation2 + $0x510] sm:$0xf0] }
 0xc4c   :  { %v13226_v60 = vld [vmem:[#allocation2 + $0x324] sm:$0xf]  ;;  %v12374_v31 = vld [vmem:[#allocation2 + $0x330] sm:$0xf0]  ;;  %v12220_v27 = vld [vmem:[#allocation2 + $0x1e8] sm:$0xf] }
 0xc4d   :  { %11079 = vmatpush.bf16.msra.mxu0 %v12553_v44  ;;  %v12093_v44 = vor.u32 %v13157_v1, %v12092_v57  ;;  %v13190_v52 = vld [vmem:[#allocation2 + $0x204] sm:$0xf]  ;;  %v12221_v50 = vor.u32 %v13189_v39, %v12220_v27  ;;  %v12230_v34 = vld [vmem:[#allocation2 + $0x210] sm:$0xf0]  ;;  %v12172_v22 = vld [vmem:[#allocation2 + $0x188] sm:$0xf] }
 0xc4e   :  { %11004 = vmatpush.bf16.msrb.mxu2 %v12757_v58  ;;  %v12297_v58 = vor.u32 %v13206_v43, %v12294_v47  ;;  %v13222_v43 = vld [vmem:[#allocation2 + $0x304] sm:$0xf]  ;;  %v12358_v47 = vld [vmem:[#allocation2 + $0x310] sm:$0xf0]  ;;  %v13177_v62 = vld [vmem:[#allocation2 + $0x194] sm:$0xf0] }
 0xc4f   :  { %11017 = vmatpush.bf16.msrb.mxu3 %v12885_v35  ;;  %11092 = vmatpush.bf16.msra.mxu1 %v12681_v61  ;;  %v13234_v35 = vld [vmem:[#allocation2 + $0x364] sm:$0xf]  ;;  %v12854_v6 = vld [vmem:[#allocation2 + $0x6f0] sm:$0xf0]  ;;  %v12361_v28 = vor.u32 %v13222_v43, %v12358_v47  ;;  %v12012_v39 = vld [vmem:[#allocation2 + $0x48] sm:$0xf] }
 0xc50   :  { %v12982_v38 = vld [vmem:[#allocation2 + $0x7f0] sm:$0xf0]  ;;  %v12140_v43 = vld [vmem:[#allocation2 + $0x148] sm:$0xf]  ;;  %v13169_v47 = vld [vmem:[#allocation2 + $0x154] sm:$0xf0] }
 0xc51   :  { %11080 = vmatpush.bf16.msra.mxu0 %v12537_v10  ;;  %v13153_v10 = vld [vmem:[#allocation2 + $0xd4] sm:$0xf0]  ;;  %v12838_v19 = vld [vmem:[#allocation2 + $0x6d0] sm:$0xf0] }
 0xc52   :  { %11005 = vmatpush.bf16.msrb.mxu2 %v12741_v14  ;;  %v12409_v14 = vor.u32 %v13234_v35, %v12406_v37  ;;  %v12077_v56 = vor.u32 %v13153_v10, %v12076_v17  ;;  %v13342_v35 = vld [vmem:[#allocation2 + $0x6c4] sm:$0xf]  ;;  %v12790_v17 = vld [vmem:[#allocation2 + $0x670] sm:$0xf0] }
 0xc53   :  { %11018 = vmatpush.bf16.msrb.mxu3 %v12869_v18  ;;  %11093 = vmatpush.bf16.msra.mxu1 %v12665_v42  ;;  %v12630_v18 = vld [vmem:[#allocation2 + $0x530] sm:$0xf0]  ;;  %v13378_v42 = vld [vmem:[#allocation2 + $0x7e4] sm:$0xf] }
 0xc54   :  { %v12633_v53 = vor.u32 %v13290_v15, %v12630_v18  ;;  %v12985_v37 = vor.u32 %v13378_v42, %v12982_v38  ;;  %v13338_v15 = vld [vmem:[#allocation2 + $0x6a4] sm:$0xf]  ;;  %v12822_v18 = vld [vmem:[#allocation2 + $0x6b0] sm:$0xf0] }
 0xc55   :  { %11006 = vmatmul.bf16.vlgmr.msrb.gmra.mxu2 %v19171_v20  ;;  %11081 = vmatpush.bf16.msra.mxu0 %v12521_v21  ;;  %v12233_v21 = vor.u32 %v13190_v52, %v12230_v34  ;;  %v12825_v1 = vor.u32 %v13338_v15, %v12822_v18  ;;  %v13137_v52 = vld [vmem:[#allocation2 + $0x54] sm:$0xf0]  ;;  %v13330_v34 = vld [vmem:[#allocation2 + $0x664] sm:$0xf]  ;;  %v12886_v18 = vld [vmem:[#allocation2 + $0x730] sm:$0xf0] }
 0xc56   :  { %11050 = vmatpush.bf16.msra.mxu2 %v12345_v4  ;;  %11019 = vmatmul.bf16.vlgmr.msrb.gmra.mxu3 %v19176_v13  ;;  %v12390_v4 = vld [vmem:[#allocation2 + $0x350] sm:$0xf0]  ;;  %v12793_v42 = vor.u32 %v13330_v34, %v12790_v17  ;;  %v13326_v38 = vld [vmem:[#allocation2 + $0x644] sm:$0xf]  ;;  %v13161_v15 = vld [vmem:[#allocation2 + $0x114] sm:$0xf0] }
 0xc57   :  { %11063 = vmatpush.bf16.msra.mxu3 %v12473_v23  ;;  %11094 = vmatpush.bf16.msra.mxu1 %v12649_v36  ;;  %v13194_v23 = vld [vmem:[#allocation2 + $0x224] sm:$0xf]  ;;  %v12393_v33 = vor.u32 %v13230_v51, %v12390_v4  ;;  %v12841_v51 = vor.u32 %v13342_v35, %v12838_v19  ;;  %v11980_v19 = vld [vmem:[#allocation2 + $0x8] sm:$0xf]  ;;  %v13277_v34 = vld [vmem:[#allocation2 + $0x4b4] sm:$0xf0] }
 0xc58   :  { %v12249_v61 = vor.u32 %v13194_v23, %v12246_v5  ;;  %v13374_v36 = vld [vmem:[#allocation2 + $0x7c4] sm:$0xf]  ;;  %v12950_v23 = vld [vmem:[#allocation2 + $0x7b0] sm:$0xf0]  ;;  %v13141_v5 = vld [vmem:[#allocation2 + $0x74] sm:$0xf0] }
 0xc59   :  { %11082 = vmatpush.bf16.msra.mxu0 %v12505_v9  ;;  %v12966_v9 = vld [vmem:[#allocation2 + $0x7d0] sm:$0xf0] }
 0xc5a   :  { %11051 = vmatpush.bf16.msra.mxu2 %v12329_v45  ;;  %v13286_v45 = vld [vmem:[#allocation2 + $0x504] sm:$0xf]  ;;  %v12969_v4 = vor.u32 %v13374_v36, %v12966_v9  ;;  %v12604_v9 = vld [vmem:[#allocation2 + $0x4e8] sm:$0xf] }
 0xc5b   :  { %11064 = vmatpush.bf16.msra.mxu3 %v12457_v11  ;;  %11095 = vmatpush.bf16.msra.mxu1 %v12633_v53  ;;  %v12617_v11 = vor.u32 %v13286_v45, %v12614_v40  ;;  %v13370_v53 = vld [vmem:[#allocation2 + $0x7a4] sm:$0xf]  ;;  %v12156_v40 = vld [vmem:[#allocation2 + $0x168] sm:$0xf] }
 0xc5c   :  { %v13366_v45 = vld [vmem:[#allocation2 + $0x784] sm:$0xf] }
 0xc5d   :  { %11083 = vmatpush.bf16.msra.mxu0 %v12489_v41  ;;  %v12173_v41 = vor.u32 %v13177_v62, %v12172_v22  ;;  %v13317_v22 = vld [vmem:[#allocation2 + $0x5f4] sm:$0xf0]  ;;  %v13318_v62 = vld [vmem:[#allocation2 + $0x604] sm:$0xf] }
 0xc5e   :  { %11052 = vmatpush.bf16.msra.mxu2 %v12313_v49  ;;  %v12377_v49 = vor.u32 %v13226_v60, %v12374_v31  ;;  %v12806_v60 = vld [vmem:[#allocation2 + $0x690] sm:$0xf0]  ;;  %v13173_v31 = vld [vmem:[#allocation2 + $0x174] sm:$0xf0] }
 0xc5f   :  { %11065 = vmatpush.bf16.msra.mxu3 %v12441_v2  ;;  %v13346_v2 = vld [vmem:[#allocation2 + $0x6e4] sm:$0xf]  ;;  %11096 = vmatpush.bf16.msra.mxu1 %v12617_v11  ;;  %v12934_v11 = vld [vmem:[#allocation2 + $0x790] sm:$0xf0]  ;;  %v12157_v27 = vor.u32 %v13173_v31, %v12156_v40  ;;  %v13221_v40 = vld [vmem:[#allocation2 + $0x2f4] sm:$0xf0] }
 0xc60   :  { %11084 = vmatmul.bf16.vlgmr.msra.gmra.mxu0 %v19145_v55  ;;  %v12937_v10 = vor.u32 %v13366_v45, %v12934_v11  ;;  %v12716_v31 = vld [vmem:[#allocation2 + $0x5c8] sm:$0xf]  ;;  %v13313_v11 = vld [vmem:[#allocation2 + $0x5d4] sm:$0xf0] }
 0xc61   :  { %11128 = vmatpush.bf16.msrb.mxu0 %v12093_v44  ;;  %v12953_v44 = vor.u32 %v13370_v53, %v12950_v23  ;;  %v12732_v53 = vld [vmem:[#allocation2 + $0x5e8] sm:$0xf] }
 0xc62   :  { %11053 = vmatpush.bf16.msra.mxu2 %v12297_v58  ;;  %v12060_v58 = vld [vmem:[#allocation2 + $0xa8] sm:$0xf]  ;;  %11097 = vmatmul.bf16.vlgmr.msra.gmra.mxu1 %v19150_v8  ;;  %v12733_v23 = vor.u32 %v13317_v22, %v12732_v53 }
 0xc63   :  { %11066 = vmatpush.bf16.msra.mxu3 %v12425_v59  ;;  %11141 = vmatpush.bf16.msrb.mxu1 %v12221_v50  ;;  %v12857_v59 = vor.u32 %v13346_v2, %v12854_v6  ;;  %v12061_v29 = vor.u32 %v13149_v32, %v12060_v58  ;;  %v12013_v50 = vor.u32 %v13137_v52, %v12012_v39  ;;  %v12918_v2 = vld [vmem:[#allocation2 + $0x770] sm:$0xf0]  ;;  %v11996_v6 = vld [vmem:[#allocation2 + $0x28] sm:$0xf]  ;;  %v13358_v58 = vld [vmem:[#allocation2 + $0x744] sm:$0xf] }
 0xc64   :  { %v11997_v7 = vor.u32 %v13133_v26, %v11996_v6  ;;  %v12124_v32 = vld [vmem:[#allocation2 + $0x128] sm:$0xf]  ;;  %v13253_v39 = vld [vmem:[#allocation2 + $0x3f4] sm:$0xf0]  ;;  %v12717_v52 = vor.u32 %v13313_v11, %v12716_v31 }
 0xc65   :  { %11129 = vmatpush.bf16.msrb.mxu0 %v12077_v56  ;;  %v12141_v56 = vor.u32 %v13169_v47, %v12140_v43  ;;  %v13217_v43 = vld [vmem:[#allocation2 + $0x2d4] sm:$0xf0]  ;;  %v12700_v6 = vld [vmem:[#allocation2 + $0x5a8] sm:$0xf] }
 0xc66   :  { %11054 = vmatpush.bf16.msra.mxu2 %v12281_v54  ;;  %v12189_v54 = vor.u32 %v13181_v63, %v12188_v3  ;;  %v12758_v63 = vld [vmem:[#allocation2 + $0x630] sm:$0xf0]  ;;  %v13309_v26 = vld [vmem:[#allocation2 + $0x5b4] sm:$0xf0]  ;;  %v12524_v22 = vld [vmem:[#allocation2 + $0x448] sm:$0xf] }
 0xc67   :  { %11067 = vmatpush.bf16.msra.mxu3 %v12409_v14  ;;  %11142 = vmatpush.bf16.msrb.mxu1 %v12205_v25  ;;  %v12045_v14 = vor.u32 %v13145_v48, %v12044_v30  ;;  %v12774_v25 = vld [vmem:[#allocation2 + $0x650] sm:$0xf0]  ;;  %v13354_v48 = vld [vmem:[#allocation2 + $0x724] sm:$0xf]  ;;  %v13261_v31 = vld [vmem:[#allocation2 + $0x434] sm:$0xf0] }
 0xc68   :  { %v12777_v3 = vor.u32 %v13326_v38, %v12774_v25  ;;  %v12556_v38 = vld [vmem:[#allocation2 + $0x488] sm:$0xf]  ;;  %v13273_v25 = vld [vmem:[#allocation2 + $0x494] sm:$0xf0] }
 0xc69   :  { %11130 = vmatpush.bf16.msrb.mxu0 %v12061_v29  ;;  %v13129_v29 = vld [vmem:[#allocation2 + $0x14] sm:$0xf0] }
 0xc6a   :  { %11055 = vmatpush.bf16.msra.mxu2 %v12265_v0  ;;  %v12028_v0 = vld [vmem:[#allocation2 + $0x68] sm:$0xf]  ;;  %v11981_v36 = vor.u32 %v13129_v29, %v11980_v19  ;;  %v13305_v29 = vld [vmem:[#allocation2 + $0x594] sm:$0xf0] }
 0xc6b   :  { %11068 = vmatpush.bf16.msra.mxu3 %v12393_v33  ;;  %11143 = vmatpush.bf16.msrb.mxu1 %v12189_v54  ;;  %v12029_v57 = vor.u32 %v13141_v5, %v12028_v0  ;;  %v13334_v33 = vld [vmem:[#allocation2 + $0x684] sm:$0xf]  ;;  %v13285_v54 = vld [vmem:[#allocation2 + $0x4f4] sm:$0xf0]  ;;  %v12742_v0 = vld [vmem:[#allocation2 + $0x610] sm:$0xf0] }
 0xc6c   :  { %v12588_v5 = vld [vmem:[#allocation2 + $0x4c8] sm:$0xf] }
 0xc6d   :  { %11131 = vmatpush.bf16.msrb.mxu0 %v12045_v14  ;;  %v12605_v14 = vor.u32 %v13285_v54, %v12604_v9  ;;  %v12684_v19 = vld [vmem:[#allocation2 + $0x588] sm:$0xf] }
 0xc6e   :  { %11056 = vmatpush.bf16.msra.mxu2 %v12249_v61  ;;  %v12809_v61 = vor.u32 %v13334_v33, %v12806_v60  ;;  %v13350_v33 = vld [vmem:[#allocation2 + $0x704] sm:$0xf]  ;;  %v12870_v60 = vld [vmem:[#allocation2 + $0x710] sm:$0xf0] }
 0xc6f   :  { %11069 = vmatpush.bf16.msra.mxu3 %v12377_v49  ;;  %11144 = vmatpush.bf16.msrb.mxu1 %v12173_v41  ;;  %v13362_v49 = vld [vmem:[#allocation2 + $0x764] sm:$0xf]  ;;  %v12873_v17 = vor.u32 %v13350_v33, %v12870_v60  ;;  %v12652_v33 = vld [vmem:[#allocation2 + $0x548] sm:$0xf]  ;;  %v13297_v60 = vld [vmem:[#allocation2 + $0x554] sm:$0xf0] }
 0xc71   :  { %11132 = vmatpush.bf16.msrb.mxu0 %v12029_v57  ;;  %v13281_v57 = vld [vmem:[#allocation2 + $0x4d4] sm:$0xf0] }
 0xc72   :  { %11057 = vmatpush.bf16.msra.mxu2 %v12233_v21  ;;  %v12921_v21 = vor.u32 %v13362_v49, %v12918_v2  ;;  %v12589_v45 = vor.u32 %v13281_v57, %v12588_v5  ;;  %v12332_v49 = vld [vmem:[#allocation2 + $0x2c8] sm:$0xf]  ;;  %v13205_v5 = vld [vmem:[#allocation2 + $0x274] sm:$0xf0] }
 0xc73   :  { %11070 = vmatpush.bf16.msra.mxu3 %v12361_v28  ;;  %11145 = vmatpush.bf16.msrb.mxu1 %v12157_v27  ;;  %v13165_v28 = vld [vmem:[#allocation2 + $0x134] sm:$0xf0]  ;;  %v12476_v27 = vld [vmem:[#allocation2 + $0x3e8] sm:$0xf] }
 0xc74   :  { %v12125_v35 = vor.u32 %v13165_v28, %v12124_v32  ;;  %v12477_v2 = vor.u32 %v13253_v39, %v12476_v27  ;;  %v12316_v32 = vld [vmem:[#allocation2 + $0x2a8] sm:$0xf]  ;;  %v13213_v28 = vld [vmem:[#allocation2 + $0x2b4] sm:$0xf0] }
 0xc75   :  { %11058 = vmatmul.bf16.vlgmr.msra.gmra.mxu2 %v19157_v46  ;;  %11133 = vmatpush.bf16.msrb.mxu0 %v12013_v50  ;;  %v12745_v50 = vor.u32 %v13318_v62, %v12742_v0  ;;  %v12317_v54 = vor.u32 %v13213_v28, %v12316_v32  ;;  %v13265_v62 = vld [vmem:[#allocation2 + $0x454] sm:$0xf0]  ;;  %v12284_v0 = vld [vmem:[#allocation2 + $0x268] sm:$0xf]  ;;  %v13155_v32 = vld [vmem:[#allocation2 + $0xec] sm:$0xf] }
 0xc76   :  { %11102 = vmatpush.bf16.msrb.mxu2 %v12857_v59  ;;  %11071 = vmatmul.bf16.vlgmr.msra.gmra.mxu3 %v19162_v24  ;;  %v12902_v59 = vld [vmem:[#allocation2 + $0x750] sm:$0xf0]  ;;  %v12285_v27 = vor.u32 %v13205_v5, %v12284_v0  ;;  %v12268_v39 = vld [vmem:[#allocation2 + $0x248] sm:$0xf]  ;;  %v12094_v28 = vld [vmem:[#allocation2 + $0xf8] sm:$0xf0] }
 0xc77   :  { %11115 = vmatpush.bf16.msrb.mxu3 %v12985_v37  ;;  %11146 = vmatpush.bf16.msrb.mxu1 %v12141_v56  ;;  %v13322_v37 = vld [vmem:[#allocation2 + $0x624] sm:$0xf]  ;;  %v12905_v30 = vor.u32 %v13358_v58, %v12902_v59  ;;  %v12460_v56 = vld [vmem:[#allocation2 + $0x3c8] sm:$0xf]  ;;  %v12333_v58 = vor.u32 %v13217_v43, %v12332_v49  ;;  %v12206_v0 = vld [vmem:[#allocation2 + $0x1d8] sm:$0xf0] }
 0xc78   :  { %v12761_v41 = vor.u32 %v13322_v37, %v12758_v63  ;;  %v13245_v37 = vld [vmem:[#allocation2 + $0x3b4] sm:$0xf0]  ;;  %v20295_v49 = vld [vmem:[#allocation9_spill] sm:$0xff]  ;;  %v12988_v5 = vld [vmem:[#allocation2 + $0x7e8] sm:$0xf] }
 0xc79   :  { %11134 = vmatpush.bf16.msrb.mxu0 %v11997_v7  ;;  %v13249_v7 = vld [vmem:[#allocation2 + $0x3d4] sm:$0xf0]  ;;  %v9632_v43 = vperm.slane %v20295_v49, 0 }
 0xc7a   :  { %11103 = vmatpush.bf16.msrb.mxu2 %v12841_v51  ;;  %v12108_v51 = vld [vmem:[#allocation2 + $0x108] sm:$0xf]  ;;  %v12461_v59 = vor.u32 %v13249_v7, %v12460_v56  ;;  %v13269_v63 = vld [vmem:[#allocation2 + $0x474] sm:$0xf0] }
 0xc7b   :  { %11116 = vmatpush.bf16.msrb.mxu3 %v12969_v4  ;;  %11147 = vmatpush.bf16.msrb.mxu1 %v12125_v35  ;;  %v12109_v4 = vor.u32 %v13161_v15, %v12108_v51  ;;  %v12444_v35 = vld [vmem:[#allocation2 + $0x3a8] sm:$0xf]  ;;  %v13197_v7 = vld [vmem:[#allocation2 + $0x234] sm:$0xf0] }
 0xc7c   :  { %v12428_v51 = vld [vmem:[#allocation2 + $0x388] sm:$0xf] }
 0xc7d   :  { %11135 = vmatpush.bf16.msrb.mxu0 %v11981_v36  ;;  %v12685_v36 = vor.u32 %v13305_v29, %v12684_v19  ;;  %v12668_v15 = vld [vmem:[#allocation2 + $0x568] sm:$0xf]  ;;  %v12097_v29 = vor.u32 %v13155_v32, %v12094_v28  ;;  %v12174_v32 = vld [vmem:[#allocation2 + $0x198] sm:$0xf0]  ;;  %v13373_v28 = vld [vmem:[#allocation2 + $0x7b4] sm:$0xf0] }
 0xc7e   :  { %11104 = vmatpush.bf16.msrb.mxu2 %v12825_v1  ;;  %v12889_v1 = vor.u32 %v13354_v48, %v12886_v18  ;;  %v13209_v48 = vld [vmem:[#allocation2 + $0x294] sm:$0xf0]  ;;  %v12492_v56 = vld [vmem:[#allocation2 + $0x408] sm:$0xf] }
 0xc7f   :  { %11117 = vmatpush.bf16.msrb.mxu3 %v12953_v44  ;;  %v12348_v44 = vld [vmem:[#allocation2 + $0x2e8] sm:$0xf]  ;;  %11148 = vmatpush.bf16.msrb.mxu1 %v12109_v4  ;;  %v13301_v18 = vld [vmem:[#allocation2 + $0x574] sm:$0xf0] }
 0xc80   :  { %11136 = vmatmul.bf16.vlgmr.msrb.gmra.mxu0 %v19133_v16  ;;  %v13241_v4 = vld [vmem:[#allocation2 + $0x394] sm:$0xf0]  ;;  %v12669_v53 = vor.u32 %v13301_v18, %v12668_v15  ;;  %v12078_v15 = vld [vmem:[#allocation2 + $0xd8] sm:$0xf0] }
 0xc81   :  { %11180 = vmatpush.bf16.msra.mxu0 %v12605_v14  ;;  %v12445_v14 = vor.u32 %v13245_v37, %v12444_v35  ;;  %v12429_v57 = vor.u32 %v13241_v4, %v12428_v51  ;;  %v13289_v37 = vld [vmem:[#allocation2 + $0x514] sm:$0xf0]  ;;  %v13151_v51 = vld [vmem:[#allocation2 + $0xcc] sm:$0xf]  ;;  %v12364_v4 = vld [vmem:[#allocation2 + $0x308] sm:$0xf] }
 0xc82   :  { %11105 = vmatpush.bf16.msrb.mxu2 %v12809_v61  ;;  %v12572_v61 = vld [vmem:[#allocation2 + $0x4a8] sm:$0xf]  ;;  %11149 = vmatmul.bf16.vlgmr.msrb.gmra.mxu1 %v19138_v12 }
 0xc83   :  { %11118 = vmatpush.bf16.msrb.mxu3 %v12937_v10  ;;  %11193 = vmatpush.bf16.msra.mxu1 %v12733_v23  ;;  %v12349_v10 = vor.u32 %v13221_v40, %v12348_v44  ;;  %v12573_v47 = vor.u32 %v13277_v34, %v12572_v61  ;;  %v12525_v23 = vor.u32 %v13265_v62, %v12524_v22  ;;  %v13237_v44 = vld [vmem:[#allocation2 + $0x374] sm:$0xf0]  ;;  %v12508_v40 = vld [vmem:[#allocation2 + $0x428] sm:$0xf] }
 0xc84   :  { %v12509_v11 = vor.u32 %v13261_v31, %v12508_v40  ;;  %v12636_v61 = vld [vmem:[#allocation2 + $0x528] sm:$0xf]  ;;  %v13293_v34 = vld [vmem:[#allocation2 + $0x534] sm:$0xf0]  ;;  %v12081_v62 = vor.u32 %v13151_v51, %v12078_v15  ;;  %v13135_v15 = vld [vmem:[#allocation2 + $0x4c] sm:$0xf] }
 0xc85   :  { %11181 = vmatpush.bf16.msra.mxu0 %v12589_v45  ;;  %v12653_v45 = vor.u32 %v13297_v60, %v12652_v33  ;;  %v12860_v22 = vld [vmem:[#allocation2 + $0x6e8] sm:$0xf]  ;;  %v13147_v60 = vld [vmem:[#allocation2 + $0xac] sm:$0xf] }
 0xc86   :  { %11106 = vmatpush.bf16.msrb.mxu2 %v12793_v42  ;;  %v12701_v42 = vor.u32 %v13309_v26, %v12700_v6  ;;  %v13257_v6 = vld [vmem:[#allocation2 + $0x414] sm:$0xf0]  ;;  %v12844_v31 = vld [vmem:[#allocation2 + $0x6c8] sm:$0xf] }
 0xc87   :  { %11119 = vmatpush.bf16.msrb.mxu3 %v12921_v21  ;;  %11194 = vmatpush.bf16.msra.mxu1 %v12717_v52  ;;  %v12557_v21 = vor.u32 %v13273_v25, %v12556_v38  ;;  %v13229_v38 = vld [vmem:[#allocation2 + $0x334] sm:$0xf0]  ;;  %v12493_v25 = vor.u32 %v13257_v6, %v12492_v56  ;;  %v12046_v56 = vld [vmem:[#allocation2 + $0x98] sm:$0xf0] }
 0xc89   :  { %11182 = vmatpush.bf16.msra.mxu0 %v12573_v47  ;;  %v12637_v47 = vor.u32 %v13293_v34, %v12636_v61  ;;  %v13179_v34 = vld [vmem:[#allocation2 + $0x1ac] sm:$0xf] }
 0xc8a   :  { %11107 = vmatpush.bf16.msrb.mxu2 %v12777_v3  ;;  %v12540_v3 = vld [vmem:[#allocation2 + $0x468] sm:$0xf] }
 0xc8b   :  { %11120 = vmatpush.bf16.msrb.mxu3 %v12905_v30  ;;  %11195 = vmatpush.bf16.msra.mxu1 %v12701_v42  ;;  %v12541_v9 = vor.u32 %v13269_v63, %v12540_v3  ;;  %v12300_v30 = vld [vmem:[#allocation2 + $0x288] sm:$0xf]  ;;  %v12222_v3 = vld [vmem:[#allocation2 + $0x1f8] sm:$0xf0] }
 0xc8c   :  { %v12380_v42 = vld [vmem:[#allocation2 + $0x328] sm:$0xf] }
 0xc8d   :  { %11183 = vmatpush.bf16.msra.mxu0 %v12557_v21  ;;  %v12236_v63 = vld [vmem:[#allocation2 + $0x208] sm:$0xf]  ;;  %v12381_v18 = vor.u32 %v13229_v38, %v12380_v42  ;;  %v13341_v42 = vld [vmem:[#allocation2 + $0x6b4] sm:$0xf0] }
 0xc8e   :  { %11108 = vmatpush.bf16.msrb.mxu2 %v12761_v41  ;;  %v12301_v41 = vor.u32 %v13209_v48, %v12300_v30  ;;  %v13193_v48 = vld [vmem:[#allocation2 + $0x214] sm:$0xf0] }
 0xc8f   :  { %11121 = vmatpush.bf16.msrb.mxu3 %v12889_v1  ;;  %11196 = vmatpush.bf16.msra.mxu1 %v12685_v36  ;;  %v12412_v1 = vld [vmem:[#allocation2 + $0x368] sm:$0xf]  ;;  %v13187_v36 = vld [vmem:[#allocation2 + $0x1ec] sm:$0xf]  ;;  %v12237_v33 = vor.u32 %v13193_v48, %v12236_v63  ;;  %v13369_v48 = vld [vmem:[#allocation2 + $0x794] sm:$0xf0] }
 0xc90   :  { %v12413_v52 = vor.u32 %v13237_v44, %v12412_v1  ;;  %v12062_v44 = vld [vmem:[#allocation2 + $0xb8] sm:$0xf0] }
 0xc91   :  { %11184 = vmatpush.bf16.msra.mxu0 %v12541_v9 }
 0xc92   :  { %11109 = vmatpush.bf16.msrb.mxu2 %v12745_v50  ;;  %v13201_v50 = vld [vmem:[#allocation2 + $0x254] sm:$0xf0] }
 0xc93   :  { %11122 = vmatpush.bf16.msrb.mxu3 %v12873_v17  ;;  %11197 = vmatpush.bf16.msra.mxu1 %v12669_v53  ;;  %v12396_v17 = vld [vmem:[#allocation2 + $0x348] sm:$0xf]  ;;  %v12269_v26 = vor.u32 %v13201_v50, %v12268_v39  ;;  %v13225_v53 = vld [vmem:[#allocation2 + $0x314] sm:$0xf0]  ;;  %v12065_v39 = vor.u32 %v13147_v60, %v12062_v44  ;;  %v13131_v44 = vld [vmem:[#allocation2 + $0x2c] sm:$0xf] }
 0xc94   :  { %v12972_v50 = vld [vmem:[#allocation2 + $0x7c8] sm:$0xf] }
 0xc95   :  { %11110 = vmatmul.bf16.vlgmr.msrb.gmra.mxu2 %v19171_v20  ;;  %11185 = vmatpush.bf16.msra.mxu0 %v12525_v23  ;;  %v13349_v23 = vld [vmem:[#allocation2 + $0x6f4] sm:$0xf0] }
 0xc96   :  { %11154 = vmatpush.bf16.msra.mxu2 %v12349_v10  ;;  %11123 = vmatmul.bf16.vlgmr.msrb.gmra.mxu3 %v19176_v13  ;;  %v13233_v10 = vld [vmem:[#allocation2 + $0x354] sm:$0xf0]  ;;  %v12861_v40 = vor.u32 %v13349_v23, %v12860_v22 }
 0xc97   :  { %11167 = vmatpush.bf16.msra.mxu3 %v12477_v2  ;;  %11198 = vmatpush.bf16.msra.mxu1 %v12653_v45  ;;  %v12252_v2 = vld [vmem:[#allocation2 + $0x228] sm:$0xf]  ;;  %v12397_v21 = vor.u32 %v13233_v10, %v12396_v17  ;;  %v12365_v45 = vor.u32 %v13225_v53, %v12364_v4  ;;  %v12190_v17 = vld [vmem:[#allocation2 + $0x1b8] sm:$0xf0]  ;;  %v13377_v10 = vld [vmem:[#allocation2 + $0x7d4] sm:$0xf0] }
 0xc98   :  { %v12253_v30 = vor.u32 %v13197_v7, %v12252_v2  ;;  %v13143_v2 = vld [vmem:[#allocation2 + $0x8c] sm:$0xf]  ;;  %v12828_v7 = vld [vmem:[#allocation2 + $0x6a8] sm:$0xf]  ;;  %v13333_v23 = vld [vmem:[#allocation2 + $0x674] sm:$0xf0] }
 0xc99   :  { %11186 = vmatpush.bf16.msra.mxu0 %v12509_v11  ;;  %v10942_v19 = vpop.f32.mrf.mxu3  ;;  %v13345_v11 = vld [vmem:[#allocation2 + $0x6d4] sm:$0xf0]  ;;  %v12049_v6 = vor.u32 %v13143_v2, %v12046_v56  ;;  %v11982_v2 = vld [vmem:[#allocation2 + $0x18] sm:$0xf0] }
 0xc9a   :  { %11155 = vmatpush.bf16.msra.mxu2 %v12333_v58  ;;  %v10929_v58 = vpop.f32.mrf.mxu2 }
 0xc9b   :  { %11168 = vmatpush.bf16.msra.mxu3 %v12461_v59  ;;  %11199 = vmatpush.bf16.msra.mxu1 %v12637_v47  ;;  %v12620_v59 = vld [vmem:[#allocation2 + $0x508] sm:$0xf]  ;;  %v10930_v35 = vadd.f32 %v10929_v58, %v9632_v43  ;;  %v12193_v47 = vor.u32 %v13179_v34, %v12190_v17  ;;  %v13175_v58 = vld [vmem:[#allocation2 + $0x18c] sm:$0xf]  ;;  %v13361_v34 = vld [vmem:[#allocation2 + $0x754] sm:$0xf0] }
 0xc9c   :  { %v12621_v9 = vor.u32 %v13289_v37, %v12620_v59  ;;  %v12177_v59 = vor.u32 %v13175_v58, %v12174_v32  ;;  %v12829_v37 = vor.u32 %v13341_v42, %v12828_v7  ;;  %v13357_v7 = vld [vmem:[#allocation2 + $0x734] sm:$0xf0]  ;;  %v13283_v58 = vld [vmem:[#allocation2 + $0x4ec] sm:$0xf]  ;;  %v12606_v32 = vld [vmem:[#allocation2 + $0x4f8] sm:$0xf0] }
 0xc9d   :  { %11187 = vmatpush.bf16.msra.mxu0 %v12493_v25  ;;  %v19193_v43 = vpop.f32.mrf.mxu0  ;;  %v12973_v25 = vor.u32 %v13377_v10, %v12972_v50  ;;  %v12126_v50 = vld [vmem:[#allocation2 + $0x138] sm:$0xf0]  ;;  %v12764_v10 = vld [vmem:[#allocation2 + $0x628] sm:$0xf] }
 0xc9e   :  { %11156 = vmatpush.bf16.msra.mxu2 %v12317_v54  ;;  %v12225_v54 = vor.u32 %v13187_v36, %v12222_v3  ;;  %v12812_v36 = vld [vmem:[#allocation2 + $0x688] sm:$0xf]  ;;  %v13337_v3 = vld [vmem:[#allocation2 + $0x694] sm:$0xf0] }
 0xc9f   :  { %11169 = vmatpush.bf16.msra.mxu3 %v12445_v14  ;;  %v19189_v14 = vadd.f32 %v10942_v19, %v10930_v35  ;;  %11200 = vmatpush.bf16.msra.mxu1 %v12621_v9  ;;  %v19195_v38 = vpop.f32.mrf.mxu1  ;;  %v13139_v35 = vld [vmem:[#allocation2 + $0x6c] sm:$0xf]  ;;  %v12030_v19 = vld [vmem:[#allocation2 + $0x78] sm:$0xf0]  ;;  %v12940_v9 = vld [vmem:[#allocation2 + $0x788] sm:$0xf]  ;;  %v12813_v22 = vor.u32 %v13337_v3, %v12812_v36 }
 0xca0   :  { %11188 = vmatmul.bf16.vlgmr.msra.gmra.mxu0 %v19145_v55  ;;  %v12734_v36 = vld [vmem:[#allocation2 + $0x5f8] sm:$0xf0]  ;;  %v12748_v3 = vld [vmem:[#allocation2 + $0x608] sm:$0xf] }
 0xca1   :  { %11232 = vmatpush.bf16.msrb.mxu0 %v12097_v29  ;;  %v10944_v61 = vpop.f32.mrf.mxu3  ;;  %v12033_v29 = vor.u32 %v13139_v35, %v12030_v19  ;;  %v12609_v19 = vor.u32 %v13283_v58, %v12606_v32  ;;  %v13267_v32 = vld [vmem:[#allocation2 + $0x46c] sm:$0xf] }
 0xca2   :  { %11157 = vmatpush.bf16.msra.mxu2 %v12301_v41  ;;  %v13183_v41 = vld [vmem:[#allocation2 + $0x1cc] sm:$0xf]  ;;  %11201 = vmatmul.bf16.vlgmr.msra.gmra.mxu1 %v19150_v8  ;;  %v12908_v61 = vld [vmem:[#allocation2 + $0x748] sm:$0xf] }
 0xca3   :  { %11170 = vmatpush.bf16.msra.mxu3 %v12429_v57  ;;  %11245 = vmatpush.bf16.msrb.mxu1 %v12225_v54  ;;  %v13381_v57 = vld [vmem:[#allocation2 + $0x7f4] sm:$0xf0]  ;;  %v12209_v1 = vor.u32 %v13183_v41, %v12206_v0  ;;  %v13171_v54 = vld [vmem:[#allocation2 + $0x16c] sm:$0xf]  ;;  %v12941_v0 = vor.u32 %v13369_v48, %v12940_v9 }
 0xca4   :  { %v13321_v48 = vld [vmem:[#allocation2 + $0x614] sm:$0xf0] }
 0xca5   :  { %11233 = vmatpush.bf16.msrb.mxu0 %v12081_v62  ;;  %v10983_v4 = vpop.f32.mrf.mxu0  ;;  %v12796_v62 = vld [vmem:[#allocation2 + $0x668] sm:$0xf] }
 0xca6   :  { %11158 = vmatpush.bf16.msra.mxu2 %v12285_v27  ;;  %v10931_v27 = vpop.f32.mrf.mxu2  ;;  %v12876_v4 = vld [vmem:[#allocation2 + $0x708] sm:$0xf] }
 0xca7   :  { %11171 = vmatpush.bf16.msra.mxu3 %v12413_v52  ;;  %v12989_v52 = vor.u32 %v13381_v57, %v12988_v5  ;;  %11246 = vmatpush.bf16.msrb.mxu1 %v12209_v1  ;;  %v10996_v41 = vpop.f32.mrf.mxu1  ;;  %v12924_v5 = vld [vmem:[#allocation2 + $0x768] sm:$0xf]  ;;  %v13167_v57 = vld [vmem:[#allocation2 + $0x14c] sm:$0xf]  ;;  %v12142_v1 = vld [vmem:[#allocation2 + $0x158] sm:$0xf0] }
 0xca8   :  { %v12145_v60 = vor.u32 %v13167_v57, %v12142_v1  ;;  %v13311_v41 = vld [vmem:[#allocation2 + $0x5cc] sm:$0xf]  ;;  %v12478_v57 = vld [vmem:[#allocation2 + $0x3f8] sm:$0xf0] }
 0xca9   :  { %11234 = vmatpush.bf16.msrb.mxu0 %v12065_v39  ;;  %v13329_v39 = vld [vmem:[#allocation2 + $0x654] sm:$0xf0] }
 0xcaa   :  { %11159 = vmatpush.bf16.msra.mxu2 %v12269_v26  ;;  %v12845_v26 = vor.u32 %v13345_v11, %v12844_v31  ;;  %v12797_v31 = vor.u32 %v13333_v23, %v12796_v62  ;;  %v12780_v11 = vld [vmem:[#allocation2 + $0x648] sm:$0xf]  ;;  %v12350_v23 = vld [vmem:[#allocation2 + $0x2f8] sm:$0xf0] }
 0xcab   :  { %11172 = vmatpush.bf16.msra.mxu3 %v12397_v21  ;;  %v12956_v21 = vld [vmem:[#allocation2 + $0x7a8] sm:$0xf]  ;;  %11247 = vmatpush.bf16.msrb.mxu1 %v12193_v47  ;;  %v13127_v47 = vld [vmem:[#allocation2 + $0xc] sm:$0xf]  ;;  %v12781_v56 = vor.u32 %v13329_v39, %v12780_v11  ;;  %v12334_v11 = vld [vmem:[#allocation2 + $0x2d8] sm:$0xf0] }
 0xcac   :  { %v12957_v63 = vor.u32 %v13373_v28, %v12956_v21  ;;  %v11985_v42 = vor.u32 %v13127_v47, %v11982_v2  ;;  %v12909_v21 = vor.u32 %v13361_v34, %v12908_v61  ;;  %v13159_v28 = vld [vmem:[#allocation2 + $0x10c] sm:$0xf]  ;;  %v12702_v61 = vld [vmem:[#allocation2 + $0x5b8] sm:$0xf0] }
 0xcad   :  { %11235 = vmatpush.bf16.msrb.mxu0 %v12049_v6  ;;  %v13325_v6 = vld [vmem:[#allocation2 + $0x634] sm:$0xf0]  ;;  %v12462_v34 = vld [vmem:[#allocation2 + $0x3d8] sm:$0xf0] }
 0xcae   :  { %11160 = vmatpush.bf16.msra.mxu2 %v12253_v30  ;;  %v12158_v30 = vld [vmem:[#allocation2 + $0x178] sm:$0xf0] }
 0xcaf   :  { %11173 = vmatpush.bf16.msra.mxu3 %v12381_v18  ;;  %11248 = vmatpush.bf16.msrb.mxu1 %v12177_v59  ;;  %v12161_v51 = vor.u32 %v13171_v54, %v12158_v30  ;;  %v12014_v18 = vld [vmem:[#allocation2 + $0x58] sm:$0xf0]  ;;  %v12765_v30 = vor.u32 %v13325_v6, %v12764_v10  ;;  %v13271_v10 = vld [vmem:[#allocation2 + $0x48c] sm:$0xf] }
 0xcb0   :  { %v12017_v53 = vor.u32 %v13135_v15, %v12014_v18  ;;  %v12590_v15 = vld [vmem:[#allocation2 + $0x4d8] sm:$0xf0]  ;;  %v13211_v6 = vld [vmem:[#allocation2 + $0x2ac] sm:$0xf] }
 0xcb1   :  { %11236 = vmatpush.bf16.msrb.mxu0 %v12033_v29  ;;  %v12110_v29 = vld [vmem:[#allocation2 + $0x118] sm:$0xf0] }
 0xcb2   :  { %11161 = vmatpush.bf16.msra.mxu2 %v12237_v33  ;;  %v13365_v33 = vld [vmem:[#allocation2 + $0x774] sm:$0xf0]  ;;  %v12558_v47 = vld [vmem:[#allocation2 + $0x498] sm:$0xf0] }
 0xcb3   :  { %11174 = vmatpush.bf16.msra.mxu3 %v12365_v45  ;;  %11249 = vmatpush.bf16.msrb.mxu1 %v12161_v51  ;;  %v11998_v45 = vld [vmem:[#allocation2 + $0x38] sm:$0xf0]  ;;  %v12925_v27 = vor.u32 %v13365_v33, %v12924_v5  ;;  %v13279_v51 = vld [vmem:[#allocation2 + $0x4cc] sm:$0xf]  ;;  %v12561_v2 = vor.u32 %v13271_v10, %v12558_v47 }
 0xcb4   :  { %v13251_v5 = vld [vmem:[#allocation2 + $0x3ec] sm:$0xf]  ;;  %v12622_v47 = vld [vmem:[#allocation2 + $0x518] sm:$0xf0] }
 0xcb5   :  { %11162 = vmatmul.bf16.vlgmr.msra.gmra.mxu2 %v19157_v46  ;;  %11237 = vmatpush.bf16.msrb.mxu0 %v12017_v53  ;;  %v13219_v53 = vld [vmem:[#allocation2 + $0x2ec] sm:$0xf] }
 0xcb6   :  { %11206 = vmatpush.bf16.msrb.mxu2 %v12861_v40  ;;  %11175 = vmatmul.bf16.vlgmr.msra.gmra.mxu3 %v19162_v24  ;;  %v12001_v40 = vor.u32 %v13131_v44, %v11998_v45  ;;  %v13275_v44 = vld [vmem:[#allocation2 + $0x4ac] sm:$0xf]  ;;  %v12574_v45 = vld [vmem:[#allocation2 + $0x4b8] sm:$0xf0] }
 0xcb7   :  { %11219 = vmatpush.bf16.msrb.mxu3 %v12989_v52  ;;  %11250 = vmatpush.bf16.msrb.mxu1 %v12145_v60  ;;  %v13163_v52 = vld [vmem:[#allocation2 + $0x12c] sm:$0xf]  ;;  %v12749_v60 = vor.u32 %v13321_v48, %v12748_v3  ;;  %v12577_v39 = vor.u32 %v13275_v44, %v12574_v45  ;;  %v12526_v48 = vld [vmem:[#allocation2 + $0x458] sm:$0xf0] }
 0xcb8   :  { %v12129_v17 = vor.u32 %v13163_v52, %v12126_v50  ;;  %v13247_v52 = vld [vmem:[#allocation2 + $0x3cc] sm:$0xf]  ;;  %v12270_v44 = vld [vmem:[#allocation2 + $0x258] sm:$0xf0] }
 0xcb9   :  { %11238 = vmatpush.bf16.msrb.mxu0 %v12001_v40  ;;  %v10968_v35 = vpop.f32.mrf.mxu3  ;;  %v13299_v3 = vld [vmem:[#allocation2 + $0x56c] sm:$0xf] }
 0xcba   :  { %11207 = vmatpush.bf16.msrb.mxu2 %v12845_v26  ;;  %v12892_v26 = vld [vmem:[#allocation2 + $0x728] sm:$0xf]  ;;  %v13287_v10 = vld [vmem:[#allocation2 + $0x50c] sm:$0xf] }
 0xcbb   :  { %11220 = vmatpush.bf16.msrb.mxu3 %v12973_v25  ;;  %v10955_v25 = vpop.f32.mrf.mxu2  ;;  %11251 = vmatpush.bf16.msrb.mxu1 %v12129_v17  ;;  %v12893_v18 = vor.u32 %v13357_v7, %v12892_v26  ;;  %v12318_v26 = vld [vmem:[#allocation2 + $0x2b8] sm:$0xf0]  ;;  %v13243_v7 = vld [vmem:[#allocation2 + $0x3ac] sm:$0xf] }
 0xcbc   :  { %v10956_v59 = vadd.f32 %v10955_v25, %v19189_v14  ;;  %v13353_v14 = vld [vmem:[#allocation2 + $0x714] sm:$0xf0]  ;;  %v12686_v25 = vld [vmem:[#allocation2 + $0x598] sm:$0xf0] }
 0xcbd   :  { %11239 = vmatpush.bf16.msrb.mxu0 %v11985_v42  ;;  %v12877_v40 = vor.u32 %v13353_v14, %v12876_v4  ;;  %v13303_v42 = vld [vmem:[#allocation2 + $0x58c] sm:$0xf]  ;;  %v12286_v4 = vld [vmem:[#allocation2 + $0x278] sm:$0xf0] }
 0xcbe   :  { %11208 = vmatpush.bf16.msrb.mxu2 %v12829_v37  ;;  %v13315_v37 = vld [vmem:[#allocation2 + $0x5ec] sm:$0xf]  ;;  %v10969_v54 = vadd.f32 %v10968_v35, %v10956_v59  ;;  %v12689_v58 = vor.u32 %v13303_v42, %v12686_v25  ;;  %v12321_v35 = vor.u32 %v13211_v6, %v12318_v26  ;;  %v12382_v26 = vld [vmem:[#allocation2 + $0x338] sm:$0xf0] }
 0xcbf   :  { %11221 = vmatpush.bf16.msrb.mxu3 %v12957_v63  ;;  %v12113_v63 = vor.u32 %v13159_v28, %v12110_v29  ;;  %v12737_v9 = vor.u32 %v13315_v37, %v12734_v36  ;;  %v12542_v28 = vld [vmem:[#allocation2 + $0x478] sm:$0xf0]  ;;  %v13239_v36 = vld [vmem:[#allocation2 + $0x38c] sm:$0xf] }
 0xcc0   :  { %v10982_v62 = vadd.f32 %v19193_v43, %v10969_v54  ;;  %11240 = vmatmul.bf16.vlgmr.msrb.gmra.mxu0 %v19133_v16  ;;  %v12353_v43 = vor.u32 %v13219_v53, %v12350_v23  ;;  %v12481_v16 = vor.u32 %v13251_v5, %v12478_v57  ;;  %v12545_v59 = vor.u32 %v13267_v32, %v12542_v28  ;;  %v12302_v29 = vld [vmem:[#allocation2 + $0x298] sm:$0xf0]  ;;  %v13235_v53 = vld [vmem:[#allocation2 + $0x36c] sm:$0xf] }
 0xcc1   :  { %11284 = vmatpush.bf16.msra.mxu0 %v12609_v19  ;;  %11252 = vmatpush.bf16.msrb.mxu1 %v12113_v63  ;;  %v10970_v50 = vpop.f32.mrf.mxu3  ;;  %v13207_v19 = vld [vmem:[#allocation2 + $0x28c] sm:$0xf]  ;;  %v12670_v63 = vld [vmem:[#allocation2 + $0x578] sm:$0xf0] }
 0xcc2   :  { %11209 = vmatpush.bf16.msrb.mxu2 %v12813_v22  ;;  %v12593_v22 = vor.u32 %v13279_v51, %v12590_v15  ;;  %v19203_v33 = vadd.f32 %v19195_v38, %v10982_v62  ;;  %v13307_v38 = vld [vmem:[#allocation2 + $0x5ac] sm:$0xf]  ;;  %v12673_v54 = vor.u32 %v13299_v3, %v12670_v63  ;;  %v12305_v15 = vor.u32 %v13207_v19, %v12302_v29  ;;  %v12654_v62 = vld [vmem:[#allocation2 + $0x558] sm:$0xf0] }
 0xcc3   :  { %11222 = vmatpush.bf16.msrb.mxu3 %v12941_v0  ;;  %v12718_v0 = vld [vmem:[#allocation2 + $0x5d8] sm:$0xf0]  ;;  %v12705_v17 = vor.u32 %v13307_v38, %v12702_v61  ;;  %v13195_v38 = vld [vmem:[#allocation2 + $0x22c] sm:$0xf] }
 0xcc4   :  { %v12721_v1 = vor.u32 %v13311_v41, %v12718_v0  ;;  %11253 = vmatmul.bf16.vlgmr.msrb.gmra.mxu1 %v19138_v12  ;;  %v12465_v12 = vor.u32 %v13247_v52, %v12462_v34  ;;  %v12414_v23 = vld [vmem:[#allocation2 + $0x378] sm:$0xf0]  ;;  %v13259_v0 = vld [vmem:[#allocation2 + $0x42c] sm:$0xf] }
 0xcc5   :  { %11297 = vmatpush.bf16.msra.mxu1 %v12737_v9  ;;  %11285 = vmatpush.bf16.msra.mxu0 %v12593_v22  ;;  %v12430_v9 = vld [vmem:[#allocation2 + $0x398] sm:$0xf0]  ;;  %v13295_v22 = vld [vmem:[#allocation2 + $0x54c] sm:$0xf]  ;;  %v12417_v45 = vor.u32 %v13235_v53, %v12414_v23  ;;  %v11046_v53 = vpop.f32.mrf.mxu1 }
 0xcc6   :  { %11210 = vmatpush.bf16.msrb.mxu2 %v12797_v31  ;;  %v13215_v31 = vld [vmem:[#allocation2 + $0x2cc] sm:$0xf]  ;;  %v12433_v14 = vor.u32 %v13239_v36, %v12430_v9  ;;  %v12657_v41 = vor.u32 %v13295_v22, %v12654_v62  ;;  %v12510_v5 = vld [vmem:[#allocation2 + $0x438] sm:$0xf0] }
 0xcc7   :  { %11223 = vmatpush.bf16.msrb.mxu3 %v12925_v27  ;;  %v10957_v27 = vpop.f32.mrf.mxu2  ;;  %v12513_v57 = vor.u32 %v13259_v0, %v12510_v5  ;;  %v13227_v6 = vld [vmem:[#allocation2 + $0x32c] sm:$0xf]  ;;  %v12366_v28 = vld [vmem:[#allocation2 + $0x318] sm:$0xf0] }
 0xcc8   :  { %v13191_v25 = vld [vmem:[#allocation2 + $0x20c] sm:$0xf]  ;;  %v12990_v29 = vld [vmem:[#allocation2 + $0x7f8] sm:$0xf0] }
 0xcc9   :  { %11298 = vmatpush.bf16.msra.mxu1 %v12721_v1  ;;  %11286 = vmatpush.bf16.msra.mxu0 %v12577_v39  ;;  %v13255_v39 = vld [vmem:[#allocation2 + $0x40c] sm:$0xf]  ;;  %v12830_v62 = vld [vmem:[#allocation2 + $0x6b8] sm:$0xf0] }
 0xcca   :  { %11211 = vmatpush.bf16.msrb.mxu2 %v12781_v56  ;;  %v12337_v56 = vor.u32 %v13215_v31, %v12334_v11  ;;  %v12638_v31 = vld [vmem:[#allocation2 + $0x538] sm:$0xf0]  ;;  %v13223_v32 = vld [vmem:[#allocation2 + $0x30c] sm:$0xf] }
 0xccb   :  { %11224 = vmatpush.bf16.msrb.mxu3 %v12909_v21  ;;  %v12446_v21 = vld [vmem:[#allocation2 + $0x3b8] sm:$0xf0]  ;;  %v13379_v19 = vld [vmem:[#allocation2 + $0x7ec] sm:$0xf]  ;;  %v12369_v36 = vor.u32 %v13223_v32, %v12366_v28 }
 0xccc   :  { %v12449_v37 = vor.u32 %v13243_v7, %v12446_v21  ;;  %v12398_v11 = vld [vmem:[#allocation2 + $0x358] sm:$0xf0]  ;;  %v12385_v21 = vor.u32 %v13227_v6, %v12382_v26  ;;  %v12993_v9 = vor.u32 %v13379_v19, %v12990_v29  ;;  %v13339_v22 = vld [vmem:[#allocation2 + $0x6ac] sm:$0xf] }
 0xccd   :  { %11299 = vmatpush.bf16.msra.mxu1 %v12705_v17  ;;  %11287 = vmatpush.bf16.msra.mxu0 %v12561_v2  ;;  %v12254_v17 = vld [vmem:[#allocation2 + $0x238] sm:$0xf0]  ;;  %v12833_v5 = vor.u32 %v13339_v22, %v12830_v62  ;;  %v13351_v29 = vld [vmem:[#allocation2 + $0x70c] sm:$0xf] }
 0xcce   :  { %11212 = vmatpush.bf16.msrb.mxu2 %v12765_v30  ;;  %v13263_v30 = vld [vmem:[#allocation2 + $0x44c] sm:$0xf]  ;;  %v12257_v42 = vor.u32 %v13195_v38, %v12254_v17  ;;  %v12958_v0 = vld [vmem:[#allocation2 + $0x7b8] sm:$0xf0] }
 0xccf   :  { %11225 = vmatpush.bf16.msrb.mxu3 %v12893_v18  ;;  %v12529_v51 = vor.u32 %v13263_v30, %v12526_v48  ;;  %v13203_v18 = vld [vmem:[#allocation2 + $0x26c] sm:$0xf]  ;;  %v12846_v30 = vld [vmem:[#allocation2 + $0x6d8] sm:$0xf0] }
 0xcd0   :  { %v12289_v1 = vor.u32 %v13203_v18, %v12286_v4  ;;  %v13375_v18 = vld [vmem:[#allocation2 + $0x7cc] sm:$0xf]  ;;  %v12974_v4 = vld [vmem:[#allocation2 + $0x7d8] sm:$0xf0] }
 0xcd1   :  { %11300 = vmatpush.bf16.msra.mxu1 %v12689_v58  ;;  %11288 = vmatpush.bf16.msra.mxu0 %v12545_v59  ;;  %v12238_v58 = vld [vmem:[#allocation2 + $0x218] sm:$0xf0] }
 0xcd2   :  { %11213 = vmatpush.bf16.msrb.mxu2 %v12749_v60  ;;  %v13199_v60 = vld [vmem:[#allocation2 + $0x24c] sm:$0xf]  ;;  %v12782_v38 = vld [vmem:[#allocation2 + $0x658] sm:$0xf0] }
 0xcd3   :  { %11226 = vmatpush.bf16.msrb.mxu3 %v12877_v40  ;;  %v13231_v40 = vld [vmem:[#allocation2 + $0x34c] sm:$0xf]  ;;  %v12273_v50 = vor.u32 %v13199_v60, %v12270_v44  ;;  %v12814_v60 = vld [vmem:[#allocation2 + $0x698] sm:$0xf0] }
 0xcd4   :  { %v12401_v34 = vor.u32 %v13231_v40, %v12398_v11  ;;  %v12942_v40 = vld [vmem:[#allocation2 + $0x798] sm:$0xf0] }
 0xcd5   :  { %11214 = vmatmul.bf16.vlgmr.msrb.gmra.mxu2 %v19171_v20  ;;  %11301 = vmatpush.bf16.msra.mxu1 %v12673_v54  ;;  %v13343_v54 = vld [vmem:[#allocation2 + $0x6cc] sm:$0xf]  ;;  %v12910_v17 = vld [vmem:[#allocation2 + $0x758] sm:$0xf0] }
 0xcd6   :  { %11258 = vmatpush.bf16.msra.mxu2 %v12353_v43  ;;  %11227 = vmatmul.bf16.vlgmr.msrb.gmra.mxu3 %v19176_v13  ;;  %v13291_v43 = vld [vmem:[#allocation2 + $0x52c] sm:$0xf]  ;;  %v12766_v6 = vld [vmem:[#allocation2 + $0x638] sm:$0xf0] }
 0xcd7   :  { %11271 = vmatpush.bf16.msra.mxu3 %v12481_v16  ;;  %11289 = vmatpush.bf16.msra.mxu0 %v12529_v51  ;;  %v12641_v27 = vor.u32 %v13291_v43, %v12638_v31  ;;  %v12494_v16 = vld [vmem:[#allocation2 + $0x418] sm:$0xf0]  ;;  %v9633_v51 = vperm.slane %v20295_v49, 1  ;;  %v11048_v31 = vpop.f32.mrf.mxu1 }
 0xcd8   :  { %v12497_v52 = vor.u32 %v13255_v39, %v12494_v16  ;;  %v11007_v61 = vpop.f32.mrf.mxu2  ;;  %v13363_v39 = vld [vmem:[#allocation2 + $0x76c] sm:$0xf]  ;;  %v12926_v16 = vld [vmem:[#allocation2 + $0x778] sm:$0xf0] }
 0xcd9   :  { %11302 = vmatpush.bf16.msra.mxu1 %v12657_v41  ;;  %v11008_v2 = vadd.f32 %v11007_v61, %v19203_v33  ;;  %v12862_v33 = vld [vmem:[#allocation2 + $0x6f8] sm:$0xf0]  ;;  %v13371_v41 = vld [vmem:[#allocation2 + $0x7ac] sm:$0xf] }
 0xcda   :  { %11259 = vmatpush.bf16.msra.mxu2 %v12337_v56  ;;  %v11020_v56 = vpop.f32.mrf.mxu3 }
 0xcdb   :  { %11272 = vmatpush.bf16.msra.mxu3 %v12465_v12  ;;  %11290 = vmatpush.bf16.msra.mxu0 %v12513_v57  ;;  %v12625_v12 = vor.u32 %v13287_v10, %v12622_v47  ;;  %v19209_v7 = vadd.f32 %v11020_v56, %v11008_v2  ;;  %v12961_v57 = vor.u32 %v13371_v41, %v12958_v0  ;;  %v13323_v56 = vld [vmem:[#allocation2 + $0x62c] sm:$0xf] }
 0xcdd   :  { %11303 = vmatpush.bf16.msra.mxu1 %v12641_v27  ;;  %v11336_v59 = vmax.f32 %v19209_v7, 0.0  ;;  %v13331_v27 = vld [vmem:[#allocation2 + $0x66c] sm:$0xf] }
 0xcde   :  { %11260 = vmatpush.bf16.msra.mxu2 %v12321_v35  ;;  %v13347_v35 = vld [vmem:[#allocation2 + $0x6ec] sm:$0xf] }
 0xcdf   :  { %11273 = vmatpush.bf16.msra.mxu3 %v12449_v37  ;;  %11291 = vmatpush.bf16.msra.mxu0 %v12497_v52  ;;  %v12241_v37 = vor.u32 %v13191_v25, %v12238_v58  ;;  %v12865_v3 = vor.u32 %v13347_v35, %v12862_v33  ;;  %v12929_v52 = vor.u32 %v13363_v39, %v12926_v16  ;;  %v11098_v47 = vpop.f32.mrf.mxu1  ;;  %v13319_v35 = vld [vmem:[#allocation2 + $0x60c] sm:$0xf]  ;;  %v12750_v33 = vld [vmem:[#allocation2 + $0x618] sm:$0xf0] }
 0xce0   :  { %v11009_v63 = vpop.f32.mrf.mxu2  ;;  %v12769_v58 = vor.u32 %v13323_v56, %v12766_v6 }
 0xce1   :  { %11304 = vmatpush.bf16.msra.mxu1 %v12625_v12  ;;  %v13355_v12 = vld [vmem:[#allocation2 + $0x72c] sm:$0xf] }
 0xce2   :  { %11261 = vmatpush.bf16.msra.mxu2 %v12305_v15  ;;  %11292 = vmatmul.bf16.vlgmr.msra.gmra.mxu0 %v19145_v55  ;;  %v11022_v48 = vpop.f32.mrf.mxu3  ;;  %v11033_v15 = vpop.f32.mrf.mxu0 }
 0xce3   :  { %11274 = vmatpush.bf16.msra.mxu3 %v12433_v14  ;;  %v11034_v55 = vadd.f32 %v11033_v15, %v9633_v51  ;;  %v12849_v14 = vor.u32 %v13343_v54, %v12846_v30  ;;  %v9634_v51 = vperm.slane %v20295_v49, 2 }
 0xce4   :  { %11305 = vmatmul.bf16.vlgmr.msra.gmra.mxu1 %v19150_v8  ;;  %v12977_v8 = vor.u32 %v13375_v18, %v12974_v4 }
 0xce5   :  { %v11047_v23 = vadd.f32 %v11046_v53, %v11034_v55 }
 0xce6   :  { %11262 = vmatpush.bf16.msra.mxu2 %v12289_v1  ;;  %v13335_v1 = vld [vmem:[#allocation2 + $0x68c] sm:$0xf] }
 0xce7   :  { %11275 = vmatpush.bf16.msra.mxu3 %v12417_v45  ;;  %v13367_v45 = vld [vmem:[#allocation2 + $0x78c] sm:$0xf]  ;;  %v12817_v43 = vor.u32 %v13335_v1, %v12814_v60 }
 0xce8   :  { %v12945_v11 = vor.u32 %v13367_v45, %v12942_v40 }
 0xcea   :  { %11263 = vmatpush.bf16.msra.mxu2 %v12273_v50  ;;  %v11035_v44 = vpop.f32.mrf.mxu0  ;;  %v13327_v50 = vld [vmem:[#allocation2 + $0x64c] sm:$0xf] }
 0xceb   :  { %11276 = vmatpush.bf16.msra.mxu3 %v12401_v34  ;;  %v13359_v34 = vld [vmem:[#allocation2 + $0x74c] sm:$0xf]  ;;  %v12785_v10 = vor.u32 %v13327_v50, %v12782_v38 }
 0xcec   :  { %v12913_v2 = vor.u32 %v13359_v34, %v12910_v17 }
 0xcee   :  { %11264 = vmatpush.bf16.msra.mxu2 %v12257_v42  ;;  %v12894_v42 = vld [vmem:[#allocation2 + $0x738] sm:$0xf0] }
 0xcef   :  { %11277 = vmatpush.bf16.msra.mxu3 %v12385_v21  ;;  %v12897_v28 = vor.u32 %v13355_v12, %v12894_v42 }
 0xcf2   :  { %11265 = vmatpush.bf16.msra.mxu2 %v12241_v37  ;;  %v11085_v61 = vpop.f32.mrf.mxu0  ;;  %v12878_v37 = vld [vmem:[#allocation2 + $0x718] sm:$0xf0] }
 0xcf3   :  { %11278 = vmatpush.bf16.msra.mxu3 %v12369_v36  ;;  %v12881_v54 = vor.u32 %v13351_v29, %v12878_v37 }
 0xcf5   :  { %11266 = vmatmul.bf16.vlgmr.msra.gmra.mxu2 %v19157_v46  ;;  %v12798_v46 = vld [vmem:[#allocation2 + $0x678] sm:$0xf0] }
 0xcf6   :  { %11310 = vmatpush.bf16.msrb.mxu2 %v12865_v3  ;;  %11279 = vmatmul.bf16.vlgmr.msra.gmra.mxu3 %v19162_v24  ;;  %v12801_v24 = vor.u32 %v13331_v27, %v12798_v46  ;;  %v12753_v3 = vor.u32 %v13319_v35, %v12750_v33  ;;  %v9635_v46 = vperm.slane %v20295_v49, 3 }
 0xcf7   :  { %11323 = vmatpush.bf16.msrb.mxu3 %v12993_v9  ;;  %v11100_v9 = vpop.f32.mrf.mxu1 }
 0xcf8   :  { %v11059_v26 = vpop.f32.mrf.mxu2 }
 0xcf9   :  { %v11060_v25 = vadd.f32 %v11059_v26, %v11047_v23  ;;  %v11072_v21 = vpop.f32.mrf.mxu3 }
 0xcfa   :  { %11311 = vmatpush.bf16.msrb.mxu2 %v12849_v14  ;;  %v11087_v19 = vpop.f32.mrf.mxu0 }
 0xcfb   :  { %11324 = vmatpush.bf16.msrb.mxu3 %v12977_v8  ;;  %v11073_v32 = vadd.f32 %v11072_v21, %v11060_v25 }
 0xcfd   :  { %v11086_v36 = vadd.f32 %v11085_v61, %v11073_v32 }
 0xcfe   :  { %11312 = vmatpush.bf16.msrb.mxu2 %v12833_v5 }
 0xcff   :  { %11325 = vmatpush.bf16.msrb.mxu3 %v12961_v57  ;;  %v11099_v63 = vadd.f32 %v11098_v47, %v11086_v36  ;;  %v11150_v4 = vpop.f32.mrf.mxu1 }
 0xd00   :  { %v11061_v30 = vpop.f32.mrf.mxu2 }
 0xd01   :  { %v11074_v48 = vpop.f32.mrf.mxu3 }
 0xd02   :  { %11313 = vmatpush.bf16.msrb.mxu2 %v12817_v43  ;;  %v11137_v15 = vpop.f32.mrf.mxu0 }
 0xd03   :  { %11326 = vmatpush.bf16.msrb.mxu3 %v12945_v11  ;;  %v11138_v18 = vadd.f32 %v11137_v15, %v9634_v51 }
 0xd05   :  { %v11151_v55 = vadd.f32 %v11150_v4, %v11138_v18 }
 0xd06   :  { %11314 = vmatpush.bf16.msrb.mxu2 %v12801_v24 }
 0xd07   :  { %11327 = vmatpush.bf16.msrb.mxu3 %v12929_v52  ;;  %v11152_v53 = vpop.f32.mrf.mxu1 }
 0xd0a   :  { %11315 = vmatpush.bf16.msrb.mxu2 %v12785_v10  ;;  %v11139_v14 = vpop.f32.mrf.mxu0 }
 0xd0b   :  { %11328 = vmatpush.bf16.msrb.mxu3 %v12913_v2 }
 0xd0e   :  { %11316 = vmatpush.bf16.msrb.mxu2 %v12769_v58 }
 0xd0f   :  { %11329 = vmatpush.bf16.msrb.mxu3 %v12897_v28 }
 0xd12   :  { %11317 = vmatpush.bf16.msrb.mxu2 %v12753_v3 }
 0xd13   :  { %11330 = vmatpush.bf16.msrb.mxu3 %v12881_v54 }
 0xd15   :  { %11318 = vmatmul.bf16.vlgmr.msrb.gmra.mxu2 %v19171_v20 }
 0xd16   :  { %11331 = vmatmul.bf16.vlgmr.msrb.gmra.mxu3 %v19176_v13 }
 0xd18   :  { %v11111_v8 = vpop.f32.mrf.mxu2 }
 0xd19   :  { %v11112_v22 = vadd.f32 %v11111_v8, %v11099_v63  ;;  %v11124_v62 = vpop.f32.mrf.mxu3 }
 0xd1b   :  { %v19220_v23 = vadd.f32 %v11124_v62, %v11112_v22 }
 0xd1d   :  { %v11337_v41 = vmax.f32 %v19220_v23, 0.0  ;;  %v11189_v57 = vpop.f32.mrf.mxu0 }
 0xd1f   :  { %v11202_v1 = vpop.f32.mrf.mxu1 }
 0xd20   :  { %v11113_v0 = vpop.f32.mrf.mxu2 }
 0xd21   :  { %v11126_v5 = vpop.f32.mrf.mxu3 }
 0xd25   :  { %v11191_v20 = vpop.f32.mrf.mxu0 }
 0xd27   :  { %v11204_v60 = vpop.f32.mrf.mxu1 }
 0xd38   :  { %v11163_v44 = vpop.f32.mrf.mxu2 }
 0xd39   :  { %v11164_v13 = vadd.f32 %v11163_v44, %v11151_v55  ;;  %v11176_v45 = vpop.f32.mrf.mxu3 }
 0xd3b   :  { %v11177_v40 = vadd.f32 %v11176_v45, %v11164_v13 }
 0xd3d   :  { %v11190_v43 = vadd.f32 %v11189_v57, %v11177_v40  ;;  %v11241_v39 = vpop.f32.mrf.mxu0 }
 0xd3e   :  { %v11242_v16 = vadd.f32 %v11241_v39, %v9635_v46 }
 0xd3f   :  { %v11203_v31 = vadd.f32 %v11202_v1, %v11190_v43 }
 0xd40   :  { %v11165_v11 = vpop.f32.mrf.mxu2 }
 0xd41   :  { %v11178_v27 = vpop.f32.mrf.mxu3  ;;  %v11254_v24 = vpop.f32.mrf.mxu1 }
 0xd42   :  { %v11255_v52 = vadd.f32 %v11254_v24, %v11242_v16 }
 0xd45   :  { %v11243_v50 = vpop.f32.mrf.mxu0 }
 0xd49   :  { %v11256_v38 = vpop.f32.mrf.mxu1 }
 0xd58   :  { %v11215_v61 = vpop.f32.mrf.mxu2 }
 0xd59   :  { %v11216_v34 = vadd.f32 %v11215_v61, %v11203_v31  ;;  %v11228_v17 = vpop.f32.mrf.mxu3 }
 0xd5b   :  { %v19224_v10 = vadd.f32 %v11228_v17, %v11216_v34 }
 0xd5d   :  { %v11338_v47 = vmax.f32 %v19224_v10, 0.0 }
 0xd5f   :  { %v11293_v6 = vpop.f32.mrf.mxu0 }
 0xd60   :  { %v11217_v2 = vpop.f32.mrf.mxu2 }
 0xd61   :  { %v11230_v56 = vpop.f32.mrf.mxu3  ;;  %v11306_v26 = vpop.f32.mrf.mxu1 }
 0xd67   :  { %v11295_v12 = vpop.f32.mrf.mxu0 }
 0xd69   :  { %v11308_v42 = vpop.f32.mrf.mxu1 }
 0xd78   :  { %v11267_v49 = vpop.f32.mrf.mxu2 }
 0xd79   :  { %v11280_v25 = vpop.f32.mrf.mxu3  ;;  %v11268_v32 = vadd.f32 %v11267_v49, %v11255_v52 }
 0xd7b   :  { %v11281_v28 = vadd.f32 %v11280_v25, %v11268_v32 }
 0xd7d   :  { %v11294_v35 = vadd.f32 %v11293_v6, %v11281_v28 }
 0xd7f   :  { %v11307_v33 = vadd.f32 %v11306_v26, %v11294_v35 }
 0xd80   :  { %v11269_v21 = vpop.f32.mrf.mxu2 }
 0xd81   :  { %v11282_v58 = vpop.f32.mrf.mxu3 }
 0xd98   :  { %v11319_v19 = vpop.f32.mrf.mxu2 }
 0xd99   :  { %v11320_v29 = vadd.f32 %v11319_v19, %v11307_v33  ;;  %v11332_v37 = vpop.f32.mrf.mxu3 }
 0xd9b   :  { %v19227_v36 = vadd.f32 %v11332_v37, %v11320_v29 }
 0xd9d   :  { %v11339_v3 = vmax.f32 %v19227_v36, 0.0 }
 0xda0   :  { %v11321_v63 = vpop.f32.mrf.mxu2 }
 0xda1   :  { %v11334_v9 = vpop.f32.mrf.mxu3 }
 0xda2   :  { %13428 = dma.done.wait [#allocation4 + $0x1], 4096 }
 0xda3   :  { %13429 = vsyncadd [#allocation4 + $0x1], 4294963200  ;;  %v13389_v54 = vld [vmem:[#allocation3 + $0x48] sm:$0xff]  ;;  %v13397_v30 = vld [vmem:[#allocation3 + $0x78] sm:$0xff]  ;;  %v11344_v50 = vpack.c.bf16 %v11336_v59, %v11336_v59  ;;  %v11345_v38 = vpack.c.bf16 %v11337_v41, %v11337_v41  ;;  %v11346_v61 = vpack.c.bf16 %v11338_v47, %v11338_v47  ;;  %v11347_v34 = vpack.c.bf16 %v11339_v3, %v11339_v3 }
 0xda4   :  { %v13405_v48 = vld [vmem:[#allocation3 + $0xc0] sm:$0xff]  ;;  %v13413_v51 = vld [vmem:[#allocation3 + $0x98] sm:$0xff]  ;;  %11604 = vmatpush.bf16.msrb.mxu0 %v13389_v54  ;;  %11617 = vmatpush.bf16.msrb.mxu1 %v13397_v30  ;;  %v13388_v15 = vld [vmem:[#allocation3 + $0x30] sm:$0xff]  ;;  %vm11683_vm6 = vcmask 523264  }
 0xda5   :  { %v13396_v18 = vld [vmem:[#allocation3 + $0x8] sm:$0xff]  ;;  %11630 = vmatpush.bf16.msra.mxu2 %v13405_v48  ;;  %11643 = vmatpush.bf16.msra.mxu3 %v13413_v51  ;;  %v13404_v4 = vld [vmem:[#allocation3 + $0x70] sm:$0xff]  ;;  %v13412_v55 = vld [vmem:[#allocation3 + $0x20] sm:$0xff] }
 0xda6   :  { %v13387_v14 = vld [vmem:[#allocation3 + $0x68] sm:$0xff]  ;;  %v13395_v53 = vld [vmem:[#allocation3 + $0xf0] sm:$0xff]  ;;  %v13411_v22 = vld [vmem:[#allocation3 + $0xf8] sm:$0xff] }
 0xda7   :  { %v13403_v8 = vld [vmem:[#allocation3 + $0x90] sm:$0xff]  ;;  %v13394_v0 = vld [vmem:[#allocation3 + $0x60] sm:$0xff]  ;;  %v13385_v1 = vld [vmem:[#allocation3 + $0x18] sm:$0xff] }
 0xda8   :  { %11605 = vmatpush.bf16.msrb.mxu0 %v13388_v15  ;;  %11618 = vmatpush.bf16.msrb.mxu1 %v13396_v18  ;;  %v13386_v62 = vld [vmem:[#allocation3 + $0x50] sm:$0xff]  ;;  %v13402_v5 = vld [vmem:[#allocation3 + $0xe0] sm:$0xff]  ;;  %v13393_v20 = vld [vmem:[#allocation3 + $0xb8] sm:$0xff] }
 0xda9   :  { %11631 = vmatpush.bf16.msra.mxu2 %v13404_v4  ;;  %11644 = vmatpush.bf16.msra.mxu3 %v13412_v55  ;;  %v13410_v57 = vld [vmem:[#allocation3 + $0xa0] sm:$0xff]  ;;  %v13401_v60 = vld [vmem:[#allocation3 + $0xc8] sm:$0xff]  ;;  %v13384_v13 = vld [vmem:[#allocation3 + $0xd8] sm:$0xff] }
 0xdaa   :  { %v13409_v44 = vld [vmem:[#allocation3 + $0x28] sm:$0xff]  ;;  %v13400_v40 = vld [vmem:[#allocation3 + $0x40] sm:$0xff]  ;;  %v13408_v43 = vld [vmem:[#allocation3 + $0x10] sm:$0xff] }
 0xdab   :  { %v13392_v45 = vld [vmem:[#allocation3 + $0xe8] sm:$0xff]  ;;  %v13383_v31 = vld [vmem:[#allocation3] sm:$0xff]  ;;  %v13399_v27 = vld [vmem:[#allocation3 + $0x58] sm:$0xff] }
 0xdac   :  { %11606 = vmatpush.bf16.msrb.mxu0 %v13387_v14  ;;  %11619 = vmatpush.bf16.msrb.mxu1 %v13395_v53  ;;  %v13391_v11 = vld [vmem:[#allocation3 + $0x88] sm:$0xff]  ;;  %v13407_v46 = vld [vmem:[#allocation3 + $0xd0] sm:$0xff]  ;;  %v13390_v16 = vld [vmem:[#allocation3 + $0x80] sm:$0xff] }
 0xdad   :  { %11632 = vmatpush.bf16.msra.mxu2 %v13403_v8  ;;  %11645 = vmatpush.bf16.msra.mxu3 %v13411_v22  ;;  %v13382_v39 = vld [vmem:[#allocation3 + $0xb0] sm:$0xff]  ;;  %v13398_v24 = vld [vmem:[#allocation3 + $0x38] sm:$0xff]  ;;  %v13406_v52 = vld [vmem:[#allocation3 + $0xa8] sm:$0xff] }
 0xdae   :  { %v11682_v7 = vld [vmem:[%s19329_s7 + $0x38] sm:$0xff]  ;;  %v11681_v23 = vld [vmem:[%s19329_s7 + $0x30] sm:$0xff]  ;;  %v11680_v10 = vld [vmem:[%s19329_s7 + $0x28] sm:$0xff] }
 0xdaf   :  { %v19245_v59 = vand.u32 4294901760, %v11682_v7  ;;  %v19253_v17 = vand.u32 4294901760, %v11681_v23  ;;  %v19264_v56 = vand.u32 4294901760, %v11680_v10  ;;  %v11679_v6 = vld [vmem:[%s19329_s7 + $0x20] sm:$0xff]  ;;  %v11678_v25 = vld [vmem:[%s19329_s7 + $0x18] sm:$0xff]  ;;  %v11677_v33 = vld [vmem:[%s19329_s7 + $0x10] sm:$0xff] }
 0xdb0   :  { %11607 = vmatpush.bf16.msrb.mxu0 %v13386_v62  ;;  %11620 = vmatpush.bf16.msrb.mxu1 %v13394_v0  ;;  %v19277_v49 = vand.u32 4294901760, %v11679_v6  ;;  %v19290_v35 = vand.u32 4294901760, %v11678_v25  ;;  %v19297_v36 = vand.u32 4294901760, %v11677_v33  ;;  %v11676_v63 = vld [vmem:[%s19329_s7 + $0x8] sm:$0xff]  ;;  %v11675_v15 = vld [vmem:[%s19329_s7] sm:$0xff] }
 0xdb1   :  { %11633 = vmatpush.bf16.msra.mxu2 %v13402_v5  ;;  %11646 = vmatpush.bf16.msra.mxu3 %v13410_v57  ;;  %v19251_v41 = vsub.f32 %v11682_v7, %v19245_v59  ;;  %v19262_v2 = vsub.f32 %v11681_v23, %v19253_v17  ;;  %v19275_v42 = vsub.f32 %v11680_v10, %v19264_v56  ;;  %v11707_v48 = vand.u32 4294901760, %v11676_v63 }
 0xdb2   :  { %v11747_v28 = vsub.f32 %v11679_v6, %v19277_v49  ;;  %v11753_v3 = vsub.f32 %v11678_v25, %v19290_v35  ;;  %v11759_v30 = vsub.f32 %v11677_v33, %v19297_v36  ;;  %v11709_v14 = vand.u32 4294901760, %v11675_v15 }
 0xdb3   :  { %v11730_v47 = vand.u32 4294901760, %v19251_v41  ;;  %v11736_v12 = vand.u32 4294901760, %v19262_v2  ;;  %v11742_v32 = vand.u32 4294901760, %v19275_v42  ;;  %v11765_v55 = vsub.f32 %v11676_v63, %v11707_v48 }
 0xdb4   :  { %11608 = vmatpush.bf16.msrb.mxu0 %v13385_v1  ;;  %11621 = vmatpush.bf16.msrb.mxu1 %v13393_v20  ;;  %v11748_v37 = vand.u32 4294901760, %v11747_v28  ;;  %v11754_v51 = vand.u32 4294901760, %v11753_v3  ;;  %v11760_v4 = vand.u32 4294901760, %v11759_v30  ;;  %v11771_v62 = vsub.f32 %v11675_v15, %v11709_v14 }
 0xdb5   :  { %11634 = vmatpush.bf16.msra.mxu2 %v13401_v60  ;;  %11647 = vmatpush.bf16.msra.mxu3 %v13409_v44  ;;  %v11731_v26 = vsub.f32 %v19251_v41, %v11730_v47  ;;  %v11737_v58 = vsub.f32 %v19262_v2, %v11736_v12  ;;  %v11743_v29 = vsub.f32 %v19275_v42, %v11742_v32  ;;  %v11766_v22 = vand.u32 4294901760, %v11765_v55 }
 0xdb6   :  { %v11749_v54 = vsub.f32 %v11747_v28, %v11748_v37  ;;  %v11755_v53 = vsub.f32 %v11753_v3, %v11754_v51  ;;  %v11761_v8 = vsub.f32 %v11759_v30, %v11760_v4  ;;  %v11772_v1 = vand.u32 4294901760, %v11771_v62 }
 0xdb7   :  { %v11732_v21 = vand.u32 4294901760, %v11731_v26  ;;  %v11738_v19 = vand.u32 4294901760, %v11737_v58  ;;  %v11744_v9 = vand.u32 4294901760, %v11743_v29  ;;  %v11767_v57 = vsub.f32 %v11765_v55, %v11766_v22 }
 0xdb8   :  { %11609 = vmatpush.bf16.msrb.mxu0 %v13384_v13  ;;  %11622 = vmatpush.bf16.msrb.mxu1 %v13392_v45  ;;  %v11750_v18 = vand.u32 4294901760, %v11749_v54  ;;  %v11756_v0 = vand.u32 4294901760, %v11755_v53  ;;  %v11762_v5 = vand.u32 4294901760, %v11761_v8  ;;  %v11773_v60 = vsub.f32 %v11771_v62, %v11772_v1  ;;  %v20296_v45 = vld [vmem:[#allocation10_spill] sm:$0xff] }
 0xdb9   :  { %11635 = vmatpush.bf16.msra.mxu2 %v13400_v40  ;;  %11648 = vmatpush.bf16.msra.mxu3 %v13408_v43  ;;  %v11768_v20 = vand.u32 4294901760, %v11767_v57 }
 0xdba   :  { %v11774_v43 = vand.u32 4294901760, %v11773_v60 }
 0xdbc   :  { %11610 = vmatpush.bf16.msrb.mxu0 %v13383_v31  ;;  %11623 = vmatpush.bf16.msrb.mxu1 %v13391_v11 }
 0xdbd   :  { %11636 = vmatpush.bf16.msra.mxu2 %v13399_v27  ;;  %11649 = vmatpush.bf16.msra.mxu3 %v13407_v46 }
 0xdc0   :  { %11611 = vmatpush.bf16.msrb.mxu0 %v13382_v39  ;;  %11624 = vmatpush.bf16.msrb.mxu1 %v13390_v16 }
 0xdc1   :  { %11637 = vmatpush.bf16.msra.mxu2 %v13398_v24  ;;  %11650 = vmatpush.bf16.msra.mxu3 %v13406_v52 }
 0xdc3   :  { %11612 = vmatmul.bf16.vlgmr.msrb.gmra.mxu0 %v11344_v50  ;;  %11625 = vmatmul.bf16.vlgmr.msrb.gmra.mxu1 %v11345_v38 }
 0xdc4   :  { %11638 = vmatmul.bf16.vlgmr.msra.gmra.mxu2 %v11346_v61  ;;  %11651 = vmatmul.bf16.vlgmr.msra.gmra.mxu3 %v11347_v34 }
 0xdc5   :  { %11696 = vmatpush.msra.mxu0 %v19245_v59  ;;  %11828 = vmatpush.msrb.mxu3 %v19245_v59 }
 0xdc6   :  { %11791 = vmatpush.msrb.mxu2 %v19251_v41  ;;  %11733 = vmatpush.msra.mxu1 %v11732_v21 }
 0xdc7   :  { %11698 = vmatpush.msra.mxu0 %v19253_v17  ;;  %11830 = vmatpush.msrb.mxu3 %v19253_v17 }
 0xdc8   :  { %11794 = vmatpush.msrb.mxu2 %v19262_v2  ;;  %11739 = vmatpush.msra.mxu1 %v11738_v19 }
 0xdc9   :  { %11700 = vmatpush.msra.mxu0 %v19264_v56  ;;  %11832 = vmatpush.msrb.mxu3 %v19264_v56 }
 0xdca   :  { %11797 = vmatpush.msrb.mxu2 %v19275_v42  ;;  %11745 = vmatpush.msra.mxu1 %v11744_v9 }
 0xdcb   :  { %11702 = vmatpush.msra.mxu0 %v19277_v49  ;;  %11834 = vmatpush.msrb.mxu3 %v19277_v49 }
 0xdcc   :  { %11800 = vmatpush.msrb.mxu2 %v11747_v28  ;;  %11751 = vmatpush.msra.mxu1 %v11750_v18  ;;  %v20297_v28 = vld [vmem:[#allocation11_spill] sm:$0xff] }
 0xdcd   :  { %11704 = vmatpush.msra.mxu0 %v19290_v35  ;;  %11836 = vmatpush.msrb.mxu3 %v19290_v35 }
 0xdce   :  { %11803 = vmatpush.msrb.mxu2 %v11753_v3  ;;  %11757 = vmatpush.msra.mxu1 %v11756_v0 }
 0xdcf   :  { %11706 = vmatpush.msra.mxu0 %v19297_v36  ;;  %11838 = vmatpush.msrb.mxu3 %v19297_v36 }
 0xdd0   :  { %11806 = vmatpush.msrb.mxu2 %v11759_v30  ;;  %11763 = vmatpush.msra.mxu1 %v11762_v5 }
 0xdd1   :  { %11708 = vmatpush.msra.mxu0 %v11707_v48  ;;  %11840 = vmatpush.msrb.mxu3 %v11707_v48 }
 0xdd2   :  { %11809 = vmatpush.msrb.mxu2 %v11765_v55  ;;  %11769 = vmatpush.msra.mxu1 %v11768_v20 }
 0xdd3   :  { %11710 = vmatpush.msra.mxu0 %v11709_v14  ;;  %11842 = vmatpush.msrb.mxu3 %v11709_v14 }
 0xdd4   :  { %11812 = vmatpush.msrb.mxu2 %v11771_v62  ;;  %11775 = vmatpush.msra.mxu1 %v11774_v43 }
 0xdd5   :  { %11861 = vmatpush.msrb.mxu0 %v11730_v47 }
 0xdd6   :  { %11904 = vmatpush.msrb.mxu1 %v19245_v59 }
 0xdd7   :  { %11865 = vmatpush.msrb.mxu0 %v11736_v12 }
 0xdd8   :  { %11906 = vmatpush.msrb.mxu1 %v19253_v17 }
 0xdd9   :  { %11869 = vmatpush.msrb.mxu0 %v11742_v32 }
 0xdda   :  { %11908 = vmatpush.msrb.mxu1 %v19264_v56 }
 0xddb   :  { %11873 = vmatpush.msrb.mxu0 %v11748_v37 }
 0xddc   :  { %11910 = vmatpush.msrb.mxu1 %v19277_v49 }
 0xddd   :  { %11877 = vmatpush.msrb.mxu0 %v11754_v51 }
 0xdde   :  { %11912 = vmatpush.msrb.mxu1 %v19290_v35 }
 0xddf   :  { %11881 = vmatpush.msrb.mxu0 %v11760_v4 }
 0xde0   :  { %11914 = vmatpush.msrb.mxu1 %v19297_v36 }
 0xde1   :  { %11885 = vmatpush.msrb.mxu0 %v11766_v22 }
 0xde2   :  { %11916 = vmatpush.msrb.mxu1 %v11707_v48 }
 0xde3   :  { %11889 = vmatpush.msrb.mxu0 %v11772_v1 }
 0xde4   :  { %11918 = vmatpush.msrb.mxu1 %v11709_v14 }
 0xe40   :  { %v11613_v44 = vpop.f32.mrf.mxu0  ;;  %v11626_v13 = vpop.f32.mrf.mxu1 }
 0xe41   :  { %v11614_v40 = vadd.f32 %v11613_v44, %v20296_v45 }
 0xe43   :  { %v11627_v31 = vadd.f32 %v11626_v13, %v11614_v40 }
 0xe47   :  { %v11639_v11 = vpop.f32.mrf.mxu2  ;;  %v11652_v27 = vpop.f32.mrf.mxu3 }
 0xe48   :  { %v11640_v46 = vadd.f32 %v11639_v11, %v11627_v31  ;;  %v11615_v39 = vpop.f32.mrf.mxu0  ;;  %v11628_v16 = vpop.f32.mrf.mxu1 }
 0xe4a   :  { %v11653_v24 = vadd.f32 %v11652_v27, %v11640_v46 }
 0xe4c   :  { %v13122_v52 = vmul.f32 -1.442695, %v11653_v24 }
 0xe4e   :  { %13418 = vpow2.f32 %v13122_v52 }
 0xe4f   :  { %v11641_v50 = vpop.f32.mrf.mxu2  ;;  %v11654_v38 = vpop.f32.mrf.mxu3 }
 0xe54   :  { %v13419_v61 = vpop.eup %13418 }
 0xe55   :  { %v11659_v34 = vadd.f32 1.0, %v13419_v61 }
 0xe57   :  { %13420 = vrcp.f32 %v11659_v34  ;;  %v11671_v41 = vand.u32 2147483648, %v11659_v34  ;;  %v11669_v10 = vand.u32 2147483647, %v11659_v34  ;;  %vm11665_vm4 = vweird.f32 %v11659_v34 }
 0xe59   :  { %v11672_v2 = vor.u32 1.1754944e-38, %v11671_v41  ;;  %vm11670_vm7 = vcmp.eq.f32.partialorder %v11669_v10, 8.507059e+37 }
 0xe5d   :  { %v13421_v7 = vpop.eup %13420 }
 0xe5e   :  { %v11661_v59 = vmul.f32 %v13421_v7, %v11659_v34  ;;  %vm11666_vm3 = vweird.f32 %v13421_v7 }
 0xe5f   :  { %vm11667_vm5 = vmor %vm11665_vm4, %vm11666_vm3 }
 0xe60   :  { %v11662_v23 = vsub.f32 1.0, %v11661_v59 }
 0xe62   :  { %v11663_v17 = vmul.f32 %v13421_v7, %v11662_v23 }
 0xe64   :  { %v11664_v47 = vadd.f32 %v13421_v7, %v11663_v17 }
 0xe66   :  { %v11668_v56 = vsel %vm11667_vm5, %v13421_v7, %v11664_v47 }
 0xe67   :  { %v11673_v6 = vsel %vm11670_vm7, %v11672_v2, %v11668_v56 }
 0xe68   :  { %v11685_v26 = vsel %vm11683_vm6, %v11673_v6, 0 }
 0xe69   :  { %v11711_v12 = vand.u32 4294901760, %v11685_v26 }
 0xe6b   :  { %11777 = vmatmul.f32.vlgmr.msra.gmra.mxu1 %v11711_v12  ;;  %v11712_v42 = vsub.f32 %v11685_v26, %v11711_v12 }
 0xe6d   :  { %11815 = vmatmul.f32.vlgmr.msrb.gmra.mxu2 %v11712_v42  ;;  %v11713_v49 = vand.u32 4294901760, %v11712_v42 }
 0xe6f   :  { %11846 = vmatmul.f32.vlgmr.msrb.gmra.mxu3 %v11713_v49  ;;  %v11714_v25 = vsub.f32 %v11712_v42, %v11713_v49 }
 0xe71   :  { %v11715_v21 = vand.u32 4294901760, %v11714_v25 }
 0xe73   :  { %11716 = vmatmul.f32.vlgmr.msra.gmra.mxu0 %v11715_v21  ;;  %11920 = vmatmul.f32.vlgmr.msrb.gmra.mxu1 %v11711_v12 }
 0xe7b   :  { %11891 = vmatmul.f32.vlgmr.msrb.gmra.mxu0 %v11711_v12 }
 0xee8   :  { %v11778_v58 = vpop.f32.mrf.mxu1 }
 0xef0   :  { %v11717_v32 = vpop.f32.mrf.mxu0  ;;  %v11816_v19 = vpop.f32.mrf.mxu2 }
 0xef1   :  { %v11718_v35 = vadd.f32 %v11717_v32, %v20297_v28  ;;  %v11921_v9 = vpop.f32.mrf.mxu1 }
 0xef2   :  { %v11847_v37 = vpop.f32.mrf.mxu3 }
 0xef3   :  { %v11779_v33 = vadd.f32 %v11778_v58, %v11718_v35 }
 0xef5   :  { %v11817_v29 = vadd.f32 %v11816_v19, %v11779_v33 }
 0xef7   :  { %v11848_v36 = vadd.f32 %v11847_v37, %v11817_v29 }
 0xef8   :  { %v11892_v3 = vpop.f32.mrf.mxu0 }
 0xef9   :  { %v11893_v63 = vadd.f32 %v11892_v3, %v11848_v36 }
 0xefb   :  { %v11922_v54 = vadd.f32 %v11921_v9, %v11893_v63 }
 0xefd   :  { %v13123_v30 = vmul.f32 -1.442695, %v11922_v54 }
 0xeff   :  { %13422 = vpow2.f32 %v13123_v30 }
 0xf05   :  { %v13423_v48 = vpop.eup %13422 }
 0xf06   :  { %v11927_v51 = vadd.f32 1.0, %v13423_v48 }
 0xf08   :  { %13424 = vrcp.f32 %v11927_v51  ;;  %v11939_v55 = vand.u32 2147483648, %v11927_v51  ;;  %v11937_v53 = vand.u32 2147483647, %v11927_v51  ;;  %vm11933_vm9 = vweird.f32 %v11927_v51 }
 0xf0a   :  { %v11940_v22 = vor.u32 1.1754944e-38, %v11939_v55  ;;  %vm11938_vm11 = vcmp.eq.f32.partialorder %v11937_v53, 8.507059e+37 }
 0xf0e   :  { %v13425_v15 = vpop.eup %13424 }
 0xf0f   :  { %v11929_v18 = vmul.f32 %v13425_v15, %v11927_v51  ;;  %vm11934_vm8 = vweird.f32 %v13425_v15 }
 0xf10   :  { %vm11935_vm10 = vmor %vm11933_vm9, %vm11934_vm8 }
 0xf11   :  { %v11930_v4 = vsub.f32 1.0, %v11929_v18 }
 0xf13   :  { %v11931_v14 = vmul.f32 %v13425_v15, %v11930_v4 }
 0xf15   :  { %v11932_v8 = vadd.f32 %v13425_v15, %v11931_v14 }
 0xf17   :  { %v11936_v62 = vsel %vm11935_vm10, %v13425_v15, %v11932_v8 }
 0xf18   :  { %v11941_v0 = vsel %vm11938_vm11, %v11940_v22, %v11936_v62 }
 0xf19   :  { %11943 = vst [vmem:[%s19330_s8] sm:$0x3] %v11941_v0 }
 0xf1a   :  { %11948 = vsyncmov [#allocation4] }
 0xf1d   :  { %s11949_s17 = vpop.sfrf %11948 }
 0xf1e   :  { %p13124_p0 = scmp.ne.s32.totalorder %s11949_s17, 0 }
 0xf20   :  { %11953 = shalt.err (%p13124_p0)  }
 0xf21   :  { %11955 = vsyncmov [#allocation4 + $0x1] }
 0xf24   :  { %s11956_s18 = vpop.sfrf %11955 }
 0xf25   :  { %p13125_p1 = scmp.ne.s32.totalorder %s11956_s18, 0 }
 0xf27   :  { %11960 = shalt.err (%p13125_p1)  }

</bundles_post_ra>
